<compile_context>
chip_gen: v5e
topology: v5e:2x2
jax: 0.10.0
libtpu: 0.0.40
codegen_flags: <defaults>
</compile_context>

<pallas_src>
import jax
import jax.numpy as jnp
from jax import lax
from jax.experimental import pallas as pl
from jax.experimental.pallas import tpu as pltpu

C_PAD = 128                    # lane-dense channel padding for kernel outputs
BATCH_TILE = 16                # images per conv grid step (multiple of 16)
VMEM_LIMIT = 32 * 1024 * 1024  # explicit scoped-VMEM budget (also raises v5e default)


def _round_up(a, b):
    return -(-a // b) * b


# ----------------------------- Pallas kernels ------------------------------

def _conv_relu_pool_kernel(cols_ref, w_ref, b_ref, o_ref):
    """Fused conv (matmul on im2col rows) + bias + ReLU + 2x2 max-pool.

    cols_ref : (4, M, K) bf16  im2col rows, one slab per pool phase,
                               M = B_TILE * pooled_pixels
    w_ref    : (K, 128)  bf16  conv weights, out-channels zero-padded to 128
    b_ref    : (1, 128)  f32   bias (zero-padded)
    o_ref    : (M, 128)  bf16  pooled activations (lane-dense)
    """
    w = w_ref[...]
    # Running max over the 4 pool phases on the raw f32 matmul results.
    y = jnp.dot(cols_ref[0], w, preferred_element_type=jnp.float32)
    for i in (1, 2, 3):
        y = jnp.maximum(
            y, jnp.dot(cols_ref[i], w, preferred_element_type=jnp.float32))
    # Single bias + ReLU epilogue (hoisted; f32 math is v5e-safe), bf16 store.
    y = jnp.maximum(y + b_ref[...], 0.0)
    o_ref[...] = y.astype(o_ref.dtype)


def _fc_kernel(x_ref, w1_ref, b1_ref, w2_ref, b2_ref, w3_ref, b3_ref, o_ref):
    """fc1 -> fc2 -> fc3 (the module has no nonlinearity between them)."""
    h = jnp.dot(x_ref[...], w1_ref[...],
                preferred_element_type=jnp.float32) + b1_ref[...]
    h = jnp.dot(h.astype(jnp.bfloat16), w2_ref[...],
                preferred_element_type=jnp.float32) + b2_ref[...]
    o_ref[...] = jnp.dot(h.astype(jnp.bfloat16), w3_ref[...],
                         preferred_element_type=jnp.float32) + b3_ref[...]


# ------------------------------ Pallas wrappers ----------------------------

def _pooled_im2col(x, kh, kw):
    """NHWC x -> ((4, N*pho*pwo, kh*kw*C) bf16, (pho, pwo)).

    The im2col rows are pre-split into the four 2x2 max-pool phases (di, dj);
    patch columns are ordered (ki, kj, c) to match the prepared conv weights;
    rows are ordered (image, pooled pixel)."""
    n, h, w, c = x.shape
    ho, wo = h - kh + 1, w - kw + 1
    pho, pwo = ho // 2, wo // 2
    phases = []
    for di in (0, 1):
        for dj in (0, 1):
            pats = []
            for ki in range(kh):
                for kj in range(kw):
                    pats.append(x[:, di + ki: di + ki + 2 * pho - 1: 2,
                                     dj + kj: dj + kj + 2 * pwo - 1: 2, :])
            p = jnp.stack(pats, axis=3)               # (N, pho, pwo, kh*kw, C)
            phases.append(p.reshape(n, pho * pwo, kh * kw * c))
    cols = jnp.stack(phases, axis=0)                  # (4, N, P, K)
    cols = cols.reshape(4, n * pho * pwo, kh * kw * c).astype(jnp.bfloat16)
    return cols, (pho, pwo)


def conv_relu_pool_pallas(x, w_pad, b_pad, b_tile, kh=5, kw=5):
    """Conv2d(k=5, stride 1, valid) + ReLU + MaxPool2d(2,2), fused.

    x: (N, H, W, C) NHWC (N a multiple of b_tile).
    Returns ((N*pho*pwo, 128) bf16 lane-dense activations, (pho, pwo))."""
    n = x.shape[0]
    assert n % b_tile == 0, (n, b_tile)
    cols, (pho, pwo) = _pooled_im2col(x, kh, kw)
    p = pho * pwo
    k = cols.shape[-1]
    m_blk = b_tile * p
    grid = n // b_tile

    out = pl.pallas_call(
        _conv_relu_pool_kernel,
        out_shape=jax.ShapeDtypeStruct((n * p, C_PAD), jnp.bfloat16),
        grid=(grid,),
        in_specs=[
            pl.BlockSpec((4, m_blk, k), lambda i: (0, i, 0)),   # packed phases
            pl.BlockSpec((k, C_PAD), lambda i: (0, 0)),         # weights (resident)
            pl.BlockSpec((1, C_PAD), lambda i: (0, 0)),         # bias (resident)
        ],
        out_specs=pl.BlockSpec((m_blk, C_PAD), lambda i: (i, 0)),
        compiler_params=pltpu.CompilerParams(
            dimension_semantics=("parallel",),
            vmem_limit_bytes=VMEM_LIMIT),
    )(cols, w_pad, b_pad)
    return out, (pho, pwo)


def fc_pallas(flat, prep, tile_m_max=512):
    """fc1->fc2->fc3 in one Pallas call.  flat: (M, 400) bf16 -> (M, 128) f32."""
    m, k = flat.shape
    tile_m = min(tile_m_max, m)
    pad_m = _round_up(m, tile_m)
    if pad_m != m:
        flat = jnp.pad(flat, ((0, pad_m - m), (0, 0)))
    grid_m = pad_m // tile_m

    out = pl.pallas_call(
        _fc_kernel,
        out_shape=jax.ShapeDtypeStruct((pad_m, C_PAD), jnp.float32),
        grid=(grid_m,),
        in_specs=[
            pl.BlockSpec((tile_m, k), lambda i: (i, 0)),
            pl.BlockSpec((k, C_PAD), lambda i: (0, 0)),
            pl.BlockSpec((1, C_PAD), lambda i: (0, 0)),
            pl.BlockSpec((C_PAD, C_PAD), lambda i: (0, 0)),
            pl.BlockSpec((1, C_PAD), lambda i: (0, 0)),
            pl.BlockSpec((C_PAD, C_PAD), lambda i: (0, 0)),
            pl.BlockSpec((1, C_PAD), lambda i: (0, 0)),
        ],
        out_specs=pl.BlockSpec((tile_m, C_PAD), lambda i: (i, 0)),
        compiler_params=pltpu.CompilerParams(
            dimension_semantics=("parallel",),
            vmem_limit_bytes=VMEM_LIMIT),
    )(flat, prep["fc1_w"], prep["fc1_b"], prep["fc2_w"], prep["fc2_b"],
      prep["fc3_w"], prep["fc3_b"])
    return out[:m]


# --------------------------- parameters & forward ---------------------------

def init_params(key, num_classes=10):
    """Parameters in the PyTorch module's native layout / init distribution."""
    ks = jax.random.split(key, 10)

    def u(k, shape, fan_in):  # U(-1/sqrt(fan_in), 1/sqrt(fan_in)) like torch
        bound = 1.0 / jnp.sqrt(float(fan_in))
        return jax.random.uniform(k, shape, jnp.float32, -bound, bound)

    return {
        "conv1_w": u(ks[0], (6, 3, 5, 5), 3 * 5 * 5),
        "conv1_b": u(ks[1], (6,), 3 * 5 * 5),
        "conv2_w": u(ks[2], (16, 6, 5, 5), 6 * 5 * 5),
        "conv2_b": u(ks[3], (16,), 6 * 5 * 5),
        "fc1_w":   u(ks[4], (16 * 5 * 5, 120), 16 * 5 * 5),   # (in, out); rows in
        "fc1_b":   u(ks[5], (120,), 16 * 5 * 5),              # torch NCHW-flatten order
        "fc2_w":   u(ks[6], (120, 84), 120),
        "fc2_b":   u(ks[7], (84,), 120),
        "fc3_w":   u(ks[8], (84, num_classes), 84),
        "fc3_b":   u(ks[9], (num_classes,), 84),
    }


def prepare_params(params, num_classes=10, c_pad=C_PAD):
    """One-time conversion to kernel-friendly layouts (outside the forward)."""
    def prep_conv(w, b):
        c_out, c_in, kh, kw = w.shape
        k = kh * kw * c_in
        w2 = jnp.transpose(w, (2, 3, 1, 0)).reshape(k, c_out)     # (ki,kj,cin) x cout
        w2 = jnp.pad(w2, ((0, 0), (0, c_pad - c_out))).astype(jnp.bfloat16)
        b2 = jnp.pad(b, (0, c_pad - c_out)).reshape(1, c_pad).astype(jnp.float32)
        return w2, b2, c_out

    c1w, c1b, c1o = prep_conv(params["conv1_w"], params["conv1_b"])
    c2w, c2b, c2o = prep_conv(params["conv2_w"], params["conv2_b"])

    def pad_mat(w, rows, cols):
        return jnp.pad(w, ((0, rows - w.shape[0]),
                           (0, cols - w.shape[1]))).astype(jnp.bfloat16)

    def pad_vec(b, cols):
        return jnp.pad(b, (0, cols - b.shape[0])).reshape(1, cols).astype(jnp.float32)

    # fc1 rows: permute from torch NCHW-flatten order (c*25 + p) to our NHWC
    # flatten order (p*16 + c), then pad all FC weights/biases to 128 lanes.
    w1 = params["fc1_w"].reshape(c2o, 25, -1).transpose(1, 0, 2).reshape(25 * c2o, -1)

    return {
        "conv1_w": c1w, "conv1_b": c1b, "conv1_cout": c1o,
        "conv2_w": c2w, "conv2_b": c2b, "conv2_cout": c2o,
        "fc1_w": pad_mat(w1, 25 * c2o, c_pad), "fc1_b": pad_vec(params["fc1_b"], c_pad),
        "fc2_w": pad_mat(params["fc2_w"], c_pad, c_pad), "fc2_b": pad_vec(params["fc2_b"], c_pad),
        "fc3_w": pad_mat(params["fc3_w"], c_pad, c_pad), "fc3_b": pad_vec(params["fc3_b"], c_pad),
        "num_classes": num_classes,
    }


def complex_net_forward(prep, x, batch_tile=BATCH_TILE):
    """x: (N, 3, 32, 32) NCHW (torch convention) -> (N, num_classes) f32."""
    n0 = x.shape[0]
    b_tile = batch_tile if n0 >= batch_tile else _round_up(n0, 8)
    pad_n = _round_up(n0, b_tile)

    x = jnp.transpose(x, (0, 2, 3, 1))                           # NCHW -> NHWC, once
    if pad_n != n0:
        x = jnp.pad(x, ((0, pad_n - n0), (0, 0), (0, 0), (0, 0)))

    # conv1 + ReLU + pool1 (fused, batch-tiled, bf16 lane-dense output)
    y1, (h1, w1) = conv_relu_pool_pallas(x, prep["conv1_w"], prep["conv1_b"], b_tile)
    c1 = prep["conv1_cout"]
    x2 = y1.reshape(pad_n, h1, w1, C_PAD)[..., :c1]              # (pad_n,14,14,6) bf16

    # conv2 + ReLU + pool2 (fused, batch-tiled)
    y2, (h2, w2) = conv_relu_pool_pallas(x2, prep["conv2_w"], prep["conv2_b"], b_tile)
    c2 = prep["conv2_cout"]

    # flatten in NHWC order (matches permuted fc1 rows) + FC tail in one call
    flat = y2.reshape(pad_n, h2 * w2, C_PAD)[:, :, :c2].reshape(pad_n, h2 * w2 * c2)
    logits = fc_pallas(flat, prep)                               # (pad_n, 128) f32
    return logits[:n0, :prep["num_classes"]]


# ------------------------------ f32 reference -------------------------------

def reference_forward(params, x):
    """Pure-JAX reference (f32) matching the PyTorch module."""
    dn = ("NCHW", "OIHW", "NCHW")
    y = lax.conv_general_dilated(x, params["conv1_w"], (1, 1), "VALID",
                                 dimension_numbers=dn)
    y = jnp.maximum(y + params["conv1_b"][None, :, None, None], 0.0)
    y = lax.reduce_window(y, -jnp.inf, lax.max, (1, 1, 2, 2), (1, 1, 2, 2), "VALID")
    y = lax.conv_general_dilated(y, params["conv2_w"], (1, 1), "VALID",
                                 dimension_numbers=dn)
    y = jnp.maximum(y + params["conv2_b"][None, :, None, None], 0.0)
    y = lax.reduce_window(y, -jnp.inf, lax.max, (1, 1, 2, 2), (1, 1, 2, 2), "VALID")
    y = y.reshape(y.shape[0], -1)                                # NCHW flatten
    y = y @ params["fc1_w"] + params["fc1_b"]
    y = y @ params["fc2_w"] + params["fc2_b"]
    y = y @ params["fc3_w"] + params["fc3_b"]
    return y


if __name__ == "__main__":
    key = jax.random.PRNGKey(0)
    k_params, k_x = jax.random.split(key)
    params = init_params(k_params, num_classes=10)
    prep = prepare_params(params, num_classes=10)

    # Input must be 3x32x32 so the flattened conv features are 16*5*5 = 400.
    x = jax.random.normal(k_x, (2, 3, 32, 32), dtype=jnp.float32)

    fwd = jax.jit(lambda inp: complex_net_forward(prep, inp))
    out = jax.block_until_ready(fwd(x))
    assert out.shape == (2, 10), out.shape

    ref = reference_forward(params, x)
    err = float(jnp.max(jnp.abs(out - ref)))
    assert err < 5e-2, f"max abs error vs f32 reference: {err}"
    print("KERNEL_OK")
</pallas_src>

<mosaic_0001>
module attributes {stable_mosaic.version = 11 : i64} {
  func.func @_conv_relu_pool_kernel(%arg0: i32, %arg1: memref<4x1568x75xbf16, #tpu.memory_space<vmem>>, %arg2: memref<75x128xbf16, #tpu.memory_space<vmem>>, %arg3: memref<1x128xf32, #tpu.memory_space<vmem>>, %arg4: memref<1568x128xbf16, #tpu.memory_space<vmem>>) attributes {dimension_semantics = [#tpu.dimension_semantics<parallel>], iteration_bounds = array<i64: 1>, scalar_prefetch = 0 : i64, scratch_operands = 0 : i64, tpu.core_type = #tpu.core_type<tc>, window_params = [{transform_indices = @transform_0, window_bounds = array<i64: 4, 1568, 75>}, {pipeline_mode = #tpu.pipeline_mode<synchronous>, transform_indices = @transform_1, window_bounds = array<i64: 75, 128>}, {pipeline_mode = #tpu.pipeline_mode<synchronous>, transform_indices = @transform_2, window_bounds = array<i64: 1, 128>}, {transform_indices = @transform_3, window_bounds = array<i64: 1568, 128>}]} {
    %c0 = arith.constant 0 : index
    %c0_0 = arith.constant 0 : index
    %0 = vector.load %arg2[%c0, %c0_0] : memref<75x128xbf16, #tpu.memory_space<vmem>>, vector<75x128xbf16>
    %c0_1 = arith.constant 0 : index
    %c0_2 = arith.constant 0 : index
    %c0_3 = arith.constant 0 : index
    %1 = vector.load %arg1[%c0_1, %c0_2, %c0_3] : memref<4x1568x75xbf16, #tpu.memory_space<vmem>>, vector<1x1568x75xbf16>
    %2 = vector.shape_cast %1 : vector<1x1568x75xbf16> to vector<1568x75xbf16>
    %cst = arith.constant dense<0.000000e+00> : vector<1568x128xf32>
    %3 = tpu.matmul %2, %0, %cst {dimension_numbers = #tpu.dot_dimension_numbers<[1], [0], [0], [1], [0, 0, 1, 1], [], []>} : vector<1568x75xbf16>, vector<75x128xbf16>, vector<1568x128xf32> -> vector<1568x128xf32>
    %c1 = arith.constant 1 : index
    %c0_4 = arith.constant 0 : index
    %c0_5 = arith.constant 0 : index
    %4 = vector.load %arg1[%c1, %c0_4, %c0_5] : memref<4x1568x75xbf16, #tpu.memory_space<vmem>>, vector<1x1568x75xbf16>
    %5 = vector.shape_cast %4 : vector<1x1568x75xbf16> to vector<1568x75xbf16>
    %cst_6 = arith.constant dense<0.000000e+00> : vector<1568x128xf32>
    %6 = tpu.matmul %5, %0, %cst_6 {dimension_numbers = #tpu.dot_dimension_numbers<[1], [0], [0], [1], [0, 0, 1, 1], [], []>} : vector<1568x75xbf16>, vector<75x128xbf16>, vector<1568x128xf32> -> vector<1568x128xf32>
    %7 = arith.maximumf %3, %6 : vector<1568x128xf32>
    %c2 = arith.constant 2 : index
    %c0_7 = arith.constant 0 : index
    %c0_8 = arith.constant 0 : index
    %8 = vector.load %arg1[%c2, %c0_7, %c0_8] : memref<4x1568x75xbf16, #tpu.memory_space<vmem>>, vector<1x1568x75xbf16>
    %9 = vector.shape_cast %8 : vector<1x1568x75xbf16> to vector<1568x75xbf16>
    %cst_9 = arith.constant dense<0.000000e+00> : vector<1568x128xf32>
    %10 = tpu.matmul %9, %0, %cst_9 {dimension_numbers = #tpu.dot_dimension_numbers<[1], [0], [0], [1], [0, 0, 1, 1], [], []>} : vector<1568x75xbf16>, vector<75x128xbf16>, vector<1568x128xf32> -> vector<1568x128xf32>
    %11 = arith.maximumf %7, %10 : vector<1568x128xf32>
    %c3 = arith.constant 3 : index
    %c0_10 = arith.constant 0 : index
    %c0_11 = arith.constant 0 : index
    %12 = vector.load %arg1[%c3, %c0_10, %c0_11] : memref<4x1568x75xbf16, #tpu.memory_space<vmem>>, vector<1x1568x75xbf16>
    %13 = vector.shape_cast %12 : vector<1x1568x75xbf16> to vector<1568x75xbf16>
    %cst_12 = arith.constant dense<0.000000e+00> : vector<1568x128xf32>
    %14 = tpu.matmul %13, %0, %cst_12 {dimension_numbers = #tpu.dot_dimension_numbers<[1], [0], [0], [1], [0, 0, 1, 1], [], []>} : vector<1568x75xbf16>, vector<75x128xbf16>, vector<1568x128xf32> -> vector<1568x128xf32>
    %15 = arith.maximumf %11, %14 : vector<1568x128xf32>
    %c0_13 = arith.constant 0 : index
    %c0_14 = arith.constant 0 : index
    %16 = vector.load %arg3[%c0_13, %c0_14] : memref<1x128xf32, #tpu.memory_space<vmem>>, vector<1x128xf32>
    %17 = vector.broadcast %16 : vector<1x128xf32> to vector<1568x128xf32>
    %18 = arith.addf %15, %17 : vector<1568x128xf32>
    %cst_15 = arith.constant 0.000000e+00 : f32
    %19 = vector.broadcast %cst_15 : f32 to vector<1568x128xf32>
    %20 = arith.maximumf %18, %19 : vector<1568x128xf32>
    %21 = arith.truncf %20 : vector<1568x128xf32> to vector<1568x128xbf16>
    %c0_16 = arith.constant 0 : index
    %c0_17 = arith.constant 0 : index
    %22 = vector.load %arg4[%c0_16, %c0_17] : memref<1568x128xbf16, #tpu.memory_space<vmem>>, vector<1568x128xbf16>
    tpu.vector_store %arg4[%c0_16, %c0_17], %21 {strides = array<i32>} : memref<1568x128xbf16, #tpu.memory_space<vmem>>, vector<1568x128xbf16>,
    return
  }
  func.func @transform_0(%arg0: i32) -> (i32, i32, i32) {
    %c0_i32 = arith.constant 0 : i32
    %c0_i32_0 = arith.constant 0 : i32
    %c0_i32_1 = arith.constant 0 : i32
    return %c0_i32, %arg0, %c0_i32_0 : i32, i32, i32
  }
  func.func @transform_1(%arg0: i32) -> (i32, i32) {
    %c0_i32 = arith.constant 0 : i32
    %c0_i32_0 = arith.constant 0 : i32
    %c0_i32_1 = arith.constant 0 : i32
    return %c0_i32, %c0_i32_0 : i32, i32
  }
  func.func @transform_2(%arg0: i32) -> (i32, i32) {
    %c0_i32 = arith.constant 0 : i32
    %c0_i32_0 = arith.constant 0 : i32
    %c0_i32_1 = arith.constant 0 : i32
    return %c0_i32, %c0_i32_0 : i32, i32
  }
  func.func @transform_3(%arg0: i32) -> (i32, i32) {
    %c0_i32 = arith.constant 0 : i32
    %c0_i32_0 = arith.constant 0 : i32
    return %arg0, %c0_i32 : i32, i32
  }
}

module attributes {stable_mosaic.version = 11 : i64} {
  func.func @_conv_relu_pool_kernel(%arg0: i32, %arg1: memref<4x200x150xbf16, #tpu.memory_space<vmem>>, %arg2: memref<150x128xbf16, #tpu.memory_space<vmem>>, %arg3: memref<1x128xf32, #tpu.memory_space<vmem>>, %arg4: memref<200x128xbf16, #tpu.memory_space<vmem>>) attributes {dimension_semantics = [#tpu.dimension_semantics<parallel>], iteration_bounds = array<i64: 1>, scalar_prefetch = 0 : i64, scratch_operands = 0 : i64, tpu.core_type = #tpu.core_type<tc>, window_params = [{transform_indices = @transform_0, window_bounds = array<i64: 4, 200, 150>}, {pipeline_mode = #tpu.pipeline_mode<synchronous>, transform_indices = @transform_1, window_bounds = array<i64: 150, 128>}, {pipeline_mode = #tpu.pipeline_mode<synchronous>, transform_indices = @transform_2, window_bounds = array<i64: 1, 128>}, {transform_indices = @transform_3, window_bounds = array<i64: 200, 128>}]} {
    %c0 = arith.constant 0 : index
    %c0_0 = arith.constant 0 : index
    %0 = vector.load %arg2[%c0, %c0_0] : memref<150x128xbf16, #tpu.memory_space<vmem>>, vector<150x128xbf16>
    %c0_1 = arith.constant 0 : index
    %c0_2 = arith.constant 0 : index
    %c0_3 = arith.constant 0 : index
    %1 = vector.load %arg1[%c0_1, %c0_2, %c0_3] : memref<4x200x150xbf16, #tpu.memory_space<vmem>>, vector<1x200x150xbf16>
    %2 = vector.shape_cast %1 : vector<1x200x150xbf16> to vector<200x150xbf16>
    %cst = arith.constant dense<0.000000e+00> : vector<200x128xf32>
    %3 = tpu.matmul %2, %0, %cst {dimension_numbers = #tpu.dot_dimension_numbers<[1], [0], [0], [1], [0, 0, 1, 1], [], []>} : vector<200x150xbf16>, vector<150x128xbf16>, vector<200x128xf32> -> vector<200x128xf32>
    %c1 = arith.constant 1 : index
    %c0_4 = arith.constant 0 : index
    %c0_5 = arith.constant 0 : index
    %4 = vector.load %arg1[%c1, %c0_4, %c0_5] : memref<4x200x150xbf16, #tpu.memory_space<vmem>>, vector<1x200x150xbf16>
    %5 = vector.shape_cast %4 : vector<1x200x150xbf16> to vector<200x150xbf16>
    %cst_6 = arith.constant dense<0.000000e+00> : vector<200x128xf32>
    %6 = tpu.matmul %5, %0, %cst_6 {dimension_numbers = #tpu.dot_dimension_numbers<[1], [0], [0], [1], [0, 0, 1, 1], [], []>} : vector<200x150xbf16>, vector<150x128xbf16>, vector<200x128xf32> -> vector<200x128xf32>
    %7 = arith.maximumf %3, %6 : vector<200x128xf32>
    %c2 = arith.constant 2 : index
    %c0_7 = arith.constant 0 : index
    %c0_8 = arith.constant 0 : index
    %8 = vector.load %arg1[%c2, %c0_7, %c0_8] : memref<4x200x150xbf16, #tpu.memory_space<vmem>>, vector<1x200x150xbf16>
    %9 = vector.shape_cast %8 : vector<1x200x150xbf16> to vector<200x150xbf16>
    %cst_9 = arith.constant dense<0.000000e+00> : vector<200x128xf32>
    %10 = tpu.matmul %9, %0, %cst_9 {dimension_numbers = #tpu.dot_dimension_numbers<[1], [0], [0], [1], [0, 0, 1, 1], [], []>} : vector<200x150xbf16>, vector<150x128xbf16>, vector<200x128xf32> -> vector<200x128xf32>
    %11 = arith.maximumf %7, %10 : vector<200x128xf32>
    %c3 = arith.constant 3 : index
    %c0_10 = arith.constant 0 : index
    %c0_11 = arith.constant 0 : index
    %12 = vector.load %arg1[%c3, %c0_10, %c0_11] : memref<4x200x150xbf16, #tpu.memory_space<vmem>>, vector<1x200x150xbf16>
    %13 = vector.shape_cast %12 : vector<1x200x150xbf16> to vector<200x150xbf16>
    %cst_12 = arith.constant dense<0.000000e+00> : vector<200x128xf32>
    %14 = tpu.matmul %13, %0, %cst_12 {dimension_numbers = #tpu.dot_dimension_numbers<[1], [0], [0], [1], [0, 0, 1, 1], [], []>} : vector<200x150xbf16>, vector<150x128xbf16>, vector<200x128xf32> -> vector<200x128xf32>
    %15 = arith.maximumf %11, %14 : vector<200x128xf32>
    %c0_13 = arith.constant 0 : index
    %c0_14 = arith.constant 0 : index
    %16 = vector.load %arg3[%c0_13, %c0_14] : memref<1x128xf32, #tpu.memory_space<vmem>>, vector<1x128xf32>
    %17 = vector.broadcast %16 : vector<1x128xf32> to vector<200x128xf32>
    %18 = arith.addf %15, %17 : vector<200x128xf32>
    %cst_15 = arith.constant 0.000000e+00 : f32
    %19 = vector.broadcast %cst_15 : f32 to vector<200x128xf32>
    %20 = arith.maximumf %18, %19 : vector<200x128xf32>
    %21 = arith.truncf %20 : vector<200x128xf32> to vector<200x128xbf16>
    %c0_16 = arith.constant 0 : index
    %c0_17 = arith.constant 0 : index
    %22 = vector.load %arg4[%c0_16, %c0_17] : memref<200x128xbf16, #tpu.memory_space<vmem>>, vector<200x128xbf16>
    tpu.vector_store %arg4[%c0_16, %c0_17], %21 {strides = array<i32>} : memref<200x128xbf16, #tpu.memory_space<vmem>>, vector<200x128xbf16>,
    return
  }
  func.func @transform_0(%arg0: i32) -> (i32, i32, i32) {
    %c0_i32 = arith.constant 0 : i32
    %c0_i32_0 = arith.constant 0 : i32
    %c0_i32_1 = arith.constant 0 : i32
    return %c0_i32, %arg0, %c0_i32_0 : i32, i32, i32
  }
  func.func @transform_1(%arg0: i32) -> (i32, i32) {
    %c0_i32 = arith.constant 0 : i32
    %c0_i32_0 = arith.constant 0 : i32
    %c0_i32_1 = arith.constant 0 : i32
    return %c0_i32, %c0_i32_0 : i32, i32
  }
  func.func @transform_2(%arg0: i32) -> (i32, i32) {
    %c0_i32 = arith.constant 0 : i32
    %c0_i32_0 = arith.constant 0 : i32
    %c0_i32_1 = arith.constant 0 : i32
    return %c0_i32, %c0_i32_0 : i32, i32
  }
  func.func @transform_3(%arg0: i32) -> (i32, i32) {
    %c0_i32 = arith.constant 0 : i32
    %c0_i32_0 = arith.constant 0 : i32
    return %arg0, %c0_i32 : i32, i32
  }
}

module attributes {stable_mosaic.version = 11 : i64} {
  func.func @_fc_kernel(%arg0: i32, %arg1: memref<8x400xbf16, #tpu.memory_space<vmem>>, %arg2: memref<400x128xbf16, #tpu.memory_space<vmem>>, %arg3: memref<1x128xf32, #tpu.memory_space<vmem>>, %arg4: memref<128x128xbf16, #tpu.memory_space<vmem>>, %arg5: memref<1x128xf32, #tpu.memory_space<vmem>>, %arg6: memref<128x128xbf16, #tpu.memory_space<vmem>>, %arg7: memref<1x128xf32, #tpu.memory_space<vmem>>, %arg8: memref<8x128xf32, #tpu.memory_space<vmem>>) attributes {dimension_semantics = [#tpu.dimension_semantics<parallel>], iteration_bounds = array<i64: 1>, scalar_prefetch = 0 : i64, scratch_operands = 0 : i64, tpu.core_type = #tpu.core_type<tc>, window_params = [{transform_indices = @transform_0, window_bounds = array<i64: 8, 400>}, {pipeline_mode = #tpu.pipeline_mode<synchronous>, transform_indices = @transform_1, window_bounds = array<i64: 400, 128>}, {pipeline_mode = #tpu.pipeline_mode<synchronous>, transform_indices = @transform_2, window_bounds = array<i64: 1, 128>}, {pipeline_mode = #tpu.pipeline_mode<synchronous>, transform_indices = @transform_3, window_bounds = array<i64: 128, 128>}, {pipeline_mode = #tpu.pipeline_mode<synchronous>, transform_indices = @transform_4, window_bounds = array<i64: 1, 128>}, {pipeline_mode = #tpu.pipeline_mode<synchronous>, transform_indices = @transform_5, window_bounds = array<i64: 128, 128>}, {pipeline_mode = #tpu.pipeline_mode<synchronous>, transform_indices = @transform_6, window_bounds = array<i64: 1, 128>}, {transform_indices = @transform_7, window_bounds = array<i64: 8, 128>}]} {
    %c0 = arith.constant 0 : index
    %c0_0 = arith.constant 0 : index
    %0 = vector.load %arg1[%c0, %c0_0] : memref<8x400xbf16, #tpu.memory_space<vmem>>, vector<8x400xbf16>
    %c0_1 = arith.constant 0 : index
    %c0_2 = arith.constant 0 : index
    %1 = vector.load %arg2[%c0_1, %c0_2] : memref<400x128xbf16, #tpu.memory_space<vmem>>, vector<400x128xbf16>
    %cst = arith.constant dense<0.000000e+00> : vector<8x128xf32>
    %2 = tpu.matmul %0, %1, %cst {dimension_numbers = #tpu.dot_dimension_numbers<[1], [0], [0], [1], [0, 0, 1, 1], [], []>} : vector<8x400xbf16>, vector<400x128xbf16>, vector<8x128xf32> -> vector<8x128xf32>
    %c0_3 = arith.constant 0 : index
    %c0_4 = arith.constant 0 : index
    %3 = vector.load %arg3[%c0_3, %c0_4] : memref<1x128xf32, #tpu.memory_space<vmem>>, vector<1x128xf32>
    %4 = vector.broadcast %3 : vector<1x128xf32> to vector<8x128xf32>
    %5 = arith.addf %2, %4 : vector<8x128xf32>
    %6 = arith.truncf %5 : vector<8x128xf32> to vector<8x128xbf16>
    %c0_5 = arith.constant 0 : index
    %c0_6 = arith.constant 0 : index
    %7 = vector.load %arg4[%c0_5, %c0_6] : memref<128x128xbf16, #tpu.memory_space<vmem>>, vector<128x128xbf16>
    %cst_7 = arith.constant dense<0.000000e+00> : vector<8x128xf32>
    %8 = tpu.matmul %6, %7, %cst_7 {dimension_numbers = #tpu.dot_dimension_numbers<[1], [0], [0], [1], [0, 0, 1, 1], [], []>} : vector<8x128xbf16>, vector<128x128xbf16>, vector<8x128xf32> -> vector<8x128xf32>
    %c0_8 = arith.constant 0 : index
    %c0_9 = arith.constant 0 : index
    %9 = vector.load %arg5[%c0_8, %c0_9] : memref<1x128xf32, #tpu.memory_space<vmem>>, vector<1x128xf32>
    %10 = vector.broadcast %9 : vector<1x128xf32> to vector<8x128xf32>
    %11 = arith.addf %8, %10 : vector<8x128xf32>
    %12 = arith.truncf %11 : vector<8x128xf32> to vector<8x128xbf16>
    %c0_10 = arith.constant 0 : index
    %c0_11 = arith.constant 0 : index
    %13 = vector.load %arg6[%c0_10, %c0_11] : memref<128x128xbf16, #tpu.memory_space<vmem>>, vector<128x128xbf16>
    %cst_12 = arith.constant dense<0.000000e+00> : vector<8x128xf32>
    %14 = tpu.matmul %12, %13, %cst_12 {dimension_numbers = #tpu.dot_dimension_numbers<[1], [0], [0], [1], [0, 0, 1, 1], [], []>} : vector<8x128xbf16>, vector<128x128xbf16>, vector<8x128xf32> -> vector<8x128xf32>
    %c0_13 = arith.constant 0 : index
    %c0_14 = arith.constant 0 : index
    %15 = vector.load %arg7[%c0_13, %c0_14] : memref<1x128xf32, #tpu.memory_space<vmem>>, vector<1x128xf32>
    %16 = vector.broadcast %15 : vector<1x128xf32> to vector<8x128xf32>
    %17 = arith.addf %14, %16 : vector<8x128xf32>
    %c0_15 = arith.constant 0 : index
    %c0_16 = arith.constant 0 : index
    %18 = vector.load %arg8[%c0_15, %c0_16] : memref<8x128xf32, #tpu.memory_space<vmem>>, vector<8x128xf32>
    tpu.vector_store %arg8[%c0_15, %c0_16], %17 {strides = array<i32>} : memref<8x128xf32, #tpu.memory_space<vmem>>, vector<8x128xf32>,
    return
  }
  func.func @transform_0(%arg0: i32) -> (i32, i32) {
    %c0_i32 = arith.constant 0 : i32
    %c0_i32_0 = arith.constant 0 : i32
    return %arg0, %c0_i32 : i32, i32
  }
  func.func @transform_1(%arg0: i32) -> (i32, i32) {
    %c0_i32 = arith.constant 0 : i32
    %c0_i32_0 = arith.constant 0 : i32
    %c0_i32_1 = arith.constant 0 : i32
    return %c0_i32, %c0_i32_0 : i32, i32
  }
  func.func @transform_2(%arg0: i32) -> (i32, i32) {
    %c0_i32 = arith.constant 0 : i32
    %c0_i32_0 = arith.constant 0 : i32
    %c0_i32_1 = arith.constant 0 : i32
    return %c0_i32, %c0_i32_0 : i32, i32
  }
  func.func @transform_3(%arg0: i32) -> (i32, i32) {
    %c0_i32 = arith.constant 0 : i32
    %c0_i32_0 = arith.constant 0 : i32
    %c0_i32_1 = arith.constant 0 : i32
    return %c0_i32, %c0_i32_0 : i32, i32
  }
  func.func @transform_4(%arg0: i32) -> (i32, i32) {
    %c0_i32 = arith.constant 0 : i32
    %c0_i32_0 = arith.constant 0 : i32
    %c0_i32_1 = arith.constant 0 : i32
    return %c0_i32, %c0_i32_0 : i32, i32
  }
  func.func @transform_5(%arg0: i32) -> (i32, i32) {
    %c0_i32 = arith.constant 0 : i32
    %c0_i32_0 = arith.constant 0 : i32
    %c0_i32_1 = arith.constant 0 : i32
    return %c0_i32, %c0_i32_0 : i32, i32
  }
  func.func @transform_6(%arg0: i32) -> (i32, i32) {
    %c0_i32 = arith.constant 0 : i32
    %c0_i32_0 = arith.constant 0 : i32
    %c0_i32_1 = arith.constant 0 : i32
    return %c0_i32, %c0_i32_0 : i32, i32
  }
  func.func @transform_7(%arg0: i32) -> (i32, i32) {
    %c0_i32 = arith.constant 0 : i32
    %c0_i32_0 = arith.constant 0 : i32
    return %arg0, %c0_i32 : i32, i32
  }
}

</mosaic_0001>

<bundles_post_ra>
// kernel: _lambda_.3
= control target key start
LH: loop header
LB: loop body
LE: loop exit
PB: predicated region body
PF: predicated region fallthrough
CT: control target
= control target key end

     0   :  { %vm1035_vm0 = vcmask 1044480   ;;  %vm1036_vm1 = vcmask 1045504   ;;  %v10920_v2 = vmov 65535   ;;  %vm740_vm2 = vcmask 613376   ;;  %s13041_s1 = inlined_call_operand.vmem [shape: bf16[75,128], index: 1, kind: input, shape index: {}]   ;;  %s13042_s0 = inlined_call_operand.vmem [shape: bf16[4,1568,75], index: 0, kind: input, shape index: {}]   ;;  %s13043_s2 = inlined_call_operand.vmem [shape: f32[1,128], index: 2, kind: input, shape index: {}]   ;;  %s13044_s3 = inlined_call_operand.vmem [shape: bf16[1568,128], index: 3, kind: output, shape index: {}]  }
   0x1   :  { %v7771_v0 = vld [vmem:[%s13041_s1 + $0x20] sm:$0xf]  ;;  %v9933_v1 = vld [vmem:[%s13041_s1 + $0x20] sm:$0x30]  ;;  %v1037_v3 = vsel %vm1035_vm0, 4294967295, %v10920_v2  ;;  %v9932_v7 = vld [vmem:[%s13041_s1 + $0x18] sm:$0xff] }
   0x2   :  { %v7772_v4 = vor.u32 %v9933_v1, %v7771_v0  ;;  %v1038_v5 = vsel %vm1036_vm1, %v1037_v3, 0  ;;  %v9931_v8 = vld [vmem:[%s13041_s1 + $0x10] sm:$0xff]  ;;  %v9930_v9 = vld [vmem:[%s13041_s1 + $0x8] sm:$0xff]  ;;  %v9929_v10 = vld [vmem:[%s13041_s1] sm:$0xff] }
   0x3   :  { %v9934_v11 = vld [vmem:[%s13042_s0] sm:$0xff]  ;;  %v10032_v12 = vld [vmem:[%s13042_s0 + $0x310] sm:$0xff]  ;;  %v9935_v15 = vld [vmem:[%s13042_s0 + $0x8] sm:$0xff] }
   0x4   :  { %v1040_v6 = vand.u32 %v7772_v4, %v1038_v5  ;;  %v10130_v13 = vld [vmem:[%s13042_s0 + $0x620] sm:$0xff]  ;;  %v10228_v14 = vld [vmem:[%s13042_s0 + $0x930] sm:$0xff]  ;;  %v10033_v16 = vld [vmem:[%s13042_s0 + $0x318] sm:$0xff] }
   0x5   :  { %v10131_v17 = vld [vmem:[%s13042_s0 + $0x628] sm:$0xff]  ;;  %v10229_v18 = vld [vmem:[%s13042_s0 + $0x938] sm:$0xff]  ;;  %v9936_v19 = vld [vmem:[%s13042_s0 + $0x10] sm:$0xff] }
   0x6   :  { %1045 = vmatpush.bf16.msra.mxu0 %v1040_v6  ;;  %2525 = vmatpush.bf16.msra.mxu1 %v1040_v6  ;;  %v10034_v20 = vld [vmem:[%s13042_s0 + $0x320] sm:$0xff]  ;;  %v10132_v21 = vld [vmem:[%s13042_s0 + $0x630] sm:$0xff]  ;;  %v9937_v23 = vld [vmem:[%s13042_s0 + $0x18] sm:$0xff] }
   0x7   :  { %4201 = vmatpush.bf16.msra.mxu2 %v1040_v6  ;;  %5877 = vmatpush.bf16.msra.mxu3 %v1040_v6  ;;  %v10230_v22 = vld [vmem:[%s13042_s0 + $0x940] sm:$0xff]  ;;  %v10035_v24 = vld [vmem:[%s13042_s0 + $0x328] sm:$0xff]  ;;  %v10133_v25 = vld [vmem:[%s13042_s0 + $0x638] sm:$0xff] }
   0x8   :  { %v10231_v26 = vld [vmem:[%s13042_s0 + $0x948] sm:$0xff]  ;;  %v9938_v27 = vld [vmem:[%s13042_s0 + $0x20] sm:$0xff]  ;;  %v10036_v28 = vld [vmem:[%s13042_s0 + $0x330] sm:$0xff] }
   0x9   :  { %v10134_v29 = vld [vmem:[%s13042_s0 + $0x640] sm:$0xff]  ;;  %v10232_v30 = vld [vmem:[%s13042_s0 + $0x950] sm:$0xff]  ;;  %v9939_v31 = vld [vmem:[%s13042_s0 + $0x28] sm:$0xff] }
   0xa   :  { %1046 = vmatpush.bf16.msra.mxu0 %v9932_v7  ;;  %2526 = vmatpush.bf16.msra.mxu1 %v9932_v7  ;;  %v10037_v32 = vld [vmem:[%s13042_s0 + $0x338] sm:$0xff]  ;;  %v10135_v33 = vld [vmem:[%s13042_s0 + $0x648] sm:$0xff]  ;;  %v9940_v35 = vld [vmem:[%s13042_s0 + $0x30] sm:$0xff] }
   0xb   :  { %4202 = vmatpush.bf16.msra.mxu2 %v9932_v7  ;;  %5878 = vmatpush.bf16.msra.mxu3 %v9932_v7  ;;  %v10233_v34 = vld [vmem:[%s13042_s0 + $0x958] sm:$0xff]  ;;  %v10038_v36 = vld [vmem:[%s13042_s0 + $0x340] sm:$0xff]  ;;  %v10136_v37 = vld [vmem:[%s13042_s0 + $0x650] sm:$0xff] }
   0xc   :  { %v10234_v38 = vld [vmem:[%s13042_s0 + $0x960] sm:$0xff]  ;;  %v9941_v39 = vld [vmem:[%s13042_s0 + $0x38] sm:$0xff]  ;;  %v10039_v40 = vld [vmem:[%s13042_s0 + $0x348] sm:$0xff] }
   0xd   :  { %v10137_v41 = vld [vmem:[%s13042_s0 + $0x658] sm:$0xff]  ;;  %v10235_v42 = vld [vmem:[%s13042_s0 + $0x968] sm:$0xff]  ;;  %v9942_v43 = vld [vmem:[%s13042_s0 + $0x40] sm:$0xff] }
   0xe   :  { %1047 = vmatpush.bf16.msra.mxu0 %v9931_v8  ;;  %2527 = vmatpush.bf16.msra.mxu1 %v9931_v8  ;;  %v10040_v44 = vld [vmem:[%s13042_s0 + $0x350] sm:$0xff]  ;;  %v10138_v47 = vld [vmem:[%s13042_s0 + $0x660] sm:$0xff]  ;;  %v9943_v60 = vld [vmem:[%s13042_s0 + $0x48] sm:$0xff] }
   0xf   :  { %4203 = vmatpush.bf16.msra.mxu2 %v9931_v8  ;;  %5879 = vmatpush.bf16.msra.mxu3 %v9931_v8  ;;  %v10236_v48 = vld [vmem:[%s13042_s0 + $0x970] sm:$0xff]  ;;  %v11106_v56 = vld [vmem:[%s13043_s2] ss:$0 sm:$0xff]  ;;  %v10041_v61 = vld [vmem:[%s13042_s0 + $0x358] sm:$0xff] }
  0x10   :  { %v10139_v1 = vld [vmem:[%s13042_s0 + $0x668] sm:$0xff]  ;;  %v10237_v2 = vld [vmem:[%s13042_s0 + $0x978] sm:$0xff] }
  0x12   :  { %1048 = vmatpush.bf16.msra.mxu0 %v9930_v9  ;;  %2528 = vmatpush.bf16.msra.mxu1 %v9930_v9 }
  0x13   :  { %4204 = vmatpush.bf16.msra.mxu2 %v9930_v9  ;;  %5880 = vmatpush.bf16.msra.mxu3 %v9930_v9 }
  0x16   :  { %1049 = vmatpush.bf16.msra.mxu0 %v9929_v10  ;;  %2529 = vmatpush.bf16.msra.mxu1 %v9929_v10 }
  0x17   :  { %4205 = vmatpush.bf16.msra.mxu2 %v9929_v10  ;;  %5881 = vmatpush.bf16.msra.mxu3 %v9929_v10 }
  0x19   :  { %7773 = vmatmul.msk.bf16.vlgmr.msra.gmra.mxu0 %vm740_vm2, %v9934_v11  ;;  %8459 = vmatmul.msk.bf16.vlgmr.msra.gmra.mxu1 %vm740_vm2, %v10032_v12 }
  0x1a   :  { %9145 = vmatmul.msk.bf16.vlgmr.msra.gmra.mxu2 %vm740_vm2, %v10130_v13  ;;  %9831 = vmatmul.msk.bf16.vlgmr.msra.gmra.mxu3 %vm740_vm2, %v10228_v14 }
  0x29   :  { %7774 = vmatmul.msk.bf16.gmra.mxu0 %vm740_vm2, %v9935_v15  ;;  %8460 = vmatmul.msk.bf16.gmra.mxu1 %vm740_vm2, %v10033_v16 }
  0x2a   :  { %9146 = vmatmul.msk.bf16.gmra.mxu2 %vm740_vm2, %v10131_v17  ;;  %9832 = vmatmul.msk.bf16.gmra.mxu3 %vm740_vm2, %v10229_v18 }
  0x39   :  { %7775 = vmatmul.msk.bf16.gmra.mxu0 %vm740_vm2, %v9936_v19  ;;  %8461 = vmatmul.msk.bf16.gmra.mxu1 %vm740_vm2, %v10034_v20  ;;  %v9944_v19 = vld [vmem:[%s13042_s0 + $0x50] sm:$0xff]  ;;  %v10042_v20 = vld [vmem:[%s13042_s0 + $0x360] sm:$0xff] }
  0x3a   :  { %9147 = vmatmul.msk.bf16.gmra.mxu2 %vm740_vm2, %v10132_v21  ;;  %9833 = vmatmul.msk.bf16.gmra.mxu3 %vm740_vm2, %v10230_v22 }
  0x49   :  { %7776 = vmatmul.msk.bf16.gmra.mxu0 %vm740_vm2, %v9937_v23  ;;  %8462 = vmatmul.msk.bf16.gmra.mxu1 %vm740_vm2, %v10035_v24  ;;  %v10140_v24 = vld [vmem:[%s13042_s0 + $0x670] sm:$0xff] }
  0x4a   :  { %9148 = vmatmul.msk.bf16.gmra.mxu2 %vm740_vm2, %v10133_v25  ;;  %9834 = vmatmul.msk.bf16.gmra.mxu3 %vm740_vm2, %v10231_v26  ;;  %v10238_v25 = vld [vmem:[%s13042_s0 + $0x980] sm:$0xff] }
  0x59   :  { %7777 = vmatmul.msk.bf16.gmra.mxu0 %vm740_vm2, %v9938_v27  ;;  %8463 = vmatmul.msk.bf16.gmra.mxu1 %vm740_vm2, %v10036_v28 }
  0x5a   :  { %9149 = vmatmul.msk.bf16.gmra.mxu2 %vm740_vm2, %v10134_v29  ;;  %9835 = vmatmul.msk.bf16.gmra.mxu3 %vm740_vm2, %v10232_v30 }
  0x69   :  { %7778 = vmatmul.msk.bf16.gmra.mxu0 %vm740_vm2, %v9939_v31  ;;  %8464 = vmatmul.msk.bf16.gmra.mxu1 %vm740_vm2, %v10037_v32 }
  0x6a   :  { %9150 = vmatmul.msk.bf16.gmra.mxu2 %vm740_vm2, %v10135_v33  ;;  %9836 = vmatmul.msk.bf16.gmra.mxu3 %vm740_vm2, %v10233_v34 }
  0x79   :  { %7779 = vmatmul.msk.bf16.gmra.mxu0 %vm740_vm2, %v9940_v35  ;;  %8465 = vmatmul.msk.bf16.gmra.mxu1 %vm740_vm2, %v10038_v36 }
  0x7a   :  { %9151 = vmatmul.msk.bf16.gmra.mxu2 %vm740_vm2, %v10136_v37  ;;  %9837 = vmatmul.msk.bf16.gmra.mxu3 %vm740_vm2, %v10234_v38 }
  0x89   :  { %7780 = vmatmul.msk.bf16.gmra.mxu0 %vm740_vm2, %v9941_v39  ;;  %8466 = vmatmul.msk.bf16.gmra.mxu1 %vm740_vm2, %v10039_v40 }
  0x8a   :  { %9152 = vmatmul.msk.bf16.gmra.mxu2 %vm740_vm2, %v10137_v41  ;;  %9838 = vmatmul.msk.bf16.gmra.mxu3 %vm740_vm2, %v10235_v42  ;;  %v9945_v42 = vld [vmem:[%s13042_s0 + $0x58] sm:$0xff] }
  0x96   :  { %v1051_v45 = vpop.f32.mrf.mxu0  ;;  %v2531_v46 = vpop.f32.mrf.mxu1 }
  0x97   :  { %v3021_v49 = vmax.f32 %v1051_v45, %v2531_v46 }
  0x99   :  { %7781 = vmatmul.msk.bf16.gmra.mxu0 %vm740_vm2, %v9942_v43  ;;  %8467 = vmatmul.msk.bf16.gmra.mxu1 %vm740_vm2, %v10040_v44  ;;  %v10043_v43 = vld [vmem:[%s13042_s0 + $0x368] sm:$0xff] }
  0x9a   :  { %9153 = vmatmul.msk.bf16.gmra.mxu2 %vm740_vm2, %v10138_v47  ;;  %9839 = vmatmul.msk.bf16.gmra.mxu3 %vm740_vm2, %v10236_v48  ;;  %v10141_v47 = vld [vmem:[%s13042_s0 + $0x678] sm:$0xff]  ;;  %v10239_v48 = vld [vmem:[%s13042_s0 + $0x988] sm:$0xff] }
  0x9d   :  { %v4207_v50 = vpop.f32.mrf.mxu2  ;;  %v5883_v51 = vpop.f32.mrf.mxu3 }
  0x9e   :  { %v1053_v52 = vpop.f32.mrf.mxu0  ;;  %v2533_v53 = vpop.f32.mrf.mxu1  ;;  %v4697_v54 = vmax.f32 %v3021_v49, %v4207_v50 }
  0x9f   :  { %v3022_v57 = vmax.f32 %v1053_v52, %v2533_v53 }
  0xa0   :  { %v6373_v55 = vmax.f32 %v4697_v54, %v5883_v51 }
  0xa2   :  { %v6573_v3 = vadd.f32 %v11106_v56, %v6373_v55 }
  0xa4   :  { %v6769_v6 = vmax.f32 %v6573_v3, 0.0  ;;  %v10044_v3 = vld [vmem:[%s13042_s0 + $0x370] sm:$0xff] }
  0xa5   :  { %v4209_v58 = vpop.f32.mrf.mxu2  ;;  %v5885_v59 = vpop.f32.mrf.mxu3 }
  0xa6   :  { %v4698_v62 = vmax.f32 %v3022_v57, %v4209_v58  ;;  %v1056_v63 = vpop.f32.mrf.mxu0  ;;  %v2536_v0 = vpop.f32.mrf.mxu1 }
  0xa7   :  { %v3023_v8 = vmax.f32 %v1056_v63, %v2536_v0 }
  0xa8   :  { %v6374_v4 = vmax.f32 %v4698_v62, %v5885_v59 }
  0xa9   :  { %7782 = vmatmul.msk.bf16.gmra.mxu0 %vm740_vm2, %v9943_v60  ;;  %8468 = vmatmul.msk.bf16.gmra.mxu1 %vm740_vm2, %v10041_v61 }
  0xaa   :  { %v6574_v5 = vadd.f32 %v11106_v56, %v6374_v4  ;;  %9154 = vmatmul.msk.bf16.gmra.mxu2 %vm740_vm2, %v10139_v1  ;;  %9840 = vmatmul.msk.bf16.gmra.mxu3 %vm740_vm2, %v10237_v2  ;;  %v9946_v2 = vld [vmem:[%s13042_s0 + $0x60] sm:$0xff] }
  0xac   :  { %v6770_v7 = vmax.f32 %v6574_v5, 0.0 }
  0xad   :  { %v4212_v9 = vpop.f32.mrf.mxu2  ;;  %v5888_v10 = vpop.f32.mrf.mxu3 }
  0xae   :  { %v10329_v11 = vpack.c.bf16 %v6770_v7, %v6769_v6  ;;  %v1058_v12 = vpop.f32.mrf.mxu0  ;;  %v2538_v13 = vpop.f32.mrf.mxu1  ;;  %v4699_v14 = vmax.f32 %v3023_v8, %v4212_v9  ;;  %v10142_v7 = vld [vmem:[%s13042_s0 + $0x680] sm:$0xff]  ;;  %v10240_v8 = vld [vmem:[%s13042_s0 + $0x990] sm:$0xff] }
  0xaf   :  { %v3024_v16 = vmax.f32 %v1058_v12, %v2538_v13 }
  0xb0   :  { %10330 = vst [vmem:[%s13044_s3] sm:$0xff] %v10329_v11   ;;  %v6375_v15 = vmax.f32 %v4699_v14, %v5888_v10 }
  0xb2   :  { %v6575_v26 = vadd.f32 %v11106_v56, %v6375_v15 }
  0xb4   :  { %v6771_v29 = vmax.f32 %v6575_v26, 0.0  ;;  %v10045_v26 = vld [vmem:[%s13042_s0 + $0x378] sm:$0xff] }
  0xb5   :  { %v4214_v17 = vpop.f32.mrf.mxu2  ;;  %v5890_v18 = vpop.f32.mrf.mxu3 }
  0xb6   :  { %v4700_v21 = vmax.f32 %v3024_v16, %v4214_v17  ;;  %v1061_v22 = vpop.f32.mrf.mxu0  ;;  %v2541_v23 = vpop.f32.mrf.mxu1 }
  0xb7   :  { %v3025_v31 = vmax.f32 %v1061_v22, %v2541_v23 }
  0xb8   :  { %v6376_v27 = vmax.f32 %v4700_v21, %v5890_v18 }
  0xb9   :  { %7783 = vmatmul.msk.bf16.gmra.mxu0 %vm740_vm2, %v9944_v19  ;;  %8469 = vmatmul.msk.bf16.gmra.mxu1 %vm740_vm2, %v10042_v20 }
  0xba   :  { %v6576_v28 = vadd.f32 %v11106_v56, %v6376_v27  ;;  %9155 = vmatmul.msk.bf16.gmra.mxu2 %vm740_vm2, %v10140_v24  ;;  %9841 = vmatmul.msk.bf16.gmra.mxu3 %vm740_vm2, %v10238_v25  ;;  %v9947_v25 = vld [vmem:[%s13042_s0 + $0x68] sm:$0xff] }
  0xbc   :  { %v6772_v30 = vmax.f32 %v6576_v28, 0.0 }
  0xbd   :  { %v4217_v32 = vpop.f32.mrf.mxu2  ;;  %v5893_v33 = vpop.f32.mrf.mxu3 }
  0xbe   :  { %v10334_v34 = vpack.c.bf16 %v6772_v30, %v6771_v29  ;;  %v1063_v35 = vpop.f32.mrf.mxu0  ;;  %v2543_v36 = vpop.f32.mrf.mxu1  ;;  %v4701_v37 = vmax.f32 %v3025_v31, %v4217_v32  ;;  %v10143_v30 = vld [vmem:[%s13042_s0 + $0x688] sm:$0xff]  ;;  %v10241_v31 = vld [vmem:[%s13042_s0 + $0x998] sm:$0xff] }
  0xbf   :  { %v3026_v39 = vmax.f32 %v1063_v35, %v2543_v36 }
  0xc0   :  { %10816 = vst [vmem:[%s13044_s3 + $0x8] sm:$0xff] %v10334_v34   ;;  %v6377_v38 = vmax.f32 %v4701_v37, %v5893_v33 }
  0xc2   :  { %v6577_v49 = vadd.f32 %v11106_v56, %v6377_v38 }
  0xc4   :  { %v6773_v52 = vmax.f32 %v6577_v49, 0.0  ;;  %v10046_v49 = vld [vmem:[%s13042_s0 + $0x380] sm:$0xff] }
  0xc5   :  { %v4219_v40 = vpop.f32.mrf.mxu2  ;;  %v5895_v41 = vpop.f32.mrf.mxu3 }
  0xc6   :  { %v4702_v44 = vmax.f32 %v3026_v39, %v4219_v40  ;;  %v1066_v45 = vpop.f32.mrf.mxu0  ;;  %v2546_v46 = vpop.f32.mrf.mxu1 }
  0xc7   :  { %v3027_v54 = vmax.f32 %v1066_v45, %v2546_v46 }
  0xc8   :  { %v6378_v50 = vmax.f32 %v4702_v44, %v5895_v41 }
  0xc9   :  { %7784 = vmatmul.msk.bf16.gmra.mxu0 %vm740_vm2, %v9945_v42  ;;  %8470 = vmatmul.msk.bf16.gmra.mxu1 %vm740_vm2, %v10043_v43 }
  0xca   :  { %v6578_v51 = vadd.f32 %v11106_v56, %v6378_v50  ;;  %9156 = vmatmul.msk.bf16.gmra.mxu2 %vm740_vm2, %v10141_v47  ;;  %9842 = vmatmul.msk.bf16.gmra.mxu3 %vm740_vm2, %v10239_v48  ;;  %v9948_v48 = vld [vmem:[%s13042_s0 + $0x70] sm:$0xff] }
  0xcc   :  { %v6774_v53 = vmax.f32 %v6578_v51, 0.0 }
  0xcd   :  { %v4222_v55 = vpop.f32.mrf.mxu2  ;;  %v5898_v57 = vpop.f32.mrf.mxu3 }
  0xce   :  { %v10339_v58 = vpack.c.bf16 %v6774_v53, %v6773_v52  ;;  %v1068_v59 = vpop.f32.mrf.mxu0  ;;  %v2548_v60 = vpop.f32.mrf.mxu1  ;;  %v4703_v61 = vmax.f32 %v3027_v54, %v4222_v55  ;;  %v10144_v53 = vld [vmem:[%s13042_s0 + $0x690] sm:$0xff]  ;;  %v10242_v54 = vld [vmem:[%s13042_s0 + $0x9a0] sm:$0xff] }
  0xcf   :  { %v3028_v63 = vmax.f32 %v1068_v59, %v2548_v60 }
  0xd0   :  { %10817 = vst [vmem:[%s13044_s3 + $0x10] sm:$0xff] %v10339_v58   ;;  %v6379_v62 = vmax.f32 %v4703_v61, %v5898_v57 }
  0xd2   :  { %v6579_v9 = vadd.f32 %v11106_v56, %v6379_v62 }
  0xd4   :  { %v6775_v12 = vmax.f32 %v6579_v9, 0.0  ;;  %v10047_v9 = vld [vmem:[%s13042_s0 + $0x388] sm:$0xff] }
  0xd5   :  { %v4224_v0 = vpop.f32.mrf.mxu2  ;;  %v5900_v1 = vpop.f32.mrf.mxu3 }
  0xd6   :  { %v4704_v4 = vmax.f32 %v3028_v63, %v4224_v0  ;;  %v1071_v5 = vpop.f32.mrf.mxu0  ;;  %v2551_v6 = vpop.f32.mrf.mxu1 }
  0xd7   :  { %v3029_v14 = vmax.f32 %v1071_v5, %v2551_v6 }
  0xd8   :  { %v6380_v10 = vmax.f32 %v4704_v4, %v5900_v1 }
  0xd9   :  { %7785 = vmatmul.msk.bf16.gmra.mxu0 %vm740_vm2, %v9946_v2  ;;  %8471 = vmatmul.msk.bf16.gmra.mxu1 %vm740_vm2, %v10044_v3 }
  0xda   :  { %v6580_v11 = vadd.f32 %v11106_v56, %v6380_v10  ;;  %9157 = vmatmul.msk.bf16.gmra.mxu2 %vm740_vm2, %v10142_v7  ;;  %9843 = vmatmul.msk.bf16.gmra.mxu3 %vm740_vm2, %v10240_v8  ;;  %v9949_v8 = vld [vmem:[%s13042_s0 + $0x78] sm:$0xff] }
  0xdc   :  { %v6776_v13 = vmax.f32 %v6580_v11, 0.0 }
  0xdd   :  { %v4227_v15 = vpop.f32.mrf.mxu2  ;;  %v5903_v16 = vpop.f32.mrf.mxu3 }
  0xde   :  { %v10344_v17 = vpack.c.bf16 %v6776_v13, %v6775_v12  ;;  %v1073_v18 = vpop.f32.mrf.mxu0  ;;  %v2553_v19 = vpop.f32.mrf.mxu1  ;;  %v4705_v20 = vmax.f32 %v3029_v14, %v4227_v15  ;;  %v10145_v13 = vld [vmem:[%s13042_s0 + $0x698] sm:$0xff]  ;;  %v10243_v14 = vld [vmem:[%s13042_s0 + $0x9a8] sm:$0xff] }
  0xdf   :  { %v3030_v22 = vmax.f32 %v1073_v18, %v2553_v19 }
  0xe0   :  { %10818 = vst [vmem:[%s13044_s3 + $0x18] sm:$0xff] %v10344_v17   ;;  %v6381_v21 = vmax.f32 %v4705_v20, %v5903_v16 }
  0xe2   :  { %v6581_v32 = vadd.f32 %v11106_v56, %v6381_v21 }
  0xe4   :  { %v6777_v35 = vmax.f32 %v6581_v32, 0.0  ;;  %v10048_v32 = vld [vmem:[%s13042_s0 + $0x390] sm:$0xff] }
  0xe5   :  { %v4229_v23 = vpop.f32.mrf.mxu2  ;;  %v5905_v24 = vpop.f32.mrf.mxu3 }
  0xe6   :  { %v4706_v27 = vmax.f32 %v3030_v22, %v4229_v23  ;;  %v1076_v28 = vpop.f32.mrf.mxu0  ;;  %v2556_v29 = vpop.f32.mrf.mxu1 }
  0xe7   :  { %v3031_v37 = vmax.f32 %v1076_v28, %v2556_v29 }
  0xe8   :  { %v6382_v33 = vmax.f32 %v4706_v27, %v5905_v24 }
  0xe9   :  { %7786 = vmatmul.msk.bf16.gmra.mxu0 %vm740_vm2, %v9947_v25  ;;  %8472 = vmatmul.msk.bf16.gmra.mxu1 %vm740_vm2, %v10045_v26 }
  0xea   :  { %v6582_v34 = vadd.f32 %v11106_v56, %v6382_v33  ;;  %9158 = vmatmul.msk.bf16.gmra.mxu2 %vm740_vm2, %v10143_v30  ;;  %9844 = vmatmul.msk.bf16.gmra.mxu3 %vm740_vm2, %v10241_v31  ;;  %v9950_v31 = vld [vmem:[%s13042_s0 + $0x80] sm:$0xff] }
  0xec   :  { %v6778_v36 = vmax.f32 %v6582_v34, 0.0 }
  0xed   :  { %v4232_v38 = vpop.f32.mrf.mxu2  ;;  %v5908_v39 = vpop.f32.mrf.mxu3 }
  0xee   :  { %v10349_v40 = vpack.c.bf16 %v6778_v36, %v6777_v35  ;;  %v1078_v41 = vpop.f32.mrf.mxu0  ;;  %v2558_v42 = vpop.f32.mrf.mxu1  ;;  %v4707_v43 = vmax.f32 %v3031_v37, %v4232_v38  ;;  %v10146_v36 = vld [vmem:[%s13042_s0 + $0x6a0] sm:$0xff]  ;;  %v10244_v37 = vld [vmem:[%s13042_s0 + $0x9b0] sm:$0xff] }
  0xef   :  { %v3032_v45 = vmax.f32 %v1078_v41, %v2558_v42 }
  0xf0   :  { %10819 = vst [vmem:[%s13044_s3 + $0x20] sm:$0xff] %v10349_v40   ;;  %v6383_v44 = vmax.f32 %v4707_v43, %v5908_v39 }
  0xf2   :  { %v6583_v55 = vadd.f32 %v11106_v56, %v6383_v44 }
  0xf4   :  { %v6779_v59 = vmax.f32 %v6583_v55, 0.0  ;;  %v10049_v55 = vld [vmem:[%s13042_s0 + $0x398] sm:$0xff] }
  0xf5   :  { %v4234_v46 = vpop.f32.mrf.mxu2  ;;  %v5910_v47 = vpop.f32.mrf.mxu3 }
  0xf6   :  { %v4708_v50 = vmax.f32 %v3032_v45, %v4234_v46  ;;  %v1081_v51 = vpop.f32.mrf.mxu0  ;;  %v2561_v52 = vpop.f32.mrf.mxu1 }
  0xf7   :  { %v3033_v61 = vmax.f32 %v1081_v51, %v2561_v52 }
  0xf8   :  { %v6384_v57 = vmax.f32 %v4708_v50, %v5910_v47 }
  0xf9   :  { %7787 = vmatmul.msk.bf16.gmra.mxu0 %vm740_vm2, %v9948_v48  ;;  %8473 = vmatmul.msk.bf16.gmra.mxu1 %vm740_vm2, %v10046_v49 }
  0xfa   :  { %v6584_v58 = vadd.f32 %v11106_v56, %v6384_v57  ;;  %9159 = vmatmul.msk.bf16.gmra.mxu2 %vm740_vm2, %v10144_v53  ;;  %9845 = vmatmul.msk.bf16.gmra.mxu3 %vm740_vm2, %v10242_v54  ;;  %v9951_v54 = vld [vmem:[%s13042_s0 + $0x88] sm:$0xff] }
  0xfc   :  { %v6780_v60 = vmax.f32 %v6584_v58, 0.0 }
  0xfd   :  { %v4237_v62 = vpop.f32.mrf.mxu2  ;;  %v5913_v63 = vpop.f32.mrf.mxu3 }
  0xfe   :  { %v10354_v0 = vpack.c.bf16 %v6780_v60, %v6779_v59  ;;  %v1083_v1 = vpop.f32.mrf.mxu0  ;;  %v2563_v2 = vpop.f32.mrf.mxu1  ;;  %v4709_v3 = vmax.f32 %v3033_v61, %v4237_v62  ;;  %v10147_v60 = vld [vmem:[%s13042_s0 + $0x6a8] sm:$0xff]  ;;  %v10245_v61 = vld [vmem:[%s13042_s0 + $0x9b8] sm:$0xff] }
  0xff   :  { %v3034_v5 = vmax.f32 %v1083_v1, %v2563_v2 }
 0x100   :  { %10820 = vst [vmem:[%s13044_s3 + $0x28] sm:$0xff] %v10354_v0   ;;  %v6385_v4 = vmax.f32 %v4709_v3, %v5913_v63 }
 0x102   :  { %v6585_v15 = vadd.f32 %v11106_v56, %v6385_v4 }
 0x104   :  { %v6781_v18 = vmax.f32 %v6585_v15, 0.0  ;;  %v10050_v15 = vld [vmem:[%s13042_s0 + $0x3a0] sm:$0xff] }
 0x105   :  { %v4239_v6 = vpop.f32.mrf.mxu2  ;;  %v5915_v7 = vpop.f32.mrf.mxu3 }
 0x106   :  { %v4710_v10 = vmax.f32 %v3034_v5, %v4239_v6  ;;  %v1086_v11 = vpop.f32.mrf.mxu0  ;;  %v2566_v12 = vpop.f32.mrf.mxu1 }
 0x107   :  { %v3035_v20 = vmax.f32 %v1086_v11, %v2566_v12 }
 0x108   :  { %v6386_v16 = vmax.f32 %v4710_v10, %v5915_v7 }
 0x109   :  { %7788 = vmatmul.msk.bf16.gmra.mxu0 %vm740_vm2, %v9949_v8  ;;  %8474 = vmatmul.msk.bf16.gmra.mxu1 %vm740_vm2, %v10047_v9 }
 0x10a   :  { %v6586_v17 = vadd.f32 %v11106_v56, %v6386_v16  ;;  %9160 = vmatmul.msk.bf16.gmra.mxu2 %vm740_vm2, %v10145_v13  ;;  %9846 = vmatmul.msk.bf16.gmra.mxu3 %vm740_vm2, %v10243_v14  ;;  %v9952_v14 = vld [vmem:[%s13042_s0 + $0x90] sm:$0xff] }
 0x10c   :  { %v6782_v19 = vmax.f32 %v6586_v17, 0.0 }
 0x10d   :  { %v4242_v21 = vpop.f32.mrf.mxu2  ;;  %v5918_v22 = vpop.f32.mrf.mxu3 }
 0x10e   :  { %v10359_v23 = vpack.c.bf16 %v6782_v19, %v6781_v18  ;;  %v1088_v24 = vpop.f32.mrf.mxu0  ;;  %v2568_v25 = vpop.f32.mrf.mxu1  ;;  %v4711_v26 = vmax.f32 %v3035_v20, %v4242_v21  ;;  %v10148_v19 = vld [vmem:[%s13042_s0 + $0x6b0] sm:$0xff]  ;;  %v10246_v20 = vld [vmem:[%s13042_s0 + $0x9c0] sm:$0xff] }
 0x10f   :  { %v3036_v28 = vmax.f32 %v1088_v24, %v2568_v25 }
 0x110   :  { %10821 = vst [vmem:[%s13044_s3 + $0x30] sm:$0xff] %v10359_v23   ;;  %v6387_v27 = vmax.f32 %v4711_v26, %v5918_v22 }
 0x112   :  { %v6587_v38 = vadd.f32 %v11106_v56, %v6387_v27 }
 0x114   :  { %v6783_v41 = vmax.f32 %v6587_v38, 0.0  ;;  %v10051_v38 = vld [vmem:[%s13042_s0 + $0x3a8] sm:$0xff] }
 0x115   :  { %v4244_v29 = vpop.f32.mrf.mxu2  ;;  %v5920_v30 = vpop.f32.mrf.mxu3 }
 0x116   :  { %v4712_v33 = vmax.f32 %v3036_v28, %v4244_v29  ;;  %v1091_v34 = vpop.f32.mrf.mxu0  ;;  %v2571_v35 = vpop.f32.mrf.mxu1 }
 0x117   :  { %v3037_v43 = vmax.f32 %v1091_v34, %v2571_v35 }
 0x118   :  { %v6388_v39 = vmax.f32 %v4712_v33, %v5920_v30 }
 0x119   :  { %7789 = vmatmul.msk.bf16.gmra.mxu0 %vm740_vm2, %v9950_v31  ;;  %8475 = vmatmul.msk.bf16.gmra.mxu1 %vm740_vm2, %v10048_v32 }
 0x11a   :  { %v6588_v40 = vadd.f32 %v11106_v56, %v6388_v39  ;;  %9161 = vmatmul.msk.bf16.gmra.mxu2 %vm740_vm2, %v10146_v36  ;;  %9847 = vmatmul.msk.bf16.gmra.mxu3 %vm740_vm2, %v10244_v37  ;;  %v9953_v37 = vld [vmem:[%s13042_s0 + $0x98] sm:$0xff] }
 0x11c   :  { %v6784_v42 = vmax.f32 %v6588_v40, 0.0 }
 0x11d   :  { %v4247_v44 = vpop.f32.mrf.mxu2  ;;  %v5923_v45 = vpop.f32.mrf.mxu3 }
 0x11e   :  { %v10364_v46 = vpack.c.bf16 %v6784_v42, %v6783_v41  ;;  %v1093_v47 = vpop.f32.mrf.mxu0  ;;  %v2573_v48 = vpop.f32.mrf.mxu1  ;;  %v4713_v49 = vmax.f32 %v3037_v43, %v4247_v44  ;;  %v10149_v42 = vld [vmem:[%s13042_s0 + $0x6b8] sm:$0xff]  ;;  %v10247_v43 = vld [vmem:[%s13042_s0 + $0x9c8] sm:$0xff] }
 0x11f   :  { %v3038_v51 = vmax.f32 %v1093_v47, %v2573_v48 }
 0x120   :  { %10822 = vst [vmem:[%s13044_s3 + $0x38] sm:$0xff] %v10364_v46   ;;  %v6389_v50 = vmax.f32 %v4713_v49, %v5923_v45 }
 0x122   :  { %v6589_v62 = vadd.f32 %v11106_v56, %v6389_v50 }
 0x124   :  { %v6785_v1 = vmax.f32 %v6589_v62, 0.0  ;;  %v10052_v62 = vld [vmem:[%s13042_s0 + $0x3b0] sm:$0xff] }
 0x125   :  { %v4249_v52 = vpop.f32.mrf.mxu2  ;;  %v5925_v53 = vpop.f32.mrf.mxu3 }
 0x126   :  { %v4714_v57 = vmax.f32 %v3038_v51, %v4249_v52  ;;  %v1096_v58 = vpop.f32.mrf.mxu0  ;;  %v2576_v59 = vpop.f32.mrf.mxu1 }
 0x127   :  { %v3039_v3 = vmax.f32 %v1096_v58, %v2576_v59 }
 0x128   :  { %v6390_v63 = vmax.f32 %v4714_v57, %v5925_v53 }
 0x129   :  { %7790 = vmatmul.msk.bf16.gmra.mxu0 %vm740_vm2, %v9951_v54  ;;  %8476 = vmatmul.msk.bf16.gmra.mxu1 %vm740_vm2, %v10049_v55 }
 0x12a   :  { %v6590_v0 = vadd.f32 %v11106_v56, %v6390_v63  ;;  %9162 = vmatmul.msk.bf16.gmra.mxu2 %vm740_vm2, %v10147_v60  ;;  %9848 = vmatmul.msk.bf16.gmra.mxu3 %vm740_vm2, %v10245_v61  ;;  %v9954_v61 = vld [vmem:[%s13042_s0 + $0xa0] sm:$0xff] }
 0x12c   :  { %v6786_v2 = vmax.f32 %v6590_v0, 0.0 }
 0x12d   :  { %v4252_v4 = vpop.f32.mrf.mxu2  ;;  %v5928_v5 = vpop.f32.mrf.mxu3 }
 0x12e   :  { %v10369_v6 = vpack.c.bf16 %v6786_v2, %v6785_v1  ;;  %v1098_v7 = vpop.f32.mrf.mxu0  ;;  %v2578_v8 = vpop.f32.mrf.mxu1  ;;  %v4715_v9 = vmax.f32 %v3039_v3, %v4252_v4  ;;  %v10150_v2 = vld [vmem:[%s13042_s0 + $0x6c0] sm:$0xff]  ;;  %v10248_v3 = vld [vmem:[%s13042_s0 + $0x9d0] sm:$0xff] }
 0x12f   :  { %v3040_v11 = vmax.f32 %v1098_v7, %v2578_v8 }
 0x130   :  { %10823 = vst [vmem:[%s13044_s3 + $0x40] sm:$0xff] %v10369_v6   ;;  %v6391_v10 = vmax.f32 %v4715_v9, %v5928_v5 }
 0x132   :  { %v6591_v21 = vadd.f32 %v11106_v56, %v6391_v10 }
 0x134   :  { %v6787_v24 = vmax.f32 %v6591_v21, 0.0  ;;  %v10053_v21 = vld [vmem:[%s13042_s0 + $0x3b8] sm:$0xff] }
 0x135   :  { %v4254_v12 = vpop.f32.mrf.mxu2  ;;  %v5930_v13 = vpop.f32.mrf.mxu3 }
 0x136   :  { %v4716_v16 = vmax.f32 %v3040_v11, %v4254_v12  ;;  %v1101_v17 = vpop.f32.mrf.mxu0  ;;  %v2581_v18 = vpop.f32.mrf.mxu1 }
 0x137   :  { %v3041_v26 = vmax.f32 %v1101_v17, %v2581_v18 }
 0x138   :  { %v6392_v22 = vmax.f32 %v4716_v16, %v5930_v13 }
 0x139   :  { %7791 = vmatmul.msk.bf16.gmra.mxu0 %vm740_vm2, %v9952_v14  ;;  %8477 = vmatmul.msk.bf16.gmra.mxu1 %vm740_vm2, %v10050_v15 }
 0x13a   :  { %v6592_v23 = vadd.f32 %v11106_v56, %v6392_v22  ;;  %9163 = vmatmul.msk.bf16.gmra.mxu2 %vm740_vm2, %v10148_v19  ;;  %9849 = vmatmul.msk.bf16.gmra.mxu3 %vm740_vm2, %v10246_v20  ;;  %v9955_v20 = vld [vmem:[%s13042_s0 + $0xa8] sm:$0xff] }
 0x13c   :  { %v6788_v25 = vmax.f32 %v6592_v23, 0.0 }
 0x13d   :  { %v4257_v27 = vpop.f32.mrf.mxu2  ;;  %v5933_v28 = vpop.f32.mrf.mxu3 }
 0x13e   :  { %v10374_v29 = vpack.c.bf16 %v6788_v25, %v6787_v24  ;;  %v1103_v30 = vpop.f32.mrf.mxu0  ;;  %v2583_v31 = vpop.f32.mrf.mxu1  ;;  %v4717_v32 = vmax.f32 %v3041_v26, %v4257_v27  ;;  %v10151_v25 = vld [vmem:[%s13042_s0 + $0x6c8] sm:$0xff]  ;;  %v10249_v26 = vld [vmem:[%s13042_s0 + $0x9d8] sm:$0xff] }
 0x13f   :  { %v3042_v34 = vmax.f32 %v1103_v30, %v2583_v31 }
 0x140   :  { %10824 = vst [vmem:[%s13044_s3 + $0x48] sm:$0xff] %v10374_v29   ;;  %v6393_v33 = vmax.f32 %v4717_v32, %v5933_v28 }
 0x142   :  { %v6593_v44 = vadd.f32 %v11106_v56, %v6393_v33 }
 0x144   :  { %v6789_v47 = vmax.f32 %v6593_v44, 0.0  ;;  %v10054_v44 = vld [vmem:[%s13042_s0 + $0x3c0] sm:$0xff] }
 0x145   :  { %v4259_v35 = vpop.f32.mrf.mxu2  ;;  %v5935_v36 = vpop.f32.mrf.mxu3 }
 0x146   :  { %v4718_v39 = vmax.f32 %v3042_v34, %v4259_v35  ;;  %v1106_v40 = vpop.f32.mrf.mxu0  ;;  %v2586_v41 = vpop.f32.mrf.mxu1 }
 0x147   :  { %v3043_v49 = vmax.f32 %v1106_v40, %v2586_v41 }
 0x148   :  { %v6394_v45 = vmax.f32 %v4718_v39, %v5935_v36 }
 0x149   :  { %7792 = vmatmul.msk.bf16.gmra.mxu0 %vm740_vm2, %v9953_v37  ;;  %8478 = vmatmul.msk.bf16.gmra.mxu1 %vm740_vm2, %v10051_v38 }
 0x14a   :  { %v6594_v46 = vadd.f32 %v11106_v56, %v6394_v45  ;;  %9164 = vmatmul.msk.bf16.gmra.mxu2 %vm740_vm2, %v10149_v42  ;;  %9850 = vmatmul.msk.bf16.gmra.mxu3 %vm740_vm2, %v10247_v43  ;;  %v9956_v43 = vld [vmem:[%s13042_s0 + $0xb0] sm:$0xff] }
 0x14c   :  { %v6790_v48 = vmax.f32 %v6594_v46, 0.0 }
 0x14d   :  { %v4262_v50 = vpop.f32.mrf.mxu2  ;;  %v5938_v51 = vpop.f32.mrf.mxu3 }
 0x14e   :  { %v10379_v52 = vpack.c.bf16 %v6790_v48, %v6789_v47  ;;  %v1108_v53 = vpop.f32.mrf.mxu0  ;;  %v2588_v54 = vpop.f32.mrf.mxu1  ;;  %v4719_v55 = vmax.f32 %v3043_v49, %v4262_v50  ;;  %v10152_v48 = vld [vmem:[%s13042_s0 + $0x6d0] sm:$0xff]  ;;  %v10250_v49 = vld [vmem:[%s13042_s0 + $0x9e0] sm:$0xff] }
 0x14f   :  { %v3044_v58 = vmax.f32 %v1108_v53, %v2588_v54 }
 0x150   :  { %10825 = vst [vmem:[%s13044_s3 + $0x50] sm:$0xff] %v10379_v52   ;;  %v6395_v57 = vmax.f32 %v4719_v55, %v5938_v51 }
 0x152   :  { %v6595_v4 = vadd.f32 %v11106_v56, %v6395_v57 }
 0x154   :  { %v6791_v7 = vmax.f32 %v6595_v4, 0.0  ;;  %v10055_v4 = vld [vmem:[%s13042_s0 + $0x3c8] sm:$0xff] }
 0x155   :  { %v4264_v59 = vpop.f32.mrf.mxu2  ;;  %v5940_v60 = vpop.f32.mrf.mxu3 }
 0x156   :  { %v4720_v63 = vmax.f32 %v3044_v58, %v4264_v59  ;;  %v1111_v0 = vpop.f32.mrf.mxu0  ;;  %v2591_v1 = vpop.f32.mrf.mxu1 }
 0x157   :  { %v3045_v9 = vmax.f32 %v1111_v0, %v2591_v1 }
 0x158   :  { %v6396_v5 = vmax.f32 %v4720_v63, %v5940_v60 }
 0x159   :  { %7793 = vmatmul.msk.bf16.gmra.mxu0 %vm740_vm2, %v9954_v61  ;;  %8479 = vmatmul.msk.bf16.gmra.mxu1 %vm740_vm2, %v10052_v62 }
 0x15a   :  { %v6596_v6 = vadd.f32 %v11106_v56, %v6396_v5  ;;  %9165 = vmatmul.msk.bf16.gmra.mxu2 %vm740_vm2, %v10150_v2  ;;  %9851 = vmatmul.msk.bf16.gmra.mxu3 %vm740_vm2, %v10248_v3  ;;  %v9957_v3 = vld [vmem:[%s13042_s0 + $0xb8] sm:$0xff] }
 0x15c   :  { %v6792_v8 = vmax.f32 %v6596_v6, 0.0 }
 0x15d   :  { %v4267_v10 = vpop.f32.mrf.mxu2  ;;  %v5943_v11 = vpop.f32.mrf.mxu3 }
 0x15e   :  { %v10384_v12 = vpack.c.bf16 %v6792_v8, %v6791_v7  ;;  %v1113_v13 = vpop.f32.mrf.mxu0  ;;  %v2593_v14 = vpop.f32.mrf.mxu1  ;;  %v4721_v15 = vmax.f32 %v3045_v9, %v4267_v10  ;;  %v10153_v8 = vld [vmem:[%s13042_s0 + $0x6d8] sm:$0xff]  ;;  %v10251_v9 = vld [vmem:[%s13042_s0 + $0x9e8] sm:$0xff] }
 0x15f   :  { %v3046_v17 = vmax.f32 %v1113_v13, %v2593_v14 }
 0x160   :  { %10826 = vst [vmem:[%s13044_s3 + $0x58] sm:$0xff] %v10384_v12   ;;  %v6397_v16 = vmax.f32 %v4721_v15, %v5943_v11 }
 0x162   :  { %v6597_v27 = vadd.f32 %v11106_v56, %v6397_v16 }
 0x164   :  { %v6793_v30 = vmax.f32 %v6597_v27, 0.0  ;;  %v10056_v27 = vld [vmem:[%s13042_s0 + $0x3d0] sm:$0xff] }
 0x165   :  { %v4269_v18 = vpop.f32.mrf.mxu2  ;;  %v5945_v19 = vpop.f32.mrf.mxu3 }
 0x166   :  { %v4722_v22 = vmax.f32 %v3046_v17, %v4269_v18  ;;  %v1116_v23 = vpop.f32.mrf.mxu0  ;;  %v2596_v24 = vpop.f32.mrf.mxu1 }
 0x167   :  { %v3047_v32 = vmax.f32 %v1116_v23, %v2596_v24 }
 0x168   :  { %v6398_v28 = vmax.f32 %v4722_v22, %v5945_v19 }
 0x169   :  { %7794 = vmatmul.msk.bf16.gmra.mxu0 %vm740_vm2, %v9955_v20  ;;  %8480 = vmatmul.msk.bf16.gmra.mxu1 %vm740_vm2, %v10053_v21 }
 0x16a   :  { %v6598_v29 = vadd.f32 %v11106_v56, %v6398_v28  ;;  %9166 = vmatmul.msk.bf16.gmra.mxu2 %vm740_vm2, %v10151_v25  ;;  %9852 = vmatmul.msk.bf16.gmra.mxu3 %vm740_vm2, %v10249_v26  ;;  %v9958_v26 = vld [vmem:[%s13042_s0 + $0xc0] sm:$0xff] }
 0x16c   :  { %v6794_v31 = vmax.f32 %v6598_v29, 0.0 }
 0x16d   :  { %v4272_v33 = vpop.f32.mrf.mxu2  ;;  %v5948_v34 = vpop.f32.mrf.mxu3 }
 0x16e   :  { %v10389_v35 = vpack.c.bf16 %v6794_v31, %v6793_v30  ;;  %v1118_v36 = vpop.f32.mrf.mxu0  ;;  %v2598_v37 = vpop.f32.mrf.mxu1  ;;  %v4723_v38 = vmax.f32 %v3047_v32, %v4272_v33  ;;  %v10154_v31 = vld [vmem:[%s13042_s0 + $0x6e0] sm:$0xff]  ;;  %v10252_v32 = vld [vmem:[%s13042_s0 + $0x9f0] sm:$0xff] }
 0x16f   :  { %v3048_v40 = vmax.f32 %v1118_v36, %v2598_v37 }
 0x170   :  { %10827 = vst [vmem:[%s13044_s3 + $0x60] sm:$0xff] %v10389_v35   ;;  %v6399_v39 = vmax.f32 %v4723_v38, %v5948_v34 }
 0x172   :  { %v6599_v50 = vadd.f32 %v11106_v56, %v6399_v39 }
 0x174   :  { %v6795_v53 = vmax.f32 %v6599_v50, 0.0  ;;  %v10057_v50 = vld [vmem:[%s13042_s0 + $0x3d8] sm:$0xff] }
 0x175   :  { %v4274_v41 = vpop.f32.mrf.mxu2  ;;  %v5950_v42 = vpop.f32.mrf.mxu3 }
 0x176   :  { %v4724_v45 = vmax.f32 %v3048_v40, %v4274_v41  ;;  %v1121_v46 = vpop.f32.mrf.mxu0  ;;  %v2601_v47 = vpop.f32.mrf.mxu1 }
 0x177   :  { %v3049_v55 = vmax.f32 %v1121_v46, %v2601_v47 }
 0x178   :  { %v6400_v51 = vmax.f32 %v4724_v45, %v5950_v42 }
 0x179   :  { %7795 = vmatmul.msk.bf16.gmra.mxu0 %vm740_vm2, %v9956_v43  ;;  %8481 = vmatmul.msk.bf16.gmra.mxu1 %vm740_vm2, %v10054_v44 }
 0x17a   :  { %v6600_v52 = vadd.f32 %v11106_v56, %v6400_v51  ;;  %9167 = vmatmul.msk.bf16.gmra.mxu2 %vm740_vm2, %v10152_v48  ;;  %9853 = vmatmul.msk.bf16.gmra.mxu3 %vm740_vm2, %v10250_v49  ;;  %v9959_v49 = vld [vmem:[%s13042_s0 + $0xc8] sm:$0xff] }
 0x17c   :  { %v6796_v54 = vmax.f32 %v6600_v52, 0.0 }
 0x17d   :  { %v4277_v57 = vpop.f32.mrf.mxu2  ;;  %v5953_v58 = vpop.f32.mrf.mxu3 }
 0x17e   :  { %v10394_v59 = vpack.c.bf16 %v6796_v54, %v6795_v53  ;;  %v1123_v60 = vpop.f32.mrf.mxu0  ;;  %v2603_v61 = vpop.f32.mrf.mxu1  ;;  %v4725_v62 = vmax.f32 %v3049_v55, %v4277_v57  ;;  %v10155_v54 = vld [vmem:[%s13042_s0 + $0x6e8] sm:$0xff]  ;;  %v10253_v55 = vld [vmem:[%s13042_s0 + $0x9f8] sm:$0xff] }
 0x17f   :  { %v3050_v0 = vmax.f32 %v1123_v60, %v2603_v61 }
 0x180   :  { %10828 = vst [vmem:[%s13044_s3 + $0x68] sm:$0xff] %v10394_v59   ;;  %v6401_v63 = vmax.f32 %v4725_v62, %v5953_v58 }
 0x182   :  { %v6601_v10 = vadd.f32 %v11106_v56, %v6401_v63 }
 0x184   :  { %v6797_v13 = vmax.f32 %v6601_v10, 0.0  ;;  %v10058_v10 = vld [vmem:[%s13042_s0 + $0x3e0] sm:$0xff] }
 0x185   :  { %v4279_v1 = vpop.f32.mrf.mxu2  ;;  %v5955_v2 = vpop.f32.mrf.mxu3 }
 0x186   :  { %v4726_v5 = vmax.f32 %v3050_v0, %v4279_v1  ;;  %v1126_v6 = vpop.f32.mrf.mxu0  ;;  %v2606_v7 = vpop.f32.mrf.mxu1 }
 0x187   :  { %v3051_v15 = vmax.f32 %v1126_v6, %v2606_v7 }
 0x188   :  { %v6402_v11 = vmax.f32 %v4726_v5, %v5955_v2 }
 0x189   :  { %7796 = vmatmul.msk.bf16.gmra.mxu0 %vm740_vm2, %v9957_v3  ;;  %8482 = vmatmul.msk.bf16.gmra.mxu1 %vm740_vm2, %v10055_v4 }
 0x18a   :  { %v6602_v12 = vadd.f32 %v11106_v56, %v6402_v11  ;;  %9168 = vmatmul.msk.bf16.gmra.mxu2 %vm740_vm2, %v10153_v8  ;;  %9854 = vmatmul.msk.bf16.gmra.mxu3 %vm740_vm2, %v10251_v9  ;;  %v9960_v9 = vld [vmem:[%s13042_s0 + $0xd0] sm:$0xff] }
 0x18c   :  { %v6798_v14 = vmax.f32 %v6602_v12, 0.0 }
 0x18d   :  { %v4282_v16 = vpop.f32.mrf.mxu2  ;;  %v5958_v17 = vpop.f32.mrf.mxu3 }
 0x18e   :  { %v10399_v18 = vpack.c.bf16 %v6798_v14, %v6797_v13  ;;  %v1128_v19 = vpop.f32.mrf.mxu0  ;;  %v2608_v20 = vpop.f32.mrf.mxu1  ;;  %v4727_v21 = vmax.f32 %v3051_v15, %v4282_v16  ;;  %v10156_v14 = vld [vmem:[%s13042_s0 + $0x6f0] sm:$0xff]  ;;  %v10254_v15 = vld [vmem:[%s13042_s0 + $0xa00] sm:$0xff] }
 0x18f   :  { %v3052_v23 = vmax.f32 %v1128_v19, %v2608_v20 }
 0x190   :  { %10829 = vst [vmem:[%s13044_s3 + $0x70] sm:$0xff] %v10399_v18   ;;  %v6403_v22 = vmax.f32 %v4727_v21, %v5958_v17 }
 0x192   :  { %v6603_v33 = vadd.f32 %v11106_v56, %v6403_v22 }
 0x194   :  { %v6799_v36 = vmax.f32 %v6603_v33, 0.0 }
 0x195   :  { %v4284_v24 = vpop.f32.mrf.mxu2  ;;  %v5960_v25 = vpop.f32.mrf.mxu3 }
 0x196   :  { %v4728_v28 = vmax.f32 %v3052_v23, %v4284_v24  ;;  %v1131_v29 = vpop.f32.mrf.mxu0  ;;  %v2611_v30 = vpop.f32.mrf.mxu1 }
 0x197   :  { %v3053_v38 = vmax.f32 %v1131_v29, %v2611_v30 }
 0x198   :  { %v6404_v34 = vmax.f32 %v4728_v28, %v5960_v25 }
 0x199   :  { %7797 = vmatmul.msk.bf16.gmra.mxu0 %vm740_vm2, %v9958_v26  ;;  %8483 = vmatmul.msk.bf16.gmra.mxu1 %vm740_vm2, %v10056_v27 }
 0x19a   :  { %v6604_v35 = vadd.f32 %v11106_v56, %v6404_v34  ;;  %9169 = vmatmul.msk.bf16.gmra.mxu2 %vm740_vm2, %v10154_v31  ;;  %9855 = vmatmul.msk.bf16.gmra.mxu3 %vm740_vm2, %v10252_v32  ;;  %v9961_v31 = vld [vmem:[%s13042_s0 + $0xd8] sm:$0xff]  ;;  %v10059_v32 = vld [vmem:[%s13042_s0 + $0x3e8] sm:$0xff] }
 0x19c   :  { %v6800_v37 = vmax.f32 %v6604_v35, 0.0 }
 0x19d   :  { %v4287_v39 = vpop.f32.mrf.mxu2  ;;  %v5963_v40 = vpop.f32.mrf.mxu3 }
 0x19e   :  { %v10404_v41 = vpack.c.bf16 %v6800_v37, %v6799_v36  ;;  %v1133_v42 = vpop.f32.mrf.mxu0  ;;  %v2613_v43 = vpop.f32.mrf.mxu1  ;;  %v4729_v44 = vmax.f32 %v3053_v38, %v4287_v39  ;;  %v10157_v36 = vld [vmem:[%s13042_s0 + $0x6f8] sm:$0xff]  ;;  %v10255_v37 = vld [vmem:[%s13042_s0 + $0xa08] sm:$0xff]  ;;  %v11501_v38 = vld [vmem:[%s13043_s2] ss:$0 sm:$0xff] }
 0x19f   :  { %v3054_v46 = vmax.f32 %v1133_v42, %v2613_v43 }
 0x1a0   :  { %10830 = vst [vmem:[%s13044_s3 + $0x78] sm:$0xff] %v10404_v41   ;;  %v6405_v45 = vmax.f32 %v4729_v44, %v5963_v40 }
 0x1a2   :  { %v6605_v57 = vadd.f32 %v11106_v56, %v6405_v45 }
 0x1a4   :  { %v6801_v60 = vmax.f32 %v6605_v57, 0.0  ;;  %v10060_v57 = vld [vmem:[%s13042_s0 + $0x3f0] sm:$0xff] }
 0x1a5   :  { %v4289_v47 = vpop.f32.mrf.mxu2  ;;  %v5965_v48 = vpop.f32.mrf.mxu3 }
 0x1a6   :  { %v4730_v51 = vmax.f32 %v3054_v46, %v4289_v47  ;;  %v1136_v52 = vpop.f32.mrf.mxu0  ;;  %v2616_v53 = vpop.f32.mrf.mxu1 }
 0x1a7   :  { %v3055_v62 = vmax.f32 %v1136_v52, %v2616_v53 }
 0x1a8   :  { %v6406_v58 = vmax.f32 %v4730_v51, %v5965_v48 }
 0x1a9   :  { %7798 = vmatmul.msk.bf16.gmra.mxu0 %vm740_vm2, %v9959_v49  ;;  %8484 = vmatmul.msk.bf16.gmra.mxu1 %vm740_vm2, %v10057_v50 }
 0x1aa   :  { %v6606_v59 = vadd.f32 %v11106_v56, %v6406_v58  ;;  %9170 = vmatmul.msk.bf16.gmra.mxu2 %vm740_vm2, %v10155_v54  ;;  %9856 = vmatmul.msk.bf16.gmra.mxu3 %vm740_vm2, %v10253_v55  ;;  %v9962_v55 = vld [vmem:[%s13042_s0 + $0xe0] sm:$0xff] }
 0x1ac   :  { %v6802_v61 = vmax.f32 %v6606_v59, 0.0 }
 0x1ad   :  { %v4292_v63 = vpop.f32.mrf.mxu2  ;;  %v5968_v0 = vpop.f32.mrf.mxu3 }
 0x1ae   :  { %v10409_v1 = vpack.c.bf16 %v6802_v61, %v6801_v60  ;;  %v1138_v2 = vpop.f32.mrf.mxu0  ;;  %v2618_v3 = vpop.f32.mrf.mxu1  ;;  %v4731_v4 = vmax.f32 %v3055_v62, %v4292_v63  ;;  %v10158_v61 = vld [vmem:[%s13042_s0 + $0x700] sm:$0xff]  ;;  %v10256_v62 = vld [vmem:[%s13042_s0 + $0xa10] sm:$0xff] }
 0x1af   :  { %v3056_v6 = vmax.f32 %v1138_v2, %v2618_v3 }
 0x1b0   :  { %10831 = vst [vmem:[%s13044_s3 + $0x80] sm:$0xff] %v10409_v1   ;;  %v6407_v5 = vmax.f32 %v4731_v4, %v5968_v0 }
 0x1b2   :  { %v6607_v16 = vadd.f32 %v11106_v56, %v6407_v5 }
 0x1b4   :  { %v6803_v19 = vmax.f32 %v6607_v16, 0.0  ;;  %v10061_v16 = vld [vmem:[%s13042_s0 + $0x3f8] sm:$0xff] }
 0x1b5   :  { %v4294_v7 = vpop.f32.mrf.mxu2  ;;  %v5970_v8 = vpop.f32.mrf.mxu3 }
 0x1b6   :  { %v4732_v11 = vmax.f32 %v3056_v6, %v4294_v7  ;;  %v1141_v12 = vpop.f32.mrf.mxu0  ;;  %v2621_v13 = vpop.f32.mrf.mxu1 }
 0x1b7   :  { %v3057_v21 = vmax.f32 %v1141_v12, %v2621_v13 }
 0x1b8   :  { %v6408_v17 = vmax.f32 %v4732_v11, %v5970_v8 }
 0x1b9   :  { %7799 = vmatmul.msk.bf16.gmra.mxu0 %vm740_vm2, %v9960_v9  ;;  %8485 = vmatmul.msk.bf16.gmra.mxu1 %vm740_vm2, %v10058_v10 }
 0x1ba   :  { %v6608_v18 = vadd.f32 %v11106_v56, %v6408_v17  ;;  %9171 = vmatmul.msk.bf16.gmra.mxu2 %vm740_vm2, %v10156_v14  ;;  %9857 = vmatmul.msk.bf16.gmra.mxu3 %vm740_vm2, %v10254_v15  ;;  %v9963_v15 = vld [vmem:[%s13042_s0 + $0xe8] sm:$0xff] }
 0x1bc   :  { %v6804_v20 = vmax.f32 %v6608_v18, 0.0 }
 0x1bd   :  { %v4297_v22 = vpop.f32.mrf.mxu2  ;;  %v5973_v23 = vpop.f32.mrf.mxu3 }
 0x1be   :  { %v10414_v24 = vpack.c.bf16 %v6804_v20, %v6803_v19  ;;  %v1143_v25 = vpop.f32.mrf.mxu0  ;;  %v2623_v26 = vpop.f32.mrf.mxu1  ;;  %v4733_v27 = vmax.f32 %v3057_v21, %v4297_v22  ;;  %v10159_v20 = vld [vmem:[%s13042_s0 + $0x708] sm:$0xff]  ;;  %v10257_v21 = vld [vmem:[%s13042_s0 + $0xa18] sm:$0xff] }
 0x1bf   :  { %v3058_v29 = vmax.f32 %v1143_v25, %v2623_v26 }
 0x1c0   :  { %10832 = vst [vmem:[%s13044_s3 + $0x88] sm:$0xff] %v10414_v24   ;;  %v6409_v28 = vmax.f32 %v4733_v27, %v5973_v23 }
 0x1c2   :  { %v6609_v39 = vadd.f32 %v11501_v38, %v6409_v28 }
 0x1c4   :  { %v6805_v42 = vmax.f32 %v6609_v39, 0.0  ;;  %v10062_v39 = vld [vmem:[%s13042_s0 + $0x400] sm:$0xff] }
 0x1c5   :  { %v4299_v56 = vpop.f32.mrf.mxu2  ;;  %v5975_v30 = vpop.f32.mrf.mxu3 }
 0x1c6   :  { %v4734_v33 = vmax.f32 %v3058_v29, %v4299_v56  ;;  %v1146_v34 = vpop.f32.mrf.mxu0  ;;  %v2626_v35 = vpop.f32.mrf.mxu1 }
 0x1c7   :  { %v3059_v44 = vmax.f32 %v1146_v34, %v2626_v35 }
 0x1c8   :  { %v6410_v40 = vmax.f32 %v4734_v33, %v5975_v30 }
 0x1c9   :  { %7800 = vmatmul.msk.bf16.gmra.mxu0 %vm740_vm2, %v9961_v31  ;;  %8486 = vmatmul.msk.bf16.gmra.mxu1 %vm740_vm2, %v10059_v32 }
 0x1ca   :  { %v6610_v41 = vadd.f32 %v11501_v38, %v6410_v40  ;;  %9172 = vmatmul.msk.bf16.gmra.mxu2 %vm740_vm2, %v10157_v36  ;;  %9858 = vmatmul.msk.bf16.gmra.mxu3 %vm740_vm2, %v10255_v37  ;;  %v9964_v37 = vld [vmem:[%s13042_s0 + $0xf0] sm:$0xff] }
 0x1cc   :  { %v6806_v43 = vmax.f32 %v6610_v41, 0.0 }
 0x1cd   :  { %v4302_v45 = vpop.f32.mrf.mxu2  ;;  %v5978_v46 = vpop.f32.mrf.mxu3 }
 0x1ce   :  { %v10419_v47 = vpack.c.bf16 %v6806_v43, %v6805_v42  ;;  %v1148_v48 = vpop.f32.mrf.mxu0  ;;  %v2628_v49 = vpop.f32.mrf.mxu1  ;;  %v4735_v50 = vmax.f32 %v3059_v44, %v4302_v45  ;;  %v10160_v43 = vld [vmem:[%s13042_s0 + $0x710] sm:$0xff]  ;;  %v10258_v44 = vld [vmem:[%s13042_s0 + $0xa20] sm:$0xff] }
 0x1cf   :  { %v3060_v52 = vmax.f32 %v1148_v48, %v2628_v49 }
 0x1d0   :  { %10833 = vst [vmem:[%s13044_s3 + $0x90] sm:$0xff] %v10419_v47   ;;  %v6411_v51 = vmax.f32 %v4735_v50, %v5978_v46 }
 0x1d2   :  { %v6611_v63 = vadd.f32 %v11501_v38, %v6411_v51 }
 0x1d4   :  { %v6807_v2 = vmax.f32 %v6611_v63, 0.0  ;;  %v10063_v63 = vld [vmem:[%s13042_s0 + $0x408] sm:$0xff] }
 0x1d5   :  { %v4304_v53 = vpop.f32.mrf.mxu2  ;;  %v5980_v54 = vpop.f32.mrf.mxu3 }
 0x1d6   :  { %v4736_v58 = vmax.f32 %v3060_v52, %v4304_v53  ;;  %v1151_v59 = vpop.f32.mrf.mxu0  ;;  %v2631_v60 = vpop.f32.mrf.mxu1 }
 0x1d7   :  { %v3061_v4 = vmax.f32 %v1151_v59, %v2631_v60 }
 0x1d8   :  { %v6412_v0 = vmax.f32 %v4736_v58, %v5980_v54 }
 0x1d9   :  { %7801 = vmatmul.msk.bf16.gmra.mxu0 %vm740_vm2, %v9962_v55  ;;  %8487 = vmatmul.msk.bf16.gmra.mxu1 %vm740_vm2, %v10060_v57 }
 0x1da   :  { %v6612_v1 = vadd.f32 %v11501_v38, %v6412_v0  ;;  %9173 = vmatmul.msk.bf16.gmra.mxu2 %vm740_vm2, %v10158_v61  ;;  %9859 = vmatmul.msk.bf16.gmra.mxu3 %vm740_vm2, %v10256_v62  ;;  %v9965_v62 = vld [vmem:[%s13042_s0 + $0xf8] sm:$0xff] }
 0x1dc   :  { %v6808_v3 = vmax.f32 %v6612_v1, 0.0 }
 0x1dd   :  { %v4307_v5 = vpop.f32.mrf.mxu2  ;;  %v5983_v6 = vpop.f32.mrf.mxu3 }
 0x1de   :  { %v10424_v7 = vpack.c.bf16 %v6808_v3, %v6807_v2  ;;  %v1153_v8 = vpop.f32.mrf.mxu0  ;;  %v2633_v9 = vpop.f32.mrf.mxu1  ;;  %v4737_v10 = vmax.f32 %v3061_v4, %v4307_v5  ;;  %v10161_v3 = vld [vmem:[%s13042_s0 + $0x718] sm:$0xff]  ;;  %v10259_v4 = vld [vmem:[%s13042_s0 + $0xa28] sm:$0xff] }
 0x1df   :  { %v3062_v12 = vmax.f32 %v1153_v8, %v2633_v9 }
 0x1e0   :  { %10834 = vst [vmem:[%s13044_s3 + $0x98] sm:$0xff] %v10424_v7   ;;  %v6413_v11 = vmax.f32 %v4737_v10, %v5983_v6 }
 0x1e2   :  { %v6613_v22 = vadd.f32 %v11501_v38, %v6413_v11 }
 0x1e4   :  { %v6809_v25 = vmax.f32 %v6613_v22, 0.0  ;;  %v10064_v22 = vld [vmem:[%s13042_s0 + $0x410] sm:$0xff] }
 0x1e5   :  { %v4309_v13 = vpop.f32.mrf.mxu2  ;;  %v5985_v14 = vpop.f32.mrf.mxu3 }
 0x1e6   :  { %v4738_v17 = vmax.f32 %v3062_v12, %v4309_v13  ;;  %v1156_v18 = vpop.f32.mrf.mxu0  ;;  %v2636_v19 = vpop.f32.mrf.mxu1 }
 0x1e7   :  { %v3063_v27 = vmax.f32 %v1156_v18, %v2636_v19 }
 0x1e8   :  { %v6414_v23 = vmax.f32 %v4738_v17, %v5985_v14 }
 0x1e9   :  { %7802 = vmatmul.msk.bf16.gmra.mxu0 %vm740_vm2, %v9963_v15  ;;  %8488 = vmatmul.msk.bf16.gmra.mxu1 %vm740_vm2, %v10061_v16 }
 0x1ea   :  { %v6614_v24 = vadd.f32 %v11501_v38, %v6414_v23  ;;  %9174 = vmatmul.msk.bf16.gmra.mxu2 %vm740_vm2, %v10159_v20  ;;  %9860 = vmatmul.msk.bf16.gmra.mxu3 %vm740_vm2, %v10257_v21  ;;  %v9966_v21 = vld [vmem:[%s13042_s0 + $0x100] sm:$0xff] }
 0x1ec   :  { %v6810_v26 = vmax.f32 %v6614_v24, 0.0 }
 0x1ed   :  { %v4312_v28 = vpop.f32.mrf.mxu2  ;;  %v5988_v29 = vpop.f32.mrf.mxu3 }
 0x1ee   :  { %v10429_v56 = vpack.c.bf16 %v6810_v26, %v6809_v25  ;;  %v1158_v30 = vpop.f32.mrf.mxu0  ;;  %v2638_v31 = vpop.f32.mrf.mxu1  ;;  %v4739_v32 = vmax.f32 %v3063_v27, %v4312_v28  ;;  %v10162_v26 = vld [vmem:[%s13042_s0 + $0x720] sm:$0xff]  ;;  %v10260_v27 = vld [vmem:[%s13042_s0 + $0xa30] sm:$0xff] }
 0x1ef   :  { %v3064_v34 = vmax.f32 %v1158_v30, %v2638_v31 }
 0x1f0   :  { %10835 = vst [vmem:[%s13044_s3 + $0xa0] sm:$0xff] %v10429_v56   ;;  %v6415_v33 = vmax.f32 %v4739_v32, %v5988_v29 }
 0x1f2   :  { %v6615_v45 = vadd.f32 %v11501_v38, %v6415_v33 }
 0x1f4   :  { %v6811_v48 = vmax.f32 %v6615_v45, 0.0  ;;  %v10065_v45 = vld [vmem:[%s13042_s0 + $0x418] sm:$0xff] }
 0x1f5   :  { %v4314_v35 = vpop.f32.mrf.mxu2  ;;  %v5990_v36 = vpop.f32.mrf.mxu3 }
 0x1f6   :  { %v4740_v40 = vmax.f32 %v3064_v34, %v4314_v35  ;;  %v1161_v41 = vpop.f32.mrf.mxu0  ;;  %v2641_v42 = vpop.f32.mrf.mxu1 }
 0x1f7   :  { %v3065_v50 = vmax.f32 %v1161_v41, %v2641_v42 }
 0x1f8   :  { %v6416_v46 = vmax.f32 %v4740_v40, %v5990_v36 }
 0x1f9   :  { %7803 = vmatmul.msk.bf16.gmra.mxu0 %vm740_vm2, %v9964_v37  ;;  %8489 = vmatmul.msk.bf16.gmra.mxu1 %vm740_vm2, %v10062_v39 }
 0x1fa   :  { %v6616_v47 = vadd.f32 %v11501_v38, %v6416_v46  ;;  %9175 = vmatmul.msk.bf16.gmra.mxu2 %vm740_vm2, %v10160_v43  ;;  %9861 = vmatmul.msk.bf16.gmra.mxu3 %vm740_vm2, %v10258_v44  ;;  %v9967_v44 = vld [vmem:[%s13042_s0 + $0x108] sm:$0xff] }
 0x1fc   :  { %v6812_v49 = vmax.f32 %v6616_v47, 0.0 }
 0x1fd   :  { %v4317_v51 = vpop.f32.mrf.mxu2  ;;  %v5993_v52 = vpop.f32.mrf.mxu3 }
 0x1fe   :  { %v10434_v53 = vpack.c.bf16 %v6812_v49, %v6811_v48  ;;  %v1163_v54 = vpop.f32.mrf.mxu0  ;;  %v2643_v55 = vpop.f32.mrf.mxu1  ;;  %v4741_v57 = vmax.f32 %v3065_v50, %v4317_v51  ;;  %v10163_v49 = vld [vmem:[%s13042_s0 + $0x728] sm:$0xff]  ;;  %v10261_v50 = vld [vmem:[%s13042_s0 + $0xa38] sm:$0xff] }
 0x1ff   :  { %v3066_v59 = vmax.f32 %v1163_v54, %v2643_v55 }
 0x200   :  { %10836 = vst [vmem:[%s13044_s3 + $0xa8] sm:$0xff] %v10434_v53   ;;  %v6417_v58 = vmax.f32 %v4741_v57, %v5993_v52 }
 0x202   :  { %v6617_v5 = vadd.f32 %v11501_v38, %v6417_v58 }
 0x204   :  { %v6813_v8 = vmax.f32 %v6617_v5, 0.0  ;;  %v10066_v5 = vld [vmem:[%s13042_s0 + $0x420] sm:$0xff] }
 0x205   :  { %v4319_v60 = vpop.f32.mrf.mxu2  ;;  %v5995_v61 = vpop.f32.mrf.mxu3 }
 0x206   :  { %v4742_v0 = vmax.f32 %v3066_v59, %v4319_v60  ;;  %v1166_v1 = vpop.f32.mrf.mxu0  ;;  %v2646_v2 = vpop.f32.mrf.mxu1 }
 0x207   :  { %v3067_v10 = vmax.f32 %v1166_v1, %v2646_v2 }
 0x208   :  { %v6418_v6 = vmax.f32 %v4742_v0, %v5995_v61 }
 0x209   :  { %7804 = vmatmul.msk.bf16.gmra.mxu0 %vm740_vm2, %v9965_v62  ;;  %8490 = vmatmul.msk.bf16.gmra.mxu1 %vm740_vm2, %v10063_v63 }
 0x20a   :  { %v6618_v7 = vadd.f32 %v11501_v38, %v6418_v6  ;;  %9176 = vmatmul.msk.bf16.gmra.mxu2 %vm740_vm2, %v10161_v3  ;;  %9862 = vmatmul.msk.bf16.gmra.mxu3 %vm740_vm2, %v10259_v4  ;;  %v9968_v4 = vld [vmem:[%s13042_s0 + $0x110] sm:$0xff] }
 0x20c   :  { %v6814_v9 = vmax.f32 %v6618_v7, 0.0 }
 0x20d   :  { %v4322_v11 = vpop.f32.mrf.mxu2  ;;  %v5998_v12 = vpop.f32.mrf.mxu3 }
 0x20e   :  { %v10439_v13 = vpack.c.bf16 %v6814_v9, %v6813_v8  ;;  %v1168_v14 = vpop.f32.mrf.mxu0  ;;  %v2648_v15 = vpop.f32.mrf.mxu1  ;;  %v4743_v16 = vmax.f32 %v3067_v10, %v4322_v11  ;;  %v10164_v9 = vld [vmem:[%s13042_s0 + $0x730] sm:$0xff]  ;;  %v10262_v10 = vld [vmem:[%s13042_s0 + $0xa40] sm:$0xff] }
 0x20f   :  { %v3068_v18 = vmax.f32 %v1168_v14, %v2648_v15 }
 0x210   :  { %10837 = vst [vmem:[%s13044_s3 + $0xb0] sm:$0xff] %v10439_v13   ;;  %v6419_v17 = vmax.f32 %v4743_v16, %v5998_v12 }
 0x212   :  { %v6619_v28 = vadd.f32 %v11501_v38, %v6419_v17 }
 0x214   :  { %v6815_v30 = vmax.f32 %v6619_v28, 0.0  ;;  %v10067_v28 = vld [vmem:[%s13042_s0 + $0x428] sm:$0xff] }
 0x215   :  { %v4324_v19 = vpop.f32.mrf.mxu2  ;;  %v6000_v20 = vpop.f32.mrf.mxu3 }
 0x216   :  { %v4744_v23 = vmax.f32 %v3068_v18, %v4324_v19  ;;  %v1171_v24 = vpop.f32.mrf.mxu0  ;;  %v2651_v25 = vpop.f32.mrf.mxu1 }
 0x217   :  { %v3069_v32 = vmax.f32 %v1171_v24, %v2651_v25 }
 0x218   :  { %v6420_v29 = vmax.f32 %v4744_v23, %v6000_v20 }
 0x219   :  { %7805 = vmatmul.msk.bf16.gmra.mxu0 %vm740_vm2, %v9966_v21  ;;  %8491 = vmatmul.msk.bf16.gmra.mxu1 %vm740_vm2, %v10064_v22 }
 0x21a   :  { %v6620_v56 = vadd.f32 %v11501_v38, %v6420_v29  ;;  %9177 = vmatmul.msk.bf16.gmra.mxu2 %vm740_vm2, %v10162_v26  ;;  %9863 = vmatmul.msk.bf16.gmra.mxu3 %vm740_vm2, %v10260_v27  ;;  %v9969_v27 = vld [vmem:[%s13042_s0 + $0x118] sm:$0xff] }
 0x21c   :  { %v6816_v31 = vmax.f32 %v6620_v56, 0.0 }
 0x21d   :  { %v4327_v33 = vpop.f32.mrf.mxu2  ;;  %v6003_v34 = vpop.f32.mrf.mxu3 }
 0x21e   :  { %v10444_v35 = vpack.c.bf16 %v6816_v31, %v6815_v30  ;;  %v1173_v36 = vpop.f32.mrf.mxu0  ;;  %v2653_v37 = vpop.f32.mrf.mxu1  ;;  %v4745_v39 = vmax.f32 %v3069_v32, %v4327_v33  ;;  %v10165_v31 = vld [vmem:[%s13042_s0 + $0x738] sm:$0xff]  ;;  %v10263_v32 = vld [vmem:[%s13042_s0 + $0xa48] sm:$0xff] }
 0x21f   :  { %v3070_v41 = vmax.f32 %v1173_v36, %v2653_v37 }
 0x220   :  { %10838 = vst [vmem:[%s13044_s3 + $0xb8] sm:$0xff] %v10444_v35   ;;  %v6421_v40 = vmax.f32 %v4745_v39, %v6003_v34 }
 0x222   :  { %v6621_v51 = vadd.f32 %v11501_v38, %v6421_v40 }
 0x224   :  { %v6817_v54 = vmax.f32 %v6621_v51, 0.0  ;;  %v10068_v51 = vld [vmem:[%s13042_s0 + $0x430] sm:$0xff] }
 0x225   :  { %v4329_v42 = vpop.f32.mrf.mxu2  ;;  %v6005_v43 = vpop.f32.mrf.mxu3 }
 0x226   :  { %v4746_v46 = vmax.f32 %v3070_v41, %v4329_v42  ;;  %v1176_v47 = vpop.f32.mrf.mxu0  ;;  %v2656_v48 = vpop.f32.mrf.mxu1 }
 0x227   :  { %v3071_v57 = vmax.f32 %v1176_v47, %v2656_v48 }
 0x228   :  { %v6422_v52 = vmax.f32 %v4746_v46, %v6005_v43 }
 0x229   :  { %7806 = vmatmul.msk.bf16.gmra.mxu0 %vm740_vm2, %v9967_v44  ;;  %8492 = vmatmul.msk.bf16.gmra.mxu1 %vm740_vm2, %v10065_v45 }
 0x22a   :  { %v6622_v53 = vadd.f32 %v11501_v38, %v6422_v52  ;;  %9178 = vmatmul.msk.bf16.gmra.mxu2 %vm740_vm2, %v10163_v49  ;;  %9864 = vmatmul.msk.bf16.gmra.mxu3 %vm740_vm2, %v10261_v50  ;;  %v9970_v50 = vld [vmem:[%s13042_s0 + $0x120] sm:$0xff] }
 0x22c   :  { %v6818_v55 = vmax.f32 %v6622_v53, 0.0 }
 0x22d   :  { %v4332_v58 = vpop.f32.mrf.mxu2  ;;  %v6008_v59 = vpop.f32.mrf.mxu3 }
 0x22e   :  { %v10449_v60 = vpack.c.bf16 %v6818_v55, %v6817_v54  ;;  %v1178_v61 = vpop.f32.mrf.mxu0  ;;  %v2658_v62 = vpop.f32.mrf.mxu1  ;;  %v4747_v63 = vmax.f32 %v3071_v57, %v4332_v58  ;;  %v10166_v55 = vld [vmem:[%s13042_s0 + $0x740] sm:$0xff]  ;;  %v10264_v57 = vld [vmem:[%s13042_s0 + $0xa50] sm:$0xff] }
 0x22f   :  { %v3072_v1 = vmax.f32 %v1178_v61, %v2658_v62 }
 0x230   :  { %10839 = vst [vmem:[%s13044_s3 + $0xc0] sm:$0xff] %v10449_v60   ;;  %v6423_v0 = vmax.f32 %v4747_v63, %v6008_v59 }
 0x232   :  { %v6623_v11 = vadd.f32 %v11501_v38, %v6423_v0 }
 0x234   :  { %v6819_v14 = vmax.f32 %v6623_v11, 0.0  ;;  %v10069_v11 = vld [vmem:[%s13042_s0 + $0x438] sm:$0xff] }
 0x235   :  { %v4334_v2 = vpop.f32.mrf.mxu2  ;;  %v6010_v3 = vpop.f32.mrf.mxu3 }
 0x236   :  { %v4748_v6 = vmax.f32 %v3072_v1, %v4334_v2  ;;  %v1181_v7 = vpop.f32.mrf.mxu0  ;;  %v2661_v8 = vpop.f32.mrf.mxu1 }
 0x237   :  { %v3073_v16 = vmax.f32 %v1181_v7, %v2661_v8 }
 0x238   :  { %v6424_v12 = vmax.f32 %v4748_v6, %v6010_v3 }
 0x239   :  { %7807 = vmatmul.msk.bf16.gmra.mxu0 %vm740_vm2, %v9968_v4  ;;  %8493 = vmatmul.msk.bf16.gmra.mxu1 %vm740_vm2, %v10066_v5 }
 0x23a   :  { %v6624_v13 = vadd.f32 %v11501_v38, %v6424_v12  ;;  %9179 = vmatmul.msk.bf16.gmra.mxu2 %vm740_vm2, %v10164_v9  ;;  %9865 = vmatmul.msk.bf16.gmra.mxu3 %vm740_vm2, %v10262_v10  ;;  %v9971_v10 = vld [vmem:[%s13042_s0 + $0x128] sm:$0xff] }
 0x23c   :  { %v6820_v15 = vmax.f32 %v6624_v13, 0.0 }
 0x23d   :  { %v4337_v17 = vpop.f32.mrf.mxu2  ;;  %v6013_v18 = vpop.f32.mrf.mxu3 }
 0x23e   :  { %v10454_v19 = vpack.c.bf16 %v6820_v15, %v6819_v14  ;;  %v1183_v20 = vpop.f32.mrf.mxu0  ;;  %v2663_v21 = vpop.f32.mrf.mxu1  ;;  %v4749_v22 = vmax.f32 %v3073_v16, %v4337_v17  ;;  %v10167_v15 = vld [vmem:[%s13042_s0 + $0x748] sm:$0xff]  ;;  %v10265_v16 = vld [vmem:[%s13042_s0 + $0xa58] sm:$0xff] }
 0x23f   :  { %v3074_v24 = vmax.f32 %v1183_v20, %v2663_v21 }
 0x240   :  { %10840 = vst [vmem:[%s13044_s3 + $0xc8] sm:$0xff] %v10454_v19   ;;  %v6425_v23 = vmax.f32 %v4749_v22, %v6013_v18 }
 0x242   :  { %v6625_v33 = vadd.f32 %v11501_v38, %v6425_v23 }
 0x244   :  { %v6821_v36 = vmax.f32 %v6625_v33, 0.0  ;;  %v10070_v33 = vld [vmem:[%s13042_s0 + $0x440] sm:$0xff] }
 0x245   :  { %v4339_v25 = vpop.f32.mrf.mxu2  ;;  %v6015_v26 = vpop.f32.mrf.mxu3 }
 0x246   :  { %v4750_v29 = vmax.f32 %v3074_v24, %v4339_v25  ;;  %v1186_v56 = vpop.f32.mrf.mxu0  ;;  %v2666_v30 = vpop.f32.mrf.mxu1 }
 0x247   :  { %v3075_v39 = vmax.f32 %v1186_v56, %v2666_v30 }
 0x248   :  { %v6426_v34 = vmax.f32 %v4750_v29, %v6015_v26 }
 0x249   :  { %7808 = vmatmul.msk.bf16.gmra.mxu0 %vm740_vm2, %v9969_v27  ;;  %8494 = vmatmul.msk.bf16.gmra.mxu1 %vm740_vm2, %v10067_v28 }
 0x24a   :  { %v6626_v35 = vadd.f32 %v11501_v38, %v6426_v34  ;;  %9180 = vmatmul.msk.bf16.gmra.mxu2 %vm740_vm2, %v10165_v31  ;;  %9866 = vmatmul.msk.bf16.gmra.mxu3 %vm740_vm2, %v10263_v32  ;;  %v9972_v32 = vld [vmem:[%s13042_s0 + $0x130] sm:$0xff] }
 0x24c   :  { %v6822_v37 = vmax.f32 %v6626_v35, 0.0 }
 0x24d   :  { %v4342_v40 = vpop.f32.mrf.mxu2  ;;  %v6018_v41 = vpop.f32.mrf.mxu3 }
 0x24e   :  { %v10459_v42 = vpack.c.bf16 %v6822_v37, %v6821_v36  ;;  %v1188_v43 = vpop.f32.mrf.mxu0  ;;  %v2668_v44 = vpop.f32.mrf.mxu1  ;;  %v4751_v45 = vmax.f32 %v3075_v39, %v4342_v40  ;;  %v10168_v37 = vld [vmem:[%s13042_s0 + $0x750] sm:$0xff]  ;;  %v10266_v39 = vld [vmem:[%s13042_s0 + $0xa60] sm:$0xff] }
 0x24f   :  { %v3076_v47 = vmax.f32 %v1188_v43, %v2668_v44 }
 0x250   :  { %10841 = vst [vmem:[%s13044_s3 + $0xd0] sm:$0xff] %v10459_v42   ;;  %v6427_v46 = vmax.f32 %v4751_v45, %v6018_v41 }
 0x252   :  { %v6627_v58 = vadd.f32 %v11501_v38, %v6427_v46 }
 0x254   :  { %v6823_v61 = vmax.f32 %v6627_v58, 0.0  ;;  %v10071_v58 = vld [vmem:[%s13042_s0 + $0x448] sm:$0xff] }
 0x255   :  { %v4344_v48 = vpop.f32.mrf.mxu2  ;;  %v6020_v49 = vpop.f32.mrf.mxu3 }
 0x256   :  { %v4752_v52 = vmax.f32 %v3076_v47, %v4344_v48  ;;  %v1191_v53 = vpop.f32.mrf.mxu0  ;;  %v2671_v54 = vpop.f32.mrf.mxu1 }
 0x257   :  { %v3077_v63 = vmax.f32 %v1191_v53, %v2671_v54 }
 0x258   :  { %v6428_v59 = vmax.f32 %v4752_v52, %v6020_v49 }
 0x259   :  { %7809 = vmatmul.msk.bf16.gmra.mxu0 %vm740_vm2, %v9970_v50  ;;  %8495 = vmatmul.msk.bf16.gmra.mxu1 %vm740_vm2, %v10068_v51 }
 0x25a   :  { %v6628_v60 = vadd.f32 %v11501_v38, %v6428_v59  ;;  %9181 = vmatmul.msk.bf16.gmra.mxu2 %vm740_vm2, %v10166_v55  ;;  %9867 = vmatmul.msk.bf16.gmra.mxu3 %vm740_vm2, %v10264_v57  ;;  %v9973_v57 = vld [vmem:[%s13042_s0 + $0x138] sm:$0xff] }
 0x25c   :  { %v6824_v62 = vmax.f32 %v6628_v60, 0.0 }
 0x25d   :  { %v4347_v0 = vpop.f32.mrf.mxu2  ;;  %v6023_v1 = vpop.f32.mrf.mxu3 }
 0x25e   :  { %v10464_v2 = vpack.c.bf16 %v6824_v62, %v6823_v61  ;;  %v1193_v3 = vpop.f32.mrf.mxu0  ;;  %v2673_v4 = vpop.f32.mrf.mxu1  ;;  %v4753_v5 = vmax.f32 %v3077_v63, %v4347_v0  ;;  %v10169_v62 = vld [vmem:[%s13042_s0 + $0x758] sm:$0xff]  ;;  %v10267_v63 = vld [vmem:[%s13042_s0 + $0xa68] sm:$0xff] }
 0x25f   :  { %v3078_v7 = vmax.f32 %v1193_v3, %v2673_v4 }
 0x260   :  { %10842 = vst [vmem:[%s13044_s3 + $0xd8] sm:$0xff] %v10464_v2   ;;  %v6429_v6 = vmax.f32 %v4753_v5, %v6023_v1 }
 0x262   :  { %v6629_v17 = vadd.f32 %v11501_v38, %v6429_v6 }
 0x264   :  { %v6825_v20 = vmax.f32 %v6629_v17, 0.0  ;;  %v10072_v17 = vld [vmem:[%s13042_s0 + $0x450] sm:$0xff] }
 0x265   :  { %v4349_v8 = vpop.f32.mrf.mxu2  ;;  %v6025_v9 = vpop.f32.mrf.mxu3 }
 0x266   :  { %v4754_v12 = vmax.f32 %v3078_v7, %v4349_v8  ;;  %v1196_v13 = vpop.f32.mrf.mxu0  ;;  %v2676_v14 = vpop.f32.mrf.mxu1 }
 0x267   :  { %v3079_v22 = vmax.f32 %v1196_v13, %v2676_v14 }
 0x268   :  { %v6430_v18 = vmax.f32 %v4754_v12, %v6025_v9 }
 0x269   :  { %7810 = vmatmul.msk.bf16.gmra.mxu0 %vm740_vm2, %v9971_v10  ;;  %8496 = vmatmul.msk.bf16.gmra.mxu1 %vm740_vm2, %v10069_v11 }
 0x26a   :  { %v6630_v19 = vadd.f32 %v11501_v38, %v6430_v18  ;;  %9182 = vmatmul.msk.bf16.gmra.mxu2 %vm740_vm2, %v10167_v15  ;;  %9868 = vmatmul.msk.bf16.gmra.mxu3 %vm740_vm2, %v10265_v16  ;;  %v9974_v16 = vld [vmem:[%s13042_s0 + $0x140] sm:$0xff] }
 0x26c   :  { %v6826_v21 = vmax.f32 %v6630_v19, 0.0 }
 0x26d   :  { %v4352_v23 = vpop.f32.mrf.mxu2  ;;  %v6028_v24 = vpop.f32.mrf.mxu3 }
 0x26e   :  { %v10469_v25 = vpack.c.bf16 %v6826_v21, %v6825_v20  ;;  %v1198_v26 = vpop.f32.mrf.mxu0  ;;  %v2678_v27 = vpop.f32.mrf.mxu1  ;;  %v4755_v28 = vmax.f32 %v3079_v22, %v4352_v23  ;;  %v10170_v21 = vld [vmem:[%s13042_s0 + $0x760] sm:$0xff]  ;;  %v10268_v22 = vld [vmem:[%s13042_s0 + $0xa70] sm:$0xff] }
 0x26f   :  { %v3080_v56 = vmax.f32 %v1198_v26, %v2678_v27 }
 0x270   :  { %10843 = vst [vmem:[%s13044_s3 + $0xe0] sm:$0xff] %v10469_v25   ;;  %v6431_v29 = vmax.f32 %v4755_v28, %v6028_v24 }
 0x272   :  { %v6631_v40 = vadd.f32 %v11501_v38, %v6431_v29 }
 0x274   :  { %v6827_v43 = vmax.f32 %v6631_v40, 0.0  ;;  %v10073_v40 = vld [vmem:[%s13042_s0 + $0x458] sm:$0xff] }
 0x275   :  { %v4354_v30 = vpop.f32.mrf.mxu2  ;;  %v6030_v31 = vpop.f32.mrf.mxu3 }
 0x276   :  { %v4756_v34 = vmax.f32 %v3080_v56, %v4354_v30  ;;  %v1201_v35 = vpop.f32.mrf.mxu0  ;;  %v2681_v36 = vpop.f32.mrf.mxu1 }
 0x277   :  { %v3081_v45 = vmax.f32 %v1201_v35, %v2681_v36 }
 0x278   :  { %v6432_v41 = vmax.f32 %v4756_v34, %v6030_v31 }
 0x279   :  { %7811 = vmatmul.msk.bf16.gmra.mxu0 %vm740_vm2, %v9972_v32  ;;  %8497 = vmatmul.msk.bf16.gmra.mxu1 %vm740_vm2, %v10070_v33 }
 0x27a   :  { %v6632_v42 = vadd.f32 %v11501_v38, %v6432_v41  ;;  %9183 = vmatmul.msk.bf16.gmra.mxu2 %vm740_vm2, %v10168_v37  ;;  %9869 = vmatmul.msk.bf16.gmra.mxu3 %vm740_vm2, %v10266_v39  ;;  %v9975_v39 = vld [vmem:[%s13042_s0 + $0x148] sm:$0xff] }
 0x27c   :  { %v6828_v44 = vmax.f32 %v6632_v42, 0.0 }
 0x27d   :  { %v4357_v46 = vpop.f32.mrf.mxu2  ;;  %v6033_v47 = vpop.f32.mrf.mxu3 }
 0x27e   :  { %v10474_v48 = vpack.c.bf16 %v6828_v44, %v6827_v43  ;;  %v1203_v49 = vpop.f32.mrf.mxu0  ;;  %v2683_v50 = vpop.f32.mrf.mxu1  ;;  %v4757_v51 = vmax.f32 %v3081_v45, %v4357_v46  ;;  %v10171_v44 = vld [vmem:[%s13042_s0 + $0x768] sm:$0xff]  ;;  %v10269_v45 = vld [vmem:[%s13042_s0 + $0xa78] sm:$0xff] }
 0x27f   :  { %v3082_v53 = vmax.f32 %v1203_v49, %v2683_v50 }
 0x280   :  { %10844 = vst [vmem:[%s13044_s3 + $0xe8] sm:$0xff] %v10474_v48   ;;  %v6433_v52 = vmax.f32 %v4757_v51, %v6033_v47 }
 0x282   :  { %v6633_v0 = vadd.f32 %v11501_v38, %v6433_v52 }
 0x284   :  { %v6829_v3 = vmax.f32 %v6633_v0, 0.0  ;;  %v10074_v0 = vld [vmem:[%s13042_s0 + $0x460] sm:$0xff] }
 0x285   :  { %v4359_v54 = vpop.f32.mrf.mxu2  ;;  %v6035_v55 = vpop.f32.mrf.mxu3 }
 0x286   :  { %v4758_v59 = vmax.f32 %v3082_v53, %v4359_v54  ;;  %v1206_v60 = vpop.f32.mrf.mxu0  ;;  %v2686_v61 = vpop.f32.mrf.mxu1 }
 0x287   :  { %v3083_v5 = vmax.f32 %v1206_v60, %v2686_v61 }
 0x288   :  { %v6434_v1 = vmax.f32 %v4758_v59, %v6035_v55 }
 0x289   :  { %7812 = vmatmul.msk.bf16.gmra.mxu0 %vm740_vm2, %v9973_v57  ;;  %8498 = vmatmul.msk.bf16.gmra.mxu1 %vm740_vm2, %v10071_v58 }
 0x28a   :  { %v6634_v2 = vadd.f32 %v11501_v38, %v6434_v1  ;;  %9184 = vmatmul.msk.bf16.gmra.mxu2 %vm740_vm2, %v10169_v62  ;;  %9870 = vmatmul.msk.bf16.gmra.mxu3 %vm740_vm2, %v10267_v63  ;;  %v9976_v63 = vld [vmem:[%s13042_s0 + $0x150] sm:$0xff] }
 0x28c   :  { %v6830_v4 = vmax.f32 %v6634_v2, 0.0 }
 0x28d   :  { %v4362_v6 = vpop.f32.mrf.mxu2  ;;  %v6038_v7 = vpop.f32.mrf.mxu3 }
 0x28e   :  { %v10479_v8 = vpack.c.bf16 %v6830_v4, %v6829_v3  ;;  %v1208_v9 = vpop.f32.mrf.mxu0  ;;  %v2688_v10 = vpop.f32.mrf.mxu1  ;;  %v4759_v11 = vmax.f32 %v3083_v5, %v4362_v6  ;;  %v10172_v4 = vld [vmem:[%s13042_s0 + $0x770] sm:$0xff]  ;;  %v10270_v5 = vld [vmem:[%s13042_s0 + $0xa80] sm:$0xff] }
 0x28f   :  { %v3084_v13 = vmax.f32 %v1208_v9, %v2688_v10 }
 0x290   :  { %10845 = vst [vmem:[%s13044_s3 + $0xf0] sm:$0xff] %v10479_v8   ;;  %v6435_v12 = vmax.f32 %v4759_v11, %v6038_v7 }
 0x292   :  { %v6635_v23 = vadd.f32 %v11501_v38, %v6435_v12 }
 0x294   :  { %v6831_v26 = vmax.f32 %v6635_v23, 0.0  ;;  %v10075_v23 = vld [vmem:[%s13042_s0 + $0x468] sm:$0xff] }
 0x295   :  { %v4364_v14 = vpop.f32.mrf.mxu2  ;;  %v6040_v15 = vpop.f32.mrf.mxu3 }
 0x296   :  { %v4760_v18 = vmax.f32 %v3084_v13, %v4364_v14  ;;  %v1211_v19 = vpop.f32.mrf.mxu0  ;;  %v2691_v20 = vpop.f32.mrf.mxu1 }
 0x297   :  { %v3085_v28 = vmax.f32 %v1211_v19, %v2691_v20 }
 0x298   :  { %v6436_v24 = vmax.f32 %v4760_v18, %v6040_v15 }
 0x299   :  { %7813 = vmatmul.msk.bf16.gmra.mxu0 %vm740_vm2, %v9974_v16  ;;  %8499 = vmatmul.msk.bf16.gmra.mxu1 %vm740_vm2, %v10072_v17 }
 0x29a   :  { %v6636_v25 = vadd.f32 %v11501_v38, %v6436_v24  ;;  %9185 = vmatmul.msk.bf16.gmra.mxu2 %vm740_vm2, %v10170_v21  ;;  %9871 = vmatmul.msk.bf16.gmra.mxu3 %vm740_vm2, %v10268_v22  ;;  %v9977_v22 = vld [vmem:[%s13042_s0 + $0x158] sm:$0xff] }
 0x29c   :  { %v6832_v27 = vmax.f32 %v6636_v25, 0.0 }
 0x29d   :  { %v4367_v29 = vpop.f32.mrf.mxu2  ;;  %v6043_v56 = vpop.f32.mrf.mxu3 }
 0x29e   :  { %v10484_v30 = vpack.c.bf16 %v6832_v27, %v6831_v26  ;;  %v1213_v31 = vpop.f32.mrf.mxu0  ;;  %v2693_v32 = vpop.f32.mrf.mxu1  ;;  %v4761_v33 = vmax.f32 %v3085_v28, %v4367_v29  ;;  %v10173_v27 = vld [vmem:[%s13042_s0 + $0x778] sm:$0xff]  ;;  %v10271_v28 = vld [vmem:[%s13042_s0 + $0xa88] sm:$0xff] }
 0x29f   :  { %v3086_v35 = vmax.f32 %v1213_v31, %v2693_v32 }
 0x2a0   :  { %10846 = vst [vmem:[%s13044_s3 + $0xf8] sm:$0xff] %v10484_v30   ;;  %v6437_v34 = vmax.f32 %v4761_v33, %v6043_v56 }
 0x2a2   :  { %v6637_v46 = vadd.f32 %v11501_v38, %v6437_v34 }
 0x2a4   :  { %v6833_v49 = vmax.f32 %v6637_v46, 0.0  ;;  %v10076_v46 = vld [vmem:[%s13042_s0 + $0x470] sm:$0xff] }
 0x2a5   :  { %v4369_v36 = vpop.f32.mrf.mxu2  ;;  %v6045_v37 = vpop.f32.mrf.mxu3 }
 0x2a6   :  { %v4762_v41 = vmax.f32 %v3086_v35, %v4369_v36  ;;  %v1216_v42 = vpop.f32.mrf.mxu0  ;;  %v2696_v43 = vpop.f32.mrf.mxu1 }
 0x2a7   :  { %v3087_v51 = vmax.f32 %v1216_v42, %v2696_v43 }
 0x2a8   :  { %v6438_v47 = vmax.f32 %v4762_v41, %v6045_v37 }
 0x2a9   :  { %7814 = vmatmul.msk.bf16.gmra.mxu0 %vm740_vm2, %v9975_v39  ;;  %8500 = vmatmul.msk.bf16.gmra.mxu1 %vm740_vm2, %v10073_v40 }
 0x2aa   :  { %v6638_v48 = vadd.f32 %v11501_v38, %v6438_v47  ;;  %9186 = vmatmul.msk.bf16.gmra.mxu2 %vm740_vm2, %v10171_v44  ;;  %9872 = vmatmul.msk.bf16.gmra.mxu3 %vm740_vm2, %v10269_v45  ;;  %v9978_v45 = vld [vmem:[%s13042_s0 + $0x160] sm:$0xff] }
 0x2ac   :  { %v6834_v50 = vmax.f32 %v6638_v48, 0.0 }
 0x2ad   :  { %v4372_v52 = vpop.f32.mrf.mxu2  ;;  %v6048_v53 = vpop.f32.mrf.mxu3 }
 0x2ae   :  { %v10489_v54 = vpack.c.bf16 %v6834_v50, %v6833_v49  ;;  %v1218_v55 = vpop.f32.mrf.mxu0  ;;  %v2698_v57 = vpop.f32.mrf.mxu1  ;;  %v4763_v58 = vmax.f32 %v3087_v51, %v4372_v52  ;;  %v10174_v50 = vld [vmem:[%s13042_s0 + $0x780] sm:$0xff]  ;;  %v10272_v51 = vld [vmem:[%s13042_s0 + $0xa90] sm:$0xff] }
 0x2af   :  { %v3088_v60 = vmax.f32 %v1218_v55, %v2698_v57 }
 0x2b0   :  { %10847 = vst [vmem:[%s13044_s3 + $0x100] sm:$0xff] %v10489_v54   ;;  %v6439_v59 = vmax.f32 %v4763_v58, %v6048_v53 }
 0x2b2   :  { %v6639_v6 = vadd.f32 %v11501_v38, %v6439_v59 }
 0x2b4   :  { %v6835_v9 = vmax.f32 %v6639_v6, 0.0  ;;  %v10077_v6 = vld [vmem:[%s13042_s0 + $0x478] sm:$0xff] }
 0x2b5   :  { %v4374_v61 = vpop.f32.mrf.mxu2  ;;  %v6050_v62 = vpop.f32.mrf.mxu3 }
 0x2b6   :  { %v4764_v1 = vmax.f32 %v3088_v60, %v4374_v61  ;;  %v1221_v2 = vpop.f32.mrf.mxu0  ;;  %v2701_v3 = vpop.f32.mrf.mxu1 }
 0x2b7   :  { %v3089_v11 = vmax.f32 %v1221_v2, %v2701_v3 }
 0x2b8   :  { %v6440_v7 = vmax.f32 %v4764_v1, %v6050_v62 }
 0x2b9   :  { %7815 = vmatmul.msk.bf16.gmra.mxu0 %vm740_vm2, %v9976_v63  ;;  %8501 = vmatmul.msk.bf16.gmra.mxu1 %vm740_vm2, %v10074_v0 }
 0x2ba   :  { %v6640_v8 = vadd.f32 %v11501_v38, %v6440_v7  ;;  %9187 = vmatmul.msk.bf16.gmra.mxu2 %vm740_vm2, %v10172_v4  ;;  %9873 = vmatmul.msk.bf16.gmra.mxu3 %vm740_vm2, %v10270_v5  ;;  %v9979_v5 = vld [vmem:[%s13042_s0 + $0x168] sm:$0xff] }
 0x2bc   :  { %v6836_v10 = vmax.f32 %v6640_v8, 0.0 }
 0x2bd   :  { %v4377_v12 = vpop.f32.mrf.mxu2  ;;  %v6053_v13 = vpop.f32.mrf.mxu3 }
 0x2be   :  { %v10494_v14 = vpack.c.bf16 %v6836_v10, %v6835_v9  ;;  %v1223_v15 = vpop.f32.mrf.mxu0  ;;  %v2703_v16 = vpop.f32.mrf.mxu1  ;;  %v4765_v17 = vmax.f32 %v3089_v11, %v4377_v12  ;;  %v10175_v10 = vld [vmem:[%s13042_s0 + $0x788] sm:$0xff]  ;;  %v10273_v11 = vld [vmem:[%s13042_s0 + $0xa98] sm:$0xff] }
 0x2bf   :  { %v3090_v19 = vmax.f32 %v1223_v15, %v2703_v16 }
 0x2c0   :  { %10848 = vst [vmem:[%s13044_s3 + $0x108] sm:$0xff] %v10494_v14   ;;  %v6441_v18 = vmax.f32 %v4765_v17, %v6053_v13 }
 0x2c2   :  { %v6641_v29 = vadd.f32 %v11501_v38, %v6441_v18 }
 0x2c4   :  { %v6837_v31 = vmax.f32 %v6641_v29, 0.0 }
 0x2c5   :  { %v4379_v20 = vpop.f32.mrf.mxu2  ;;  %v6055_v21 = vpop.f32.mrf.mxu3 }
 0x2c6   :  { %v4766_v24 = vmax.f32 %v3090_v19, %v4379_v20  ;;  %v1226_v25 = vpop.f32.mrf.mxu0  ;;  %v2706_v26 = vpop.f32.mrf.mxu1 }
 0x2c7   :  { %v3091_v33 = vmax.f32 %v1226_v25, %v2706_v26 }
 0x2c8   :  { %v6442_v56 = vmax.f32 %v4766_v24, %v6055_v21 }
 0x2c9   :  { %7816 = vmatmul.msk.bf16.gmra.mxu0 %vm740_vm2, %v9977_v22  ;;  %8502 = vmatmul.msk.bf16.gmra.mxu1 %vm740_vm2, %v10075_v23 }
 0x2ca   :  { %v6642_v30 = vadd.f32 %v11501_v38, %v6442_v56  ;;  %9188 = vmatmul.msk.bf16.gmra.mxu2 %vm740_vm2, %v10173_v27  ;;  %9874 = vmatmul.msk.bf16.gmra.mxu3 %vm740_vm2, %v10271_v28  ;;  %v9980_v27 = vld [vmem:[%s13042_s0 + $0x170] sm:$0xff]  ;;  %v10078_v28 = vld [vmem:[%s13042_s0 + $0x480] sm:$0xff] }
 0x2cc   :  { %v6838_v32 = vmax.f32 %v6642_v30, 0.0 }
 0x2cd   :  { %v4382_v34 = vpop.f32.mrf.mxu2  ;;  %v6058_v35 = vpop.f32.mrf.mxu3 }
 0x2ce   :  { %v10499_v36 = vpack.c.bf16 %v6838_v32, %v6837_v31  ;;  %v1228_v37 = vpop.f32.mrf.mxu0  ;;  %v2708_v39 = vpop.f32.mrf.mxu1  ;;  %v4767_v40 = vmax.f32 %v3091_v33, %v4382_v34  ;;  %v10176_v31 = vld [vmem:[%s13042_s0 + $0x790] sm:$0xff]  ;;  %v10274_v32 = vld [vmem:[%s13042_s0 + $0xaa0] sm:$0xff] }
 0x2cf   :  { %v3092_v42 = vmax.f32 %v1228_v37, %v2708_v39  ;;  %v11905_v33 = vld [vmem:[%s13043_s2] ss:$0 sm:$0xff] }
 0x2d0   :  { %10849 = vst [vmem:[%s13044_s3 + $0x110] sm:$0xff] %v10499_v36   ;;  %v6443_v41 = vmax.f32 %v4767_v40, %v6058_v35 }
 0x2d2   :  { %v6643_v52 = vadd.f32 %v11501_v38, %v6443_v41 }
 0x2d4   :  { %v6839_v55 = vmax.f32 %v6643_v52, 0.0  ;;  %v10079_v52 = vld [vmem:[%s13042_s0 + $0x488] sm:$0xff] }
 0x2d5   :  { %v4384_v43 = vpop.f32.mrf.mxu2  ;;  %v6060_v44 = vpop.f32.mrf.mxu3 }
 0x2d6   :  { %v4768_v47 = vmax.f32 %v3092_v42, %v4384_v43  ;;  %v1231_v48 = vpop.f32.mrf.mxu0  ;;  %v2711_v49 = vpop.f32.mrf.mxu1 }
 0x2d7   :  { %v3093_v58 = vmax.f32 %v1231_v48, %v2711_v49 }
 0x2d8   :  { %v6444_v53 = vmax.f32 %v4768_v47, %v6060_v44 }
 0x2d9   :  { %7817 = vmatmul.msk.bf16.gmra.mxu0 %vm740_vm2, %v9978_v45  ;;  %8503 = vmatmul.msk.bf16.gmra.mxu1 %vm740_vm2, %v10076_v46 }
 0x2da   :  { %v6644_v54 = vadd.f32 %v11501_v38, %v6444_v53  ;;  %9189 = vmatmul.msk.bf16.gmra.mxu2 %vm740_vm2, %v10174_v50  ;;  %9875 = vmatmul.msk.bf16.gmra.mxu3 %vm740_vm2, %v10272_v51  ;;  %v9981_v51 = vld [vmem:[%s13042_s0 + $0x178] sm:$0xff] }
 0x2dc   :  { %v6840_v57 = vmax.f32 %v6644_v54, 0.0 }
 0x2dd   :  { %v4387_v59 = vpop.f32.mrf.mxu2  ;;  %v6063_v60 = vpop.f32.mrf.mxu3 }
 0x2de   :  { %v10504_v61 = vpack.c.bf16 %v6840_v57, %v6839_v55  ;;  %v1233_v62 = vpop.f32.mrf.mxu0  ;;  %v2713_v63 = vpop.f32.mrf.mxu1  ;;  %v4769_v0 = vmax.f32 %v3093_v58, %v4387_v59  ;;  %v10177_v57 = vld [vmem:[%s13042_s0 + $0x798] sm:$0xff]  ;;  %v10275_v58 = vld [vmem:[%s13042_s0 + $0xaa8] sm:$0xff] }
 0x2df   :  { %v3094_v2 = vmax.f32 %v1233_v62, %v2713_v63 }
 0x2e0   :  { %10850 = vst [vmem:[%s13044_s3 + $0x118] sm:$0xff] %v10504_v61   ;;  %v6445_v1 = vmax.f32 %v4769_v0, %v6063_v60 }
 0x2e2   :  { %v6645_v12 = vadd.f32 %v11501_v38, %v6445_v1 }
 0x2e4   :  { %v6841_v15 = vmax.f32 %v6645_v12, 0.0  ;;  %v10080_v12 = vld [vmem:[%s13042_s0 + $0x490] sm:$0xff] }
 0x2e5   :  { %v4389_v3 = vpop.f32.mrf.mxu2  ;;  %v6065_v4 = vpop.f32.mrf.mxu3 }
 0x2e6   :  { %v4770_v7 = vmax.f32 %v3094_v2, %v4389_v3  ;;  %v1236_v8 = vpop.f32.mrf.mxu0  ;;  %v2716_v9 = vpop.f32.mrf.mxu1 }
 0x2e7   :  { %v3095_v17 = vmax.f32 %v1236_v8, %v2716_v9 }
 0x2e8   :  { %v6446_v13 = vmax.f32 %v4770_v7, %v6065_v4 }
 0x2e9   :  { %7818 = vmatmul.msk.bf16.gmra.mxu0 %vm740_vm2, %v9979_v5  ;;  %8504 = vmatmul.msk.bf16.gmra.mxu1 %vm740_vm2, %v10077_v6 }
 0x2ea   :  { %v6646_v14 = vadd.f32 %v11501_v38, %v6446_v13  ;;  %9190 = vmatmul.msk.bf16.gmra.mxu2 %vm740_vm2, %v10175_v10  ;;  %9876 = vmatmul.msk.bf16.gmra.mxu3 %vm740_vm2, %v10273_v11  ;;  %v9982_v11 = vld [vmem:[%s13042_s0 + $0x180] sm:$0xff] }
 0x2ec   :  { %v6842_v16 = vmax.f32 %v6646_v14, 0.0 }
 0x2ed   :  { %v4392_v18 = vpop.f32.mrf.mxu2  ;;  %v6068_v19 = vpop.f32.mrf.mxu3 }
 0x2ee   :  { %v10509_v20 = vpack.c.bf16 %v6842_v16, %v6841_v15  ;;  %v1238_v21 = vpop.f32.mrf.mxu0  ;;  %v2718_v22 = vpop.f32.mrf.mxu1  ;;  %v4771_v23 = vmax.f32 %v3095_v17, %v4392_v18  ;;  %v10178_v16 = vld [vmem:[%s13042_s0 + $0x7a0] sm:$0xff]  ;;  %v10276_v17 = vld [vmem:[%s13042_s0 + $0xab0] sm:$0xff] }
 0x2ef   :  { %v3096_v25 = vmax.f32 %v1238_v21, %v2718_v22 }
 0x2f0   :  { %10851 = vst [vmem:[%s13044_s3 + $0x120] sm:$0xff] %v10509_v20   ;;  %v6447_v24 = vmax.f32 %v4771_v23, %v6068_v19 }
 0x2f2   :  { %v6647_v34 = vadd.f32 %v11905_v33, %v6447_v24 }
 0x2f4   :  { %v6843_v37 = vmax.f32 %v6647_v34, 0.0  ;;  %v10081_v34 = vld [vmem:[%s13042_s0 + $0x498] sm:$0xff] }
 0x2f5   :  { %v4394_v38 = vpop.f32.mrf.mxu2  ;;  %v6070_v26 = vpop.f32.mrf.mxu3 }
 0x2f6   :  { %v4772_v29 = vmax.f32 %v3096_v25, %v4394_v38  ;;  %v1241_v56 = vpop.f32.mrf.mxu0  ;;  %v2721_v30 = vpop.f32.mrf.mxu1 }
 0x2f7   :  { %v3097_v40 = vmax.f32 %v1241_v56, %v2721_v30 }
 0x2f8   :  { %v6448_v35 = vmax.f32 %v4772_v29, %v6070_v26 }
 0x2f9   :  { %7819 = vmatmul.msk.bf16.gmra.mxu0 %vm740_vm2, %v9980_v27  ;;  %8505 = vmatmul.msk.bf16.gmra.mxu1 %vm740_vm2, %v10078_v28 }
 0x2fa   :  { %v6648_v36 = vadd.f32 %v11905_v33, %v6448_v35  ;;  %9191 = vmatmul.msk.bf16.gmra.mxu2 %vm740_vm2, %v10176_v31  ;;  %9877 = vmatmul.msk.bf16.gmra.mxu3 %vm740_vm2, %v10274_v32  ;;  %v9983_v32 = vld [vmem:[%s13042_s0 + $0x188] sm:$0xff] }
 0x2fc   :  { %v6844_v39 = vmax.f32 %v6648_v36, 0.0 }
 0x2fd   :  { %v4397_v41 = vpop.f32.mrf.mxu2  ;;  %v6073_v42 = vpop.f32.mrf.mxu3 }
 0x2fe   :  { %v10514_v43 = vpack.c.bf16 %v6844_v39, %v6843_v37  ;;  %v1243_v44 = vpop.f32.mrf.mxu0  ;;  %v2723_v45 = vpop.f32.mrf.mxu1  ;;  %v4773_v46 = vmax.f32 %v3097_v40, %v4397_v41  ;;  %v10179_v39 = vld [vmem:[%s13042_s0 + $0x7a8] sm:$0xff]  ;;  %v10277_v40 = vld [vmem:[%s13042_s0 + $0xab8] sm:$0xff] }
 0x2ff   :  { %v3098_v48 = vmax.f32 %v1243_v44, %v2723_v45 }
 0x300   :  { %10852 = vst [vmem:[%s13044_s3 + $0x128] sm:$0xff] %v10514_v43   ;;  %v6449_v47 = vmax.f32 %v4773_v46, %v6073_v42 }
 0x302   :  { %v6649_v59 = vadd.f32 %v11905_v33, %v6449_v47 }
 0x304   :  { %v6845_v62 = vmax.f32 %v6649_v59, 0.0  ;;  %v10082_v59 = vld [vmem:[%s13042_s0 + $0x4a0] sm:$0xff] }
 0x305   :  { %v4399_v49 = vpop.f32.mrf.mxu2  ;;  %v6075_v50 = vpop.f32.mrf.mxu3 }
 0x306   :  { %v4774_v53 = vmax.f32 %v3098_v48, %v4399_v49  ;;  %v1246_v54 = vpop.f32.mrf.mxu0  ;;  %v2726_v55 = vpop.f32.mrf.mxu1 }
 0x307   :  { %v3099_v0 = vmax.f32 %v1246_v54, %v2726_v55 }
 0x308   :  { %v6450_v60 = vmax.f32 %v4774_v53, %v6075_v50 }
 0x309   :  { %7820 = vmatmul.msk.bf16.gmra.mxu0 %vm740_vm2, %v9981_v51  ;;  %8506 = vmatmul.msk.bf16.gmra.mxu1 %vm740_vm2, %v10079_v52 }
 0x30a   :  { %v6650_v61 = vadd.f32 %v11905_v33, %v6450_v60  ;;  %9192 = vmatmul.msk.bf16.gmra.mxu2 %vm740_vm2, %v10177_v57  ;;  %9878 = vmatmul.msk.bf16.gmra.mxu3 %vm740_vm2, %v10275_v58  ;;  %v9984_v58 = vld [vmem:[%s13042_s0 + $0x190] sm:$0xff] }
 0x30c   :  { %v6846_v63 = vmax.f32 %v6650_v61, 0.0 }
 0x30d   :  { %v4402_v1 = vpop.f32.mrf.mxu2  ;;  %v6078_v2 = vpop.f32.mrf.mxu3 }
 0x30e   :  { %v10519_v3 = vpack.c.bf16 %v6846_v63, %v6845_v62  ;;  %v1248_v4 = vpop.f32.mrf.mxu0  ;;  %v2728_v5 = vpop.f32.mrf.mxu1  ;;  %v4775_v6 = vmax.f32 %v3099_v0, %v4402_v1  ;;  %v10180_v63 = vld [vmem:[%s13042_s0 + $0x7b0] sm:$0xff]  ;;  %v10278_v0 = vld [vmem:[%s13042_s0 + $0xac0] sm:$0xff] }
 0x30f   :  { %v3100_v8 = vmax.f32 %v1248_v4, %v2728_v5 }
 0x310   :  { %10853 = vst [vmem:[%s13044_s3 + $0x130] sm:$0xff] %v10519_v3   ;;  %v6451_v7 = vmax.f32 %v4775_v6, %v6078_v2 }
 0x312   :  { %v6651_v18 = vadd.f32 %v11905_v33, %v6451_v7 }
 0x314   :  { %v6847_v21 = vmax.f32 %v6651_v18, 0.0  ;;  %v10083_v18 = vld [vmem:[%s13042_s0 + $0x4a8] sm:$0xff] }
 0x315   :  { %v4404_v9 = vpop.f32.mrf.mxu2  ;;  %v6080_v10 = vpop.f32.mrf.mxu3 }
 0x316   :  { %v4776_v13 = vmax.f32 %v3100_v8, %v4404_v9  ;;  %v1251_v14 = vpop.f32.mrf.mxu0  ;;  %v2731_v15 = vpop.f32.mrf.mxu1 }
 0x317   :  { %v3101_v23 = vmax.f32 %v1251_v14, %v2731_v15 }
 0x318   :  { %v6452_v19 = vmax.f32 %v4776_v13, %v6080_v10 }
 0x319   :  { %7821 = vmatmul.msk.bf16.gmra.mxu0 %vm740_vm2, %v9982_v11  ;;  %8507 = vmatmul.msk.bf16.gmra.mxu1 %vm740_vm2, %v10080_v12 }
 0x31a   :  { %v6652_v20 = vadd.f32 %v11905_v33, %v6452_v19  ;;  %9193 = vmatmul.msk.bf16.gmra.mxu2 %vm740_vm2, %v10178_v16  ;;  %9879 = vmatmul.msk.bf16.gmra.mxu3 %vm740_vm2, %v10276_v17  ;;  %v9985_v17 = vld [vmem:[%s13042_s0 + $0x198] sm:$0xff] }
 0x31c   :  { %v6848_v22 = vmax.f32 %v6652_v20, 0.0 }
 0x31d   :  { %v4407_v24 = vpop.f32.mrf.mxu2  ;;  %v6083_v25 = vpop.f32.mrf.mxu3 }
 0x31e   :  { %v10524_v38 = vpack.c.bf16 %v6848_v22, %v6847_v21  ;;  %v1253_v26 = vpop.f32.mrf.mxu0  ;;  %v2733_v27 = vpop.f32.mrf.mxu1  ;;  %v4777_v28 = vmax.f32 %v3101_v23, %v4407_v24  ;;  %v10181_v22 = vld [vmem:[%s13042_s0 + $0x7b8] sm:$0xff]  ;;  %v10279_v23 = vld [vmem:[%s13042_s0 + $0xac8] sm:$0xff] }
 0x31f   :  { %v3102_v56 = vmax.f32 %v1253_v26, %v2733_v27 }
 0x320   :  { %10854 = vst [vmem:[%s13044_s3 + $0x138] sm:$0xff] %v10524_v38   ;;  %v6453_v29 = vmax.f32 %v4777_v28, %v6083_v25 }
 0x322   :  { %v6653_v41 = vadd.f32 %v11905_v33, %v6453_v29 }
 0x324   :  { %v6849_v44 = vmax.f32 %v6653_v41, 0.0  ;;  %v10084_v41 = vld [vmem:[%s13042_s0 + $0x4b0] sm:$0xff] }
 0x325   :  { %v4409_v30 = vpop.f32.mrf.mxu2  ;;  %v6085_v31 = vpop.f32.mrf.mxu3 }
 0x326   :  { %v4778_v35 = vmax.f32 %v3102_v56, %v4409_v30  ;;  %v1256_v36 = vpop.f32.mrf.mxu0  ;;  %v2736_v37 = vpop.f32.mrf.mxu1 }
 0x327   :  { %v3103_v46 = vmax.f32 %v1256_v36, %v2736_v37 }
 0x328   :  { %v6454_v42 = vmax.f32 %v4778_v35, %v6085_v31 }
 0x329   :  { %7822 = vmatmul.msk.bf16.gmra.mxu0 %vm740_vm2, %v9983_v32  ;;  %8508 = vmatmul.msk.bf16.gmra.mxu1 %vm740_vm2, %v10081_v34 }
 0x32a   :  { %v6654_v43 = vadd.f32 %v11905_v33, %v6454_v42  ;;  %9194 = vmatmul.msk.bf16.gmra.mxu2 %vm740_vm2, %v10179_v39  ;;  %9880 = vmatmul.msk.bf16.gmra.mxu3 %vm740_vm2, %v10277_v40  ;;  %v9986_v40 = vld [vmem:[%s13042_s0 + $0x1a0] sm:$0xff] }
 0x32c   :  { %v6850_v45 = vmax.f32 %v6654_v43, 0.0 }
 0x32d   :  { %v4412_v47 = vpop.f32.mrf.mxu2  ;;  %v6088_v48 = vpop.f32.mrf.mxu3 }
 0x32e   :  { %v10529_v49 = vpack.c.bf16 %v6850_v45, %v6849_v44  ;;  %v1258_v50 = vpop.f32.mrf.mxu0  ;;  %v2738_v51 = vpop.f32.mrf.mxu1  ;;  %v4779_v52 = vmax.f32 %v3103_v46, %v4412_v47  ;;  %v10182_v45 = vld [vmem:[%s13042_s0 + $0x7c0] sm:$0xff]  ;;  %v10280_v46 = vld [vmem:[%s13042_s0 + $0xad0] sm:$0xff] }
 0x32f   :  { %v3104_v54 = vmax.f32 %v1258_v50, %v2738_v51 }
 0x330   :  { %10855 = vst [vmem:[%s13044_s3 + $0x140] sm:$0xff] %v10529_v49   ;;  %v6455_v53 = vmax.f32 %v4779_v52, %v6088_v48 }
 0x332   :  { %v6655_v1 = vadd.f32 %v11905_v33, %v6455_v53 }
 0x334   :  { %v6851_v4 = vmax.f32 %v6655_v1, 0.0  ;;  %v10085_v1 = vld [vmem:[%s13042_s0 + $0x4b8] sm:$0xff] }
 0x335   :  { %v4414_v55 = vpop.f32.mrf.mxu2  ;;  %v6090_v57 = vpop.f32.mrf.mxu3 }
 0x336   :  { %v4780_v60 = vmax.f32 %v3104_v54, %v4414_v55  ;;  %v1261_v61 = vpop.f32.mrf.mxu0  ;;  %v2741_v62 = vpop.f32.mrf.mxu1 }
 0x337   :  { %v3105_v6 = vmax.f32 %v1261_v61, %v2741_v62 }
 0x338   :  { %v6456_v2 = vmax.f32 %v4780_v60, %v6090_v57 }
 0x339   :  { %7823 = vmatmul.msk.bf16.gmra.mxu0 %vm740_vm2, %v9984_v58  ;;  %8509 = vmatmul.msk.bf16.gmra.mxu1 %vm740_vm2, %v10082_v59 }
 0x33a   :  { %v6656_v3 = vadd.f32 %v11905_v33, %v6456_v2  ;;  %9195 = vmatmul.msk.bf16.gmra.mxu2 %vm740_vm2, %v10180_v63  ;;  %9881 = vmatmul.msk.bf16.gmra.mxu3 %vm740_vm2, %v10278_v0  ;;  %v9987_v0 = vld [vmem:[%s13042_s0 + $0x1a8] sm:$0xff] }
 0x33c   :  { %v6852_v5 = vmax.f32 %v6656_v3, 0.0 }
 0x33d   :  { %v4417_v7 = vpop.f32.mrf.mxu2  ;;  %v6093_v8 = vpop.f32.mrf.mxu3 }
 0x33e   :  { %v10534_v9 = vpack.c.bf16 %v6852_v5, %v6851_v4  ;;  %v1263_v10 = vpop.f32.mrf.mxu0  ;;  %v2743_v11 = vpop.f32.mrf.mxu1  ;;  %v4781_v12 = vmax.f32 %v3105_v6, %v4417_v7  ;;  %v10183_v5 = vld [vmem:[%s13042_s0 + $0x7c8] sm:$0xff]  ;;  %v10281_v6 = vld [vmem:[%s13042_s0 + $0xad8] sm:$0xff] }
 0x33f   :  { %v3106_v14 = vmax.f32 %v1263_v10, %v2743_v11 }
 0x340   :  { %10856 = vst [vmem:[%s13044_s3 + $0x148] sm:$0xff] %v10534_v9   ;;  %v6457_v13 = vmax.f32 %v4781_v12, %v6093_v8 }
 0x342   :  { %v6657_v24 = vadd.f32 %v11905_v33, %v6457_v13 }
 0x344   :  { %v6853_v26 = vmax.f32 %v6657_v24, 0.0  ;;  %v10086_v24 = vld [vmem:[%s13042_s0 + $0x4c0] sm:$0xff] }
 0x345   :  { %v4419_v15 = vpop.f32.mrf.mxu2  ;;  %v6095_v16 = vpop.f32.mrf.mxu3 }
 0x346   :  { %v4782_v19 = vmax.f32 %v3106_v14, %v4419_v15  ;;  %v1266_v20 = vpop.f32.mrf.mxu0  ;;  %v2746_v21 = vpop.f32.mrf.mxu1 }
 0x347   :  { %v3107_v28 = vmax.f32 %v1266_v20, %v2746_v21 }
 0x348   :  { %v6458_v25 = vmax.f32 %v4782_v19, %v6095_v16 }
 0x349   :  { %7824 = vmatmul.msk.bf16.gmra.mxu0 %vm740_vm2, %v9985_v17  ;;  %8510 = vmatmul.msk.bf16.gmra.mxu1 %vm740_vm2, %v10083_v18 }
 0x34a   :  { %v6658_v38 = vadd.f32 %v11905_v33, %v6458_v25  ;;  %9196 = vmatmul.msk.bf16.gmra.mxu2 %vm740_vm2, %v10181_v22  ;;  %9882 = vmatmul.msk.bf16.gmra.mxu3 %vm740_vm2, %v10279_v23  ;;  %v9988_v23 = vld [vmem:[%s13042_s0 + $0x1b0] sm:$0xff] }
 0x34c   :  { %v6854_v27 = vmax.f32 %v6658_v38, 0.0 }
 0x34d   :  { %v4422_v29 = vpop.f32.mrf.mxu2  ;;  %v6098_v56 = vpop.f32.mrf.mxu3 }
 0x34e   :  { %v10539_v30 = vpack.c.bf16 %v6854_v27, %v6853_v26  ;;  %v1268_v31 = vpop.f32.mrf.mxu0  ;;  %v2748_v32 = vpop.f32.mrf.mxu1  ;;  %v4783_v34 = vmax.f32 %v3107_v28, %v4422_v29  ;;  %v10184_v27 = vld [vmem:[%s13042_s0 + $0x7d0] sm:$0xff]  ;;  %v10282_v28 = vld [vmem:[%s13042_s0 + $0xae0] sm:$0xff] }
 0x34f   :  { %v3108_v36 = vmax.f32 %v1268_v31, %v2748_v32 }
 0x350   :  { %10857 = vst [vmem:[%s13044_s3 + $0x150] sm:$0xff] %v10539_v30   ;;  %v6459_v35 = vmax.f32 %v4783_v34, %v6098_v56 }
 0x352   :  { %v6659_v47 = vadd.f32 %v11905_v33, %v6459_v35 }
 0x354   :  { %v6855_v50 = vmax.f32 %v6659_v47, 0.0  ;;  %v10087_v47 = vld [vmem:[%s13042_s0 + $0x4c8] sm:$0xff] }
 0x355   :  { %v4424_v37 = vpop.f32.mrf.mxu2  ;;  %v6100_v39 = vpop.f32.mrf.mxu3 }
 0x356   :  { %v4784_v42 = vmax.f32 %v3108_v36, %v4424_v37  ;;  %v1271_v43 = vpop.f32.mrf.mxu0  ;;  %v2751_v44 = vpop.f32.mrf.mxu1 }
 0x357   :  { %v3109_v52 = vmax.f32 %v1271_v43, %v2751_v44 }
 0x358   :  { %v6460_v48 = vmax.f32 %v4784_v42, %v6100_v39 }
 0x359   :  { %7825 = vmatmul.msk.bf16.gmra.mxu0 %vm740_vm2, %v9986_v40  ;;  %8511 = vmatmul.msk.bf16.gmra.mxu1 %vm740_vm2, %v10084_v41 }
 0x35a   :  { %v6660_v49 = vadd.f32 %v11905_v33, %v6460_v48  ;;  %9197 = vmatmul.msk.bf16.gmra.mxu2 %vm740_vm2, %v10182_v45  ;;  %9883 = vmatmul.msk.bf16.gmra.mxu3 %vm740_vm2, %v10280_v46  ;;  %v9989_v46 = vld [vmem:[%s13042_s0 + $0x1b8] sm:$0xff] }
 0x35c   :  { %v6856_v51 = vmax.f32 %v6660_v49, 0.0 }
 0x35d   :  { %v4427_v53 = vpop.f32.mrf.mxu2  ;;  %v6103_v54 = vpop.f32.mrf.mxu3 }
 0x35e   :  { %v10544_v55 = vpack.c.bf16 %v6856_v51, %v6855_v50  ;;  %v1273_v57 = vpop.f32.mrf.mxu0  ;;  %v2753_v58 = vpop.f32.mrf.mxu1  ;;  %v4785_v59 = vmax.f32 %v3109_v52, %v4427_v53  ;;  %v10185_v51 = vld [vmem:[%s13042_s0 + $0x7d8] sm:$0xff]  ;;  %v10283_v52 = vld [vmem:[%s13042_s0 + $0xae8] sm:$0xff] }
 0x35f   :  { %v3110_v61 = vmax.f32 %v1273_v57, %v2753_v58 }
 0x360   :  { %10858 = vst [vmem:[%s13044_s3 + $0x158] sm:$0xff] %v10544_v55   ;;  %v6461_v60 = vmax.f32 %v4785_v59, %v6103_v54 }
 0x362   :  { %v6661_v7 = vadd.f32 %v11905_v33, %v6461_v60 }
 0x364   :  { %v6857_v10 = vmax.f32 %v6661_v7, 0.0  ;;  %v10088_v7 = vld [vmem:[%s13042_s0 + $0x4d0] sm:$0xff] }
 0x365   :  { %v4429_v62 = vpop.f32.mrf.mxu2  ;;  %v6105_v63 = vpop.f32.mrf.mxu3 }
 0x366   :  { %v4786_v2 = vmax.f32 %v3110_v61, %v4429_v62  ;;  %v1276_v3 = vpop.f32.mrf.mxu0  ;;  %v2756_v4 = vpop.f32.mrf.mxu1 }
 0x367   :  { %v3111_v12 = vmax.f32 %v1276_v3, %v2756_v4 }
 0x368   :  { %v6462_v8 = vmax.f32 %v4786_v2, %v6105_v63 }
 0x369   :  { %7826 = vmatmul.msk.bf16.gmra.mxu0 %vm740_vm2, %v9987_v0  ;;  %8512 = vmatmul.msk.bf16.gmra.mxu1 %vm740_vm2, %v10085_v1 }
 0x36a   :  { %v6662_v9 = vadd.f32 %v11905_v33, %v6462_v8  ;;  %9198 = vmatmul.msk.bf16.gmra.mxu2 %vm740_vm2, %v10183_v5  ;;  %9884 = vmatmul.msk.bf16.gmra.mxu3 %vm740_vm2, %v10281_v6  ;;  %v9990_v6 = vld [vmem:[%s13042_s0 + $0x1c0] sm:$0xff] }
 0x36c   :  { %v6858_v11 = vmax.f32 %v6662_v9, 0.0 }
 0x36d   :  { %v4432_v13 = vpop.f32.mrf.mxu2  ;;  %v6108_v14 = vpop.f32.mrf.mxu3 }
 0x36e   :  { %v10549_v15 = vpack.c.bf16 %v6858_v11, %v6857_v10  ;;  %v1278_v16 = vpop.f32.mrf.mxu0  ;;  %v2758_v17 = vpop.f32.mrf.mxu1  ;;  %v4787_v18 = vmax.f32 %v3111_v12, %v4432_v13  ;;  %v10186_v11 = vld [vmem:[%s13042_s0 + $0x7e0] sm:$0xff]  ;;  %v10284_v12 = vld [vmem:[%s13042_s0 + $0xaf0] sm:$0xff] }
 0x36f   :  { %v3112_v20 = vmax.f32 %v1278_v16, %v2758_v17 }
 0x370   :  { %10859 = vst [vmem:[%s13044_s3 + $0x160] sm:$0xff] %v10549_v15   ;;  %v6463_v19 = vmax.f32 %v4787_v18, %v6108_v14 }
 0x372   :  { %v6663_v29 = vadd.f32 %v11905_v33, %v6463_v19 }
 0x374   :  { %v6859_v31 = vmax.f32 %v6663_v29, 0.0  ;;  %v10089_v29 = vld [vmem:[%s13042_s0 + $0x4d8] sm:$0xff] }
 0x375   :  { %v4434_v21 = vpop.f32.mrf.mxu2  ;;  %v6110_v22 = vpop.f32.mrf.mxu3 }
 0x376   :  { %v4788_v25 = vmax.f32 %v3112_v20, %v4434_v21  ;;  %v1281_v38 = vpop.f32.mrf.mxu0  ;;  %v2761_v26 = vpop.f32.mrf.mxu1 }
 0x377   :  { %v3113_v34 = vmax.f32 %v1281_v38, %v2761_v26 }
 0x378   :  { %v6464_v56 = vmax.f32 %v4788_v25, %v6110_v22 }
 0x379   :  { %7827 = vmatmul.msk.bf16.gmra.mxu0 %vm740_vm2, %v9988_v23  ;;  %8513 = vmatmul.msk.bf16.gmra.mxu1 %vm740_vm2, %v10086_v24 }
 0x37a   :  { %v6664_v30 = vadd.f32 %v11905_v33, %v6464_v56  ;;  %9199 = vmatmul.msk.bf16.gmra.mxu2 %vm740_vm2, %v10184_v27  ;;  %9885 = vmatmul.msk.bf16.gmra.mxu3 %vm740_vm2, %v10282_v28  ;;  %v9991_v28 = vld [vmem:[%s13042_s0 + $0x1c8] sm:$0xff] }
 0x37c   :  { %v6860_v32 = vmax.f32 %v6664_v30, 0.0 }
 0x37d   :  { %v4437_v35 = vpop.f32.mrf.mxu2  ;;  %v6113_v36 = vpop.f32.mrf.mxu3 }
 0x37e   :  { %v10554_v37 = vpack.c.bf16 %v6860_v32, %v6859_v31  ;;  %v1283_v39 = vpop.f32.mrf.mxu0  ;;  %v2763_v40 = vpop.f32.mrf.mxu1  ;;  %v4789_v41 = vmax.f32 %v3113_v34, %v4437_v35  ;;  %v10187_v32 = vld [vmem:[%s13042_s0 + $0x7e8] sm:$0xff]  ;;  %v10285_v34 = vld [vmem:[%s13042_s0 + $0xaf8] sm:$0xff] }
 0x37f   :  { %v3114_v43 = vmax.f32 %v1283_v39, %v2763_v40 }
 0x380   :  { %10860 = vst [vmem:[%s13044_s3 + $0x168] sm:$0xff] %v10554_v37   ;;  %v6465_v42 = vmax.f32 %v4789_v41, %v6113_v36 }
 0x382   :  { %v6665_v53 = vadd.f32 %v11905_v33, %v6465_v42 }
 0x384   :  { %v6861_v57 = vmax.f32 %v6665_v53, 0.0  ;;  %v10090_v53 = vld [vmem:[%s13042_s0 + $0x4e0] sm:$0xff] }
 0x385   :  { %v4439_v44 = vpop.f32.mrf.mxu2  ;;  %v6115_v45 = vpop.f32.mrf.mxu3 }
 0x386   :  { %v4790_v48 = vmax.f32 %v3114_v43, %v4439_v44  ;;  %v1286_v49 = vpop.f32.mrf.mxu0  ;;  %v2766_v50 = vpop.f32.mrf.mxu1 }
 0x387   :  { %v3115_v59 = vmax.f32 %v1286_v49, %v2766_v50 }
 0x388   :  { %v6466_v54 = vmax.f32 %v4790_v48, %v6115_v45 }
 0x389   :  { %7828 = vmatmul.msk.bf16.gmra.mxu0 %vm740_vm2, %v9989_v46  ;;  %8514 = vmatmul.msk.bf16.gmra.mxu1 %vm740_vm2, %v10087_v47 }
 0x38a   :  { %v6666_v55 = vadd.f32 %v11905_v33, %v6466_v54  ;;  %9200 = vmatmul.msk.bf16.gmra.mxu2 %vm740_vm2, %v10185_v51  ;;  %9886 = vmatmul.msk.bf16.gmra.mxu3 %vm740_vm2, %v10283_v52  ;;  %v9992_v52 = vld [vmem:[%s13042_s0 + $0x1d0] sm:$0xff] }
 0x38c   :  { %v6862_v58 = vmax.f32 %v6666_v55, 0.0 }
 0x38d   :  { %v4442_v60 = vpop.f32.mrf.mxu2  ;;  %v6118_v61 = vpop.f32.mrf.mxu3 }
 0x38e   :  { %v10559_v62 = vpack.c.bf16 %v6862_v58, %v6861_v57  ;;  %v1288_v63 = vpop.f32.mrf.mxu0  ;;  %v2768_v0 = vpop.f32.mrf.mxu1  ;;  %v4791_v1 = vmax.f32 %v3115_v59, %v4442_v60  ;;  %v10188_v58 = vld [vmem:[%s13042_s0 + $0x7f0] sm:$0xff]  ;;  %v10286_v59 = vld [vmem:[%s13042_s0 + $0xb00] sm:$0xff] }
 0x38f   :  { %v3116_v3 = vmax.f32 %v1288_v63, %v2768_v0 }
 0x390   :  { %10861 = vst [vmem:[%s13044_s3 + $0x170] sm:$0xff] %v10559_v62   ;;  %v6467_v2 = vmax.f32 %v4791_v1, %v6118_v61 }
 0x392   :  { %v6667_v13 = vadd.f32 %v11905_v33, %v6467_v2 }
 0x394   :  { %v6863_v16 = vmax.f32 %v6667_v13, 0.0  ;;  %v10091_v13 = vld [vmem:[%s13042_s0 + $0x4e8] sm:$0xff] }
 0x395   :  { %v4444_v4 = vpop.f32.mrf.mxu2  ;;  %v6120_v5 = vpop.f32.mrf.mxu3 }
 0x396   :  { %v4792_v8 = vmax.f32 %v3116_v3, %v4444_v4  ;;  %v1291_v9 = vpop.f32.mrf.mxu0  ;;  %v2771_v10 = vpop.f32.mrf.mxu1 }
 0x397   :  { %v3117_v18 = vmax.f32 %v1291_v9, %v2771_v10 }
 0x398   :  { %v6468_v14 = vmax.f32 %v4792_v8, %v6120_v5 }
 0x399   :  { %7829 = vmatmul.msk.bf16.gmra.mxu0 %vm740_vm2, %v9990_v6  ;;  %8515 = vmatmul.msk.bf16.gmra.mxu1 %vm740_vm2, %v10088_v7 }
 0x39a   :  { %v6668_v15 = vadd.f32 %v11905_v33, %v6468_v14  ;;  %9201 = vmatmul.msk.bf16.gmra.mxu2 %vm740_vm2, %v10186_v11  ;;  %9887 = vmatmul.msk.bf16.gmra.mxu3 %vm740_vm2, %v10284_v12  ;;  %v9993_v12 = vld [vmem:[%s13042_s0 + $0x1d8] sm:$0xff] }
 0x39c   :  { %v6864_v17 = vmax.f32 %v6668_v15, 0.0 }
 0x39d   :  { %v4447_v19 = vpop.f32.mrf.mxu2  ;;  %v6123_v20 = vpop.f32.mrf.mxu3 }
 0x39e   :  { %v10564_v21 = vpack.c.bf16 %v6864_v17, %v6863_v16  ;;  %v1293_v22 = vpop.f32.mrf.mxu0  ;;  %v2773_v23 = vpop.f32.mrf.mxu1  ;;  %v4793_v24 = vmax.f32 %v3117_v18, %v4447_v19  ;;  %v10189_v17 = vld [vmem:[%s13042_s0 + $0x7f8] sm:$0xff]  ;;  %v10287_v18 = vld [vmem:[%s13042_s0 + $0xb08] sm:$0xff] }
 0x39f   :  { %v3118_v38 = vmax.f32 %v1293_v22, %v2773_v23 }
 0x3a0   :  { %10862 = vst [vmem:[%s13044_s3 + $0x178] sm:$0xff] %v10564_v21   ;;  %v6469_v25 = vmax.f32 %v4793_v24, %v6123_v20 }
 0x3a2   :  { %v6669_v35 = vadd.f32 %v11905_v33, %v6469_v25 }
 0x3a4   :  { %v6865_v39 = vmax.f32 %v6669_v35, 0.0  ;;  %v10092_v35 = vld [vmem:[%s13042_s0 + $0x4f0] sm:$0xff] }
 0x3a5   :  { %v4449_v26 = vpop.f32.mrf.mxu2  ;;  %v6125_v27 = vpop.f32.mrf.mxu3 }
 0x3a6   :  { %v4794_v56 = vmax.f32 %v3118_v38, %v4449_v26  ;;  %v1296_v30 = vpop.f32.mrf.mxu0  ;;  %v2776_v31 = vpop.f32.mrf.mxu1 }
 0x3a7   :  { %v3119_v41 = vmax.f32 %v1296_v30, %v2776_v31 }
 0x3a8   :  { %v6470_v36 = vmax.f32 %v4794_v56, %v6125_v27 }
 0x3a9   :  { %7830 = vmatmul.msk.bf16.gmra.mxu0 %vm740_vm2, %v9991_v28  ;;  %8516 = vmatmul.msk.bf16.gmra.mxu1 %vm740_vm2, %v10089_v29 }
 0x3aa   :  { %v6670_v37 = vadd.f32 %v11905_v33, %v6470_v36  ;;  %9202 = vmatmul.msk.bf16.gmra.mxu2 %vm740_vm2, %v10187_v32  ;;  %9888 = vmatmul.msk.bf16.gmra.mxu3 %vm740_vm2, %v10285_v34  ;;  %v9994_v34 = vld [vmem:[%s13042_s0 + $0x1e0] sm:$0xff] }
 0x3ac   :  { %v6866_v40 = vmax.f32 %v6670_v37, 0.0 }
 0x3ad   :  { %v4452_v42 = vpop.f32.mrf.mxu2  ;;  %v6128_v43 = vpop.f32.mrf.mxu3 }
 0x3ae   :  { %v10569_v44 = vpack.c.bf16 %v6866_v40, %v6865_v39  ;;  %v1298_v45 = vpop.f32.mrf.mxu0  ;;  %v2778_v46 = vpop.f32.mrf.mxu1  ;;  %v4795_v47 = vmax.f32 %v3119_v41, %v4452_v42  ;;  %v10190_v40 = vld [vmem:[%s13042_s0 + $0x800] sm:$0xff]  ;;  %v10288_v41 = vld [vmem:[%s13042_s0 + $0xb10] sm:$0xff] }
 0x3af   :  { %v3120_v49 = vmax.f32 %v1298_v45, %v2778_v46 }
 0x3b0   :  { %10863 = vst [vmem:[%s13044_s3 + $0x180] sm:$0xff] %v10569_v44   ;;  %v6471_v48 = vmax.f32 %v4795_v47, %v6128_v43 }
 0x3b2   :  { %v6671_v60 = vadd.f32 %v11905_v33, %v6471_v48 }
 0x3b4   :  { %v6867_v63 = vmax.f32 %v6671_v60, 0.0  ;;  %v10093_v60 = vld [vmem:[%s13042_s0 + $0x4f8] sm:$0xff] }
 0x3b5   :  { %v4454_v50 = vpop.f32.mrf.mxu2  ;;  %v6130_v51 = vpop.f32.mrf.mxu3 }
 0x3b6   :  { %v4796_v54 = vmax.f32 %v3120_v49, %v4454_v50  ;;  %v1301_v55 = vpop.f32.mrf.mxu0  ;;  %v2781_v57 = vpop.f32.mrf.mxu1 }
 0x3b7   :  { %v3121_v1 = vmax.f32 %v1301_v55, %v2781_v57 }
 0x3b8   :  { %v6472_v61 = vmax.f32 %v4796_v54, %v6130_v51 }
 0x3b9   :  { %7831 = vmatmul.msk.bf16.gmra.mxu0 %vm740_vm2, %v9992_v52  ;;  %8517 = vmatmul.msk.bf16.gmra.mxu1 %vm740_vm2, %v10090_v53 }
 0x3ba   :  { %v6672_v62 = vadd.f32 %v11905_v33, %v6472_v61  ;;  %9203 = vmatmul.msk.bf16.gmra.mxu2 %vm740_vm2, %v10188_v58  ;;  %9889 = vmatmul.msk.bf16.gmra.mxu3 %vm740_vm2, %v10286_v59  ;;  %v9995_v59 = vld [vmem:[%s13042_s0 + $0x1e8] sm:$0xff] }
 0x3bc   :  { %v6868_v0 = vmax.f32 %v6672_v62, 0.0 }
 0x3bd   :  { %v4457_v2 = vpop.f32.mrf.mxu2  ;;  %v6133_v3 = vpop.f32.mrf.mxu3 }
 0x3be   :  { %v10574_v4 = vpack.c.bf16 %v6868_v0, %v6867_v63  ;;  %v1303_v5 = vpop.f32.mrf.mxu0  ;;  %v2783_v6 = vpop.f32.mrf.mxu1  ;;  %v4797_v7 = vmax.f32 %v3121_v1, %v4457_v2  ;;  %v10191_v0 = vld [vmem:[%s13042_s0 + $0x808] sm:$0xff]  ;;  %v10289_v1 = vld [vmem:[%s13042_s0 + $0xb18] sm:$0xff] }
 0x3bf   :  { %v3122_v9 = vmax.f32 %v1303_v5, %v2783_v6 }
 0x3c0   :  { %10864 = vst [vmem:[%s13044_s3 + $0x188] sm:$0xff] %v10574_v4   ;;  %v6473_v8 = vmax.f32 %v4797_v7, %v6133_v3 }
 0x3c2   :  { %v6673_v19 = vadd.f32 %v11905_v33, %v6473_v8 }
 0x3c4   :  { %v6869_v22 = vmax.f32 %v6673_v19, 0.0  ;;  %v10094_v19 = vld [vmem:[%s13042_s0 + $0x500] sm:$0xff] }
 0x3c5   :  { %v4459_v10 = vpop.f32.mrf.mxu2  ;;  %v6135_v11 = vpop.f32.mrf.mxu3 }
 0x3c6   :  { %v4798_v14 = vmax.f32 %v3122_v9, %v4459_v10  ;;  %v1306_v15 = vpop.f32.mrf.mxu0  ;;  %v2786_v16 = vpop.f32.mrf.mxu1 }
 0x3c7   :  { %v3123_v24 = vmax.f32 %v1306_v15, %v2786_v16 }
 0x3c8   :  { %v6474_v20 = vmax.f32 %v4798_v14, %v6135_v11 }
 0x3c9   :  { %7832 = vmatmul.msk.bf16.gmra.mxu0 %vm740_vm2, %v9993_v12  ;;  %8518 = vmatmul.msk.bf16.gmra.mxu1 %vm740_vm2, %v10091_v13 }
 0x3ca   :  { %v6674_v21 = vadd.f32 %v11905_v33, %v6474_v20  ;;  %9204 = vmatmul.msk.bf16.gmra.mxu2 %vm740_vm2, %v10189_v17  ;;  %9890 = vmatmul.msk.bf16.gmra.mxu3 %vm740_vm2, %v10287_v18  ;;  %v9996_v18 = vld [vmem:[%s13042_s0 + $0x1f0] sm:$0xff] }
 0x3cc   :  { %v6870_v23 = vmax.f32 %v6674_v21, 0.0 }
 0x3cd   :  { %v4462_v25 = vpop.f32.mrf.mxu2  ;;  %v6138_v38 = vpop.f32.mrf.mxu3 }
 0x3ce   :  { %v10579_v26 = vpack.c.bf16 %v6870_v23, %v6869_v22  ;;  %v1308_v27 = vpop.f32.mrf.mxu0  ;;  %v2788_v28 = vpop.f32.mrf.mxu1  ;;  %v4799_v29 = vmax.f32 %v3123_v24, %v4462_v25  ;;  %v10192_v23 = vld [vmem:[%s13042_s0 + $0x810] sm:$0xff]  ;;  %v10290_v24 = vld [vmem:[%s13042_s0 + $0xb20] sm:$0xff] }
 0x3cf   :  { %v3124_v30 = vmax.f32 %v1308_v27, %v2788_v28 }
 0x3d0   :  { %10865 = vst [vmem:[%s13044_s3 + $0x190] sm:$0xff] %v10579_v26   ;;  %v6475_v56 = vmax.f32 %v4799_v29, %v6138_v38 }
 0x3d2   :  { %v6675_v42 = vadd.f32 %v11905_v33, %v6475_v56 }
 0x3d4   :  { %v6871_v45 = vmax.f32 %v6675_v42, 0.0  ;;  %v10095_v42 = vld [vmem:[%s13042_s0 + $0x508] sm:$0xff] }
 0x3d5   :  { %v4464_v31 = vpop.f32.mrf.mxu2  ;;  %v6140_v32 = vpop.f32.mrf.mxu3 }
 0x3d6   :  { %v4800_v36 = vmax.f32 %v3124_v30, %v4464_v31  ;;  %v1311_v37 = vpop.f32.mrf.mxu0  ;;  %v2791_v39 = vpop.f32.mrf.mxu1 }
 0x3d7   :  { %v3125_v47 = vmax.f32 %v1311_v37, %v2791_v39 }
 0x3d8   :  { %v6476_v43 = vmax.f32 %v4800_v36, %v6140_v32 }
 0x3d9   :  { %7833 = vmatmul.msk.bf16.gmra.mxu0 %vm740_vm2, %v9994_v34  ;;  %8519 = vmatmul.msk.bf16.gmra.mxu1 %vm740_vm2, %v10092_v35 }
 0x3da   :  { %v6676_v44 = vadd.f32 %v11905_v33, %v6476_v43  ;;  %9205 = vmatmul.msk.bf16.gmra.mxu2 %vm740_vm2, %v10190_v40  ;;  %9891 = vmatmul.msk.bf16.gmra.mxu3 %vm740_vm2, %v10288_v41  ;;  %v9997_v41 = vld [vmem:[%s13042_s0 + $0x1f8] sm:$0xff] }
 0x3dc   :  { %v6872_v46 = vmax.f32 %v6676_v44, 0.0 }
 0x3dd   :  { %v4467_v48 = vpop.f32.mrf.mxu2  ;;  %v6143_v49 = vpop.f32.mrf.mxu3 }
 0x3de   :  { %v10584_v50 = vpack.c.bf16 %v6872_v46, %v6871_v45  ;;  %v1313_v51 = vpop.f32.mrf.mxu0  ;;  %v2793_v52 = vpop.f32.mrf.mxu1  ;;  %v4801_v53 = vmax.f32 %v3125_v47, %v4467_v48  ;;  %v10193_v46 = vld [vmem:[%s13042_s0 + $0x818] sm:$0xff]  ;;  %v10291_v47 = vld [vmem:[%s13042_s0 + $0xb28] sm:$0xff] }
 0x3df   :  { %v3126_v55 = vmax.f32 %v1313_v51, %v2793_v52 }
 0x3e0   :  { %10866 = vst [vmem:[%s13044_s3 + $0x198] sm:$0xff] %v10584_v50   ;;  %v6477_v54 = vmax.f32 %v4801_v53, %v6143_v49 }
 0x3e2   :  { %v6677_v2 = vadd.f32 %v11905_v33, %v6477_v54 }
 0x3e4   :  { %v6873_v5 = vmax.f32 %v6677_v2, 0.0  ;;  %v10096_v2 = vld [vmem:[%s13042_s0 + $0x510] sm:$0xff] }
 0x3e5   :  { %v4469_v57 = vpop.f32.mrf.mxu2  ;;  %v6145_v58 = vpop.f32.mrf.mxu3 }
 0x3e6   :  { %v4802_v61 = vmax.f32 %v3126_v55, %v4469_v57  ;;  %v1316_v62 = vpop.f32.mrf.mxu0  ;;  %v2796_v63 = vpop.f32.mrf.mxu1 }
 0x3e7   :  { %v3127_v7 = vmax.f32 %v1316_v62, %v2796_v63 }
 0x3e8   :  { %v6478_v3 = vmax.f32 %v4802_v61, %v6145_v58 }
 0x3e9   :  { %7834 = vmatmul.msk.bf16.gmra.mxu0 %vm740_vm2, %v9995_v59  ;;  %8520 = vmatmul.msk.bf16.gmra.mxu1 %vm740_vm2, %v10093_v60 }
 0x3ea   :  { %v6678_v4 = vadd.f32 %v11905_v33, %v6478_v3  ;;  %9206 = vmatmul.msk.bf16.gmra.mxu2 %vm740_vm2, %v10191_v0  ;;  %9892 = vmatmul.msk.bf16.gmra.mxu3 %vm740_vm2, %v10289_v1  ;;  %v9998_v1 = vld [vmem:[%s13042_s0 + $0x200] sm:$0xff] }
 0x3ec   :  { %v6874_v6 = vmax.f32 %v6678_v4, 0.0 }
 0x3ed   :  { %v4472_v8 = vpop.f32.mrf.mxu2  ;;  %v6148_v9 = vpop.f32.mrf.mxu3 }
 0x3ee   :  { %v10589_v10 = vpack.c.bf16 %v6874_v6, %v6873_v5  ;;  %v1318_v11 = vpop.f32.mrf.mxu0  ;;  %v2798_v12 = vpop.f32.mrf.mxu1  ;;  %v4803_v13 = vmax.f32 %v3127_v7, %v4472_v8  ;;  %v10194_v6 = vld [vmem:[%s13042_s0 + $0x820] sm:$0xff]  ;;  %v10292_v7 = vld [vmem:[%s13042_s0 + $0xb30] sm:$0xff] }
 0x3ef   :  { %v3128_v15 = vmax.f32 %v1318_v11, %v2798_v12 }
 0x3f0   :  { %10867 = vst [vmem:[%s13044_s3 + $0x1a0] sm:$0xff] %v10589_v10   ;;  %v6479_v14 = vmax.f32 %v4803_v13, %v6148_v9 }
 0x3f2   :  { %v6679_v25 = vadd.f32 %v11905_v33, %v6479_v14 }
 0x3f4   :  { %v6875_v27 = vmax.f32 %v6679_v25, 0.0 }
 0x3f5   :  { %v4474_v16 = vpop.f32.mrf.mxu2  ;;  %v6150_v17 = vpop.f32.mrf.mxu3 }
 0x3f6   :  { %v4804_v20 = vmax.f32 %v3128_v15, %v4474_v16  ;;  %v1321_v21 = vpop.f32.mrf.mxu0  ;;  %v2801_v22 = vpop.f32.mrf.mxu1 }
 0x3f7   :  { %v3129_v29 = vmax.f32 %v1321_v21, %v2801_v22 }
 0x3f8   :  { %v6480_v38 = vmax.f32 %v4804_v20, %v6150_v17 }
 0x3f9   :  { %7835 = vmatmul.msk.bf16.gmra.mxu0 %vm740_vm2, %v9996_v18  ;;  %8521 = vmatmul.msk.bf16.gmra.mxu1 %vm740_vm2, %v10094_v19 }
 0x3fa   :  { %v6680_v26 = vadd.f32 %v11905_v33, %v6480_v38  ;;  %9207 = vmatmul.msk.bf16.gmra.mxu2 %vm740_vm2, %v10192_v23  ;;  %9893 = vmatmul.msk.bf16.gmra.mxu3 %vm740_vm2, %v10290_v24  ;;  %v9999_v23 = vld [vmem:[%s13042_s0 + $0x208] sm:$0xff]  ;;  %v10097_v24 = vld [vmem:[%s13042_s0 + $0x518] sm:$0xff] }
 0x3fc   :  { %v6876_v28 = vmax.f32 %v6680_v26, 0.0 }
 0x3fd   :  { %v4477_v56 = vpop.f32.mrf.mxu2  ;;  %v6153_v30 = vpop.f32.mrf.mxu3 }
 0x3fe   :  { %v10594_v31 = vpack.c.bf16 %v6876_v28, %v6875_v27  ;;  %v1323_v32 = vpop.f32.mrf.mxu0  ;;  %v2803_v34 = vpop.f32.mrf.mxu1  ;;  %v4805_v35 = vmax.f32 %v3129_v29, %v4477_v56  ;;  %v10195_v27 = vld [vmem:[%s13042_s0 + $0x828] sm:$0xff]  ;;  %v10293_v28 = vld [vmem:[%s13042_s0 + $0xb38] sm:$0xff]  ;;  %v12309_v29 = vld [vmem:[%s13043_s2] ss:$0 sm:$0xff] }
 0x3ff   :  { %v3130_v37 = vmax.f32 %v1323_v32, %v2803_v34 }
 0x400   :  { %10868 = vst [vmem:[%s13044_s3 + $0x1a8] sm:$0xff] %v10594_v31   ;;  %v6481_v36 = vmax.f32 %v4805_v35, %v6153_v30 }
 0x402   :  { %v6681_v48 = vadd.f32 %v11905_v33, %v6481_v36 }
 0x404   :  { %v6877_v51 = vmax.f32 %v6681_v48, 0.0  ;;  %v10098_v48 = vld [vmem:[%s13042_s0 + $0x520] sm:$0xff] }
 0x405   :  { %v4479_v39 = vpop.f32.mrf.mxu2  ;;  %v6155_v40 = vpop.f32.mrf.mxu3 }
 0x406   :  { %v4806_v43 = vmax.f32 %v3130_v37, %v4479_v39  ;;  %v1326_v44 = vpop.f32.mrf.mxu0  ;;  %v2806_v45 = vpop.f32.mrf.mxu1 }
 0x407   :  { %v3131_v53 = vmax.f32 %v1326_v44, %v2806_v45 }
 0x408   :  { %v6482_v49 = vmax.f32 %v4806_v43, %v6155_v40 }
 0x409   :  { %7836 = vmatmul.msk.bf16.gmra.mxu0 %vm740_vm2, %v9997_v41  ;;  %8522 = vmatmul.msk.bf16.gmra.mxu1 %vm740_vm2, %v10095_v42 }
 0x40a   :  { %v6682_v50 = vadd.f32 %v11905_v33, %v6482_v49  ;;  %9208 = vmatmul.msk.bf16.gmra.mxu2 %vm740_vm2, %v10193_v46  ;;  %9894 = vmatmul.msk.bf16.gmra.mxu3 %vm740_vm2, %v10291_v47  ;;  %v10000_v47 = vld [vmem:[%s13042_s0 + $0x210] sm:$0xff] }
 0x40c   :  { %v6878_v52 = vmax.f32 %v6682_v50, 0.0 }
 0x40d   :  { %v4482_v54 = vpop.f32.mrf.mxu2  ;;  %v6158_v55 = vpop.f32.mrf.mxu3 }
 0x40e   :  { %v10599_v57 = vpack.c.bf16 %v6878_v52, %v6877_v51  ;;  %v1328_v58 = vpop.f32.mrf.mxu0  ;;  %v2808_v59 = vpop.f32.mrf.mxu1  ;;  %v4807_v60 = vmax.f32 %v3131_v53, %v4482_v54  ;;  %v10196_v52 = vld [vmem:[%s13042_s0 + $0x830] sm:$0xff]  ;;  %v10294_v53 = vld [vmem:[%s13042_s0 + $0xb40] sm:$0xff] }
 0x40f   :  { %v3132_v62 = vmax.f32 %v1328_v58, %v2808_v59 }
 0x410   :  { %10869 = vst [vmem:[%s13044_s3 + $0x1b0] sm:$0xff] %v10599_v57   ;;  %v6483_v61 = vmax.f32 %v4807_v60, %v6158_v55 }
 0x412   :  { %v6683_v8 = vadd.f32 %v11905_v33, %v6483_v61 }
 0x414   :  { %v6879_v11 = vmax.f32 %v6683_v8, 0.0  ;;  %v10099_v8 = vld [vmem:[%s13042_s0 + $0x528] sm:$0xff] }
 0x415   :  { %v4484_v63 = vpop.f32.mrf.mxu2  ;;  %v6160_v0 = vpop.f32.mrf.mxu3 }
 0x416   :  { %v4808_v3 = vmax.f32 %v3132_v62, %v4484_v63  ;;  %v1331_v4 = vpop.f32.mrf.mxu0  ;;  %v2811_v5 = vpop.f32.mrf.mxu1 }
 0x417   :  { %v3133_v13 = vmax.f32 %v1331_v4, %v2811_v5 }
 0x418   :  { %v6484_v9 = vmax.f32 %v4808_v3, %v6160_v0 }
 0x419   :  { %7837 = vmatmul.msk.bf16.gmra.mxu0 %vm740_vm2, %v9998_v1  ;;  %8523 = vmatmul.msk.bf16.gmra.mxu1 %vm740_vm2, %v10096_v2 }
 0x41a   :  { %v6684_v10 = vadd.f32 %v11905_v33, %v6484_v9  ;;  %9209 = vmatmul.msk.bf16.gmra.mxu2 %vm740_vm2, %v10194_v6  ;;  %9895 = vmatmul.msk.bf16.gmra.mxu3 %vm740_vm2, %v10292_v7  ;;  %v10001_v7 = vld [vmem:[%s13042_s0 + $0x218] sm:$0xff] }
 0x41c   :  { %v6880_v12 = vmax.f32 %v6684_v10, 0.0 }
 0x41d   :  { %v4487_v14 = vpop.f32.mrf.mxu2  ;;  %v6163_v15 = vpop.f32.mrf.mxu3 }
 0x41e   :  { %v10604_v16 = vpack.c.bf16 %v6880_v12, %v6879_v11  ;;  %v1333_v17 = vpop.f32.mrf.mxu0  ;;  %v2813_v18 = vpop.f32.mrf.mxu1  ;;  %v4809_v19 = vmax.f32 %v3133_v13, %v4487_v14  ;;  %v10197_v12 = vld [vmem:[%s13042_s0 + $0x838] sm:$0xff]  ;;  %v10295_v13 = vld [vmem:[%s13042_s0 + $0xb48] sm:$0xff] }
 0x41f   :  { %v3134_v21 = vmax.f32 %v1333_v17, %v2813_v18 }
 0x420   :  { %10870 = vst [vmem:[%s13044_s3 + $0x1b8] sm:$0xff] %v10604_v16   ;;  %v6485_v20 = vmax.f32 %v4809_v19, %v6163_v15 }
 0x422   :  { %v6685_v56 = vadd.f32 %v12309_v29, %v6485_v20 }
 0x424   :  { %v6881_v32 = vmax.f32 %v6685_v56, 0.0  ;;  %v10100_v56 = vld [vmem:[%s13042_s0 + $0x530] sm:$0xff] }
 0x425   :  { %v4489_v33 = vpop.f32.mrf.mxu2  ;;  %v6165_v22 = vpop.f32.mrf.mxu3 }
 0x426   :  { %v4810_v25 = vmax.f32 %v3134_v21, %v4489_v33  ;;  %v1336_v38 = vpop.f32.mrf.mxu0  ;;  %v2816_v26 = vpop.f32.mrf.mxu1 }
 0x427   :  { %v3135_v35 = vmax.f32 %v1336_v38, %v2816_v26 }
 0x428   :  { %v6486_v30 = vmax.f32 %v4810_v25, %v6165_v22 }
 0x429   :  { %7838 = vmatmul.msk.bf16.gmra.mxu0 %vm740_vm2, %v9999_v23  ;;  %8524 = vmatmul.msk.bf16.gmra.mxu1 %vm740_vm2, %v10097_v24 }
 0x42a   :  { %v6686_v31 = vadd.f32 %v12309_v29, %v6486_v30  ;;  %9210 = vmatmul.msk.bf16.gmra.mxu2 %vm740_vm2, %v10195_v27  ;;  %9896 = vmatmul.msk.bf16.gmra.mxu3 %vm740_vm2, %v10293_v28  ;;  %v10002_v28 = vld [vmem:[%s13042_s0 + $0x220] sm:$0xff] }
 0x42c   :  { %v6882_v34 = vmax.f32 %v6686_v31, 0.0 }
 0x42d   :  { %v4492_v36 = vpop.f32.mrf.mxu2  ;;  %v6168_v37 = vpop.f32.mrf.mxu3 }
 0x42e   :  { %v10609_v39 = vpack.c.bf16 %v6882_v34, %v6881_v32  ;;  %v1338_v40 = vpop.f32.mrf.mxu0  ;;  %v2818_v41 = vpop.f32.mrf.mxu1  ;;  %v4811_v42 = vmax.f32 %v3135_v35, %v4492_v36  ;;  %v10198_v34 = vld [vmem:[%s13042_s0 + $0x840] sm:$0xff]  ;;  %v10296_v35 = vld [vmem:[%s13042_s0 + $0xb50] sm:$0xff] }
 0x42f   :  { %v3136_v44 = vmax.f32 %v1338_v40, %v2818_v41 }
 0x430   :  { %10871 = vst [vmem:[%s13044_s3 + $0x1c0] sm:$0xff] %v10609_v39   ;;  %v6487_v43 = vmax.f32 %v4811_v42, %v6168_v37 }
 0x432   :  { %v6687_v54 = vadd.f32 %v12309_v29, %v6487_v43 }
 0x434   :  { %v6883_v58 = vmax.f32 %v6687_v54, 0.0  ;;  %v10101_v54 = vld [vmem:[%s13042_s0 + $0x538] sm:$0xff] }
 0x435   :  { %v4494_v45 = vpop.f32.mrf.mxu2  ;;  %v6170_v46 = vpop.f32.mrf.mxu3 }
 0x436   :  { %v4812_v49 = vmax.f32 %v3136_v44, %v4494_v45  ;;  %v1341_v50 = vpop.f32.mrf.mxu0  ;;  %v2821_v51 = vpop.f32.mrf.mxu1 }
 0x437   :  { %v3137_v60 = vmax.f32 %v1341_v50, %v2821_v51 }
 0x438   :  { %v6488_v55 = vmax.f32 %v4812_v49, %v6170_v46 }
 0x439   :  { %7839 = vmatmul.msk.bf16.gmra.mxu0 %vm740_vm2, %v10000_v47  ;;  %8525 = vmatmul.msk.bf16.gmra.mxu1 %vm740_vm2, %v10098_v48 }
 0x43a   :  { %v6688_v57 = vadd.f32 %v12309_v29, %v6488_v55  ;;  %9211 = vmatmul.msk.bf16.gmra.mxu2 %vm740_vm2, %v10196_v52  ;;  %9897 = vmatmul.msk.bf16.gmra.mxu3 %vm740_vm2, %v10294_v53  ;;  %v10003_v53 = vld [vmem:[%s13042_s0 + $0x228] sm:$0xff] }
 0x43c   :  { %v6884_v59 = vmax.f32 %v6688_v57, 0.0 }
 0x43d   :  { %v4497_v61 = vpop.f32.mrf.mxu2  ;;  %v6173_v62 = vpop.f32.mrf.mxu3 }
 0x43e   :  { %v10614_v63 = vpack.c.bf16 %v6884_v59, %v6883_v58  ;;  %v1343_v0 = vpop.f32.mrf.mxu0  ;;  %v2823_v1 = vpop.f32.mrf.mxu1  ;;  %v4813_v2 = vmax.f32 %v3137_v60, %v4497_v61  ;;  %v10199_v59 = vld [vmem:[%s13042_s0 + $0x848] sm:$0xff]  ;;  %v10297_v60 = vld [vmem:[%s13042_s0 + $0xb58] sm:$0xff] }
 0x43f   :  { %v3138_v4 = vmax.f32 %v1343_v0, %v2823_v1 }
 0x440   :  { %10872 = vst [vmem:[%s13044_s3 + $0x1c8] sm:$0xff] %v10614_v63   ;;  %v6489_v3 = vmax.f32 %v4813_v2, %v6173_v62 }
 0x442   :  { %v6689_v14 = vadd.f32 %v12309_v29, %v6489_v3 }
 0x444   :  { %v6885_v17 = vmax.f32 %v6689_v14, 0.0  ;;  %v10102_v14 = vld [vmem:[%s13042_s0 + $0x540] sm:$0xff] }
 0x445   :  { %v4499_v5 = vpop.f32.mrf.mxu2  ;;  %v6175_v6 = vpop.f32.mrf.mxu3 }
 0x446   :  { %v4814_v9 = vmax.f32 %v3138_v4, %v4499_v5  ;;  %v1346_v10 = vpop.f32.mrf.mxu0  ;;  %v2826_v11 = vpop.f32.mrf.mxu1 }
 0x447   :  { %v3139_v19 = vmax.f32 %v1346_v10, %v2826_v11 }
 0x448   :  { %v6490_v15 = vmax.f32 %v4814_v9, %v6175_v6 }
 0x449   :  { %7840 = vmatmul.msk.bf16.gmra.mxu0 %vm740_vm2, %v10001_v7  ;;  %8526 = vmatmul.msk.bf16.gmra.mxu1 %vm740_vm2, %v10099_v8 }
 0x44a   :  { %v6690_v16 = vadd.f32 %v12309_v29, %v6490_v15  ;;  %9212 = vmatmul.msk.bf16.gmra.mxu2 %vm740_vm2, %v10197_v12  ;;  %9898 = vmatmul.msk.bf16.gmra.mxu3 %vm740_vm2, %v10295_v13  ;;  %v10004_v13 = vld [vmem:[%s13042_s0 + $0x230] sm:$0xff] }
 0x44c   :  { %v6886_v18 = vmax.f32 %v6690_v16, 0.0 }
 0x44d   :  { %v4502_v20 = vpop.f32.mrf.mxu2  ;;  %v6178_v21 = vpop.f32.mrf.mxu3 }
 0x44e   :  { %v10619_v33 = vpack.c.bf16 %v6886_v18, %v6885_v17  ;;  %v1348_v22 = vpop.f32.mrf.mxu0  ;;  %v2828_v23 = vpop.f32.mrf.mxu1  ;;  %v4815_v24 = vmax.f32 %v3139_v19, %v4502_v20  ;;  %v10200_v18 = vld [vmem:[%s13042_s0 + $0x850] sm:$0xff]  ;;  %v10298_v19 = vld [vmem:[%s13042_s0 + $0xb60] sm:$0xff] }
 0x44f   :  { %v3140_v38 = vmax.f32 %v1348_v22, %v2828_v23 }
 0x450   :  { %10873 = vst [vmem:[%s13044_s3 + $0x1d0] sm:$0xff] %v10619_v33   ;;  %v6491_v25 = vmax.f32 %v4815_v24, %v6178_v21 }
 0x452   :  { %v6691_v36 = vadd.f32 %v12309_v29, %v6491_v25 }
 0x454   :  { %v6887_v40 = vmax.f32 %v6691_v36, 0.0  ;;  %v10103_v36 = vld [vmem:[%s13042_s0 + $0x548] sm:$0xff] }
 0x455   :  { %v4504_v26 = vpop.f32.mrf.mxu2  ;;  %v6180_v27 = vpop.f32.mrf.mxu3 }
 0x456   :  { %v4816_v30 = vmax.f32 %v3140_v38, %v4504_v26  ;;  %v1351_v31 = vpop.f32.mrf.mxu0  ;;  %v2831_v32 = vpop.f32.mrf.mxu1 }
 0x457   :  { %v3141_v42 = vmax.f32 %v1351_v31, %v2831_v32 }
 0x458   :  { %v6492_v37 = vmax.f32 %v4816_v30, %v6180_v27 }
 0x459   :  { %7841 = vmatmul.msk.bf16.gmra.mxu0 %vm740_vm2, %v10002_v28  ;;  %8527 = vmatmul.msk.bf16.gmra.mxu1 %vm740_vm2, %v10100_v56 }
 0x45a   :  { %v6692_v39 = vadd.f32 %v12309_v29, %v6492_v37  ;;  %9213 = vmatmul.msk.bf16.gmra.mxu2 %vm740_vm2, %v10198_v34  ;;  %9899 = vmatmul.msk.bf16.gmra.mxu3 %vm740_vm2, %v10296_v35  ;;  %v10005_v35 = vld [vmem:[%s13042_s0 + $0x238] sm:$0xff] }
 0x45c   :  { %v6888_v41 = vmax.f32 %v6692_v39, 0.0 }
 0x45d   :  { %v4507_v43 = vpop.f32.mrf.mxu2  ;;  %v6183_v44 = vpop.f32.mrf.mxu3 }
 0x45e   :  { %v10624_v45 = vpack.c.bf16 %v6888_v41, %v6887_v40  ;;  %v1353_v46 = vpop.f32.mrf.mxu0  ;;  %v2833_v47 = vpop.f32.mrf.mxu1  ;;  %v4817_v48 = vmax.f32 %v3141_v42, %v4507_v43  ;;  %v10201_v41 = vld [vmem:[%s13042_s0 + $0x858] sm:$0xff]  ;;  %v10299_v42 = vld [vmem:[%s13042_s0 + $0xb68] sm:$0xff] }
 0x45f   :  { %v3142_v50 = vmax.f32 %v1353_v46, %v2833_v47 }
 0x460   :  { %10874 = vst [vmem:[%s13044_s3 + $0x1d8] sm:$0xff] %v10624_v45   ;;  %v6493_v49 = vmax.f32 %v4817_v48, %v6183_v44 }
 0x462   :  { %v6693_v61 = vadd.f32 %v12309_v29, %v6493_v49 }
 0x464   :  { %v6889_v0 = vmax.f32 %v6693_v61, 0.0  ;;  %v10104_v61 = vld [vmem:[%s13042_s0 + $0x550] sm:$0xff] }
 0x465   :  { %v4509_v51 = vpop.f32.mrf.mxu2  ;;  %v6185_v52 = vpop.f32.mrf.mxu3 }
 0x466   :  { %v4818_v55 = vmax.f32 %v3142_v50, %v4509_v51  ;;  %v1356_v57 = vpop.f32.mrf.mxu0  ;;  %v2836_v58 = vpop.f32.mrf.mxu1 }
 0x467   :  { %v3143_v2 = vmax.f32 %v1356_v57, %v2836_v58 }
 0x468   :  { %v6494_v62 = vmax.f32 %v4818_v55, %v6185_v52 }
 0x469   :  { %7842 = vmatmul.msk.bf16.gmra.mxu0 %vm740_vm2, %v10003_v53  ;;  %8528 = vmatmul.msk.bf16.gmra.mxu1 %vm740_vm2, %v10101_v54 }
 0x46a   :  { %v6694_v63 = vadd.f32 %v12309_v29, %v6494_v62  ;;  %9214 = vmatmul.msk.bf16.gmra.mxu2 %vm740_vm2, %v10199_v59  ;;  %9900 = vmatmul.msk.bf16.gmra.mxu3 %vm740_vm2, %v10297_v60  ;;  %v10006_v60 = vld [vmem:[%s13042_s0 + $0x240] sm:$0xff] }
 0x46c   :  { %v6890_v1 = vmax.f32 %v6694_v63, 0.0 }
 0x46d   :  { %v4512_v3 = vpop.f32.mrf.mxu2  ;;  %v6188_v4 = vpop.f32.mrf.mxu3 }
 0x46e   :  { %v10629_v5 = vpack.c.bf16 %v6890_v1, %v6889_v0  ;;  %v1358_v6 = vpop.f32.mrf.mxu0  ;;  %v2838_v7 = vpop.f32.mrf.mxu1  ;;  %v4819_v8 = vmax.f32 %v3143_v2, %v4512_v3  ;;  %v10202_v1 = vld [vmem:[%s13042_s0 + $0x860] sm:$0xff]  ;;  %v10300_v2 = vld [vmem:[%s13042_s0 + $0xb70] sm:$0xff] }
 0x46f   :  { %v3144_v10 = vmax.f32 %v1358_v6, %v2838_v7 }
 0x470   :  { %10875 = vst [vmem:[%s13044_s3 + $0x1e0] sm:$0xff] %v10629_v5   ;;  %v6495_v9 = vmax.f32 %v4819_v8, %v6188_v4 }
 0x472   :  { %v6695_v20 = vadd.f32 %v12309_v29, %v6495_v9 }
 0x474   :  { %v6891_v22 = vmax.f32 %v6695_v20, 0.0  ;;  %v10105_v20 = vld [vmem:[%s13042_s0 + $0x558] sm:$0xff] }
 0x475   :  { %v4514_v11 = vpop.f32.mrf.mxu2  ;;  %v6190_v12 = vpop.f32.mrf.mxu3 }
 0x476   :  { %v4820_v15 = vmax.f32 %v3144_v10, %v4514_v11  ;;  %v1361_v16 = vpop.f32.mrf.mxu0  ;;  %v2841_v17 = vpop.f32.mrf.mxu1 }
 0x477   :  { %v3145_v24 = vmax.f32 %v1361_v16, %v2841_v17 }
 0x478   :  { %v6496_v21 = vmax.f32 %v4820_v15, %v6190_v12 }
 0x479   :  { %7843 = vmatmul.msk.bf16.gmra.mxu0 %vm740_vm2, %v10004_v13  ;;  %8529 = vmatmul.msk.bf16.gmra.mxu1 %vm740_vm2, %v10102_v14 }
 0x47a   :  { %v6696_v33 = vadd.f32 %v12309_v29, %v6496_v21  ;;  %9215 = vmatmul.msk.bf16.gmra.mxu2 %vm740_vm2, %v10200_v18  ;;  %9901 = vmatmul.msk.bf16.gmra.mxu3 %vm740_vm2, %v10298_v19  ;;  %v10007_v19 = vld [vmem:[%s13042_s0 + $0x248] sm:$0xff] }
 0x47c   :  { %v6892_v23 = vmax.f32 %v6696_v33, 0.0 }
 0x47d   :  { %v4517_v25 = vpop.f32.mrf.mxu2  ;;  %v6193_v38 = vpop.f32.mrf.mxu3 }
 0x47e   :  { %v10634_v26 = vpack.c.bf16 %v6892_v23, %v6891_v22  ;;  %v1363_v27 = vpop.f32.mrf.mxu0  ;;  %v2843_v28 = vpop.f32.mrf.mxu1  ;;  %v4821_v56 = vmax.f32 %v3145_v24, %v4517_v25  ;;  %v10203_v23 = vld [vmem:[%s13042_s0 + $0x868] sm:$0xff]  ;;  %v10301_v24 = vld [vmem:[%s13042_s0 + $0xb78] sm:$0xff] }
 0x47f   :  { %v3146_v31 = vmax.f32 %v1363_v27, %v2843_v28 }
 0x480   :  { %10876 = vst [vmem:[%s13044_s3 + $0x1e8] sm:$0xff] %v10634_v26   ;;  %v6497_v30 = vmax.f32 %v4821_v56, %v6193_v38 }
 0x482   :  { %v6697_v43 = vadd.f32 %v12309_v29, %v6497_v30 }
 0x484   :  { %v6893_v46 = vmax.f32 %v6697_v43, 0.0  ;;  %v10106_v43 = vld [vmem:[%s13042_s0 + $0x560] sm:$0xff] }
 0x485   :  { %v4519_v32 = vpop.f32.mrf.mxu2  ;;  %v6195_v34 = vpop.f32.mrf.mxu3 }
 0x486   :  { %v4822_v37 = vmax.f32 %v3146_v31, %v4519_v32  ;;  %v1366_v39 = vpop.f32.mrf.mxu0  ;;  %v2846_v40 = vpop.f32.mrf.mxu1 }
 0x487   :  { %v3147_v48 = vmax.f32 %v1366_v39, %v2846_v40 }
 0x488   :  { %v6498_v44 = vmax.f32 %v4822_v37, %v6195_v34 }
 0x489   :  { %7844 = vmatmul.msk.bf16.gmra.mxu0 %vm740_vm2, %v10005_v35  ;;  %8530 = vmatmul.msk.bf16.gmra.mxu1 %vm740_vm2, %v10103_v36 }
 0x48a   :  { %v6698_v45 = vadd.f32 %v12309_v29, %v6498_v44  ;;  %9216 = vmatmul.msk.bf16.gmra.mxu2 %vm740_vm2, %v10201_v41  ;;  %9902 = vmatmul.msk.bf16.gmra.mxu3 %vm740_vm2, %v10299_v42  ;;  %v10008_v42 = vld [vmem:[%s13042_s0 + $0x250] sm:$0xff] }
 0x48c   :  { %v6894_v47 = vmax.f32 %v6698_v45, 0.0 }
 0x48d   :  { %v4522_v49 = vpop.f32.mrf.mxu2  ;;  %v6198_v50 = vpop.f32.mrf.mxu3 }
 0x48e   :  { %v10639_v51 = vpack.c.bf16 %v6894_v47, %v6893_v46  ;;  %v1368_v52 = vpop.f32.mrf.mxu0  ;;  %v2848_v53 = vpop.f32.mrf.mxu1  ;;  %v4823_v54 = vmax.f32 %v3147_v48, %v4522_v49  ;;  %v10204_v47 = vld [vmem:[%s13042_s0 + $0x870] sm:$0xff]  ;;  %v10302_v48 = vld [vmem:[%s13042_s0 + $0xb80] sm:$0xff] }
 0x48f   :  { %v3148_v57 = vmax.f32 %v1368_v52, %v2848_v53 }
 0x490   :  { %10877 = vst [vmem:[%s13044_s3 + $0x1f0] sm:$0xff] %v10639_v51   ;;  %v6499_v55 = vmax.f32 %v4823_v54, %v6198_v50 }
 0x492   :  { %v6699_v3 = vadd.f32 %v12309_v29, %v6499_v55 }
 0x494   :  { %v6895_v6 = vmax.f32 %v6699_v3, 0.0  ;;  %v10107_v3 = vld [vmem:[%s13042_s0 + $0x568] sm:$0xff] }
 0x495   :  { %v4524_v58 = vpop.f32.mrf.mxu2  ;;  %v6200_v59 = vpop.f32.mrf.mxu3 }
 0x496   :  { %v4824_v62 = vmax.f32 %v3148_v57, %v4524_v58  ;;  %v1371_v63 = vpop.f32.mrf.mxu0  ;;  %v2851_v0 = vpop.f32.mrf.mxu1 }
 0x497   :  { %v3149_v8 = vmax.f32 %v1371_v63, %v2851_v0 }
 0x498   :  { %v6500_v4 = vmax.f32 %v4824_v62, %v6200_v59 }
 0x499   :  { %7845 = vmatmul.msk.bf16.gmra.mxu0 %vm740_vm2, %v10006_v60  ;;  %8531 = vmatmul.msk.bf16.gmra.mxu1 %vm740_vm2, %v10104_v61 }
 0x49a   :  { %v6700_v5 = vadd.f32 %v12309_v29, %v6500_v4  ;;  %9217 = vmatmul.msk.bf16.gmra.mxu2 %vm740_vm2, %v10202_v1  ;;  %9903 = vmatmul.msk.bf16.gmra.mxu3 %vm740_vm2, %v10300_v2  ;;  %v10009_v2 = vld [vmem:[%s13042_s0 + $0x258] sm:$0xff] }
 0x49c   :  { %v6896_v7 = vmax.f32 %v6700_v5, 0.0 }
 0x49d   :  { %v4527_v9 = vpop.f32.mrf.mxu2  ;;  %v6203_v10 = vpop.f32.mrf.mxu3 }
 0x49e   :  { %v10644_v11 = vpack.c.bf16 %v6896_v7, %v6895_v6  ;;  %v1373_v12 = vpop.f32.mrf.mxu0  ;;  %v2853_v13 = vpop.f32.mrf.mxu1  ;;  %v4825_v14 = vmax.f32 %v3149_v8, %v4527_v9  ;;  %v10205_v7 = vld [vmem:[%s13042_s0 + $0x878] sm:$0xff]  ;;  %v10303_v8 = vld [vmem:[%s13042_s0 + $0xb88] sm:$0xff] }
 0x49f   :  { %v3150_v16 = vmax.f32 %v1373_v12, %v2853_v13 }
 0x4a0   :  { %10878 = vst [vmem:[%s13044_s3 + $0x1f8] sm:$0xff] %v10644_v11   ;;  %v6501_v15 = vmax.f32 %v4825_v14, %v6203_v10 }
 0x4a2   :  { %v6701_v25 = vadd.f32 %v12309_v29, %v6501_v15 }
 0x4a4   :  { %v6897_v27 = vmax.f32 %v6701_v25, 0.0  ;;  %v10108_v25 = vld [vmem:[%s13042_s0 + $0x570] sm:$0xff] }
 0x4a5   :  { %v4529_v17 = vpop.f32.mrf.mxu2  ;;  %v6205_v18 = vpop.f32.mrf.mxu3 }
 0x4a6   :  { %v4826_v21 = vmax.f32 %v3150_v16, %v4529_v17  ;;  %v1376_v33 = vpop.f32.mrf.mxu0  ;;  %v2856_v22 = vpop.f32.mrf.mxu1 }
 0x4a7   :  { %v3151_v56 = vmax.f32 %v1376_v33, %v2856_v22 }
 0x4a8   :  { %v6502_v38 = vmax.f32 %v4826_v21, %v6205_v18 }
 0x4a9   :  { %7846 = vmatmul.msk.bf16.gmra.mxu0 %vm740_vm2, %v10007_v19  ;;  %8532 = vmatmul.msk.bf16.gmra.mxu1 %vm740_vm2, %v10105_v20 }
 0x4aa   :  { %v6702_v26 = vadd.f32 %v12309_v29, %v6502_v38  ;;  %9218 = vmatmul.msk.bf16.gmra.mxu2 %vm740_vm2, %v10203_v23  ;;  %9904 = vmatmul.msk.bf16.gmra.mxu3 %vm740_vm2, %v10301_v24  ;;  %v10010_v24 = vld [vmem:[%s13042_s0 + $0x260] sm:$0xff] }
 0x4ac   :  { %v6898_v28 = vmax.f32 %v6702_v26, 0.0 }
 0x4ad   :  { %v4532_v30 = vpop.f32.mrf.mxu2  ;;  %v6208_v31 = vpop.f32.mrf.mxu3 }
 0x4ae   :  { %v10649_v32 = vpack.c.bf16 %v6898_v28, %v6897_v27  ;;  %v1378_v34 = vpop.f32.mrf.mxu0  ;;  %v2858_v35 = vpop.f32.mrf.mxu1  ;;  %v4827_v36 = vmax.f32 %v3151_v56, %v4532_v30  ;;  %v10206_v28 = vld [vmem:[%s13042_s0 + $0x880] sm:$0xff]  ;;  %v10304_v56 = vld [vmem:[%s13042_s0 + $0xb90] sm:$0xff] }
 0x4af   :  { %v3152_v39 = vmax.f32 %v1378_v34, %v2858_v35 }
 0x4b0   :  { %10879 = vst [vmem:[%s13044_s3 + $0x200] sm:$0xff] %v10649_v32   ;;  %v6503_v37 = vmax.f32 %v4827_v36, %v6208_v31 }
 0x4b2   :  { %v6703_v49 = vadd.f32 %v12309_v29, %v6503_v37 }
 0x4b4   :  { %v6899_v52 = vmax.f32 %v6703_v49, 0.0  ;;  %v10109_v49 = vld [vmem:[%s13042_s0 + $0x578] sm:$0xff] }
 0x4b5   :  { %v4534_v40 = vpop.f32.mrf.mxu2  ;;  %v6210_v41 = vpop.f32.mrf.mxu3 }
 0x4b6   :  { %v4828_v44 = vmax.f32 %v3152_v39, %v4534_v40  ;;  %v1381_v45 = vpop.f32.mrf.mxu0  ;;  %v2861_v46 = vpop.f32.mrf.mxu1 }
 0x4b7   :  { %v3153_v54 = vmax.f32 %v1381_v45, %v2861_v46 }
 0x4b8   :  { %v6504_v50 = vmax.f32 %v4828_v44, %v6210_v41 }
 0x4b9   :  { %7847 = vmatmul.msk.bf16.gmra.mxu0 %vm740_vm2, %v10008_v42  ;;  %8533 = vmatmul.msk.bf16.gmra.mxu1 %vm740_vm2, %v10106_v43 }
 0x4ba   :  { %v6704_v51 = vadd.f32 %v12309_v29, %v6504_v50  ;;  %9219 = vmatmul.msk.bf16.gmra.mxu2 %vm740_vm2, %v10204_v47  ;;  %9905 = vmatmul.msk.bf16.gmra.mxu3 %vm740_vm2, %v10302_v48  ;;  %v10011_v48 = vld [vmem:[%s13042_s0 + $0x268] sm:$0xff] }
 0x4bc   :  { %v6900_v53 = vmax.f32 %v6704_v51, 0.0 }
 0x4bd   :  { %v4537_v55 = vpop.f32.mrf.mxu2  ;;  %v6213_v57 = vpop.f32.mrf.mxu3 }
 0x4be   :  { %v10654_v58 = vpack.c.bf16 %v6900_v53, %v6899_v52  ;;  %v1383_v59 = vpop.f32.mrf.mxu0  ;;  %v2863_v60 = vpop.f32.mrf.mxu1  ;;  %v4829_v61 = vmax.f32 %v3153_v54, %v4537_v55  ;;  %v10207_v53 = vld [vmem:[%s13042_s0 + $0x888] sm:$0xff]  ;;  %v10305_v54 = vld [vmem:[%s13042_s0 + $0xb98] sm:$0xff] }
 0x4bf   :  { %v3154_v63 = vmax.f32 %v1383_v59, %v2863_v60 }
 0x4c0   :  { %10880 = vst [vmem:[%s13044_s3 + $0x208] sm:$0xff] %v10654_v58   ;;  %v6505_v62 = vmax.f32 %v4829_v61, %v6213_v57 }
 0x4c2   :  { %v6705_v9 = vadd.f32 %v12309_v29, %v6505_v62 }
 0x4c4   :  { %v6901_v12 = vmax.f32 %v6705_v9, 0.0  ;;  %v10110_v9 = vld [vmem:[%s13042_s0 + $0x580] sm:$0xff] }
 0x4c5   :  { %v4539_v0 = vpop.f32.mrf.mxu2  ;;  %v6215_v1 = vpop.f32.mrf.mxu3 }
 0x4c6   :  { %v4830_v4 = vmax.f32 %v3154_v63, %v4539_v0  ;;  %v1386_v5 = vpop.f32.mrf.mxu0  ;;  %v2866_v6 = vpop.f32.mrf.mxu1 }
 0x4c7   :  { %v3155_v14 = vmax.f32 %v1386_v5, %v2866_v6 }
 0x4c8   :  { %v6506_v10 = vmax.f32 %v4830_v4, %v6215_v1 }
 0x4c9   :  { %7848 = vmatmul.msk.bf16.gmra.mxu0 %vm740_vm2, %v10009_v2  ;;  %8534 = vmatmul.msk.bf16.gmra.mxu1 %vm740_vm2, %v10107_v3 }
 0x4ca   :  { %v6706_v11 = vadd.f32 %v12309_v29, %v6506_v10  ;;  %9220 = vmatmul.msk.bf16.gmra.mxu2 %vm740_vm2, %v10205_v7  ;;  %9906 = vmatmul.msk.bf16.gmra.mxu3 %vm740_vm2, %v10303_v8  ;;  %v10012_v8 = vld [vmem:[%s13042_s0 + $0x270] sm:$0xff] }
 0x4cc   :  { %v6902_v13 = vmax.f32 %v6706_v11, 0.0 }
 0x4cd   :  { %v4542_v15 = vpop.f32.mrf.mxu2  ;;  %v6218_v16 = vpop.f32.mrf.mxu3 }
 0x4ce   :  { %v10659_v17 = vpack.c.bf16 %v6902_v13, %v6901_v12  ;;  %v1388_v18 = vpop.f32.mrf.mxu0  ;;  %v2868_v19 = vpop.f32.mrf.mxu1  ;;  %v4831_v20 = vmax.f32 %v3155_v14, %v4542_v15  ;;  %v10208_v13 = vld [vmem:[%s13042_s0 + $0x890] sm:$0xff]  ;;  %v10306_v14 = vld [vmem:[%s13042_s0 + $0xba0] sm:$0xff] }
 0x4cf   :  { %v3156_v33 = vmax.f32 %v1388_v18, %v2868_v19 }
 0x4d0   :  { %10881 = vst [vmem:[%s13044_s3 + $0x210] sm:$0xff] %v10659_v17   ;;  %v6507_v21 = vmax.f32 %v4831_v20, %v6218_v16 }
 0x4d2   :  { %v6707_v30 = vadd.f32 %v12309_v29, %v6507_v21 }
 0x4d4   :  { %v6903_v34 = vmax.f32 %v6707_v30, 0.0  ;;  %v10111_v30 = vld [vmem:[%s13042_s0 + $0x588] sm:$0xff] }
 0x4d5   :  { %v4544_v22 = vpop.f32.mrf.mxu2  ;;  %v6220_v23 = vpop.f32.mrf.mxu3 }
 0x4d6   :  { %v4832_v38 = vmax.f32 %v3156_v33, %v4544_v22  ;;  %v1391_v26 = vpop.f32.mrf.mxu0  ;;  %v2871_v27 = vpop.f32.mrf.mxu1 }
 0x4d7   :  { %v3157_v36 = vmax.f32 %v1391_v26, %v2871_v27 }
 0x4d8   :  { %v6508_v31 = vmax.f32 %v4832_v38, %v6220_v23 }
 0x4d9   :  { %7849 = vmatmul.msk.bf16.gmra.mxu0 %vm740_vm2, %v10010_v24  ;;  %8535 = vmatmul.msk.bf16.gmra.mxu1 %vm740_vm2, %v10108_v25 }
 0x4da   :  { %v6708_v32 = vadd.f32 %v12309_v29, %v6508_v31  ;;  %9221 = vmatmul.msk.bf16.gmra.mxu2 %vm740_vm2, %v10206_v28  ;;  %9907 = vmatmul.msk.bf16.gmra.mxu3 %vm740_vm2, %v10304_v56  ;;  %v10013_v56 = vld [vmem:[%s13042_s0 + $0x278] sm:$0xff] }
 0x4dc   :  { %v6904_v35 = vmax.f32 %v6708_v32, 0.0 }
 0x4dd   :  { %v4547_v37 = vpop.f32.mrf.mxu2  ;;  %v6223_v39 = vpop.f32.mrf.mxu3 }
 0x4de   :  { %v10664_v40 = vpack.c.bf16 %v6904_v35, %v6903_v34  ;;  %v1393_v41 = vpop.f32.mrf.mxu0  ;;  %v2873_v42 = vpop.f32.mrf.mxu1  ;;  %v4833_v43 = vmax.f32 %v3157_v36, %v4547_v37  ;;  %v10209_v35 = vld [vmem:[%s13042_s0 + $0x898] sm:$0xff]  ;;  %v10307_v36 = vld [vmem:[%s13042_s0 + $0xba8] sm:$0xff] }
 0x4df   :  { %v3158_v45 = vmax.f32 %v1393_v41, %v2873_v42 }
 0x4e0   :  { %10882 = vst [vmem:[%s13044_s3 + $0x218] sm:$0xff] %v10664_v40   ;;  %v6509_v44 = vmax.f32 %v4833_v43, %v6223_v39 }
 0x4e2   :  { %v6709_v55 = vadd.f32 %v12309_v29, %v6509_v44 }
 0x4e4   :  { %v6905_v59 = vmax.f32 %v6709_v55, 0.0  ;;  %v10112_v55 = vld [vmem:[%s13042_s0 + $0x590] sm:$0xff] }
 0x4e5   :  { %v4549_v46 = vpop.f32.mrf.mxu2  ;;  %v6225_v47 = vpop.f32.mrf.mxu3 }
 0x4e6   :  { %v4834_v50 = vmax.f32 %v3158_v45, %v4549_v46  ;;  %v1396_v51 = vpop.f32.mrf.mxu0  ;;  %v2876_v52 = vpop.f32.mrf.mxu1 }
 0x4e7   :  { %v3159_v61 = vmax.f32 %v1396_v51, %v2876_v52 }
 0x4e8   :  { %v6510_v57 = vmax.f32 %v4834_v50, %v6225_v47 }
 0x4e9   :  { %7850 = vmatmul.msk.bf16.gmra.mxu0 %vm740_vm2, %v10011_v48  ;;  %8536 = vmatmul.msk.bf16.gmra.mxu1 %vm740_vm2, %v10109_v49 }
 0x4ea   :  { %v6710_v58 = vadd.f32 %v12309_v29, %v6510_v57  ;;  %9222 = vmatmul.msk.bf16.gmra.mxu2 %vm740_vm2, %v10207_v53  ;;  %9908 = vmatmul.msk.bf16.gmra.mxu3 %vm740_vm2, %v10305_v54  ;;  %v10014_v54 = vld [vmem:[%s13042_s0 + $0x280] sm:$0xff] }
 0x4ec   :  { %v6906_v60 = vmax.f32 %v6710_v58, 0.0 }
 0x4ed   :  { %v4552_v62 = vpop.f32.mrf.mxu2  ;;  %v6228_v63 = vpop.f32.mrf.mxu3 }
 0x4ee   :  { %v10669_v0 = vpack.c.bf16 %v6906_v60, %v6905_v59  ;;  %v1398_v1 = vpop.f32.mrf.mxu0  ;;  %v2878_v2 = vpop.f32.mrf.mxu1  ;;  %v4835_v3 = vmax.f32 %v3159_v61, %v4552_v62  ;;  %v10210_v60 = vld [vmem:[%s13042_s0 + $0x8a0] sm:$0xff]  ;;  %v10308_v61 = vld [vmem:[%s13042_s0 + $0xbb0] sm:$0xff] }
 0x4ef   :  { %v3160_v5 = vmax.f32 %v1398_v1, %v2878_v2 }
 0x4f0   :  { %10883 = vst [vmem:[%s13044_s3 + $0x220] sm:$0xff] %v10669_v0   ;;  %v6511_v4 = vmax.f32 %v4835_v3, %v6228_v63 }
 0x4f2   :  { %v6711_v15 = vadd.f32 %v12309_v29, %v6511_v4 }
 0x4f4   :  { %v6907_v18 = vmax.f32 %v6711_v15, 0.0  ;;  %v10113_v15 = vld [vmem:[%s13042_s0 + $0x598] sm:$0xff] }
 0x4f5   :  { %v4554_v6 = vpop.f32.mrf.mxu2  ;;  %v6230_v7 = vpop.f32.mrf.mxu3 }
 0x4f6   :  { %v4836_v10 = vmax.f32 %v3160_v5, %v4554_v6  ;;  %v1401_v11 = vpop.f32.mrf.mxu0  ;;  %v2881_v12 = vpop.f32.mrf.mxu1 }
 0x4f7   :  { %v3161_v20 = vmax.f32 %v1401_v11, %v2881_v12 }
 0x4f8   :  { %v6512_v16 = vmax.f32 %v4836_v10, %v6230_v7 }
 0x4f9   :  { %7851 = vmatmul.msk.bf16.gmra.mxu0 %vm740_vm2, %v10012_v8  ;;  %8537 = vmatmul.msk.bf16.gmra.mxu1 %vm740_vm2, %v10110_v9 }
 0x4fa   :  { %v6712_v17 = vadd.f32 %v12309_v29, %v6512_v16  ;;  %9223 = vmatmul.msk.bf16.gmra.mxu2 %vm740_vm2, %v10208_v13  ;;  %9909 = vmatmul.msk.bf16.gmra.mxu3 %vm740_vm2, %v10306_v14  ;;  %v10015_v14 = vld [vmem:[%s13042_s0 + $0x288] sm:$0xff] }
 0x4fc   :  { %v6908_v19 = vmax.f32 %v6712_v17, 0.0 }
 0x4fd   :  { %v4557_v21 = vpop.f32.mrf.mxu2  ;;  %v6233_v33 = vpop.f32.mrf.mxu3 }
 0x4fe   :  { %v10674_v22 = vpack.c.bf16 %v6908_v19, %v6907_v18  ;;  %v1403_v23 = vpop.f32.mrf.mxu0  ;;  %v2883_v24 = vpop.f32.mrf.mxu1  ;;  %v4837_v25 = vmax.f32 %v3161_v20, %v4557_v21  ;;  %v10211_v19 = vld [vmem:[%s13042_s0 + $0x8a8] sm:$0xff]  ;;  %v10309_v20 = vld [vmem:[%s13042_s0 + $0xbb8] sm:$0xff] }
 0x4ff   :  { %v3162_v26 = vmax.f32 %v1403_v23, %v2883_v24 }
 0x500   :  { %10884 = vst [vmem:[%s13044_s3 + $0x228] sm:$0xff] %v10674_v22   ;;  %v6513_v38 = vmax.f32 %v4837_v25, %v6233_v33 }
 0x502   :  { %v6713_v37 = vadd.f32 %v12309_v29, %v6513_v38 }
 0x504   :  { %v6909_v41 = vmax.f32 %v6713_v37, 0.0  ;;  %v10114_v37 = vld [vmem:[%s13042_s0 + $0x5a0] sm:$0xff] }
 0x505   :  { %v4559_v27 = vpop.f32.mrf.mxu2  ;;  %v6235_v28 = vpop.f32.mrf.mxu3 }
 0x506   :  { %v4838_v31 = vmax.f32 %v3162_v26, %v4559_v27  ;;  %v1406_v32 = vpop.f32.mrf.mxu0  ;;  %v2886_v34 = vpop.f32.mrf.mxu1 }
 0x507   :  { %v3163_v43 = vmax.f32 %v1406_v32, %v2886_v34 }
 0x508   :  { %v6514_v39 = vmax.f32 %v4838_v31, %v6235_v28 }
 0x509   :  { %7852 = vmatmul.msk.bf16.gmra.mxu0 %vm740_vm2, %v10013_v56  ;;  %8538 = vmatmul.msk.bf16.gmra.mxu1 %vm740_vm2, %v10111_v30 }
 0x50a   :  { %v6714_v40 = vadd.f32 %v12309_v29, %v6514_v39  ;;  %9224 = vmatmul.msk.bf16.gmra.mxu2 %vm740_vm2, %v10209_v35  ;;  %9910 = vmatmul.msk.bf16.gmra.mxu3 %vm740_vm2, %v10307_v36  ;;  %v10016_v36 = vld [vmem:[%s13042_s0 + $0x290] sm:$0xff] }
 0x50c   :  { %v6910_v42 = vmax.f32 %v6714_v40, 0.0 }
 0x50d   :  { %v4562_v44 = vpop.f32.mrf.mxu2  ;;  %v6238_v45 = vpop.f32.mrf.mxu3 }
 0x50e   :  { %v10679_v46 = vpack.c.bf16 %v6910_v42, %v6909_v41  ;;  %v1408_v47 = vpop.f32.mrf.mxu0  ;;  %v2888_v48 = vpop.f32.mrf.mxu1  ;;  %v4839_v49 = vmax.f32 %v3163_v43, %v4562_v44  ;;  %v10212_v42 = vld [vmem:[%s13042_s0 + $0x8b0] sm:$0xff]  ;;  %v10310_v43 = vld [vmem:[%s13042_s0 + $0xbc0] sm:$0xff] }
 0x50f   :  { %v3164_v51 = vmax.f32 %v1408_v47, %v2888_v48 }
 0x510   :  { %10885 = vst [vmem:[%s13044_s3 + $0x230] sm:$0xff] %v10679_v46   ;;  %v6515_v50 = vmax.f32 %v4839_v49, %v6238_v45 }
 0x512   :  { %v6715_v62 = vadd.f32 %v12309_v29, %v6515_v50 }
 0x514   :  { %v6911_v1 = vmax.f32 %v6715_v62, 0.0  ;;  %v10115_v62 = vld [vmem:[%s13042_s0 + $0x5a8] sm:$0xff] }
 0x515   :  { %v4564_v52 = vpop.f32.mrf.mxu2  ;;  %v6240_v53 = vpop.f32.mrf.mxu3 }
 0x516   :  { %v4840_v57 = vmax.f32 %v3164_v51, %v4564_v52  ;;  %v1411_v58 = vpop.f32.mrf.mxu0  ;;  %v2891_v59 = vpop.f32.mrf.mxu1 }
 0x517   :  { %v3165_v3 = vmax.f32 %v1411_v58, %v2891_v59 }
 0x518   :  { %v6516_v63 = vmax.f32 %v4840_v57, %v6240_v53 }
 0x519   :  { %7853 = vmatmul.msk.bf16.gmra.mxu0 %vm740_vm2, %v10014_v54  ;;  %8539 = vmatmul.msk.bf16.gmra.mxu1 %vm740_vm2, %v10112_v55 }
 0x51a   :  { %v6716_v0 = vadd.f32 %v12309_v29, %v6516_v63  ;;  %9225 = vmatmul.msk.bf16.gmra.mxu2 %vm740_vm2, %v10210_v60  ;;  %9911 = vmatmul.msk.bf16.gmra.mxu3 %vm740_vm2, %v10308_v61  ;;  %v10017_v61 = vld [vmem:[%s13042_s0 + $0x298] sm:$0xff] }
 0x51c   :  { %v6912_v2 = vmax.f32 %v6716_v0, 0.0 }
 0x51d   :  { %v4567_v4 = vpop.f32.mrf.mxu2  ;;  %v6243_v5 = vpop.f32.mrf.mxu3 }
 0x51e   :  { %v10684_v6 = vpack.c.bf16 %v6912_v2, %v6911_v1  ;;  %v1413_v7 = vpop.f32.mrf.mxu0  ;;  %v2893_v8 = vpop.f32.mrf.mxu1  ;;  %v4841_v9 = vmax.f32 %v3165_v3, %v4567_v4  ;;  %v10213_v2 = vld [vmem:[%s13042_s0 + $0x8b8] sm:$0xff]  ;;  %v10311_v3 = vld [vmem:[%s13042_s0 + $0xbc8] sm:$0xff] }
 0x51f   :  { %v3166_v11 = vmax.f32 %v1413_v7, %v2893_v8 }
 0x520   :  { %10886 = vst [vmem:[%s13044_s3 + $0x238] sm:$0xff] %v10684_v6   ;;  %v6517_v10 = vmax.f32 %v4841_v9, %v6243_v5 }
 0x522   :  { %v6717_v21 = vadd.f32 %v12309_v29, %v6517_v10 }
 0x524   :  { %v6913_v23 = vmax.f32 %v6717_v21, 0.0 }
 0x525   :  { %v4569_v12 = vpop.f32.mrf.mxu2  ;;  %v6245_v13 = vpop.f32.mrf.mxu3 }
 0x526   :  { %v4842_v16 = vmax.f32 %v3166_v11, %v4569_v12  ;;  %v1416_v17 = vpop.f32.mrf.mxu0  ;;  %v2896_v18 = vpop.f32.mrf.mxu1 }
 0x527   :  { %v3167_v25 = vmax.f32 %v1416_v17, %v2896_v18 }
 0x528   :  { %v6518_v33 = vmax.f32 %v4842_v16, %v6245_v13 }
 0x529   :  { %7854 = vmatmul.msk.bf16.gmra.mxu0 %vm740_vm2, %v10015_v14  ;;  %8540 = vmatmul.msk.bf16.gmra.mxu1 %vm740_vm2, %v10113_v15 }
 0x52a   :  { %v6718_v22 = vadd.f32 %v12309_v29, %v6518_v33  ;;  %9226 = vmatmul.msk.bf16.gmra.mxu2 %vm740_vm2, %v10211_v19  ;;  %9912 = vmatmul.msk.bf16.gmra.mxu3 %vm740_vm2, %v10309_v20  ;;  %v10018_v19 = vld [vmem:[%s13042_s0 + $0x2a0] sm:$0xff]  ;;  %v10116_v20 = vld [vmem:[%s13042_s0 + $0x5b0] sm:$0xff] }
 0x52c   :  { %v6914_v24 = vmax.f32 %v6718_v22, 0.0 }
 0x52d   :  { %v4572_v38 = vpop.f32.mrf.mxu2  ;;  %v6248_v26 = vpop.f32.mrf.mxu3 }
 0x52e   :  { %v10689_v27 = vpack.c.bf16 %v6914_v24, %v6913_v23  ;;  %v1418_v28 = vpop.f32.mrf.mxu0  ;;  %v2898_v56 = vpop.f32.mrf.mxu1  ;;  %v4843_v30 = vmax.f32 %v3167_v25, %v4572_v38  ;;  %v10214_v23 = vld [vmem:[%s13042_s0 + $0x8c0] sm:$0xff]  ;;  %v10312_v24 = vld [vmem:[%s13042_s0 + $0xbd0] sm:$0xff] }
 0x52f   :  { %v3168_v32 = vmax.f32 %v1418_v28, %v2898_v56  ;;  %v12713_v25 = vld [vmem:[%s13043_s2] ss:$0 sm:$0xff] }
 0x530   :  { %10887 = vst [vmem:[%s13044_s3 + $0x240] sm:$0xff] %v10689_v27   ;;  %v6519_v31 = vmax.f32 %v4843_v30, %v6248_v26 }
 0x532   :  { %v6719_v44 = vadd.f32 %v12309_v29, %v6519_v31 }
 0x534   :  { %v6915_v47 = vmax.f32 %v6719_v44, 0.0  ;;  %v10117_v44 = vld [vmem:[%s13042_s0 + $0x5b8] sm:$0xff] }
 0x535   :  { %v4574_v34 = vpop.f32.mrf.mxu2  ;;  %v6250_v35 = vpop.f32.mrf.mxu3 }
 0x536   :  { %v4844_v39 = vmax.f32 %v3168_v32, %v4574_v34  ;;  %v1421_v40 = vpop.f32.mrf.mxu0  ;;  %v2901_v41 = vpop.f32.mrf.mxu1 }
 0x537   :  { %v3169_v49 = vmax.f32 %v1421_v40, %v2901_v41 }
 0x538   :  { %v6520_v45 = vmax.f32 %v4844_v39, %v6250_v35 }
 0x539   :  { %7855 = vmatmul.msk.bf16.gmra.mxu0 %vm740_vm2, %v10016_v36  ;;  %8541 = vmatmul.msk.bf16.gmra.mxu1 %vm740_vm2, %v10114_v37 }
 0x53a   :  { %v6720_v46 = vadd.f32 %v12309_v29, %v6520_v45  ;;  %9227 = vmatmul.msk.bf16.gmra.mxu2 %vm740_vm2, %v10212_v42  ;;  %9913 = vmatmul.msk.bf16.gmra.mxu3 %vm740_vm2, %v10310_v43  ;;  %v10019_v43 = vld [vmem:[%s13042_s0 + $0x2a8] sm:$0xff] }
 0x53c   :  { %v6916_v48 = vmax.f32 %v6720_v46, 0.0 }
 0x53d   :  { %v4577_v50 = vpop.f32.mrf.mxu2  ;;  %v6253_v51 = vpop.f32.mrf.mxu3 }
 0x53e   :  { %v10694_v52 = vpack.c.bf16 %v6916_v48, %v6915_v47  ;;  %v1423_v53 = vpop.f32.mrf.mxu0  ;;  %v2903_v54 = vpop.f32.mrf.mxu1  ;;  %v4845_v55 = vmax.f32 %v3169_v49, %v4577_v50  ;;  %v10215_v48 = vld [vmem:[%s13042_s0 + $0x8c8] sm:$0xff]  ;;  %v10313_v49 = vld [vmem:[%s13042_s0 + $0xbd8] sm:$0xff] }
 0x53f   :  { %v3170_v58 = vmax.f32 %v1423_v53, %v2903_v54 }
 0x540   :  { %10888 = vst [vmem:[%s13044_s3 + $0x248] sm:$0xff] %v10694_v52   ;;  %v6521_v57 = vmax.f32 %v4845_v55, %v6253_v51 }
 0x542   :  { %v6721_v4 = vadd.f32 %v12309_v29, %v6521_v57 }
 0x544   :  { %v6917_v7 = vmax.f32 %v6721_v4, 0.0  ;;  %v10118_v4 = vld [vmem:[%s13042_s0 + $0x5c0] sm:$0xff] }
 0x545   :  { %v4579_v59 = vpop.f32.mrf.mxu2  ;;  %v6255_v60 = vpop.f32.mrf.mxu3 }
 0x546   :  { %v4846_v63 = vmax.f32 %v3170_v58, %v4579_v59  ;;  %v1426_v0 = vpop.f32.mrf.mxu0  ;;  %v2906_v1 = vpop.f32.mrf.mxu1 }
 0x547   :  { %v3171_v9 = vmax.f32 %v1426_v0, %v2906_v1 }
 0x548   :  { %v6522_v5 = vmax.f32 %v4846_v63, %v6255_v60 }
 0x549   :  { %7856 = vmatmul.msk.bf16.gmra.mxu0 %vm740_vm2, %v10017_v61  ;;  %8542 = vmatmul.msk.bf16.gmra.mxu1 %vm740_vm2, %v10115_v62 }
 0x54a   :  { %v6722_v6 = vadd.f32 %v12309_v29, %v6522_v5  ;;  %9228 = vmatmul.msk.bf16.gmra.mxu2 %vm740_vm2, %v10213_v2  ;;  %9914 = vmatmul.msk.bf16.gmra.mxu3 %vm740_vm2, %v10311_v3  ;;  %v10020_v3 = vld [vmem:[%s13042_s0 + $0x2b0] sm:$0xff] }
 0x54c   :  { %v6918_v8 = vmax.f32 %v6722_v6, 0.0 }
 0x54d   :  { %v4582_v10 = vpop.f32.mrf.mxu2  ;;  %v6258_v11 = vpop.f32.mrf.mxu3 }
 0x54e   :  { %v10699_v12 = vpack.c.bf16 %v6918_v8, %v6917_v7  ;;  %v1428_v13 = vpop.f32.mrf.mxu0  ;;  %v2908_v14 = vpop.f32.mrf.mxu1  ;;  %v4847_v15 = vmax.f32 %v3171_v9, %v4582_v10  ;;  %v10216_v8 = vld [vmem:[%s13042_s0 + $0x8d0] sm:$0xff]  ;;  %v10314_v9 = vld [vmem:[%s13042_s0 + $0xbe0] sm:$0xff] }
 0x54f   :  { %v3172_v17 = vmax.f32 %v1428_v13, %v2908_v14 }
 0x550   :  { %10889 = vst [vmem:[%s13044_s3 + $0x250] sm:$0xff] %v10699_v12   ;;  %v6523_v16 = vmax.f32 %v4847_v15, %v6258_v11 }
 0x552   :  { %v6723_v38 = vadd.f32 %v12713_v25, %v6523_v16 }
 0x554   :  { %v6919_v28 = vmax.f32 %v6723_v38, 0.0  ;;  %v10119_v38 = vld [vmem:[%s13042_s0 + $0x5c8] sm:$0xff] }
 0x555   :  { %v4584_v29 = vpop.f32.mrf.mxu2  ;;  %v6260_v18 = vpop.f32.mrf.mxu3 }
 0x556   :  { %v4848_v21 = vmax.f32 %v3172_v17, %v4584_v29  ;;  %v1431_v33 = vpop.f32.mrf.mxu0  ;;  %v2911_v22 = vpop.f32.mrf.mxu1 }
 0x557   :  { %v3173_v30 = vmax.f32 %v1431_v33, %v2911_v22 }
 0x558   :  { %v6524_v26 = vmax.f32 %v4848_v21, %v6260_v18 }
 0x559   :  { %7857 = vmatmul.msk.bf16.gmra.mxu0 %vm740_vm2, %v10018_v19  ;;  %8543 = vmatmul.msk.bf16.gmra.mxu1 %vm740_vm2, %v10116_v20 }
 0x55a   :  { %v6724_v27 = vadd.f32 %v12713_v25, %v6524_v26  ;;  %9229 = vmatmul.msk.bf16.gmra.mxu2 %vm740_vm2, %v10214_v23  ;;  %9915 = vmatmul.msk.bf16.gmra.mxu3 %vm740_vm2, %v10312_v24  ;;  %v10021_v24 = vld [vmem:[%s13042_s0 + $0x2b8] sm:$0xff] }
 0x55c   :  { %v6920_v56 = vmax.f32 %v6724_v27, 0.0 }
 0x55d   :  { %v4587_v31 = vpop.f32.mrf.mxu2  ;;  %v6263_v32 = vpop.f32.mrf.mxu3 }
 0x55e   :  { %v10704_v34 = vpack.c.bf16 %v6920_v56, %v6919_v28  ;;  %v1433_v35 = vpop.f32.mrf.mxu0  ;;  %v2913_v36 = vpop.f32.mrf.mxu1  ;;  %v4849_v37 = vmax.f32 %v3173_v30, %v4587_v31  ;;  %v10217_v56 = vld [vmem:[%s13042_s0 + $0x8d8] sm:$0xff]  ;;  %v10315_v30 = vld [vmem:[%s13042_s0 + $0xbe8] sm:$0xff] }
 0x55f   :  { %v3174_v40 = vmax.f32 %v1433_v35, %v2913_v36 }
 0x560   :  { %10890 = vst [vmem:[%s13044_s3 + $0x258] sm:$0xff] %v10704_v34   ;;  %v6525_v39 = vmax.f32 %v4849_v37, %v6263_v32 }
 0x562   :  { %v6725_v50 = vadd.f32 %v12713_v25, %v6525_v39 }
 0x564   :  { %v6921_v53 = vmax.f32 %v6725_v50, 0.0  ;;  %v10120_v50 = vld [vmem:[%s13042_s0 + $0x5d0] sm:$0xff] }
 0x565   :  { %v4589_v41 = vpop.f32.mrf.mxu2  ;;  %v6265_v42 = vpop.f32.mrf.mxu3 }
 0x566   :  { %v4850_v45 = vmax.f32 %v3174_v40, %v4589_v41  ;;  %v1436_v46 = vpop.f32.mrf.mxu0  ;;  %v2916_v47 = vpop.f32.mrf.mxu1 }
 0x567   :  { %v3175_v55 = vmax.f32 %v1436_v46, %v2916_v47 }
 0x568   :  { %v6526_v51 = vmax.f32 %v4850_v45, %v6265_v42 }
 0x569   :  { %7858 = vmatmul.msk.bf16.gmra.mxu0 %vm740_vm2, %v10019_v43  ;;  %8544 = vmatmul.msk.bf16.gmra.mxu1 %vm740_vm2, %v10117_v44 }
 0x56a   :  { %v6726_v52 = vadd.f32 %v12713_v25, %v6526_v51  ;;  %9230 = vmatmul.msk.bf16.gmra.mxu2 %vm740_vm2, %v10215_v48  ;;  %9916 = vmatmul.msk.bf16.gmra.mxu3 %vm740_vm2, %v10313_v49  ;;  %v10022_v49 = vld [vmem:[%s13042_s0 + $0x2c0] sm:$0xff] }
 0x56c   :  { %v6922_v54 = vmax.f32 %v6726_v52, 0.0 }
 0x56d   :  { %v4592_v57 = vpop.f32.mrf.mxu2  ;;  %v6268_v58 = vpop.f32.mrf.mxu3 }
 0x56e   :  { %v10709_v59 = vpack.c.bf16 %v6922_v54, %v6921_v53  ;;  %v1438_v60 = vpop.f32.mrf.mxu0  ;;  %v2918_v61 = vpop.f32.mrf.mxu1  ;;  %v4851_v62 = vmax.f32 %v3175_v55, %v4592_v57  ;;  %v10218_v54 = vld [vmem:[%s13042_s0 + $0x8e0] sm:$0xff]  ;;  %v10316_v55 = vld [vmem:[%s13042_s0 + $0xbf0] sm:$0xff] }
 0x56f   :  { %v3176_v0 = vmax.f32 %v1438_v60, %v2918_v61 }
 0x570   :  { %10891 = vst [vmem:[%s13044_s3 + $0x260] sm:$0xff] %v10709_v59   ;;  %v6527_v63 = vmax.f32 %v4851_v62, %v6268_v58 }
 0x572   :  { %v6727_v10 = vadd.f32 %v12713_v25, %v6527_v63 }
 0x574   :  { %v6923_v13 = vmax.f32 %v6727_v10, 0.0  ;;  %v10121_v10 = vld [vmem:[%s13042_s0 + $0x5d8] sm:$0xff] }
 0x575   :  { %v4594_v1 = vpop.f32.mrf.mxu2  ;;  %v6270_v2 = vpop.f32.mrf.mxu3 }
 0x576   :  { %v4852_v5 = vmax.f32 %v3176_v0, %v4594_v1  ;;  %v1441_v6 = vpop.f32.mrf.mxu0  ;;  %v2921_v7 = vpop.f32.mrf.mxu1 }
 0x577   :  { %v3177_v15 = vmax.f32 %v1441_v6, %v2921_v7 }
 0x578   :  { %v6528_v11 = vmax.f32 %v4852_v5, %v6270_v2 }
 0x579   :  { %7859 = vmatmul.msk.bf16.gmra.mxu0 %vm740_vm2, %v10020_v3  ;;  %8545 = vmatmul.msk.bf16.gmra.mxu1 %vm740_vm2, %v10118_v4 }
 0x57a   :  { %v6728_v12 = vadd.f32 %v12713_v25, %v6528_v11  ;;  %9231 = vmatmul.msk.bf16.gmra.mxu2 %vm740_vm2, %v10216_v8  ;;  %9917 = vmatmul.msk.bf16.gmra.mxu3 %vm740_vm2, %v10314_v9  ;;  %v10023_v9 = vld [vmem:[%s13042_s0 + $0x2c8] sm:$0xff] }
 0x57c   :  { %v6924_v14 = vmax.f32 %v6728_v12, 0.0 }
 0x57d   :  { %v4597_v16 = vpop.f32.mrf.mxu2  ;;  %v6273_v17 = vpop.f32.mrf.mxu3 }
 0x57e   :  { %v10714_v29 = vpack.c.bf16 %v6924_v14, %v6923_v13  ;;  %v1443_v18 = vpop.f32.mrf.mxu0  ;;  %v2923_v19 = vpop.f32.mrf.mxu1  ;;  %v4853_v20 = vmax.f32 %v3177_v15, %v4597_v16  ;;  %v10219_v14 = vld [vmem:[%s13042_s0 + $0x8e8] sm:$0xff]  ;;  %v10317_v15 = vld [vmem:[%s13042_s0 + $0xbf8] sm:$0xff] }
 0x57f   :  { %v3178_v33 = vmax.f32 %v1443_v18, %v2923_v19 }
 0x580   :  { %10892 = vst [vmem:[%s13044_s3 + $0x268] sm:$0xff] %v10714_v29   ;;  %v6529_v21 = vmax.f32 %v4853_v20, %v6273_v17 }
 0x582   :  { %v6729_v31 = vadd.f32 %v12713_v25, %v6529_v21 }
 0x584   :  { %v6925_v35 = vmax.f32 %v6729_v31, 0.0  ;;  %v10122_v31 = vld [vmem:[%s13042_s0 + $0x5e0] sm:$0xff] }
 0x585   :  { %v4599_v22 = vpop.f32.mrf.mxu2  ;;  %v6275_v23 = vpop.f32.mrf.mxu3 }
 0x586   :  { %v4854_v26 = vmax.f32 %v3178_v33, %v4599_v22  ;;  %v1446_v27 = vpop.f32.mrf.mxu0  ;;  %v2926_v28 = vpop.f32.mrf.mxu1 }
 0x587   :  { %v3179_v37 = vmax.f32 %v1446_v27, %v2926_v28 }
 0x588   :  { %v6530_v32 = vmax.f32 %v4854_v26, %v6275_v23 }
 0x589   :  { %7860 = vmatmul.msk.bf16.gmra.mxu0 %vm740_vm2, %v10021_v24  ;;  %8546 = vmatmul.msk.bf16.gmra.mxu1 %vm740_vm2, %v10119_v38 }
 0x58a   :  { %v6730_v34 = vadd.f32 %v12713_v25, %v6530_v32  ;;  %9232 = vmatmul.msk.bf16.gmra.mxu2 %vm740_vm2, %v10217_v56  ;;  %9918 = vmatmul.msk.bf16.gmra.mxu3 %vm740_vm2, %v10315_v30  ;;  %v10024_v30 = vld [vmem:[%s13042_s0 + $0x2d0] sm:$0xff] }
 0x58c   :  { %v6926_v36 = vmax.f32 %v6730_v34, 0.0 }
 0x58d   :  { %v4602_v39 = vpop.f32.mrf.mxu2  ;;  %v6278_v40 = vpop.f32.mrf.mxu3 }
 0x58e   :  { %v10719_v41 = vpack.c.bf16 %v6926_v36, %v6925_v35  ;;  %v1448_v42 = vpop.f32.mrf.mxu0  ;;  %v2928_v43 = vpop.f32.mrf.mxu1  ;;  %v4855_v44 = vmax.f32 %v3179_v37, %v4602_v39  ;;  %v10220_v36 = vld [vmem:[%s13042_s0 + $0x8f0] sm:$0xff]  ;;  %v10318_v37 = vld [vmem:[%s13042_s0 + $0xc00] sm:$0xff] }
 0x58f   :  { %v3180_v46 = vmax.f32 %v1448_v42, %v2928_v43 }
 0x590   :  { %10893 = vst [vmem:[%s13044_s3 + $0x270] sm:$0xff] %v10719_v41   ;;  %v6531_v45 = vmax.f32 %v4855_v44, %v6278_v40 }
 0x592   :  { %v6731_v57 = vadd.f32 %v12713_v25, %v6531_v45 }
 0x594   :  { %v6927_v60 = vmax.f32 %v6731_v57, 0.0  ;;  %v10123_v57 = vld [vmem:[%s13042_s0 + $0x5e8] sm:$0xff] }
 0x595   :  { %v4604_v47 = vpop.f32.mrf.mxu2  ;;  %v6280_v48 = vpop.f32.mrf.mxu3 }
 0x596   :  { %v4856_v51 = vmax.f32 %v3180_v46, %v4604_v47  ;;  %v1451_v52 = vpop.f32.mrf.mxu0  ;;  %v2931_v53 = vpop.f32.mrf.mxu1 }
 0x597   :  { %v3181_v62 = vmax.f32 %v1451_v52, %v2931_v53 }
 0x598   :  { %v6532_v58 = vmax.f32 %v4856_v51, %v6280_v48 }
 0x599   :  { %7861 = vmatmul.msk.bf16.gmra.mxu0 %vm740_vm2, %v10022_v49  ;;  %8547 = vmatmul.msk.bf16.gmra.mxu1 %vm740_vm2, %v10120_v50 }
 0x59a   :  { %v6732_v59 = vadd.f32 %v12713_v25, %v6532_v58  ;;  %9233 = vmatmul.msk.bf16.gmra.mxu2 %vm740_vm2, %v10218_v54  ;;  %9919 = vmatmul.msk.bf16.gmra.mxu3 %vm740_vm2, %v10316_v55  ;;  %v10025_v55 = vld [vmem:[%s13042_s0 + $0x2d8] sm:$0xff] }
 0x59c   :  { %v6928_v61 = vmax.f32 %v6732_v59, 0.0 }
 0x59d   :  { %v4607_v63 = vpop.f32.mrf.mxu2  ;;  %v6283_v0 = vpop.f32.mrf.mxu3 }
 0x59e   :  { %v10724_v1 = vpack.c.bf16 %v6928_v61, %v6927_v60  ;;  %v1453_v2 = vpop.f32.mrf.mxu0  ;;  %v2933_v3 = vpop.f32.mrf.mxu1  ;;  %v4857_v4 = vmax.f32 %v3181_v62, %v4607_v63  ;;  %v10221_v61 = vld [vmem:[%s13042_s0 + $0x8f8] sm:$0xff]  ;;  %v10319_v62 = vld [vmem:[%s13042_s0 + $0xc08] sm:$0xff] }
 0x59f   :  { %v3182_v6 = vmax.f32 %v1453_v2, %v2933_v3 }
 0x5a0   :  { %10894 = vst [vmem:[%s13044_s3 + $0x278] sm:$0xff] %v10724_v1   ;;  %v6533_v5 = vmax.f32 %v4857_v4, %v6283_v0 }
 0x5a2   :  { %v6733_v16 = vadd.f32 %v12713_v25, %v6533_v5 }
 0x5a4   :  { %v6929_v18 = vmax.f32 %v6733_v16, 0.0  ;;  %v10124_v16 = vld [vmem:[%s13042_s0 + $0x5f0] sm:$0xff] }
 0x5a5   :  { %v4609_v7 = vpop.f32.mrf.mxu2  ;;  %v6285_v8 = vpop.f32.mrf.mxu3 }
 0x5a6   :  { %v4858_v11 = vmax.f32 %v3182_v6, %v4609_v7  ;;  %v1456_v12 = vpop.f32.mrf.mxu0  ;;  %v2936_v13 = vpop.f32.mrf.mxu1 }
 0x5a7   :  { %v3183_v20 = vmax.f32 %v1456_v12, %v2936_v13 }
 0x5a8   :  { %v6534_v17 = vmax.f32 %v4858_v11, %v6285_v8 }
 0x5a9   :  { %7862 = vmatmul.msk.bf16.gmra.mxu0 %vm740_vm2, %v10023_v9  ;;  %8548 = vmatmul.msk.bf16.gmra.mxu1 %vm740_vm2, %v10121_v10 }
 0x5aa   :  { %v6734_v29 = vadd.f32 %v12713_v25, %v6534_v17  ;;  %9234 = vmatmul.msk.bf16.gmra.mxu2 %vm740_vm2, %v10219_v14  ;;  %9920 = vmatmul.msk.bf16.gmra.mxu3 %vm740_vm2, %v10317_v15  ;;  %v10026_v15 = vld [vmem:[%s13042_s0 + $0x2e0] sm:$0xff] }
 0x5ac   :  { %v6930_v19 = vmax.f32 %v6734_v29, 0.0 }
 0x5ad   :  { %v4612_v21 = vpop.f32.mrf.mxu2  ;;  %v6288_v33 = vpop.f32.mrf.mxu3 }
 0x5ae   :  { %v10729_v22 = vpack.c.bf16 %v6930_v19, %v6929_v18  ;;  %v1458_v23 = vpop.f32.mrf.mxu0  ;;  %v2938_v24 = vpop.f32.mrf.mxu1  ;;  %v4859_v38 = vmax.f32 %v3183_v20, %v4612_v21  ;;  %v10222_v19 = vld [vmem:[%s13042_s0 + $0x900] sm:$0xff]  ;;  %v10320_v20 = vld [vmem:[%s13042_s0 + $0xc10] sm:$0xff] }
 0x5af   :  { %v3184_v27 = vmax.f32 %v1458_v23, %v2938_v24 }
 0x5b0   :  { %10895 = vst [vmem:[%s13044_s3 + $0x280] sm:$0xff] %v10729_v22   ;;  %v6535_v26 = vmax.f32 %v4859_v38, %v6288_v33 }
 0x5b2   :  { %v6735_v39 = vadd.f32 %v12713_v25, %v6535_v26 }
 0x5b4   :  { %v6931_v42 = vmax.f32 %v6735_v39, 0.0  ;;  %v10125_v39 = vld [vmem:[%s13042_s0 + $0x5f8] sm:$0xff] }
 0x5b5   :  { %v4614_v28 = vpop.f32.mrf.mxu2  ;;  %v6290_v56 = vpop.f32.mrf.mxu3 }
 0x5b6   :  { %v4860_v32 = vmax.f32 %v3184_v27, %v4614_v28  ;;  %v1461_v34 = vpop.f32.mrf.mxu0  ;;  %v2941_v35 = vpop.f32.mrf.mxu1 }
 0x5b7   :  { %v3185_v44 = vmax.f32 %v1461_v34, %v2941_v35 }
 0x5b8   :  { %v6536_v40 = vmax.f32 %v4860_v32, %v6290_v56 }
 0x5b9   :  { %7863 = vmatmul.msk.bf16.gmra.mxu0 %vm740_vm2, %v10024_v30  ;;  %8549 = vmatmul.msk.bf16.gmra.mxu1 %vm740_vm2, %v10122_v31 }
 0x5ba   :  { %v6736_v41 = vadd.f32 %v12713_v25, %v6536_v40  ;;  %9235 = vmatmul.msk.bf16.gmra.mxu2 %vm740_vm2, %v10220_v36  ;;  %9921 = vmatmul.msk.bf16.gmra.mxu3 %vm740_vm2, %v10318_v37  ;;  %v10027_v37 = vld [vmem:[%s13042_s0 + $0x2e8] sm:$0xff] }
 0x5bc   :  { %v6932_v43 = vmax.f32 %v6736_v41, 0.0 }
 0x5bd   :  { %v4617_v45 = vpop.f32.mrf.mxu2  ;;  %v6293_v46 = vpop.f32.mrf.mxu3 }
 0x5be   :  { %v10734_v47 = vpack.c.bf16 %v6932_v43, %v6931_v42  ;;  %v1463_v48 = vpop.f32.mrf.mxu0  ;;  %v2943_v49 = vpop.f32.mrf.mxu1  ;;  %v4861_v50 = vmax.f32 %v3185_v44, %v4617_v45  ;;  %v10223_v43 = vld [vmem:[%s13042_s0 + $0x908] sm:$0xff]  ;;  %v10321_v44 = vld [vmem:[%s13042_s0 + $0xc18] sm:$0xff] }
 0x5bf   :  { %v3186_v52 = vmax.f32 %v1463_v48, %v2943_v49 }
 0x5c0   :  { %10896 = vst [vmem:[%s13044_s3 + $0x288] sm:$0xff] %v10734_v47   ;;  %v6537_v51 = vmax.f32 %v4861_v50, %v6293_v46 }
 0x5c2   :  { %v6737_v63 = vadd.f32 %v12713_v25, %v6537_v51 }
 0x5c4   :  { %v6933_v2 = vmax.f32 %v6737_v63, 0.0  ;;  %v10126_v63 = vld [vmem:[%s13042_s0 + $0x600] sm:$0xff] }
 0x5c5   :  { %v4619_v53 = vpop.f32.mrf.mxu2  ;;  %v6295_v54 = vpop.f32.mrf.mxu3 }
 0x5c6   :  { %v4862_v58 = vmax.f32 %v3186_v52, %v4619_v53  ;;  %v1466_v59 = vpop.f32.mrf.mxu0  ;;  %v2946_v60 = vpop.f32.mrf.mxu1 }
 0x5c7   :  { %v3187_v4 = vmax.f32 %v1466_v59, %v2946_v60 }
 0x5c8   :  { %v6538_v0 = vmax.f32 %v4862_v58, %v6295_v54 }
 0x5c9   :  { %7864 = vmatmul.msk.bf16.gmra.mxu0 %vm740_vm2, %v10025_v55  ;;  %8550 = vmatmul.msk.bf16.gmra.mxu1 %vm740_vm2, %v10123_v57 }
 0x5ca   :  { %v6738_v1 = vadd.f32 %v12713_v25, %v6538_v0  ;;  %9236 = vmatmul.msk.bf16.gmra.mxu2 %vm740_vm2, %v10221_v61  ;;  %9922 = vmatmul.msk.bf16.gmra.mxu3 %vm740_vm2, %v10319_v62  ;;  %v10028_v62 = vld [vmem:[%s13042_s0 + $0x2f0] sm:$0xff] }
 0x5cc   :  { %v6934_v3 = vmax.f32 %v6738_v1, 0.0 }
 0x5cd   :  { %v4622_v5 = vpop.f32.mrf.mxu2  ;;  %v6298_v6 = vpop.f32.mrf.mxu3 }
 0x5ce   :  { %v10739_v7 = vpack.c.bf16 %v6934_v3, %v6933_v2  ;;  %v1468_v8 = vpop.f32.mrf.mxu0  ;;  %v2948_v9 = vpop.f32.mrf.mxu1  ;;  %v4863_v10 = vmax.f32 %v3187_v4, %v4622_v5  ;;  %v10224_v3 = vld [vmem:[%s13042_s0 + $0x910] sm:$0xff]  ;;  %v10322_v4 = vld [vmem:[%s13042_s0 + $0xc20] sm:$0xff] }
 0x5cf   :  { %v3188_v12 = vmax.f32 %v1468_v8, %v2948_v9 }
 0x5d0   :  { %10897 = vst [vmem:[%s13044_s3 + $0x290] sm:$0xff] %v10739_v7   ;;  %v6539_v11 = vmax.f32 %v4863_v10, %v6298_v6 }
 0x5d2   :  { %v6739_v21 = vadd.f32 %v12713_v25, %v6539_v11 }
 0x5d4   :  { %v6935_v23 = vmax.f32 %v6739_v21, 0.0  ;;  %v10127_v21 = vld [vmem:[%s13042_s0 + $0x608] sm:$0xff] }
 0x5d5   :  { %v4624_v13 = vpop.f32.mrf.mxu2  ;;  %v6300_v14 = vpop.f32.mrf.mxu3 }
 0x5d6   :  { %v4864_v17 = vmax.f32 %v3188_v12, %v4624_v13  ;;  %v1471_v29 = vpop.f32.mrf.mxu0  ;;  %v2951_v18 = vpop.f32.mrf.mxu1 }
 0x5d7   :  { %v3189_v38 = vmax.f32 %v1471_v29, %v2951_v18 }
 0x5d8   :  { %v6540_v33 = vmax.f32 %v4864_v17, %v6300_v14 }
 0x5d9   :  { %7865 = vmatmul.msk.bf16.gmra.mxu0 %vm740_vm2, %v10026_v15  ;;  %8551 = vmatmul.msk.bf16.gmra.mxu1 %vm740_vm2, %v10124_v16 }
 0x5da   :  { %v6740_v22 = vadd.f32 %v12713_v25, %v6540_v33  ;;  %9237 = vmatmul.msk.bf16.gmra.mxu2 %vm740_vm2, %v10222_v19  ;;  %9923 = vmatmul.msk.bf16.gmra.mxu3 %vm740_vm2, %v10320_v20  ;;  %v10029_v20 = vld [vmem:[%s13042_s0 + $0x2f8] sm:$0xff] }
 0x5dc   :  { %v6936_v24 = vmax.f32 %v6740_v22, 0.0 }
 0x5dd   :  { %v4627_v26 = vpop.f32.mrf.mxu2  ;;  %v6303_v27 = vpop.f32.mrf.mxu3 }
 0x5de   :  { %v10744_v28 = vpack.c.bf16 %v6936_v24, %v6935_v23  ;;  %v1473_v56 = vpop.f32.mrf.mxu0  ;;  %v2953_v30 = vpop.f32.mrf.mxu1  ;;  %v4865_v31 = vmax.f32 %v3189_v38, %v4627_v26  ;;  %v10225_v24 = vld [vmem:[%s13042_s0 + $0x918] sm:$0xff]  ;;  %v10323_v38 = vld [vmem:[%s13042_s0 + $0xc28] sm:$0xff] }
 0x5df   :  { %v3190_v34 = vmax.f32 %v1473_v56, %v2953_v30 }
 0x5e0   :  { %10898 = vst [vmem:[%s13044_s3 + $0x298] sm:$0xff] %v10744_v28   ;;  %v6541_v32 = vmax.f32 %v4865_v31, %v6303_v27 }
 0x5e2   :  { %v6741_v45 = vadd.f32 %v12713_v25, %v6541_v32 }
 0x5e4   :  { %v6937_v48 = vmax.f32 %v6741_v45, 0.0  ;;  %v10128_v45 = vld [vmem:[%s13042_s0 + $0x610] sm:$0xff] }
 0x5e5   :  { %v4629_v35 = vpop.f32.mrf.mxu2  ;;  %v6305_v36 = vpop.f32.mrf.mxu3 }
 0x5e6   :  { %v4866_v40 = vmax.f32 %v3190_v34, %v4629_v35  ;;  %v1476_v41 = vpop.f32.mrf.mxu0  ;;  %v2956_v42 = vpop.f32.mrf.mxu1 }
 0x5e7   :  { %v3191_v50 = vmax.f32 %v1476_v41, %v2956_v42 }
 0x5e8   :  { %v6542_v46 = vmax.f32 %v4866_v40, %v6305_v36 }
 0x5e9   :  { %7866 = vmatmul.msk.bf16.gmra.mxu0 %vm740_vm2, %v10027_v37  ;;  %8552 = vmatmul.msk.bf16.gmra.mxu1 %vm740_vm2, %v10125_v39 }
 0x5ea   :  { %v6742_v47 = vadd.f32 %v12713_v25, %v6542_v46  ;;  %9238 = vmatmul.msk.bf16.gmra.mxu2 %vm740_vm2, %v10223_v43  ;;  %9924 = vmatmul.msk.bf16.gmra.mxu3 %vm740_vm2, %v10321_v44  ;;  %v10030_v44 = vld [vmem:[%s13042_s0 + $0x300] sm:$0xff] }
 0x5ec   :  { %v6938_v49 = vmax.f32 %v6742_v47, 0.0 }
 0x5ed   :  { %v4632_v51 = vpop.f32.mrf.mxu2  ;;  %v6308_v52 = vpop.f32.mrf.mxu3 }
 0x5ee   :  { %v10749_v53 = vpack.c.bf16 %v6938_v49, %v6937_v48  ;;  %v1478_v54 = vpop.f32.mrf.mxu0  ;;  %v2958_v55 = vpop.f32.mrf.mxu1  ;;  %v4867_v57 = vmax.f32 %v3191_v50, %v4632_v51  ;;  %v10226_v49 = vld [vmem:[%s13042_s0 + $0x920] sm:$0xff]  ;;  %v10324_v50 = vld [vmem:[%s13042_s0 + $0xc30] sm:$0xff] }
 0x5ef   :  { %v3192_v59 = vmax.f32 %v1478_v54, %v2958_v55 }
 0x5f0   :  { %10899 = vst [vmem:[%s13044_s3 + $0x2a0] sm:$0xff] %v10749_v53   ;;  %v6543_v58 = vmax.f32 %v4867_v57, %v6308_v52 }
 0x5f2   :  { %v6743_v5 = vadd.f32 %v12713_v25, %v6543_v58 }
 0x5f4   :  { %v6939_v8 = vmax.f32 %v6743_v5, 0.0  ;;  %v10129_v5 = vld [vmem:[%s13042_s0 + $0x618] sm:$0xff] }
 0x5f5   :  { %v4634_v60 = vpop.f32.mrf.mxu2  ;;  %v6310_v61 = vpop.f32.mrf.mxu3 }
 0x5f6   :  { %v4868_v0 = vmax.f32 %v3192_v59, %v4634_v60  ;;  %v1481_v1 = vpop.f32.mrf.mxu0  ;;  %v2961_v2 = vpop.f32.mrf.mxu1 }
 0x5f7   :  { %v3193_v10 = vmax.f32 %v1481_v1, %v2961_v2 }
 0x5f8   :  { %v6544_v6 = vmax.f32 %v4868_v0, %v6310_v61 }
 0x5f9   :  { %7867 = vmatmul.msk.bf16.gmra.mxu0 %vm740_vm2, %v10028_v62  ;;  %8553 = vmatmul.msk.bf16.gmra.mxu1 %vm740_vm2, %v10126_v63 }
 0x5fa   :  { %v6744_v7 = vadd.f32 %v12713_v25, %v6544_v6  ;;  %9239 = vmatmul.msk.bf16.gmra.mxu2 %vm740_vm2, %v10224_v3  ;;  %9925 = vmatmul.msk.bf16.gmra.mxu3 %vm740_vm2, %v10322_v4  ;;  %v10031_v4 = vld [vmem:[%s13042_s0 + $0x308] sm:$0xff] }
 0x5fc   :  { %v6940_v9 = vmax.f32 %v6744_v7, 0.0 }
 0x5fd   :  { %v4637_v11 = vpop.f32.mrf.mxu2  ;;  %v6313_v12 = vpop.f32.mrf.mxu3 }
 0x5fe   :  { %v10754_v13 = vpack.c.bf16 %v6940_v9, %v6939_v8  ;;  %v1483_v14 = vpop.f32.mrf.mxu0  ;;  %v2963_v15 = vpop.f32.mrf.mxu1  ;;  %v4869_v16 = vmax.f32 %v3193_v10, %v4637_v11  ;;  %v10227_v9 = vld [vmem:[%s13042_s0 + $0x928] sm:$0xff]  ;;  %v10325_v10 = vld [vmem:[%s13042_s0 + $0xc38] sm:$0xff] }
 0x5ff   :  { %v3194_v29 = vmax.f32 %v1483_v14, %v2963_v15 }
 0x600   :  { %10900 = vst [vmem:[%s13044_s3 + $0x2a8] sm:$0xff] %v10754_v13   ;;  %v6545_v17 = vmax.f32 %v4869_v16, %v6313_v12 }
 0x602   :  { %v6745_v26 = vadd.f32 %v12713_v25, %v6545_v17 }
 0x604   :  { %v6941_v56 = vmax.f32 %v6745_v26, 0.0 }
 0x605   :  { %v4639_v18 = vpop.f32.mrf.mxu2  ;;  %v6315_v19 = vpop.f32.mrf.mxu3 }
 0x606   :  { %v4870_v33 = vmax.f32 %v3194_v29, %v4639_v18  ;;  %v1486_v22 = vpop.f32.mrf.mxu0  ;;  %v2966_v23 = vpop.f32.mrf.mxu1 }
 0x607   :  { %v3195_v31 = vmax.f32 %v1486_v22, %v2966_v23 }
 0x608   :  { %v6546_v27 = vmax.f32 %v4870_v33, %v6315_v19 }
 0x609   :  { %7868 = vmatmul.msk.bf16.gmra.mxu0 %vm740_vm2, %v10029_v20  ;;  %8554 = vmatmul.msk.bf16.gmra.mxu1 %vm740_vm2, %v10127_v21 }
 0x60a   :  { %v6746_v28 = vadd.f32 %v12713_v25, %v6546_v27  ;;  %9240 = vmatmul.msk.bf16.gmra.mxu2 %vm740_vm2, %v10225_v24  ;;  %9926 = vmatmul.msk.bf16.gmra.mxu3 %vm740_vm2, %v10323_v38 }
 0x60c   :  { %v6942_v30 = vmax.f32 %v6746_v28, 0.0 }
 0x60d   :  { %v4642_v32 = vpop.f32.mrf.mxu2  ;;  %v6318_v34 = vpop.f32.mrf.mxu3 }
 0x60e   :  { %v10759_v35 = vpack.c.bf16 %v6942_v30, %v6941_v56  ;;  %v1488_v36 = vpop.f32.mrf.mxu0  ;;  %v2968_v37 = vpop.f32.mrf.mxu1  ;;  %v4871_v39 = vmax.f32 %v3195_v31, %v4642_v32 }
 0x60f   :  { %v3196_v41 = vmax.f32 %v1488_v36, %v2968_v37 }
 0x610   :  { %10901 = vst [vmem:[%s13044_s3 + $0x2b0] sm:$0xff] %v10759_v35   ;;  %v6547_v40 = vmax.f32 %v4871_v39, %v6318_v34 }
 0x612   :  { %v6747_v51 = vadd.f32 %v12713_v25, %v6547_v40 }
 0x614   :  { %v6943_v54 = vmax.f32 %v6747_v51, 0.0 }
 0x615   :  { %v4644_v42 = vpop.f32.mrf.mxu2  ;;  %v6320_v43 = vpop.f32.mrf.mxu3 }
 0x616   :  { %v4872_v46 = vmax.f32 %v3196_v41, %v4644_v42  ;;  %v1491_v47 = vpop.f32.mrf.mxu0  ;;  %v2971_v48 = vpop.f32.mrf.mxu1 }
 0x617   :  { %v3197_v57 = vmax.f32 %v1491_v47, %v2971_v48 }
 0x618   :  { %v6548_v52 = vmax.f32 %v4872_v46, %v6320_v43 }
 0x619   :  { %7869 = vmatmul.msk.bf16.gmra.mxu0 %vm740_vm2, %v10030_v44  ;;  %8555 = vmatmul.msk.bf16.gmra.mxu1 %vm740_vm2, %v10128_v45 }
 0x61a   :  { %v6748_v53 = vadd.f32 %v12713_v25, %v6548_v52  ;;  %9241 = vmatmul.msk.bf16.gmra.mxu2 %vm740_vm2, %v10226_v49  ;;  %9927 = vmatmul.msk.bf16.gmra.mxu3 %vm740_vm2, %v10324_v50 }
 0x61c   :  { %v6944_v55 = vmax.f32 %v6748_v53, 0.0 }
 0x61d   :  { %v4647_v58 = vpop.f32.mrf.mxu2  ;;  %v6323_v59 = vpop.f32.mrf.mxu3 }
 0x61e   :  { %v10764_v60 = vpack.c.bf16 %v6944_v55, %v6943_v54  ;;  %v1493_v61 = vpop.f32.mrf.mxu0  ;;  %v2973_v62 = vpop.f32.mrf.mxu1  ;;  %v4873_v63 = vmax.f32 %v3197_v57, %v4647_v58 }
 0x61f   :  { %v3198_v1 = vmax.f32 %v1493_v61, %v2973_v62 }
 0x620   :  { %10902 = vst [vmem:[%s13044_s3 + $0x2b8] sm:$0xff] %v10764_v60   ;;  %v6549_v0 = vmax.f32 %v4873_v63, %v6323_v59 }
 0x622   :  { %v6749_v11 = vadd.f32 %v12713_v25, %v6549_v0 }
 0x624   :  { %v6945_v14 = vmax.f32 %v6749_v11, 0.0 }
 0x625   :  { %v4649_v2 = vpop.f32.mrf.mxu2  ;;  %v6325_v3 = vpop.f32.mrf.mxu3 }
 0x626   :  { %v4874_v6 = vmax.f32 %v3198_v1, %v4649_v2  ;;  %v1496_v7 = vpop.f32.mrf.mxu0  ;;  %v2976_v8 = vpop.f32.mrf.mxu1 }
 0x627   :  { %v3199_v16 = vmax.f32 %v1496_v7, %v2976_v8 }
 0x628   :  { %v6550_v12 = vmax.f32 %v4874_v6, %v6325_v3 }
 0x629   :  { %7870 = vmatmul.msk.bf16.gmra.mxu0 %vm740_vm2, %v10031_v4  ;;  %8556 = vmatmul.msk.bf16.gmra.mxu1 %vm740_vm2, %v10129_v5 }
 0x62a   :  { %v6750_v13 = vadd.f32 %v12713_v25, %v6550_v12  ;;  %9242 = vmatmul.msk.bf16.gmra.mxu2 %vm740_vm2, %v10227_v9  ;;  %9928 = vmatmul.msk.bf16.gmra.mxu3 %vm740_vm2, %v10325_v10 }
 0x62c   :  { %v6946_v15 = vmax.f32 %v6750_v13, 0.0 }
 0x62d   :  { %v4652_v17 = vpop.f32.mrf.mxu2  ;;  %v6328_v29 = vpop.f32.mrf.mxu3 }
 0x62e   :  { %v10769_v18 = vpack.c.bf16 %v6946_v15, %v6945_v14  ;;  %v1498_v19 = vpop.f32.mrf.mxu0  ;;  %v2978_v20 = vpop.f32.mrf.mxu1  ;;  %v4875_v21 = vmax.f32 %v3199_v16, %v4652_v17 }
 0x62f   :  { %v3200_v22 = vmax.f32 %v1498_v19, %v2978_v20 }
 0x630   :  { %10903 = vst [vmem:[%s13044_s3 + $0x2c0] sm:$0xff] %v10769_v18   ;;  %v6551_v33 = vmax.f32 %v4875_v21, %v6328_v29 }
 0x632   :  { %v6751_v28 = vadd.f32 %v12713_v25, %v6551_v33 }
 0x634   :  { %v6947_v31 = vmax.f32 %v6751_v28, 0.0 }
 0x635   :  { %v4654_v23 = vpop.f32.mrf.mxu2  ;;  %v6330_v24 = vpop.f32.mrf.mxu3 }
 0x636   :  { %v4876_v38 = vmax.f32 %v3200_v22, %v4654_v23  ;;  %v1501_v26 = vpop.f32.mrf.mxu0  ;;  %v2981_v27 = vpop.f32.mrf.mxu1 }
 0x637   :  { %v3201_v34 = vmax.f32 %v1501_v26, %v2981_v27 }
 0x638   :  { %v6552_v56 = vmax.f32 %v4876_v38, %v6330_v24 }
 0x63a   :  { %v6752_v30 = vadd.f32 %v12713_v25, %v6552_v56 }
 0x63c   :  { %v6948_v32 = vmax.f32 %v6752_v30, 0.0 }
 0x63d   :  { %v4657_v35 = vpop.f32.mrf.mxu2  ;;  %v6333_v36 = vpop.f32.mrf.mxu3 }
 0x63e   :  { %v10774_v37 = vpack.c.bf16 %v6948_v32, %v6947_v31  ;;  %v1503_v39 = vpop.f32.mrf.mxu0  ;;  %v2983_v40 = vpop.f32.mrf.mxu1  ;;  %v4877_v41 = vmax.f32 %v3201_v34, %v4657_v35 }
 0x63f   :  { %v3202_v43 = vmax.f32 %v1503_v39, %v2983_v40 }
 0x640   :  { %10904 = vst [vmem:[%s13044_s3 + $0x2c8] sm:$0xff] %v10774_v37   ;;  %v6553_v42 = vmax.f32 %v4877_v41, %v6333_v36 }
 0x642   :  { %v6753_v49 = vadd.f32 %v12713_v25, %v6553_v42 }
 0x644   :  { %v6949_v52 = vmax.f32 %v6753_v49, 0.0 }
 0x645   :  { %v4659_v44 = vpop.f32.mrf.mxu2  ;;  %v6335_v45 = vpop.f32.mrf.mxu3 }
 0x646   :  { %v4878_v46 = vmax.f32 %v3202_v43, %v4659_v44  ;;  %v1506_v47 = vpop.f32.mrf.mxu0  ;;  %v2986_v48 = vpop.f32.mrf.mxu1 }
 0x647   :  { %v3203_v54 = vmax.f32 %v1506_v47, %v2986_v48 }
 0x648   :  { %v6554_v50 = vmax.f32 %v4878_v46, %v6335_v45 }
 0x64a   :  { %v6754_v51 = vadd.f32 %v12713_v25, %v6554_v50 }
 0x64c   :  { %v6950_v53 = vmax.f32 %v6754_v51, 0.0 }
 0x64d   :  { %v4662_v55 = vpop.f32.mrf.mxu2  ;;  %v6338_v57 = vpop.f32.mrf.mxu3 }
 0x64e   :  { %v10779_v58 = vpack.c.bf16 %v6950_v53, %v6949_v52  ;;  %v1508_v59 = vpop.f32.mrf.mxu0  ;;  %v2988_v60 = vpop.f32.mrf.mxu1  ;;  %v4879_v61 = vmax.f32 %v3203_v54, %v4662_v55 }
 0x64f   :  { %v3204_v63 = vmax.f32 %v1508_v59, %v2988_v60 }
 0x650   :  { %10905 = vst [vmem:[%s13044_s3 + $0x2d0] sm:$0xff] %v10779_v58   ;;  %v6555_v62 = vmax.f32 %v4879_v61, %v6338_v57 }
 0x652   :  { %v6755_v5 = vadd.f32 %v12713_v25, %v6555_v62 }
 0x654   :  { %v6951_v8 = vmax.f32 %v6755_v5, 0.0 }
 0x655   :  { %v4664_v0 = vpop.f32.mrf.mxu2  ;;  %v6340_v1 = vpop.f32.mrf.mxu3 }
 0x656   :  { %v4880_v2 = vmax.f32 %v3204_v63, %v4664_v0  ;;  %v1511_v3 = vpop.f32.mrf.mxu0  ;;  %v2991_v4 = vpop.f32.mrf.mxu1 }
 0x657   :  { %v3205_v10 = vmax.f32 %v1511_v3, %v2991_v4 }
 0x658   :  { %v6556_v6 = vmax.f32 %v4880_v2, %v6340_v1 }
 0x65a   :  { %v6756_v7 = vadd.f32 %v12713_v25, %v6556_v6 }
 0x65c   :  { %v6952_v9 = vmax.f32 %v6756_v7, 0.0 }
 0x65d   :  { %v4667_v11 = vpop.f32.mrf.mxu2  ;;  %v6343_v12 = vpop.f32.mrf.mxu3 }
 0x65e   :  { %v10784_v13 = vpack.c.bf16 %v6952_v9, %v6951_v8  ;;  %v1513_v14 = vpop.f32.mrf.mxu0  ;;  %v2993_v15 = vpop.f32.mrf.mxu1  ;;  %v4881_v16 = vmax.f32 %v3205_v10, %v4667_v11 }
 0x65f   :  { %v3206_v29 = vmax.f32 %v1513_v14, %v2993_v15 }
 0x660   :  { %10906 = vst [vmem:[%s13044_s3 + $0x2d8] sm:$0xff] %v10784_v13   ;;  %v6557_v17 = vmax.f32 %v4881_v16, %v6343_v12 }
 0x662   :  { %v6757_v22 = vadd.f32 %v12713_v25, %v6557_v17 }
 0x664   :  { %v6953_v38 = vmax.f32 %v6757_v22, 0.0 }
 0x665   :  { %v4669_v18 = vpop.f32.mrf.mxu2  ;;  %v6345_v19 = vpop.f32.mrf.mxu3 }
 0x666   :  { %v4882_v20 = vmax.f32 %v3206_v29, %v4669_v18  ;;  %v1516_v21 = vpop.f32.mrf.mxu0  ;;  %v2996_v33 = vpop.f32.mrf.mxu1 }
 0x667   :  { %v3207_v27 = vmax.f32 %v1516_v21, %v2996_v33 }
 0x668   :  { %v6558_v23 = vmax.f32 %v4882_v20, %v6345_v19 }
 0x66a   :  { %v6758_v24 = vadd.f32 %v12713_v25, %v6558_v23 }
 0x66c   :  { %v6954_v26 = vmax.f32 %v6758_v24, 0.0 }
 0x66d   :  { %v4672_v28 = vpop.f32.mrf.mxu2  ;;  %v6348_v56 = vpop.f32.mrf.mxu3 }
 0x66e   :  { %v10789_v30 = vpack.c.bf16 %v6954_v26, %v6953_v38  ;;  %v1518_v31 = vpop.f32.mrf.mxu0  ;;  %v2998_v32 = vpop.f32.mrf.mxu1  ;;  %v4883_v34 = vmax.f32 %v3207_v27, %v4672_v28 }
 0x66f   :  { %v3208_v36 = vmax.f32 %v1518_v31, %v2998_v32 }
 0x670   :  { %10907 = vst [vmem:[%s13044_s3 + $0x2e0] sm:$0xff] %v10789_v30   ;;  %v6559_v35 = vmax.f32 %v4883_v34, %v6348_v56 }
 0x672   :  { %v6759_v43 = vadd.f32 %v12713_v25, %v6559_v35  ;;  %v10919_v35 = vld [vmem:[%s13043_s2] ss:$0 sm:$0xff] }
 0x674   :  { %v6955_v46 = vmax.f32 %v6759_v43, 0.0 }
 0x675   :  { %v4674_v37 = vpop.f32.mrf.mxu2  ;;  %v6350_v39 = vpop.f32.mrf.mxu3 }
 0x676   :  { %v4884_v40 = vmax.f32 %v3208_v36, %v4674_v37  ;;  %v1521_v41 = vpop.f32.mrf.mxu0  ;;  %v3001_v42 = vpop.f32.mrf.mxu1 }
 0x677   :  { %v3209_v48 = vmax.f32 %v1521_v41, %v3001_v42 }
 0x678   :  { %v6560_v44 = vmax.f32 %v4884_v40, %v6350_v39 }
 0x67a   :  { %v6760_v45 = vadd.f32 %v12713_v25, %v6560_v44 }
 0x67c   :  { %v6956_v47 = vmax.f32 %v6760_v45, 0.0 }
 0x67d   :  { %v4677_v49 = vpop.f32.mrf.mxu2  ;;  %v6353_v50 = vpop.f32.mrf.mxu3 }
 0x67e   :  { %v10794_v51 = vpack.c.bf16 %v6956_v47, %v6955_v46  ;;  %v1523_v52 = vpop.f32.mrf.mxu0  ;;  %v3003_v53 = vpop.f32.mrf.mxu1  ;;  %v4885_v54 = vmax.f32 %v3209_v48, %v4677_v49 }
 0x67f   :  { %v3210_v57 = vmax.f32 %v1523_v52, %v3003_v53 }
 0x680   :  { %10908 = vst [vmem:[%s13044_s3 + $0x2e8] sm:$0xff] %v10794_v51   ;;  %v6561_v55 = vmax.f32 %v4885_v54, %v6353_v50 }
 0x682   :  { %v6761_v63 = vadd.f32 %v12713_v25, %v6561_v55 }
 0x684   :  { %v6957_v2 = vmax.f32 %v6761_v63, 0.0 }
 0x685   :  { %v4679_v58 = vpop.f32.mrf.mxu2  ;;  %v6355_v59 = vpop.f32.mrf.mxu3 }
 0x686   :  { %v4886_v60 = vmax.f32 %v3210_v57, %v4679_v58  ;;  %v1526_v61 = vpop.f32.mrf.mxu0  ;;  %v3006_v62 = vpop.f32.mrf.mxu1 }
 0x687   :  { %v3211_v4 = vmax.f32 %v1526_v61, %v3006_v62 }
 0x688   :  { %v6562_v0 = vmax.f32 %v4886_v60, %v6355_v59 }
 0x68a   :  { %v6762_v1 = vadd.f32 %v12713_v25, %v6562_v0 }
 0x68c   :  { %v6958_v3 = vmax.f32 %v6762_v1, 0.0 }
 0x68d   :  { %v4682_v5 = vpop.f32.mrf.mxu2  ;;  %v6358_v6 = vpop.f32.mrf.mxu3 }
 0x68e   :  { %v10799_v7 = vpack.c.bf16 %v6958_v3, %v6957_v2  ;;  %v1528_v8 = vpop.f32.mrf.mxu0  ;;  %v3008_v9 = vpop.f32.mrf.mxu1  ;;  %v4887_v10 = vmax.f32 %v3211_v4, %v4682_v5 }
 0x68f   :  { %v3212_v12 = vmax.f32 %v1528_v8, %v3008_v9 }
 0x690   :  { %10909 = vst [vmem:[%s13044_s3 + $0x2f0] sm:$0xff] %v10799_v7   ;;  %v6563_v11 = vmax.f32 %v4887_v10, %v6358_v6 }
 0x692   :  { %v6763_v29 = vadd.f32 %v12713_v25, %v6563_v11 }
 0x694   :  { %v6959_v20 = vmax.f32 %v6763_v29, 0.0 }
 0x695   :  { %v4684_v13 = vpop.f32.mrf.mxu2  ;;  %v6360_v14 = vpop.f32.mrf.mxu3 }
 0x696   :  { %v4888_v15 = vmax.f32 %v3212_v12, %v4684_v13  ;;  %v1531_v16 = vpop.f32.mrf.mxu0  ;;  %v3011_v17 = vpop.f32.mrf.mxu1 }
 0x697   :  { %v3213_v33 = vmax.f32 %v1531_v16, %v3011_v17 }
 0x698   :  { %v6564_v18 = vmax.f32 %v4888_v15, %v6360_v14 }
 0x69a   :  { %v6764_v19 = vadd.f32 %v12713_v25, %v6564_v18 }
 0x69c   :  { %v6960_v21 = vmax.f32 %v6764_v19, 0.0 }
 0x69d   :  { %v4687_v22 = vpop.f32.mrf.mxu2  ;;  %v6363_v23 = vpop.f32.mrf.mxu3 }
 0x69e   :  { %v10804_v24 = vpack.c.bf16 %v6960_v21, %v6959_v20  ;;  %v1533_v38 = vpop.f32.mrf.mxu0  ;;  %v3013_v26 = vpop.f32.mrf.mxu1  ;;  %v4889_v27 = vmax.f32 %v3213_v33, %v4687_v22 }
 0x69f   :  { %v3214_v56 = vmax.f32 %v1533_v38, %v3013_v26 }
 0x6a0   :  { %10910 = vst [vmem:[%s13044_s3 + $0x2f8] sm:$0xff] %v10804_v24   ;;  %v6565_v28 = vmax.f32 %v4889_v27, %v6363_v23 }
 0x6a2   :  { %v6765_v36 = vadd.f32 %v10919_v35, %v6565_v28 }
 0x6a4   :  { %v6961_v40 = vmax.f32 %v6765_v36, 0.0 }
 0x6a5   :  { %v4689_v30 = vpop.f32.mrf.mxu2  ;;  %v6365_v31 = vpop.f32.mrf.mxu3 }
 0x6a6   :  { %v4890_v32 = vmax.f32 %v3214_v56, %v4689_v30  ;;  %v1536_v34 = vpop.f32.mrf.mxu0  ;;  %v3016_v25 = vpop.f32.mrf.mxu1 }
 0x6a7   :  { %v3215_v42 = vmax.f32 %v1536_v34, %v3016_v25 }
 0x6a8   :  { %v6566_v37 = vmax.f32 %v4890_v32, %v6365_v31 }
 0x6aa   :  { %v6766_v39 = vadd.f32 %v10919_v35, %v6566_v37 }
 0x6ac   :  { %v6962_v41 = vmax.f32 %v6766_v39, 0.0 }
 0x6ad   :  { %v4692_v43 = vpop.f32.mrf.mxu2  ;;  %v6368_v44 = vpop.f32.mrf.mxu3 }
 0x6ae   :  { %v10809_v45 = vpack.c.bf16 %v6962_v41, %v6961_v40  ;;  %v4891_v46 = vmax.f32 %v3215_v42, %v4692_v43  ;;  %v1538_v47 = vpop.f32.mrf.mxu0  ;;  %v3018_v48 = vpop.f32.mrf.mxu1 }
 0x6af   :  { %v3216_v50 = vmax.f32 %v1538_v47, %v3018_v48 }
 0x6b0   :  { %10911 = vst [vmem:[%s13044_s3 + $0x300] sm:$0xff] %v10809_v45   ;;  %v6567_v49 = vmax.f32 %v4891_v46, %v6368_v44 }
 0x6b2   :  { %v6767_v54 = vadd.f32 %v10919_v35, %v6567_v49 }
 0x6b4   :  { %v6963_v58 = vmax.f32 %v6767_v54, 0.0 }
 0x6b5   :  { %v4694_v51 = vpop.f32.mrf.mxu2  ;;  %v6370_v53 = vpop.f32.mrf.mxu3 }
 0x6b6   :  { %v4892_v52 = vmax.f32 %v3216_v50, %v4694_v51 }
 0x6b8   :  { %v6568_v55 = vmax.f32 %v4892_v52, %v6370_v53 }
 0x6ba   :  { %v6768_v57 = vadd.f32 %v10919_v35, %v6568_v55 }
 0x6bc   :  { %v6964_v59 = vmax.f32 %v6768_v57, 0.0 }
 0x6be   :  { %v10814_v60 = vpack.c.bf16 %v6964_v59, %v6963_v58 }
 0x6c0   :  { %10912 = vst [vmem:[%s13044_s3 + $0x308] sm:$0xff] %v10814_v60  }

// kernel: _lambda_.4
= control target key start
LH: loop header
LB: loop body
LE: loop exit
PB: predicated region body
PF: predicated region fallthrough
CT: control target
= control target key end

     0   :  { %vm270_vm0 = vcmask 1042432   ;;  %vm230_vm1 = vcmask 179200   ;;  %s3307_s1 = inlined_call_operand.vmem [shape: bf16[150,128], index: 1, kind: input, shape index: {}]   ;;  %s3308_s0 = inlined_call_operand.vmem [shape: bf16[4,200,150], index: 0, kind: input, shape index: {}]   ;;  %s3309_s2 = inlined_call_operand.vmem [shape: f32[1,128], index: 2, kind: input, shape index: {}]   ;;  %s3310_s3 = inlined_call_operand.vmem [shape: bf16[200,128], index: 3, kind: output, shape index: {}]  }
   0x1   :  { %v2325_v0 = vld [vmem:[%s3307_s1 + $0x38] sm:$0xff]  ;;  %v33_v1 = vld [vmem:[%s3307_s1 + $0x48] sm:$0x7]  ;;  %v2335_v3 = vld [vmem:[%s3307_s1 + $0x30] sm:$0xff] }
   0x2   :  { %v210_v2 = vunpack.c.l.b16 %v33_v1  ;;  %274 = vmatpush.bf16.msra.mxu0 %v2325_v0  ;;  %599 = vmatpush.bf16.msra.mxu2 %v2325_v0  ;;  %v2133_v6 = vld [vmem:[%s3307_s1 + $0x40] sm:$0xff]  ;;  %v2344_v7 = vld [vmem:[%s3307_s1 + $0x28] sm:$0xff]  ;;  %v1752_v9 = vld [vmem:[%s3308_s0 + $0xd0] sm:$0xf0] }
   0x3   :  { %v2158_v8 = vld [vmem:[%s3308_s0 + $0xcc] sm:$0xf]  ;;  %v2134_v10 = vld [vmem:[%s3308_s0 + $0x4] sm:$0xf]  ;;  %v2128_v15 = vld [vmem:[%s3307_s1 + $0x18] sm:$0xff] }
   0x4   :  { %v220_v4 = vpack.c.b16 %v210_v2, %v210_v2  ;;  %v1582_v11 = vld [vmem:[%s3308_s0 + $0x8] sm:$0xf0]  ;;  %v1755_v12 = vor.u32 %v2158_v8, %v1752_v9  ;;  %v2129_v13 = vld [vmem:[%s3307_s1 + $0x20] sm:$0xff]  ;;  %v2127_v16 = vld [vmem:[%s3307_s1 + $0x10] sm:$0xff] }
   0x5   :  { %v1585_v14 = vor.u32 %v2134_v10, %v1582_v11  ;;  %v2126_v17 = vld [vmem:[%s3307_s1 + $0x8] sm:$0xff]  ;;  %v2160_v18 = vld [vmem:[%s3308_s0 + $0xdc] sm:$0xf]  ;;  %v1760_v19 = vld [vmem:[%s3308_s0 + $0xe0] sm:$0xf0] }
   0x6   :  { %v272_v5 = vsel %vm270_vm0, %v220_v4, 0  ;;  %275 = vmatpush.bf16.msra.mxu0 %v2335_v3  ;;  %600 = vmatpush.bf16.msra.mxu2 %v2335_v3  ;;  %v2136_v20 = vld [vmem:[%s3308_s0 + $0x14] sm:$0xf]  ;;  %v1590_v21 = vld [vmem:[%s3308_s0 + $0x18] sm:$0xf0]  ;;  %v1763_v22 = vor.u32 %v2160_v18, %v1760_v19  ;;  %v2125_v23 = vld [vmem:[%s3307_s1] sm:$0xff] }
   0x7   :  { %678 = vmatpush.bf16.msra.mxu3 %v272_v5  ;;  %353 = vmatpush.bf16.msra.mxu1 %v272_v5  ;;  %v1580_v24 = vld [vmem:[%s3308_s0] sm:$0xf]  ;;  %v2135_v25 = vld [vmem:[%s3308_s0 + $0x4] sm:$0xf0]  ;;  %v1593_v26 = vor.u32 %v2136_v20, %v1590_v21  ;;  %v2159_v28 = vld [vmem:[%s3308_s0 + $0xcc] sm:$0xf0] }
   0x8   :  { %v1750_v27 = vld [vmem:[%s3308_s0 + $0xc8] sm:$0xf]  ;;  %v1581_v29 = vor.u32 %v2135_v25, %v1580_v24  ;;  %v2162_v31 = vld [vmem:[%s3308_s0 + $0xec] sm:$0xf]  ;;  %v1768_v32 = vld [vmem:[%s3308_s0 + $0xf0] sm:$0xf0] }
   0x9   :  { %v1751_v30 = vor.u32 %v2159_v28, %v1750_v27  ;;  %v2138_v33 = vld [vmem:[%s3308_s0 + $0x24] sm:$0xf]  ;;  %v1598_v34 = vld [vmem:[%s3308_s0 + $0x28] sm:$0xf0]  ;;  %v1771_v35 = vor.u32 %v2162_v31, %v1768_v32  ;;  %v1588_v36 = vld [vmem:[%s3308_s0 + $0x10] sm:$0xf] }
   0xa   :  { %276 = vmatpush.bf16.msra.mxu0 %v2344_v7  ;;  %601 = vmatpush.bf16.msra.mxu2 %v2344_v7  ;;  %v2137_v37 = vld [vmem:[%s3308_s0 + $0x14] sm:$0xf0]  ;;  %v1601_v38 = vor.u32 %v2138_v33, %v1598_v34  ;;  %v2161_v40 = vld [vmem:[%s3308_s0 + $0xdc] sm:$0xf0]  ;;  %v2164_v43 = vld [vmem:[%s3308_s0 + $0xfc] sm:$0xf] }
   0xb   :  { %679 = vmatpush.bf16.msra.mxu3 %v2133_v6  ;;  %354 = vmatpush.bf16.msra.mxu1 %v2133_v6  ;;  %v1758_v39 = vld [vmem:[%s3308_s0 + $0xd8] sm:$0xf]  ;;  %v1589_v41 = vor.u32 %v2137_v37, %v1588_v36  ;;  %v1776_v44 = vld [vmem:[%s3308_s0 + $0x100] sm:$0xf0]  ;;  %v2140_v45 = vld [vmem:[%s3308_s0 + $0x34] sm:$0xf] }
   0xc   :  { %v1759_v42 = vor.u32 %v2161_v40, %v1758_v39  ;;  %v1606_v46 = vld [vmem:[%s3308_s0 + $0x38] sm:$0xf0]  ;;  %v1779_v47 = vor.u32 %v2164_v43, %v1776_v44  ;;  %v1596_v48 = vld [vmem:[%s3308_s0 + $0x20] sm:$0xf]  ;;  %v2139_v49 = vld [vmem:[%s3308_s0 + $0x24] sm:$0xf0] }
   0xd   :  { %v1609_v50 = vor.u32 %v2140_v45, %v1606_v46  ;;  %v1766_v51 = vld [vmem:[%s3308_s0 + $0xe8] sm:$0xf]  ;;  %v2163_v52 = vld [vmem:[%s3308_s0 + $0xec] sm:$0xf0]  ;;  %v1597_v53 = vor.u32 %v2139_v49, %v1596_v48  ;;  %v2166_v55 = vld [vmem:[%s3308_s0 + $0x10c] sm:$0xf] }
   0xe   :  { %1844 = vmatmul.msk.bf16.vlgmr.msra.gmra.mxu3 %vm230_vm1, %v1755_v12  ;;  %277 = vmatpush.bf16.msra.mxu0 %v2129_v13  ;;  %v1767_v54 = vor.u32 %v2163_v52, %v1766_v51  ;;  %v1784_v56 = vld [vmem:[%s3308_s0 + $0x110] sm:$0xf0]  ;;  %v2142_v57 = vld [vmem:[%s3308_s0 + $0x44] sm:$0xf]  ;;  %v1614_v58 = vld [vmem:[%s3308_s0 + $0x48] sm:$0xf0] }
   0xf   :  { %1028 = vmatpush.bf16.msrb.mxu3 %v272_v5  ;;  %949 = vmatpush.bf16.msrb.mxu1 %v2325_v0  ;;  %v1787_v59 = vor.u32 %v2166_v55, %v1784_v56  ;;  %v1604_v60 = vld [vmem:[%s3308_s0 + $0x30] sm:$0xf]  ;;  %v2141_v61 = vld [vmem:[%s3308_s0 + $0x34] sm:$0xf0]  ;;  %v1617_v62 = vor.u32 %v2142_v57, %v1614_v58  ;;  %v1792_v4 = vld [vmem:[%s3308_s0 + $0x120] sm:$0xf0] }
  0x10   :  { %1710 = vmatmul.msk.bf16.vlgmr.msra.gmra.mxu1 %vm230_vm1, %v1585_v14  ;;  %602 = vmatpush.bf16.msra.mxu2 %v2129_v13  ;;  %v1774_v63 = vld [vmem:[%s3308_s0 + $0xf8] sm:$0xf]  ;;  %v1605_v1 = vor.u32 %v2141_v61, %v1604_v60  ;;  %v1612_v8 = vld [vmem:[%s3308_s0 + $0x40] sm:$0xf]  ;;  %v2143_v9 = vld [vmem:[%s3308_s0 + $0x44] sm:$0xf0] }
  0x11   :  { %v1782_v11 = vld [vmem:[%s3308_s0 + $0x108] sm:$0xf]  ;;  %v2167_v12 = vld [vmem:[%s3308_s0 + $0x10c] sm:$0xf0]  ;;  %v1630_v18 = vld [vmem:[%s3308_s0 + $0x68] sm:$0xf0] }
  0x12   :  { %278 = vmatpush.bf16.msra.mxu0 %v2128_v15  ;;  %v1783_v14 = vor.u32 %v2167_v12, %v1782_v11  ;;  %v1620_v20 = vld [vmem:[%s3308_s0 + $0x50] sm:$0xf]  ;;  %v2145_v21 = vld [vmem:[%s3308_s0 + $0x54] sm:$0xf0]  ;;  %v2169_v24 = vld [vmem:[%s3308_s0 + $0x11c] sm:$0xf0] }
  0x13   :  { %950 = vmatpush.bf16.msrb.mxu1 %v2335_v3  ;;  %1029 = vmatpush.bf16.msrb.mxu3 %v2133_v6  ;;  %v1621_v25 = vor.u32 %v2145_v21, %v1620_v20  ;;  %v2172_v27 = vld [vmem:[%s3308_s0 + $0x13c] sm:$0xf]  ;;  %v1808_v28 = vld [vmem:[%s3308_s0 + $0x140] sm:$0xf0]  ;;  %v1628_v32 = vld [vmem:[%s3308_s0 + $0x60] sm:$0xf] }
  0x14   :  { %603 = vmatpush.bf16.msra.mxu2 %v2128_v15  ;;  %v1811_v31 = vor.u32 %v2172_v27, %v1808_v28  ;;  %v2147_v33 = vld [vmem:[%s3308_s0 + $0x64] sm:$0xf0]  ;;  %v2171_v36 = vld [vmem:[%s3308_s0 + $0x12c] sm:$0xf0]  ;;  %v2174_v39 = vld [vmem:[%s3308_s0 + $0x14c] sm:$0xf] }
  0x15   :  { %v1629_v37 = vor.u32 %v2147_v33, %v1628_v32  ;;  %v1816_v40 = vld [vmem:[%s3308_s0 + $0x150] sm:$0xf0]  ;;  %v1636_v44 = vld [vmem:[%s3308_s0 + $0x70] sm:$0xf]  ;;  %v2149_v45 = vld [vmem:[%s3308_s0 + $0x74] sm:$0xf0] }
  0x16   :  { %279 = vmatpush.bf16.msra.mxu0 %v2127_v16  ;;  %v1819_v43 = vor.u32 %v2174_v39, %v1816_v40  ;;  %v1806_v48 = vld [vmem:[%s3308_s0 + $0x138] sm:$0xf]  ;;  %v2173_v49 = vld [vmem:[%s3308_s0 + $0x13c] sm:$0xf0]  ;;  %v1824_v55 = vld [vmem:[%s3308_s0 + $0x160] sm:$0xf0] }
  0x17   :  { %951 = vmatpush.bf16.msrb.mxu1 %v2344_v7  ;;  %v1807_v51 = vor.u32 %v2173_v49, %v1806_v48  ;;  %v2152_v56 = vld [vmem:[%s3308_s0 + $0x94] sm:$0xf]  ;;  %v1654_v57 = vld [vmem:[%s3308_s0 + $0x98] sm:$0xf0]  ;;  %v1644_v60 = vld [vmem:[%s3308_s0 + $0x80] sm:$0xf] }
  0x18   :  { %604 = vmatpush.bf16.msra.mxu2 %v2127_v16  ;;  %v2151_v61 = vld [vmem:[%s3308_s0 + $0x84] sm:$0xf0]  ;;  %v2178_v11 = vld [vmem:[%s3308_s0 + $0x16c] sm:$0xf]  ;;  %v1832_v12 = vld [vmem:[%s3308_s0 + $0x170] sm:$0xf0] }
  0x19   :  { %v2153_v20 = vld [vmem:[%s3308_s0 + $0x94] sm:$0xf0]  ;;  %v2156_v40 = vld [vmem:[%s3308_s0 + $0xb4] sm:$0xf]  ;;  %v1830_v49 = vld [vmem:[%s3308_s0 + $0x168] sm:$0xf] }
  0x1a   :  { %280 = vmatpush.bf16.msra.mxu0 %v2126_v17 }
  0x1b   :  { %952 = vmatpush.bf16.msrb.mxu1 %v2129_v13 }
  0x1c   :  { %605 = vmatpush.bf16.msra.mxu2 %v2126_v17 }
  0x1e   :  { %1845 = vmatmul.msk.bf16.gmra.mxu3 %vm230_vm1, %v1763_v22  ;;  %281 = vmatpush.bf16.msra.mxu0 %v2125_v23 }
  0x1f   :  { %953 = vmatpush.bf16.msrb.mxu1 %v2128_v15 }
  0x20   :  { %1711 = vmatmul.msk.bf16.gmra.mxu1 %vm230_vm1, %v1593_v26  ;;  %606 = vmatpush.bf16.msra.mxu2 %v2125_v23 }
  0x21   :  { %282 = vmatmul.bf16.vlgmr.msra.gmra.mxu0 %v1581_v29  ;;  %v2148_v29 = vld [vmem:[%s3308_s0 + $0x74] sm:$0xf] }
  0x22   :  { %1299 = vmatpush.bf16.msrb.mxu0 %v2325_v0  ;;  %v2165_v0 = vld [vmem:[%s3308_s0 + $0xfc] sm:$0xf0] }
  0x23   :  { %954 = vmatpush.bf16.msrb.mxu1 %v2127_v16  ;;  %607 = vmatmul.bf16.vlgmr.msra.gmra.mxu2 %v1751_v30  ;;  %v1775_v2 = vor.u32 %v2165_v0, %v1774_v63  ;;  %v1638_v30 = vld [vmem:[%s3308_s0 + $0x78] sm:$0xf0]  ;;  %v1814_v0 = vld [vmem:[%s3308_s0 + $0x148] sm:$0xf] }
  0x24   :  { %1378 = vmatpush.bf16.msrb.mxu2 %v272_v5  ;;  %v2144_v5 = vld [vmem:[%s3308_s0 + $0x54] sm:$0xf]  ;;  %v1641_v34 = vor.u32 %v2148_v29, %v1638_v30 }
  0x26   :  { %1300 = vmatpush.bf16.msrb.mxu0 %v2335_v3  ;;  %v2168_v3 = vld [vmem:[%s3308_s0 + $0x11c] sm:$0xf] }
  0x27   :  { %955 = vmatpush.bf16.msrb.mxu1 %v2126_v17 }
  0x28   :  { %1379 = vmatpush.bf16.msrb.mxu2 %v2133_v6  ;;  %v1622_v6 = vld [vmem:[%s3308_s0 + $0x58] sm:$0xf0] }
  0x29   :  { %v1625_v10 = vor.u32 %v2144_v5, %v1622_v6 }
  0x2a   :  { %1301 = vmatpush.bf16.msrb.mxu0 %v2344_v7  ;;  %v1795_v7 = vor.u32 %v2168_v3, %v1792_v4 }
  0x2b   :  { %956 = vmatpush.bf16.msrb.mxu1 %v2125_v23 }
  0x2e   :  { %1302 = vmatpush.bf16.msrb.mxu0 %v2129_v13  ;;  %1846 = vmatmul.msk.bf16.gmra.mxu3 %vm230_vm1, %v1771_v35  ;;  %v1613_v13 = vor.u32 %v2143_v9, %v1612_v8  ;;  %v1798_v35 = vld [vmem:[%s3308_s0 + $0x128] sm:$0xf] }
  0x30   :  { %1712 = vmatmul.msk.bf16.gmra.mxu1 %vm230_vm1, %v1601_v38  ;;  %v1799_v38 = vor.u32 %v2171_v36, %v1798_v35 }
  0x31   :  { %287 = vmatmul.bf16.gmra.mxu0 %v1589_v41  ;;  %v2150_v41 = vld [vmem:[%s3308_s0 + $0x84] sm:$0xf] }
  0x32   :  { %1303 = vmatpush.bf16.msrb.mxu0 %v2128_v15  ;;  %v2170_v15 = vld [vmem:[%s3308_s0 + $0x12c] sm:$0xf] }
  0x33   :  { %612 = vmatmul.bf16.gmra.mxu2 %v1759_v42  ;;  %v1646_v42 = vld [vmem:[%s3308_s0 + $0x88] sm:$0xf0] }
  0x34   :  { %v1649_v46 = vor.u32 %v2150_v41, %v1646_v42  ;;  %v1670_v41 = vld [vmem:[%s3308_s0 + $0xb8] sm:$0xf0] }
  0x36   :  { %1304 = vmatpush.bf16.msrb.mxu0 %v2127_v16  ;;  %v1800_v16 = vld [vmem:[%s3308_s0 + $0x130] sm:$0xf0] }
  0x37   :  { %v1803_v19 = vor.u32 %v2170_v15, %v1800_v16  ;;  %v1662_v15 = vld [vmem:[%s3308_s0 + $0xa8] sm:$0xf0] }
  0x3a   :  { %1305 = vmatpush.bf16.msrb.mxu0 %v2126_v17  ;;  %v2146_v17 = vld [vmem:[%s3308_s0 + $0x64] sm:$0xf] }
  0x3b   :  { %v1633_v22 = vor.u32 %v2146_v17, %v1630_v18  ;;  %v1835_v18 = vor.u32 %v2178_v11, %v1832_v12 }
  0x3e   :  { %1306 = vmatpush.bf16.msrb.mxu0 %v2125_v23  ;;  %1847 = vmatmul.msk.bf16.gmra.mxu3 %vm230_vm1, %v1779_v47  ;;  %v1790_v23 = vld [vmem:[%s3308_s0 + $0x118] sm:$0xf] }
  0x3f   :  { %v1791_v26 = vor.u32 %v2169_v24, %v1790_v23  ;;  %v1822_v23 = vld [vmem:[%s3308_s0 + $0x158] sm:$0xf]  ;;  %v2177_v24 = vld [vmem:[%s3308_s0 + $0x15c] sm:$0xf0] }
  0x40   :  { %1713 = vmatmul.msk.bf16.gmra.mxu1 %vm230_vm1, %v1609_v50  ;;  %v1637_v50 = vor.u32 %v2149_v45, %v1636_v44  ;;  %v1823_v29 = vor.u32 %v2177_v24, %v1822_v23  ;;  %v1660_v45 = vld [vmem:[%s3308_s0 + $0xa0] sm:$0xf] }
  0x41   :  { %292 = vmatmul.bf16.gmra.mxu0 %v1597_v53 }
  0x43   :  { %617 = vmatmul.bf16.gmra.mxu2 %v1767_v54  ;;  %v2176_v54 = vld [vmem:[%s3308_s0 + $0x15c] sm:$0xf] }
  0x4e   :  { %1848 = vmatmul.msk.bf16.gmra.mxu3 %vm230_vm1, %v1787_v59  ;;  %v1827_v59 = vor.u32 %v2176_v54, %v1824_v55 }
  0x50   :  { %1714 = vmatmul.msk.bf16.gmra.mxu1 %vm230_vm1, %v1617_v62  ;;  %v1657_v62 = vor.u32 %v2152_v56, %v1654_v57 }
  0x51   :  { %297 = vmatmul.bf16.gmra.mxu0 %v1605_v1  ;;  %v2175_v1 = vld [vmem:[%s3308_s0 + $0x14c] sm:$0xf0] }
  0x52   :  { %v1815_v4 = vor.u32 %v2175_v1, %v1814_v0 }
  0x53   :  { %622 = vmatmul.bf16.gmra.mxu2 %v1775_v2  ;;  %v1645_v2 = vor.u32 %v2151_v61, %v1644_v60  ;;  %v58_v61 = vld [vmem:[%s3308_s0 + $0xc0] sm:$0xff] }
  0x5e   :  { %1849 = vmatmul.msk.bf16.gmra.mxu3 %vm230_vm1, %v1795_v7 }
  0x60   :  { %1715 = vmatmul.msk.bf16.gmra.mxu1 %vm230_vm1, %v1625_v10 }
  0x61   :  { %302 = vmatmul.bf16.gmra.mxu0 %v1613_v13 }
  0x63   :  { %627 = vmatmul.bf16.gmra.mxu2 %v1783_v14  ;;  %v2154_v14 = vld [vmem:[%s3308_s0 + $0xa4] sm:$0xf] }
  0x64   :  { %v1665_v21 = vor.u32 %v2154_v14, %v1662_v15  ;;  %v1838_v14 = vld [vmem:[%s3308_s0 + $0x178] sm:$0xf]  ;;  %v2181_v15 = vld [vmem:[%s3308_s0 + $0x17c] sm:$0xf0] }
  0x6e   :  { %1850 = vmatmul.msk.bf16.gmra.mxu3 %vm230_vm1, %v1803_v19  ;;  %v1652_v19 = vld [vmem:[%s3308_s0 + $0x90] sm:$0xf] }
  0x70   :  { %1716 = vmatmul.msk.bf16.gmra.mxu1 %vm230_vm1, %v1633_v22 }
  0x71   :  { %307 = vmatmul.bf16.gmra.mxu0 %v1621_v25 }
  0x73   :  { %632 = vmatmul.bf16.gmra.mxu2 %v1791_v26  ;;  %v1653_v26 = vor.u32 %v2153_v20, %v1652_v19 }
  0x7e   :  { %1851 = vmatmul.msk.bf16.gmra.mxu3 %vm230_vm1, %v1811_v31 }
  0x80   :  { %1717 = vmatmul.msk.bf16.gmra.mxu1 %vm230_vm1, %v1641_v34 }
  0x81   :  { %312 = vmatmul.bf16.gmra.mxu0 %v1629_v37  ;;  %v2180_v37 = vld [vmem:[%s3308_s0 + $0x17c] sm:$0xf] }
  0x83   :  { %637 = vmatmul.bf16.gmra.mxu2 %v1799_v38  ;;  %v1840_v38 = vld [vmem:[%s3308_s0 + $0x180] sm:$0xf0] }
  0x84   :  { %v1843_v44 = vor.u32 %v2180_v37, %v1840_v38  ;;  %v2183_v37 = vld [vmem:[%s3308_s0 + $0x194] sm:$0xf0] }
  0x8d   :  { %v356_v47 = vpop.f32.mrf.mxu1 }
  0x8e   :  { %1852 = vmatmul.msk.bf16.gmra.mxu3 %vm230_vm1, %v1819_v43 }
  0x90   :  { %1718 = vmatmul.msk.bf16.gmra.mxu1 %vm230_vm1, %v1649_v46  ;;  %v2155_v46 = vld [vmem:[%s3308_s0 + $0xa4] sm:$0xf0] }
  0x91   :  { %v681_v52 = vpop.f32.mrf.mxu3  ;;  %317 = vmatmul.bf16.gmra.mxu0 %v1637_v50  ;;  %v2179_v50 = vld [vmem:[%s3308_s0 + $0x16c] sm:$0xf0] }
  0x92   :  { %v1831_v55 = vor.u32 %v2179_v50, %v1830_v49 }
  0x93   :  { %642 = vmatmul.bf16.gmra.mxu2 %v1807_v51 }
  0x95   :  { %v358_v53 = vpop.f32.mrf.mxu1 }
  0x99   :  { %v683_v58 = vpop.f32.mrf.mxu3 }
  0x9d   :  { %v361_v63 = vpop.f32.mrf.mxu1 }
  0x9e   :  { %1853 = vmatmul.msk.bf16.gmra.mxu3 %vm230_vm1, %v1827_v59  ;;  %v283_v3 = vpop.f32.mrf.mxu0  ;;  %v1747_v59 = vld [vmem:[%s3308_s0 + $0x188] sm:$0xff] }
  0x9f   :  { %v2618_v5 = vadd.f32 %v356_v47, %v283_v3  ;;  %v1673_v47 = vor.u32 %v2156_v40, %v1670_v41 }
  0xa0   :  { %1719 = vmatmul.msk.bf16.gmra.mxu1 %vm230_vm1, %v1657_v62 }
  0xa1   :  { %v686_v6 = vpop.f32.mrf.mxu3  ;;  %322 = vmatmul.bf16.gmra.mxu0 %v1645_v2  ;;  %v133_v2 = vunpack.c.h.b16 %v58_v61 }
  0xa3   :  { %647 = vmatmul.bf16.gmra.mxu2 %v1815_v4  ;;  %v159_v11 = vpack.c.b16 %v133_v2, %v133_v2  ;;  %v1892_v2 = vld [vmem:[%s3308_s0 + $0x1a0] sm:$0xf] }
  0xa5   :  { %v363_v7 = vpop.f32.mrf.mxu1 }
  0xa6   :  { %v608_v8 = vpop.f32.mrf.mxu2  ;;  %v285_v10 = vpop.f32.mrf.mxu0 }
  0xa7   :  { %v2620_v9 = vadd.f32 %v681_v52, %v608_v8  ;;  %v2628_v13 = vadd.f32 %v358_v53, %v285_v10  ;;  %v1661_v52 = vor.u32 %v2155_v46, %v1660_v45  ;;  %v1668_v8 = vld [vmem:[%s3308_s0 + $0xb0] sm:$0xf]  ;;  %v2157_v10 = vld [vmem:[%s3308_s0 + $0xb4] sm:$0xf0] }
  0xa9   :  { %v688_v17 = vpop.f32.mrf.mxu3 }
  0xad   :  { %v366_v22 = vpop.f32.mrf.mxu1 }
  0xae   :  { %v610_v25 = vpop.f32.mrf.mxu2  ;;  %1854 = vmatmul.msk.bf16.gmra.mxu3 %vm230_vm1, %v1835_v18  ;;  %v288_v28 = vpop.f32.mrf.mxu0  ;;  %v1669_v18 = vor.u32 %v2157_v10, %v1668_v8 }
  0xaf   :  { %v2651_v27 = vadd.f32 %v683_v58, %v610_v25  ;;  %v2654_v30 = vadd.f32 %v361_v63, %v288_v28  ;;  %v520_v63 = vunpack.c.h.b16 %v1747_v59 }
  0xb0   :  { %1720 = vmatmul.msk.bf16.gmra.mxu1 %vm230_vm1, %v1665_v21  ;;  %v1839_v21 = vor.u32 %v2181_v15, %v1838_v14 }
  0xb1   :  { %v691_v32 = vpop.f32.mrf.mxu3  ;;  %327 = vmatmul.bf16.gmra.mxu0 %v1653_v26 }
  0xb3   :  { %652 = vmatmul.bf16.gmra.mxu2 %v1823_v29 }
  0xb5   :  { %v368_v33 = vpop.f32.mrf.mxu1 }
  0xb6   :  { %v613_v34 = vpop.f32.mrf.mxu2  ;;  %v290_v36 = vpop.f32.mrf.mxu0 }
  0xb7   :  { %v2658_v35 = vadd.f32 %v686_v6, %v613_v34  ;;  %v2666_v39 = vadd.f32 %v363_v7, %v290_v36  ;;  %v546_v7 = vpack.c.b16 %v520_v63, %v520_v63  ;;  %v1884_v36 = vld [vmem:[%s3308_s0 + $0x190] sm:$0xf]  ;;  %v1894_v63 = vld [vmem:[%s3308_s0 + $0x1a8] sm:$0xf0] }
  0xb8   :  { %v1885_v45 = vor.u32 %v2183_v37, %v1884_v36 }
  0xb9   :  { %v693_v43 = vpop.f32.mrf.mxu3 }
  0xbd   :  { %v371_v48 = vpop.f32.mrf.mxu1 }
  0xbe   :  { %v615_v51 = vpop.f32.mrf.mxu2  ;;  %1855 = vmatmul.msk.bf16.gmra.mxu3 %vm230_vm1, %v1843_v44  ;;  %v293_v54 = vpop.f32.mrf.mxu0  ;;  %v519_v44 = vunpack.c.l.b16 %v1747_v59 }
  0xbf   :  { %v2689_v53 = vadd.f32 %v688_v17, %v615_v51  ;;  %v2692_v56 = vadd.f32 %v366_v22, %v293_v54 }
  0xc0   :  { %1721 = vmatmul.msk.bf16.gmra.mxu1 %vm230_vm1, %v1673_v47  ;;  %v545_v51 = vpack.c.b16 %v519_v44, %v519_v44  ;;  %v1902_v44 = vld [vmem:[%s3308_s0 + $0x1b8] sm:$0xf0] }
  0xc1   :  { %v696_v58 = vpop.f32.mrf.mxu3  ;;  %332 = vmatmul.bf16.gmra.mxu0 %v1661_v52 }
  0xc3   :  { %657 = vmatmul.bf16.gmra.mxu2 %v1831_v55 }
  0xc5   :  { %v373_v60 = vpop.f32.mrf.mxu1 }
  0xc6   :  { %v618_v62 = vpop.f32.mrf.mxu2  ;;  %v295_v1 = vpop.f32.mrf.mxu0 }
  0xc7   :  { %v2702_v0 = vadd.f32 %v691_v32, %v618_v62  ;;  %v2704_v3 = vadd.f32 %v368_v33, %v295_v1  ;;  %v2182_v32 = vld [vmem:[%s3308_s0 + $0x194] sm:$0xf]  ;;  %v1886_v33 = vld [vmem:[%s3308_s0 + $0x198] sm:$0xf0]  ;;  %v2184_v62 = vld [vmem:[%s3308_s0 + $0x1a4] sm:$0xf] }
  0xc8   :  { %v1889_v41 = vor.u32 %v2182_v32, %v1886_v33  ;;  %v1897_v10 = vor.u32 %v2184_v62, %v1894_v63  ;;  %v2208_v62 = vld [vmem:[%s3308_s0 + $0x26c] sm:$0xf]  ;;  %v2028_v63 = vld [vmem:[%s3308_s0 + $0x270] sm:$0xf0] }
  0xc9   :  { %v698_v6 = vpop.f32.mrf.mxu3 }
  0xcd   :  { %v376_v12 = vpop.f32.mrf.mxu1 }
  0xce   :  { %v620_v17 = vpop.f32.mrf.mxu2  ;;  %1856 = vmatmul.msk.bf16.gmra.mxu3 %vm230_vm1, %v546_v7  ;;  %v298_v20 = vpop.f32.mrf.mxu0 }
  0xcf   :  { %v2721_v19 = vadd.f32 %v693_v43, %v620_v17  ;;  %v2724_v22 = vadd.f32 %v371_v48, %v298_v20  ;;  %v132_v43 = vunpack.c.l.b16 %v58_v61  ;;  %v2206_v17 = vld [vmem:[%s3308_s0 + $0x25c] sm:$0xf] }
  0xd0   :  { %1722 = vmatmul.msk.bf16.gmra.mxu1 %vm230_vm1, %v159_v11  ;;  %v2018_v11 = vld [vmem:[%s3308_s0 + $0x258] sm:$0xf] }
  0xd1   :  { %v701_v24 = vpop.f32.mrf.mxu3  ;;  %337 = vmatmul.bf16.gmra.mxu0 %v1669_v18  ;;  %v158_v48 = vpack.c.b16 %v132_v43, %v132_v43  ;;  %v2020_v18 = vld [vmem:[%s3308_s0 + $0x260] sm:$0xf0] }
  0xd3   :  { %662 = vmatmul.bf16.gmra.mxu2 %v1839_v21 }
  0xd5   :  { %v378_v25 = vpop.f32.mrf.mxu1 }
  0xd6   :  { %v623_v26 = vpop.f32.mrf.mxu2  ;;  %v300_v29 = vpop.f32.mrf.mxu0 }
  0xd7   :  { %v2728_v28 = vadd.f32 %v696_v58, %v623_v26  ;;  %v2736_v34 = vadd.f32 %v373_v60, %v300_v29  ;;  %v2023_v26 = vor.u32 %v2206_v17, %v2020_v18 }
  0xd9   :  { %v703_v40 = vpop.f32.mrf.mxu3 }
  0xdd   :  { %v381_v46 = vpop.f32.mrf.mxu1 }
  0xde   :  { %v625_v47 = vpop.f32.mrf.mxu2  ;;  %1978 = vmatmul.msk.bf16.vlgmr.msrb.gmra.mxu3 %vm230_vm1, %v1889_v41  ;;  %v303_v50 = vpop.f32.mrf.mxu0 }
  0xdf   :  { %v2747_v49 = vadd.f32 %v698_v6, %v625_v47  ;;  %v2749_v52 = vadd.f32 %v376_v12, %v303_v50  ;;  %v2185_v6 = vld [vmem:[%s3308_s0 + $0x1a4] sm:$0xf0]  ;;  %v2207_v12 = vld [vmem:[%s3308_s0 + $0x25c] sm:$0xf0]  ;;  %v2187_v47 = vld [vmem:[%s3308_s0 + $0x1b4] sm:$0xf0] }
  0xe0   :  { %957 = vmatmul.bf16.vlgmr.msrb.gmra.mxu1 %v1885_v45  ;;  %v1893_v14 = vor.u32 %v2185_v6, %v1892_v2  ;;  %v2019_v21 = vor.u32 %v2207_v12, %v2018_v11  ;;  %v2031_v12 = vor.u32 %v2208_v62, %v2028_v63 }
  0xe1   :  { %v706_v55 = vpop.f32.mrf.mxu3  ;;  %342 = vmatmul.bf16.gmra.mxu0 %v158_v48 }
  0xe3   :  { %667 = vmatmul.bf16.gmra.mxu2 %v545_v51 }
  0xe5   :  { %v383_v58 = vpop.f32.mrf.mxu1 }
  0xe6   :  { %v628_v59 = vpop.f32.mrf.mxu2  ;;  %v305_v61 = vpop.f32.mrf.mxu0 }
  0xe7   :  { %v2753_v60 = vadd.f32 %v701_v24, %v628_v59  ;;  %v2761_v1 = vadd.f32 %v378_v25, %v305_v61 }
  0xe9   :  { %v708_v8 = vpop.f32.mrf.mxu3 }
  0xed   :  { %v386_v15 = vpop.f32.mrf.mxu1 }
  0xee   :  { %v630_v20 = vpop.f32.mrf.mxu2  ;;  %1979 = vmatmul.msk.bf16.gmra.mxu3 %vm230_vm1, %v1897_v10  ;;  %v308_v25 = vpop.f32.mrf.mxu0 }
  0xef   :  { %v2784_v24 = vadd.f32 %v703_v40, %v630_v20  ;;  %v2786_v29 = vadd.f32 %v381_v46, %v308_v25  ;;  %v2186_v40 = vld [vmem:[%s3308_s0 + $0x1b4] sm:$0xf]  ;;  %v1900_v46 = vld [vmem:[%s3308_s0 + $0x1b0] sm:$0xf] }
  0xf0   :  { %962 = vmatmul.bf16.gmra.mxu1 %v1893_v14  ;;  %v1905_v51 = vor.u32 %v2186_v40, %v1902_v44  ;;  %v1901_v59 = vor.u32 %v2187_v47, %v1900_v46  ;;  %v2034_v47 = vld [vmem:[%s3308_s0 + $0x278] sm:$0xf] }
  0xf1   :  { %v711_v33 = vpop.f32.mrf.mxu3  ;;  %1307 = vmatmul.bf16.vlgmr.msrb.gmra.mxu0 %v2019_v21 }
  0xf3   :  { %2112 = vmatmul.msk.bf16.vlgmr.msrb.gmra.mxu2 %vm230_vm1, %v2023_v26 }
  0xf5   :  { %v388_v36 = vpop.f32.mrf.mxu1 }
  0xf6   :  { %v633_v37 = vpop.f32.mrf.mxu2  ;;  %v310_v43 = vpop.f32.mrf.mxu0 }
  0xf7   :  { %v2791_v41 = vadd.f32 %v706_v55, %v633_v37  ;;  %v2799_v45 = vadd.f32 %v383_v58, %v310_v43  ;;  %v2026_v55 = vld [vmem:[%s3308_s0 + $0x268] sm:$0xf]  ;;  %v2209_v58 = vld [vmem:[%s3308_s0 + $0x26c] sm:$0xf0]  ;;  %v1908_v43 = vld [vmem:[%s3308_s0 + $0x1c0] sm:$0xf] }
  0xf8   :  { %v2027_v6 = vor.u32 %v2209_v58, %v2026_v55  ;;  %v2210_v58 = vld [vmem:[%s3308_s0 + $0x27c] sm:$0xf] }
  0xf9   :  { %v713_v50 = vpop.f32.mrf.mxu3 }
  0xfd   :  { %v391_v61 = vpop.f32.mrf.mxu1 }
  0xfe   :  { %v635_v2 = vpop.f32.mrf.mxu2  ;;  %1980 = vmatmul.msk.bf16.gmra.mxu3 %vm230_vm1, %v1905_v51  ;;  %v313_v11 = vpop.f32.mrf.mxu0 }
  0xff   :  { %v2822_v10 = vadd.f32 %v708_v8, %v635_v2  ;;  %v2824_v14 = vadd.f32 %v386_v15, %v313_v11  ;;  %v2188_v8 = vld [vmem:[%s3308_s0 + $0x1c4] sm:$0xf]  ;;  %v1910_v15 = vld [vmem:[%s3308_s0 + $0x1c8] sm:$0xf0] }
 0x100   :  { %967 = vmatmul.bf16.gmra.mxu1 %v1901_v59  ;;  %v1913_v46 = vor.u32 %v2188_v8, %v1910_v15  ;;  %v2036_v59 = vld [vmem:[%s3308_s0 + $0x280] sm:$0xf0] }
 0x101   :  { %v716_v18 = vpop.f32.mrf.mxu3  ;;  %1312 = vmatmul.bf16.gmra.mxu0 %v2027_v6  ;;  %v2039_v11 = vor.u32 %v2210_v58, %v2036_v59  ;;  %v2042_v59 = vld [vmem:[%s3308_s0 + $0x288] sm:$0xf] }
 0x103   :  { %2113 = vmatmul.msk.bf16.gmra.mxu2 %vm230_vm1, %v2031_v12 }
 0x105   :  { %v393_v20 = vpop.f32.mrf.mxu1 }
 0x106   :  { %v638_v21 = vpop.f32.mrf.mxu2  ;;  %v315_v26 = vpop.f32.mrf.mxu0 }
 0x107   :  { %v2829_v25 = vadd.f32 %v711_v33, %v638_v21  ;;  %v2837_v37 = vadd.f32 %v388_v36, %v315_v26  ;;  %v2189_v33 = vld [vmem:[%s3308_s0 + $0x1c4] sm:$0xf0]  ;;  %v2211_v36 = vld [vmem:[%s3308_s0 + $0x27c] sm:$0xf0] }
 0x108   :  { %v1909_v51 = vor.u32 %v2189_v33, %v1908_v43  ;;  %v2035_v63 = vor.u32 %v2211_v36, %v2034_v47  ;;  %v1916_v47 = vld [vmem:[%s3308_s0 + $0x1d0] sm:$0xf] }
 0x109   :  { %v718_v44 = vpop.f32.mrf.mxu3 }
 0x10d   :  { %v396_v55 = vpop.f32.mrf.mxu1 }
 0x10e   :  { %v640_v62 = vpop.f32.mrf.mxu2  ;;  %1981 = vmatmul.msk.bf16.gmra.mxu3 %vm230_vm1, %v1913_v46  ;;  %v318_v6 = vpop.f32.mrf.mxu0 }
 0x10f   :  { %v2860_v2 = vadd.f32 %v713_v50, %v640_v62  ;;  %v2862_v12 = vadd.f32 %v391_v61, %v318_v6  ;;  %v2190_v50 = vld [vmem:[%s3308_s0 + $0x1d4] sm:$0xf]  ;;  %v1918_v61 = vld [vmem:[%s3308_s0 + $0x1d8] sm:$0xf0]  ;;  %v2212_v6 = vld [vmem:[%s3308_s0 + $0x28c] sm:$0xf] }
 0x110   :  { %972 = vmatmul.bf16.gmra.mxu1 %v1909_v51  ;;  %v1921_v58 = vor.u32 %v2190_v50, %v1918_v61 }
 0x111   :  { %v721_v26 = vpop.f32.mrf.mxu3  ;;  %1317 = vmatmul.bf16.gmra.mxu0 %v2035_v63 }
 0x113   :  { %2114 = vmatmul.msk.bf16.gmra.mxu2 %vm230_vm1, %v2039_v11  ;;  %v2044_v11 = vld [vmem:[%s3308_s0 + $0x290] sm:$0xf0] }
 0x114   :  { %v2047_v36 = vor.u32 %v2212_v6, %v2044_v11  ;;  %v2050_v6 = vld [vmem:[%s3308_s0 + $0x298] sm:$0xf] }
 0x115   :  { %v398_v8 = vpop.f32.mrf.mxu1 }
 0x116   :  { %v643_v15 = vpop.f32.mrf.mxu2  ;;  %v320_v33 = vpop.f32.mrf.mxu0 }
 0x117   :  { %v2867_v43 = vadd.f32 %v716_v18, %v643_v15  ;;  %v2875_v46 = vadd.f32 %v393_v20, %v320_v33  ;;  %v2191_v18 = vld [vmem:[%s3308_s0 + $0x1d4] sm:$0xf0]  ;;  %v2213_v20 = vld [vmem:[%s3308_s0 + $0x28c] sm:$0xf0] }
 0x118   :  { %v1917_v62 = vor.u32 %v2191_v18, %v1916_v47  ;;  %v2043_v33 = vor.u32 %v2213_v20, %v2042_v59  ;;  %v1924_v20 = vld [vmem:[%s3308_s0 + $0x1e0] sm:$0xf] }
 0x119   :  { %v723_v51 = vpop.f32.mrf.mxu3 }
 0x11d   :  { %v401_v63 = vpop.f32.mrf.mxu1 }
 0x11e   :  { %v645_v15 = vpop.f32.mrf.mxu2  ;;  %1982 = vmatmul.msk.bf16.gmra.mxu3 %vm230_vm1, %v1921_v58  ;;  %v323_v61 = vpop.f32.mrf.mxu0 }
 0x11f   :  { %v2898_v50 = vadd.f32 %v718_v44, %v645_v15  ;;  %v2900_v21 = vadd.f32 %v396_v55, %v323_v61  ;;  %v2192_v44 = vld [vmem:[%s3308_s0 + $0x1e4] sm:$0xf]  ;;  %v1926_v55 = vld [vmem:[%s3308_s0 + $0x1e8] sm:$0xf0] }
 0x120   :  { %977 = vmatmul.bf16.gmra.mxu1 %v1917_v62  ;;  %v1929_v62 = vor.u32 %v2192_v44, %v1926_v55  ;;  %v2052_v61 = vld [vmem:[%s3308_s0 + $0x2a0] sm:$0xf0] }
 0x121   :  { %v726_v18 = vpop.f32.mrf.mxu3  ;;  %1322 = vmatmul.bf16.gmra.mxu0 %v2043_v33  ;;  %v2214_v33 = vld [vmem:[%s3308_s0 + $0x29c] sm:$0xf] }
 0x122   :  { %v2055_v47 = vor.u32 %v2214_v33, %v2052_v61 }
 0x123   :  { %2115 = vmatmul.msk.bf16.gmra.mxu2 %vm230_vm1, %v2047_v36 }
 0x125   :  { %v403_v40 = vpop.f32.mrf.mxu1 }
 0x126   :  { %v648_v17 = vpop.f32.mrf.mxu2  ;;  %v325_v58 = vpop.f32.mrf.mxu0 }
 0x127   :  { %v2905_v48 = vadd.f32 %v721_v26, %v648_v17  ;;  %v2913_v59 = vadd.f32 %v398_v8, %v325_v58  ;;  %v2193_v17 = vld [vmem:[%s3308_s0 + $0x1e4] sm:$0xf0]  ;;  %v2215_v8 = vld [vmem:[%s3308_s0 + $0x29c] sm:$0xf0] }
 0x128   :  { %v1925_v11 = vor.u32 %v2193_v17, %v1924_v20  ;;  %v2051_v44 = vor.u32 %v2215_v8, %v2050_v6  ;;  %v1932_v6 = vld [vmem:[%s3308_s0 + $0x1f0] sm:$0xf] }
 0x129   :  { %v728_v36 = vpop.f32.mrf.mxu3 }
 0x12d   :  { %v406_v15 = vpop.f32.mrf.mxu1 }
 0x12e   :  { %v650_v58 = vpop.f32.mrf.mxu2  ;;  %1983 = vmatmul.msk.bf16.gmra.mxu3 %vm230_vm1, %v1929_v62  ;;  %v328_v26 = vpop.f32.mrf.mxu0 }
 0x12f   :  { %v2936_v55 = vadd.f32 %v723_v51, %v650_v58  ;;  %v2938_v32 = vadd.f32 %v401_v63, %v328_v26  ;;  %v2194_v51 = vld [vmem:[%s3308_s0 + $0x1f4] sm:$0xf]  ;;  %v1934_v63 = vld [vmem:[%s3308_s0 + $0x1f8] sm:$0xf0]  ;;  %v2216_v58 = vld [vmem:[%s3308_s0 + $0x2ac] sm:$0xf] }
 0x130   :  { %982 = vmatmul.bf16.gmra.mxu1 %v1925_v11  ;;  %v1937_v8 = vor.u32 %v2194_v51, %v1934_v63  ;;  %v2058_v11 = vld [vmem:[%s3308_s0 + $0x2a8] sm:$0xf] }
 0x131   :  { %v731_v17 = vpop.f32.mrf.mxu3  ;;  %1327 = vmatmul.bf16.gmra.mxu0 %v2051_v44  ;;  %v2060_v44 = vld [vmem:[%s3308_s0 + $0x2b0] sm:$0xf0] }
 0x132   :  { %v2063_v20 = vor.u32 %v2216_v58, %v2060_v44 }
 0x133   :  { %2116 = vmatmul.msk.bf16.gmra.mxu2 %vm230_vm1, %v2055_v47 }
 0x135   :  { %v408_v7 = vpop.f32.mrf.mxu1 }
 0x136   :  { %v653_v54 = vpop.f32.mrf.mxu2  ;;  %v330_v62 = vpop.f32.mrf.mxu0 }
 0x137   :  { %v2943_v38 = vadd.f32 %v726_v18, %v653_v54  ;;  %v2951_v26 = vadd.f32 %v403_v40, %v330_v62  ;;  %v2195_v54 = vld [vmem:[%s3308_s0 + $0x1f4] sm:$0xf0]  ;;  %v2217_v40 = vld [vmem:[%s3308_s0 + $0x2ac] sm:$0xf0] }
 0x138   :  { %v1933_v33 = vor.u32 %v2195_v54, %v1932_v6  ;;  %v2059_v51 = vor.u32 %v2217_v40, %v2058_v11  ;;  %v1940_v11 = vld [vmem:[%s3308_s0 + $0x200] sm:$0xf] }
 0x139   :  { %3323 = vst [vmem:[#allocation2_spill] sm:$0xff] %v2951_v26  ;;  %v733_v18 = vpop.f32.mrf.mxu3 }
 0x13d   :  { %v411_v61 = vpop.f32.mrf.mxu1 }
 0x13e   :  { %v655_v62 = vpop.f32.mrf.mxu2  ;;  %1984 = vmatmul.msk.bf16.gmra.mxu3 %vm230_vm1, %v1937_v8  ;;  %v333_v47 = vpop.f32.mrf.mxu0 }
 0x13f   :  { %v2974_v63 = vadd.f32 %v728_v36, %v655_v62  ;;  %v2976_v23 = vadd.f32 %v406_v15, %v333_v47  ;;  %v2196_v36 = vld [vmem:[%s3308_s0 + $0x204] sm:$0xf]  ;;  %v1942_v15 = vld [vmem:[%s3308_s0 + $0x208] sm:$0xf0]  ;;  %v2218_v62 = vld [vmem:[%s3308_s0 + $0x2bc] sm:$0xf] }
 0x140   :  { %987 = vmatmul.bf16.gmra.mxu1 %v1933_v33  ;;  %v1945_v40 = vor.u32 %v2196_v36, %v1942_v15  ;;  %v2066_v33 = vld [vmem:[%s3308_s0 + $0x2b8] sm:$0xf] }
 0x141   :  { %3324 = vst [vmem:[#allocation3_spill] sm:$0xff] %v2974_v63  ;;  %v736_v54 = vpop.f32.mrf.mxu3  ;;  %1332 = vmatmul.bf16.gmra.mxu0 %v2059_v51  ;;  %v2068_v51 = vld [vmem:[%s3308_s0 + $0x2c0] sm:$0xf0] }
 0x142   :  { %3325 = vst [vmem:[#allocation4_spill] sm:$0xff] %v2976_v23  ;;  %v2071_v6 = vor.u32 %v2218_v62, %v2068_v51  ;;  %v2220_v51 = vld [vmem:[%s3308_s0 + $0x2cc] sm:$0xf] }
 0x143   :  { %2117 = vmatmul.msk.bf16.gmra.mxu2 %vm230_vm1, %v2063_v20 }
 0x145   :  { %v413_v4 = vpop.f32.mrf.mxu1 }
 0x146   :  { %v658_v57 = vpop.f32.mrf.mxu2  ;;  %v335_v8 = vpop.f32.mrf.mxu0 }
 0x147   :  { %v2981_v42 = vadd.f32 %v731_v17, %v658_v57  ;;  %v2989_v47 = vadd.f32 %v408_v7, %v335_v8  ;;  %v2197_v57 = vld [vmem:[%s3308_s0 + $0x204] sm:$0xf0]  ;;  %v2219_v7 = vld [vmem:[%s3308_s0 + $0x2bc] sm:$0xf0] }
 0x148   :  { %v1941_v58 = vor.u32 %v2197_v57, %v1940_v11  ;;  %v2067_v36 = vor.u32 %v2219_v7, %v2066_v33  ;;  %v1948_v33 = vld [vmem:[%s3308_s0 + $0x210] sm:$0xf]  ;;  %v2074_v7 = vld [vmem:[%s3308_s0 + $0x2c8] sm:$0xf] }
 0x149   :  { %3326 = vst [vmem:[#allocation5_spill] sm:$0xff] %v2981_v42  ;;  %v738_v17 = vpop.f32.mrf.mxu3 }
 0x14a   :  { %3327 = vst [vmem:[#allocation6_spill] sm:$0xff] %v2989_v47 }
 0x14d   :  { %v416_v44 = vpop.f32.mrf.mxu1 }
 0x14e   :  { %v660_v8 = vpop.f32.mrf.mxu2  ;;  %1985 = vmatmul.msk.bf16.gmra.mxu3 %vm230_vm1, %v1945_v40  ;;  %v338_v20 = vpop.f32.mrf.mxu0 }
 0x14f   :  { %v3012_v15 = vadd.f32 %v733_v18, %v660_v8  ;;  %v3014_v31 = vadd.f32 %v411_v61, %v338_v20  ;;  %v2198_v18 = vld [vmem:[%s3308_s0 + $0x214] sm:$0xf]  ;;  %v1950_v61 = vld [vmem:[%s3308_s0 + $0x218] sm:$0xf0] }
 0x150   :  { %992 = vmatmul.bf16.gmra.mxu1 %v1941_v58  ;;  %v2076_v8 = vld [vmem:[%s3308_s0 + $0x2d0] sm:$0xf0] }
 0x151   :  { %3328 = vst [vmem:[#allocation7_spill] sm:$0xff] %v3012_v15  ;;  %v741_v57 = vpop.f32.mrf.mxu3  ;;  %1337 = vmatmul.bf16.gmra.mxu0 %v2067_v36 }
 0x152   :  { %3329 = vst [vmem:[#allocation8_spill] sm:$0xff] %v3014_v31 }
 0x153   :  { %2118 = vmatmul.msk.bf16.gmra.mxu2 %vm230_vm1, %v2071_v6 }
 0x155   :  { %v418_v16 = vpop.f32.mrf.mxu1 }
 0x156   :  { %v663_v42 = vpop.f32.mrf.mxu2  ;;  %v340_v40 = vpop.f32.mrf.mxu0  ;;  %v2199_v16 = vld [vmem:[%s3308_s0 + $0x214] sm:$0xf0] }
 0x157   :  { %v3019_v23 = vadd.f32 %v736_v54, %v663_v42  ;;  %v3027_v20 = vadd.f32 %v413_v4, %v340_v40  ;;  %v1953_v54 = vor.u32 %v2198_v18, %v1950_v61  ;;  %v2221_v4 = vld [vmem:[%s3308_s0 + $0x2cc] sm:$0xf0]  ;;  %v1949_v58 = vor.u32 %v2199_v16, %v1948_v33 }
 0x158   :  { %v2075_v40 = vor.u32 %v2221_v4, %v2074_v7  ;;  %v1956_v7 = vld [vmem:[%s3308_s0 + $0x220] sm:$0xf]  ;;  %v2201_v4 = vld [vmem:[%s3308_s0 + $0x224] sm:$0xf0] }
 0x159   :  { %3330 = vst [vmem:[#allocation9_spill] sm:$0xff] %v3019_v23  ;;  %v743_v6 = vpop.f32.mrf.mxu3 }
 0x15a   :  { %3331 = vst [vmem:[#allocation10_spill] sm:$0xff] %v3027_v20  ;;  %v2079_v6 = vor.u32 %v2220_v51, %v2076_v8  ;;  %v2082_v51 = vld [vmem:[%s3308_s0 + $0x2d8] sm:$0xf]  ;;  %v2223_v8 = vld [vmem:[%s3308_s0 + $0x2dc] sm:$0xf0] }
 0x15d   :  { %v958_v62 = vpop.f32.mrf.mxu1 }
 0x15e   :  { %v665_v36 = vpop.f32.mrf.mxu2  ;;  %1986 = vmatmul.msk.bf16.gmra.mxu3 %vm230_vm1, %v1953_v54  ;;  %v343_v61 = vpop.f32.mrf.mxu0 }
 0x15f   :  { %v3050_v18 = vadd.f32 %v738_v17, %v665_v36  ;;  %v3052_v42 = vadd.f32 %v416_v44, %v343_v61  ;;  %v2200_v17 = vld [vmem:[%s3308_s0 + $0x224] sm:$0xf]  ;;  %v1958_v44 = vld [vmem:[%s3308_s0 + $0x228] sm:$0xf0]  ;;  %v1957_v36 = vor.u32 %v2201_v4, %v1956_v7  ;;  %v2222_v61 = vld [vmem:[%s3308_s0 + $0x2dc] sm:$0xf] }
 0x160   :  { %997 = vmatmul.bf16.gmra.mxu1 %v1949_v58  ;;  %v1961_v58 = vor.u32 %v2200_v17, %v1958_v44  ;;  %v2083_v17 = vor.u32 %v2223_v8, %v2082_v51  ;;  %v1964_v51 = vld [vmem:[%s3308_s0 + $0x230] sm:$0xf] }
 0x161   :  { %3332 = vst [vmem:[#allocation11_spill] sm:$0xff] %v3050_v18  ;;  %v1031_v16 = vpop.f32.mrf.mxu3  ;;  %1342 = vmatmul.bf16.gmra.mxu0 %v2075_v40  ;;  %v2202_v18 = vld [vmem:[%s3308_s0 + $0x234] sm:$0xf] }
 0x162   :  { %3333 = vst [vmem:[#allocation12_spill] sm:$0xff] %v3052_v42 }
 0x163   :  { %2119 = vmatmul.msk.bf16.gmra.mxu2 %vm230_vm1, %v2079_v6  ;;  %v2084_v6 = vld [vmem:[%s3308_s0 + $0x2e0] sm:$0xf0] }
 0x165   :  { %v960_v11 = vpop.f32.mrf.mxu1 }
 0x166   :  { %v668_v23 = vpop.f32.mrf.mxu2  ;;  %v345_v54 = vpop.f32.mrf.mxu0 }
 0x167   :  { %v3057_v31 = vadd.f32 %v741_v57, %v668_v23  ;;  %v2087_v23 = vor.u32 %v2222_v61, %v2084_v6 }
 0x169   :  { %3334 = vst [vmem:[#allocation13_spill] sm:$0xff] %v3057_v31  ;;  %v1033_v57 = vpop.f32.mrf.mxu3  ;;  %v1032_v31 = vadd.f32 %v1031_v16, %v958_v62  ;;  %v3335_v16 = vmax.f32 %v2618_v5, %v2620_v9  ;;  %v2092_v5 = vld [vmem:[%s3308_s0 + $0x2f0] sm:$0xf0] }
 0x16a   :  { %v1034_v6 = vadd.f32 %v1033_v57, %v960_v11 }
 0x16b   :  { %v1095_v61 = vmax.f32 %v3335_v16, %v1032_v31  ;;  %v3119_v31 = vld [vmem:[%s3309_s2] ss:$0 sm:$0xff] }
 0x16d   :  { %v963_v40 = vpop.f32.mrf.mxu1 }
 0x16e   :  { %v670_v54 = vpop.f32.mrf.mxu2  ;;  %1987 = vmatmul.msk.bf16.gmra.mxu3 %vm230_vm1, %v1961_v58  ;;  %v1308_v44 = vpop.f32.mrf.mxu0  ;;  %v1966_v58 = vld [vmem:[%s3308_s0 + $0x238] sm:$0xf0] }
 0x16f   :  { %v1969_v62 = vor.u32 %v2202_v18, %v1966_v58  ;;  %v2090_v54 = vld [vmem:[%s3308_s0 + $0x2e8] sm:$0xf]  ;;  %v2224_v18 = vld [vmem:[%s3308_s0 + $0x2ec] sm:$0xf] }
 0x170   :  { %1002 = vmatmul.bf16.gmra.mxu1 %v1957_v36 }
 0x171   :  { %v1036_v33 = vpop.f32.mrf.mxu3  ;;  %1347 = vmatmul.bf16.gmra.mxu0 %v2083_v17  ;;  %v2225_v17 = vld [vmem:[%s3308_s0 + $0x2ec] sm:$0xf0] }
 0x172   :  { %v2091_v57 = vor.u32 %v2225_v17, %v2090_v54  ;;  %v1037_v26 = vadd.f32 %v1036_v33, %v963_v40 }
 0x173   :  { %2120 = vmatmul.msk.bf16.gmra.mxu2 %vm230_vm1, %v2087_v23  ;;  %v2203_v23 = vld [vmem:[%s3308_s0 + $0x234] sm:$0xf0] }
 0x174   :  { %v1965_v20 = vor.u32 %v2203_v23, %v1964_v51  ;;  %v2095_v23 = vor.u32 %v2224_v18, %v2092_v5  ;;  %v3337_v18 = vmax.f32 %v2654_v30, %v2658_v35  ;;  %v2100_v30 = vld [vmem:[%s3308_s0 + $0x300] sm:$0xf0] }
 0x175   :  { %v965_v7 = vpop.f32.mrf.mxu1 }
 0x176   :  { %v1381_v4 = vpop.f32.mrf.mxu2  ;;  %v1310_v42 = vpop.f32.mrf.mxu0  ;;  %v1097_v5 = vmax.f32 %v3337_v18, %v1037_v26 }
 0x177   :  { %v1382_v8 = vadd.f32 %v1381_v4, %v1308_v44  ;;  %v3336_v44 = vmax.f32 %v2628_v13, %v2651_v27 }
 0x179   :  { %v1038_v36 = vpop.f32.mrf.mxu3  ;;  %v1445_v9 = vmax.f32 %v1095_v61, %v1382_v8  ;;  %v1096_v4 = vmax.f32 %v3336_v44, %v1034_v6  ;;  %v1972_v6 = vld [vmem:[%s3308_s0 + $0x240] sm:$0xf] }
 0x17b   :  { %v1474_v16 = vadd.f32 %v3119_v31, %v1445_v9  ;;  %v1039_v9 = vadd.f32 %v1038_v36, %v965_v7  ;;  %v3338_v36 = vmax.f32 %v2666_v39, %v2689_v53 }
 0x17d   :  { %v3108_v15 = vpop.f32.mrf.mxu1  ;;  %v1499_v63 = vmax.f32 %v1474_v16, 0.0 }
 0x17e   :  { %1988 = vmatmul.msk.bf16.gmra.mxu3 %vm230_vm1, %v1969_v62  ;;  %v1383_v11 = vpop.f32.mrf.mxu2  ;;  %v1313_v51 = vpop.f32.mrf.mxu0 }
 0x17f   :  { %v1384_v58 = vadd.f32 %v1383_v11, %v1310_v42  ;;  %v1974_v42 = vld [vmem:[%s3308_s0 + $0x248] sm:$0xf0]  ;;  %v2098_v11 = vld [vmem:[%s3308_s0 + $0x2f8] sm:$0xf] }
 0x180   :  { %1007 = vmatmul.bf16.gmra.mxu1 %v1965_v20  ;;  %v2204_v20 = vld [vmem:[%s3308_s0 + $0x244] sm:$0xf] }
 0x181   :  { %v1446_v8 = vmax.f32 %v1096_v4, %v1384_v58  ;;  %v1041_v61 = vpop.f32.mrf.mxu3  ;;  %1352 = vmatmul.bf16.gmra.mxu0 %v2091_v57  ;;  %v1977_v40 = vor.u32 %v2204_v20, %v1974_v42  ;;  %v2227_v57 = vld [vmem:[%s3308_s0 + $0x2fc] sm:$0xf0]  ;;  %v2226_v58 = vld [vmem:[%s3308_s0 + $0x2fc] sm:$0xf]  ;;  %v1881_v42 = vld [vmem:[%s3308_s0 + $0x250] sm:$0xff] }
 0x182   :  { %v2099_v7 = vor.u32 %v2227_v57, %v2098_v11 }
 0x183   :  { %v1475_v47 = vadd.f32 %v3119_v31, %v1446_v8  ;;  %2121 = vmatmul.msk.bf16.gmra.mxu2 %vm230_vm1, %v2095_v23  ;;  %v2103_v8 = vor.u32 %v2226_v58, %v2100_v30 }
 0x185   :  { %v970_v62 = vpop.f32.mrf.mxu1  ;;  %v1500_v54 = vmax.f32 %v1475_v47, 0.0  ;;  %v2205_v47 = vld [vmem:[%s3308_s0 + $0x244] sm:$0xf0] }
 0x186   :  { %v1386_v17 = vpop.f32.mrf.mxu2  ;;  %v1315_v27 = vpop.f32.mrf.mxu0  ;;  %v1973_v44 = vor.u32 %v2205_v47, %v1972_v6  ;;  %v870_v47 = vunpack.c.h.b16 %v1881_v42 }
 0x187   :  { %v2233_v13 = vpack.c.bf16 %v1500_v54, %v1499_v63  ;;  %v1387_v63 = vadd.f32 %v1386_v17, %v1313_v51  ;;  %v1098_v51 = vmax.f32 %v3338_v36, %v1039_v9  ;;  %v3340_v36 = vmax.f32 %v2704_v3, %v2721_v19 }
 0x188   :  { %v896_v57 = vpack.c.b16 %v870_v47, %v870_v47 }
 0x189   :  { %2234 = vst [vmem:[%s3310_s3] sm:$0xff] %v2233_v13   ;;  %v1043_v33 = vpop.f32.mrf.mxu3  ;;  %v1447_v35 = vmax.f32 %v1097_v5, %v1387_v63  ;;  %v1042_v63 = vadd.f32 %v1041_v61, %v3108_v15  ;;  %v869_v5 = vunpack.c.l.b16 %v1881_v42  ;;  %v2229_v15 = vld [vmem:[%s3308_s0 + $0x30c] sm:$0xf0] }
 0x18a   :  { %v1044_v30 = vadd.f32 %v1043_v33, %v970_v62 }
 0x18b   :  { %v1476_v54 = vadd.f32 %v3119_v31, %v1447_v35  ;;  %v2106_v35 = vld [vmem:[%s3308_s0 + $0x308] sm:$0xf]  ;;  %v895_v61 = vpack.c.b16 %v869_v5, %v869_v5 }
 0x18c   :  { %v2107_v33 = vor.u32 %v2229_v15, %v2106_v35 }
 0x18d   :  { %v973_v4 = vpop.f32.mrf.mxu1  ;;  %v1501_v39 = vmax.f32 %v1476_v54, 0.0 }
 0x18e   :  { %1989 = vmatmul.msk.bf16.gmra.mxu3 %vm230_vm1, %v1977_v40  ;;  %v1388_v26 = vpop.f32.mrf.mxu2  ;;  %v1318_v16 = vpop.f32.mrf.mxu0 }
 0x18f   :  { %v1389_v23 = vadd.f32 %v1388_v26, %v1315_v27 }
 0x190   :  { %1012 = vmatmul.bf16.gmra.mxu1 %v1973_v44  ;;  %v3339_v44 = vmax.f32 %v2692_v56, %v2702_v0  ;;  %v2108_v56 = vld [vmem:[%s3308_s0 + $0x310] sm:$0xf0] }
 0x191   :  { %v1448_v17 = vmax.f32 %v1098_v51, %v1389_v23  ;;  %v1046_v13 = vpop.f32.mrf.mxu3  ;;  %1357 = vmatmul.bf16.gmra.mxu0 %v2099_v7  ;;  %v2228_v7 = vld [vmem:[%s3308_s0 + $0x30c] sm:$0xf]  ;;  %v1100_v51 = vmax.f32 %v3340_v36, %v1044_v30 }
 0x192   :  { %v1099_v58 = vmax.f32 %v3339_v44, %v1042_v63  ;;  %v1047_v63 = vadd.f32 %v1046_v13, %v973_v4 }
 0x193   :  { %v1477_v20 = vadd.f32 %v3119_v31, %v1448_v17  ;;  %2122 = vmatmul.msk.bf16.gmra.mxu2 %vm230_vm1, %v2103_v8  ;;  %v2111_v8 = vor.u32 %v2228_v7, %v2108_v56 }
 0x195   :  { %v975_v6 = vpop.f32.mrf.mxu1  ;;  %v1502_v53 = vmax.f32 %v1477_v20, 0.0 }
 0x196   :  { %v1391_v27 = vpop.f32.mrf.mxu2  ;;  %v1320_v18 = vpop.f32.mrf.mxu0 }
 0x197   :  { %v2238_v40 = vpack.c.bf16 %v1502_v53, %v1501_v39  ;;  %v1392_v9 = vadd.f32 %v1391_v27, %v1318_v16 }
 0x199   :  { %2290 = vst [vmem:[%s3310_s3 + $0x8] sm:$0xff] %v2238_v40   ;;  %v1048_v11 = vpop.f32.mrf.mxu3  ;;  %v1449_v0 = vmax.f32 %v1099_v58, %v1392_v9  ;;  %v2015_v40 = vld [vmem:[%s3308_s0 + $0x318] sm:$0xff] }
 0x19a   :  { %v1219_v9 = vunpack.c.l.b16 %v2015_v40  ;;  %v1049_v58 = vadd.f32 %v1048_v11, %v975_v6  ;;  %v1220_v30 = vunpack.c.h.b16 %v2015_v40 }
 0x19b   :  { %v1478_v54 = vadd.f32 %v3119_v31, %v1449_v0 }
 0x19c   :  { %v1245_v15 = vpack.c.b16 %v1219_v9, %v1219_v9 }
 0x19d   :  { %v978_v26 = vpop.f32.mrf.mxu1  ;;  %v1503_v53 = vmax.f32 %v1478_v54, 0.0 }
 0x19e   :  { %1990 = vmatmul.msk.bf16.gmra.mxu3 %vm230_vm1, %v896_v57  ;;  %v1393_v62 = vpop.f32.mrf.mxu2  ;;  %v1323_v16 = vpop.f32.mrf.mxu0  ;;  %v3341_v57 = vmax.f32 %v2724_v22, %v2728_v28 }
 0x19f   :  { %v1394_v23 = vadd.f32 %v1393_v62, %v1320_v18  ;;  %v1246_v62 = vpack.c.b16 %v1220_v30, %v1220_v30 }
 0x1a0   :  { %1017 = vmatmul.bf16.gmra.mxu1 %v895_v61  ;;  %v1101_v44 = vmax.f32 %v3341_v57, %v1047_v63  ;;  %v3342_v61 = vmax.f32 %v2736_v34, %v2747_v49 }
 0x1a1   :  { %v1450_v17 = vmax.f32 %v1100_v51, %v1394_v23  ;;  %v1051_v20 = vpop.f32.mrf.mxu3  ;;  %1362 = vmatmul.bf16.gmra.mxu0 %v2107_v33 }
 0x1a2   :  { %v1102_v7 = vmax.f32 %v3342_v61, %v1049_v58 }
 0x1a3   :  { %v1479_v42 = vadd.f32 %v3119_v31, %v1450_v17  ;;  %2123 = vmatmul.msk.bf16.gmra.mxu2 %vm230_vm1, %v2111_v8  ;;  %v3343_v17 = vmax.f32 %v2749_v52, %v2753_v60 }
 0x1a5   :  { %v980_v39 = vpop.f32.mrf.mxu1  ;;  %v1504_v27 = vmax.f32 %v1479_v42, 0.0 }
 0x1a6   :  { %v1396_v47 = vpop.f32.mrf.mxu2  ;;  %v1325_v19 = vpop.f32.mrf.mxu0 }
 0x1a7   :  { %v2243_v3 = vpack.c.bf16 %v1504_v27, %v1503_v53  ;;  %v1397_v18 = vadd.f32 %v1396_v47, %v1323_v16  ;;  %v1052_v16 = vadd.f32 %v1051_v20, %v978_v26 }
 0x1a9   :  { %2291 = vst [vmem:[%s3310_s3 + $0x10] sm:$0xff] %v2243_v3   ;;  %v1053_v5 = vpop.f32.mrf.mxu3  ;;  %v1451_v13 = vmax.f32 %v1101_v44, %v1397_v18  ;;  %v1103_v42 = vmax.f32 %v3343_v17, %v1052_v16  ;;  %v3344_v3 = vmax.f32 %v2761_v1, %v2784_v24 }
 0x1aa   :  { %v1054_v53 = vadd.f32 %v1053_v5, %v980_v39 }
 0x1ab   :  { %v1480_v33 = vadd.f32 %v3119_v31, %v1451_v13  ;;  %v3345_v13 = vmax.f32 %v2786_v29, %v2791_v41 }
 0x1ac   :  { %v1104_v26 = vmax.f32 %v3344_v3, %v1054_v53 }
 0x1ad   :  { %v983_v4 = vpop.f32.mrf.mxu1  ;;  %v1505_v6 = vmax.f32 %v1480_v33, 0.0 }
 0x1ae   :  { %v1398_v35 = vpop.f32.mrf.mxu2  ;;  %v1328_v0 = vpop.f32.mrf.mxu0 }
 0x1af   :  { %v1399_v56 = vadd.f32 %v1398_v35, %v1325_v19 }
 0x1b1   :  { %v1452_v36 = vmax.f32 %v1102_v7, %v1399_v56  ;;  %v1056_v51 = vpop.f32.mrf.mxu3  ;;  %1367 = vmatmul.bf16.gmra.mxu0 %v1245_v15 }
 0x1b2   :  { %v1057_v39 = vadd.f32 %v1056_v51, %v983_v4 }
 0x1b3   :  { %v1481_v22 = vadd.f32 %v3119_v31, %v1452_v36  ;;  %2124 = vmatmul.msk.bf16.gmra.mxu2 %vm230_vm1, %v1246_v62 }
 0x1b4   :  { %v1105_v35 = vmax.f32 %v3345_v13, %v1057_v39 }
 0x1b5   :  { %v985_v28 = vpop.f32.mrf.mxu1  ;;  %v1506_v11 = vmax.f32 %v1481_v22, 0.0 }
 0x1b6   :  { %v1401_v23 = vpop.f32.mrf.mxu2  ;;  %v1330_v34 = vpop.f32.mrf.mxu0 }
 0x1b7   :  { %v2248_v8 = vpack.c.bf16 %v1506_v11, %v1505_v6  ;;  %v1402_v49 = vadd.f32 %v1401_v23, %v1328_v0  ;;  %v3346_v0 = vmax.f32 %v2799_v45, %v2822_v10 }
 0x1b9   :  { %2292 = vst [vmem:[%s3310_s3 + $0x18] sm:$0xff] %v2248_v8   ;;  %v1058_v54 = vpop.f32.mrf.mxu3  ;;  %v1453_v47 = vmax.f32 %v1103_v42, %v1402_v49 }
 0x1ba   :  { %v1059_v15 = vadd.f32 %v1058_v54, %v985_v28 }
 0x1bb   :  { %v1482_v40 = vadd.f32 %v3119_v31, %v1453_v47  ;;  %v3348_v47 = vmax.f32 %v2837_v37, %v2860_v2 }
 0x1bc   :  { %v1106_v4 = vmax.f32 %v3346_v0, %v1059_v15 }
 0x1bd   :  { %v988_v27 = vpop.f32.mrf.mxu1  ;;  %v1507_v58 = vmax.f32 %v1482_v40, 0.0 }
 0x1be   :  { %v1403_v63 = vpop.f32.mrf.mxu2  ;;  %v1333_v19 = vpop.f32.mrf.mxu0 }
 0x1bf   :  { %v1404_v20 = vadd.f32 %v1403_v63, %v1330_v34  ;;  %v3347_v34 = vmax.f32 %v2824_v14, %v2829_v25 }
 0x1c1   :  { %v1454_v18 = vmax.f32 %v1104_v26, %v1404_v20  ;;  %v1061_v9 = vpop.f32.mrf.mxu3 }
 0x1c2   :  { %v1062_v28 = vadd.f32 %v1061_v9, %v988_v27 }
 0x1c3   :  { %v1483_v57 = vadd.f32 %v3119_v31, %v1454_v18 }
 0x1c4   :  { %v1107_v49 = vmax.f32 %v3347_v34, %v1062_v28  ;;  %v3352_v28 = vmax.f32 %v2913_v59, %v2936_v55 }
 0x1c5   :  { %v990_v44 = vpop.f32.mrf.mxu1  ;;  %v1508_v52 = vmax.f32 %v1483_v57, 0.0 }
 0x1c6   :  { %v1406_v60 = vpop.f32.mrf.mxu2  ;;  %v1335_v30 = vpop.f32.mrf.mxu0 }
 0x1c7   :  { %v2253_v5 = vpack.c.bf16 %v1508_v52, %v1507_v58  ;;  %v1407_v1 = vadd.f32 %v1406_v60, %v1333_v19  ;;  %v3349_v52 = vmax.f32 %v2862_v12, %v2867_v43 }
 0x1c9   :  { %2293 = vst [vmem:[%s3310_s3 + $0x20] sm:$0xff] %v2253_v5   ;;  %v1063_v24 = vpop.f32.mrf.mxu3  ;;  %v1455_v7 = vmax.f32 %v1105_v35, %v1407_v1 }
 0x1ca   :  { %v1064_v54 = vadd.f32 %v1063_v24, %v990_v44  ;;  %v3350_v24 = vmax.f32 %v2875_v46, %v2898_v50 }
 0x1cb   :  { %v1484_v36 = vadd.f32 %v3119_v31, %v1455_v7 }
 0x1cc   :  { %v1108_v27 = vmax.f32 %v3348_v47, %v1064_v54 }
 0x1cd   :  { %v993_v61 = vpop.f32.mrf.mxu1  ;;  %v1509_v23 = vmax.f32 %v1484_v36, 0.0 }
 0x1ce   :  { %v1408_v56 = vpop.f32.mrf.mxu2  ;;  %v1338_v33 = vpop.f32.mrf.mxu0 }
 0x1cf   :  { %v1409_v62 = vadd.f32 %v1408_v56, %v1335_v30 }
 0x1d1   :  { %v1456_v51 = vmax.f32 %v1106_v4, %v1409_v62  ;;  %v1066_v22 = vpop.f32.mrf.mxu3 }
 0x1d2   :  { %v1067_v57 = vadd.f32 %v1066_v22, %v993_v61  ;;  %v3351_v22 = vmax.f32 %v2900_v21, %v2905_v48 }
 0x1d3   :  { %v1485_v6 = vadd.f32 %v3119_v31, %v1456_v51 }
 0x1d4   :  { %v1109_v60 = vmax.f32 %v3349_v52, %v1067_v57 }
 0x1d5   :  { %v995_v11 = vpop.f32.mrf.mxu1  ;;  %v1510_v29 = vmax.f32 %v1485_v6, 0.0 }
 0x1d6   :  { %v1411_v41 = vpop.f32.mrf.mxu2  ;;  %v1340_v8 = vpop.f32.mrf.mxu0 }
 0x1d7   :  { %v2258_v16 = vpack.c.bf16 %v1510_v29, %v1509_v23  ;;  %v1412_v45 = vadd.f32 %v1411_v41, %v1338_v33 }
 0x1d9   :  { %2294 = vst [vmem:[%s3310_s3 + $0x28] sm:$0xff] %v2258_v16   ;;  %v1068_v10 = vpop.f32.mrf.mxu3  ;;  %v1457_v42 = vmax.f32 %v1107_v49, %v1412_v45 }
 0x1da   :  { %v1069_v39 = vadd.f32 %v1068_v10, %v995_v11 }
 0x1db   :  { %v1486_v26 = vadd.f32 %v3119_v31, %v1457_v42 }
 0x1dc   :  { %v1110_v13 = vmax.f32 %v3350_v24, %v1069_v39 }
 0x1dd   :  { %v998_v17 = vpop.f32.mrf.mxu1  ;;  %v1511_v9 = vmax.f32 %v1486_v26, 0.0 }
 0x1de   :  { %v1413_v53 = vpop.f32.mrf.mxu2  ;;  %v1343_v3 = vpop.f32.mrf.mxu0 }
 0x1df   :  { %v1414_v63 = vadd.f32 %v1413_v53, %v1340_v8 }
 0x1e1   :  { %v1458_v20 = vmax.f32 %v1108_v27, %v1414_v63  ;;  %v1071_v19 = vpop.f32.mrf.mxu3  ;;  %v3353_v63 = vmax.f32 %v2938_v32, %v2943_v38 }
 0x1e2   :  { %v1072_v33 = vadd.f32 %v1071_v19, %v998_v17 }
 0x1e3   :  { %v1487_v40 = vadd.f32 %v3119_v31, %v1458_v20 }
 0x1e4   :  { %v1111_v6 = vmax.f32 %v3351_v22, %v1072_v33 }
 0x1e5   :  { %v1000_v18 = vpop.f32.mrf.mxu1  ;;  %v1512_v14 = vmax.f32 %v1487_v40, 0.0 }
 0x1e6   :  { %v1416_v25 = vpop.f32.mrf.mxu2  ;;  %v1345_v58 = vpop.f32.mrf.mxu0 }
 0x1e7   :  { %v2263_v44 = vpack.c.bf16 %v1512_v14, %v1511_v9  ;;  %v1417_v37 = vadd.f32 %v1416_v25, %v1343_v3  ;;  %v3355_v9 = vld [vmem:[#allocation3_spill] sm:$0xff] }
 0x1e9   :  { %2295 = vst [vmem:[%s3310_s3 + $0x30] sm:$0xff] %v2263_v44   ;;  %v1073_v2 = vpop.f32.mrf.mxu3  ;;  %v1459_v30 = vmax.f32 %v1109_v60, %v1417_v37 }
 0x1ea   :  { %v1074_v11 = vadd.f32 %v1073_v2, %v1000_v18  ;;  %v3354_v18 = vld [vmem:[#allocation2_spill] sm:$0xff] }
 0x1eb   :  { %v1488_v61 = vadd.f32 %v3119_v31, %v1459_v30  ;;  %v3356_v14 = vmax.f32 %v3354_v18, %v3355_v9 }
 0x1ec   :  { %v1112_v16 = vmax.f32 %v3352_v28, %v1074_v11 }
 0x1ed   :  { %v1003_v5 = vpop.f32.mrf.mxu1  ;;  %v1513_v62 = vmax.f32 %v1488_v61, 0.0 }
 0x1ee   :  { %v1418_v1 = vpop.f32.mrf.mxu2  ;;  %v1348_v15 = vpop.f32.mrf.mxu0 }
 0x1ef   :  { %v1419_v35 = vadd.f32 %v1418_v1, %v1345_v58 }
 0x1f1   :  { %v1460_v7 = vmax.f32 %v1110_v13, %v1419_v35  ;;  %v1076_v56 = vpop.f32.mrf.mxu3  ;;  %v3357_v35 = vld [vmem:[#allocation4_spill] sm:$0xff] }
 0x1f2   :  { %v1077_v53 = vadd.f32 %v1076_v56, %v1003_v5 }
 0x1f3   :  { %v1489_v0 = vadd.f32 %v3119_v31, %v1460_v7 }
 0x1f4   :  { %v1113_v3 = vmax.f32 %v3353_v63, %v1077_v53 }
 0x1f5   :  { %v1005_v4 = vpop.f32.mrf.mxu1  ;;  %v1514_v12 = vmax.f32 %v1489_v0, 0.0 }
 0x1f6   :  { %v1421_v43 = vpop.f32.mrf.mxu2  ;;  %v1350_v51 = vpop.f32.mrf.mxu0 }
 0x1f7   :  { %v2268_v36 = vpack.c.bf16 %v1514_v12, %v1513_v62  ;;  %v1422_v46 = vadd.f32 %v1421_v43, %v1348_v15  ;;  %v3358_v15 = vld [vmem:[#allocation5_spill] sm:$0xff]  ;;  %v3360_v12 = vld [vmem:[#allocation6_spill] sm:$0xff]  ;;  %v3361_v43 = vld [vmem:[#allocation7_spill] sm:$0xff] }
 0x1f8   :  { %v3359_v61 = vmax.f32 %v3357_v35, %v3358_v15  ;;  %v3362_v33 = vmax.f32 %v3360_v12, %v3361_v43 }
 0x1f9   :  { %2296 = vst [vmem:[%s3310_s3 + $0x38] sm:$0xff] %v2268_v36   ;;  %v1078_v50 = vpop.f32.mrf.mxu3  ;;  %v1461_v29 = vmax.f32 %v1111_v6, %v1422_v46 }
 0x1fa   :  { %v1079_v26 = vadd.f32 %v1078_v50, %v1005_v4 }
 0x1fb   :  { %v1490_v10 = vadd.f32 %v3119_v31, %v1461_v29 }
 0x1fc   :  { %v1114_v25 = vmax.f32 %v3356_v14, %v1079_v26 }
 0x1fd   :  { %v1008_v23 = vpop.f32.mrf.mxu1  ;;  %v1515_v42 = vmax.f32 %v1490_v10, 0.0 }
 0x1fe   :  { %v1423_v41 = vpop.f32.mrf.mxu2  ;;  %v1353_v45 = vpop.f32.mrf.mxu0 }
 0x1ff   :  { %v1424_v8 = vadd.f32 %v1423_v41, %v1350_v51 }
 0x201   :  { %v1462_v34 = vmax.f32 %v1112_v16, %v1424_v8  ;;  %v1081_v49 = vpop.f32.mrf.mxu3 }
 0x202   :  { %v1082_v5 = vadd.f32 %v1081_v49, %v1008_v23  ;;  %v3363_v49 = vld [vmem:[#allocation8_spill] sm:$0xff] }
 0x203   :  { %v1491_v54 = vadd.f32 %v3119_v31, %v1462_v34 }
 0x204   :  { %v1115_v7 = vmax.f32 %v3359_v61, %v1082_v5 }
 0x205   :  { %v1010_v17 = vpop.f32.mrf.mxu1  ;;  %v1516_v48 = vmax.f32 %v1491_v54, 0.0  ;;  %v3364_v54 = vld [vmem:[#allocation9_spill] sm:$0xff] }
 0x206   :  { %v1426_v21 = vpop.f32.mrf.mxu2  ;;  %v1355_v27 = vpop.f32.mrf.mxu0 }
 0x207   :  { %v2273_v47 = vpack.c.bf16 %v1516_v48, %v1515_v42  ;;  %v1427_v59 = vadd.f32 %v1426_v21, %v1353_v45 }
 0x209   :  { %2297 = vst [vmem:[%s3310_s3 + $0x40] sm:$0xff] %v2273_v47   ;;  %v1083_v55 = vpop.f32.mrf.mxu3  ;;  %v1463_v19 = vmax.f32 %v1113_v3, %v1427_v59  ;;  %v3366_v47 = vld [vmem:[#allocation10_spill] sm:$0xff] }
 0x20a   :  { %v1084_v56 = vadd.f32 %v1083_v55, %v1010_v17  ;;  %v3365_v17 = vmax.f32 %v3363_v49, %v3364_v54 }
 0x20b   :  { %v1492_v58 = vadd.f32 %v3119_v31, %v1463_v19 }
 0x20c   :  { %v1116_v36 = vmax.f32 %v3362_v33, %v1084_v56 }
 0x20d   :  { %v1013_v20 = vpop.f32.mrf.mxu1  ;;  %v1517_v39 = vmax.f32 %v1492_v58, 0.0 }
 0x20e   :  { %v1428_v40 = vpop.f32.mrf.mxu2  ;;  %v1358_v44 = vpop.f32.mrf.mxu0 }
 0x20f   :  { %v1429_v57 = vadd.f32 %v1428_v40, %v1355_v27  ;;  %v3367_v27 = vld [vmem:[#allocation11_spill] sm:$0xff] }
 0x210   :  { %v3368_v59 = vmax.f32 %v3366_v47, %v3367_v27 }
 0x211   :  { %v1464_v37 = vmax.f32 %v1114_v25, %v1429_v57  ;;  %v1086_v2 = vpop.f32.mrf.mxu3  ;;  %v3369_v25 = vld [vmem:[#allocation12_spill] sm:$0xff]  ;;  %v3370_v57 = vld [vmem:[#allocation13_spill] sm:$0xff] }
 0x212   :  { %v1087_v16 = vadd.f32 %v1086_v2, %v1013_v20 }
 0x213   :  { %v1493_v52 = vadd.f32 %v3119_v31, %v1464_v37 }
 0x214   :  { %v1117_v42 = vmax.f32 %v3365_v17, %v1087_v16 }
 0x215   :  { %v1015_v60 = vpop.f32.mrf.mxu1  ;;  %v1518_v38 = vmax.f32 %v1493_v52, 0.0 }
 0x216   :  { %v1431_v32 = vpop.f32.mrf.mxu2  ;;  %v1360_v1 = vpop.f32.mrf.mxu0 }
 0x217   :  { %v2278_v30 = vpack.c.bf16 %v1518_v38, %v1517_v39  ;;  %v1432_v24 = vadd.f32 %v1431_v32, %v1358_v44  ;;  %v3371_v44 = vmax.f32 %v3369_v25, %v3370_v57 }
 0x219   :  { %2298 = vst [vmem:[%s3310_s3 + $0x48] sm:$0xff] %v2278_v30   ;;  %v1088_v13 = vpop.f32.mrf.mxu3  ;;  %v1465_v4 = vmax.f32 %v1115_v7, %v1432_v24 }
 0x21a   :  { %v1089_v48 = vadd.f32 %v1088_v13, %v1015_v60 }
 0x21b   :  { %v1494_v50 = vadd.f32 %v3119_v31, %v1465_v4 }
 0x21c   :  { %v1118_v55 = vmax.f32 %v3368_v59, %v1089_v48 }
 0x21d   :  { %v1018_v0 = vpop.f32.mrf.mxu1  ;;  %v1519_v29 = vmax.f32 %v1494_v50, 0.0 }
 0x21e   :  { %v1433_v62 = vpop.f32.mrf.mxu2  ;;  %v1363_v46 = vpop.f32.mrf.mxu0 }
 0x21f   :  { %v1434_v51 = vadd.f32 %v1433_v62, %v1360_v1 }
 0x221   :  { %v1466_v22 = vmax.f32 %v1116_v36, %v1434_v51  ;;  %v1091_v6 = vpop.f32.mrf.mxu3 }
 0x222   :  { %v1092_v19 = vadd.f32 %v1091_v6, %v1018_v0 }
 0x223   :  { %v1495_v11 = vadd.f32 %v3119_v31, %v1466_v22 }
 0x224   :  { %v1119_v58 = vmax.f32 %v3371_v44, %v1092_v19 }
 0x225   :  { %v1020_v23 = vpop.f32.mrf.mxu1  ;;  %v1520_v41 = vmax.f32 %v1495_v11, 0.0 }
 0x226   :  { %v1436_v28 = vpop.f32.mrf.mxu2  ;;  %v1365_v45 = vpop.f32.mrf.mxu0 }
 0x227   :  { %v2283_v8 = vpack.c.bf16 %v1520_v41, %v1519_v29  ;;  %v1437_v10 = vadd.f32 %v1436_v28, %v1363_v46 }
 0x229   :  { %2299 = vst [vmem:[%s3310_s3 + $0x50] sm:$0xff] %v2283_v8   ;;  %v1093_v34 = vpop.f32.mrf.mxu3  ;;  %v1467_v21 = vmax.f32 %v1117_v42, %v1437_v10 }
 0x22b   :  { %v1496_v26 = vadd.f32 %v3119_v31, %v1467_v21 }
 0x22d   :  { %v1521_v18 = vmax.f32 %v1496_v26, 0.0 }
 0x22e   :  { %v1438_v53 = vpop.f32.mrf.mxu2  ;;  %v1368_v3 = vpop.f32.mrf.mxu0 }
 0x22f   :  { %v1439_v63 = vadd.f32 %v1438_v53, %v1365_v45 }
 0x231   :  { %v1468_v20 = vmax.f32 %v1118_v55, %v1439_v63 }
 0x233   :  { %v1497_v40 = vadd.f32 %v3119_v31, %v1468_v20 }
 0x235   :  { %v1522_v9 = vmax.f32 %v1497_v40, 0.0 }
 0x236   :  { %v1441_v14 = vpop.f32.mrf.mxu2  ;;  %v1370_v52 = vpop.f32.mrf.mxu0 }
 0x237   :  { %v2288_v37 = vpack.c.bf16 %v1522_v9, %v1521_v18  ;;  %v1442_v2 = vadd.f32 %v1441_v14, %v1368_v3 }
 0x239   :  { %2300 = vst [vmem:[%s3310_s3 + $0x58] sm:$0xff] %v2288_v37   ;;  %v1469_v60 = vmax.f32 %v1119_v58, %v1442_v2 }
 0x23b   :  { %v1498_v39 = vadd.f32 %v3119_v31, %v1469_v60 }
 0x23d   :  { %v1523_v38 = vmax.f32 %v1498_v39, 0.0 }
 0x23e   :  { %v1443_v32 = vpop.f32.mrf.mxu2 }
 0x23f   :  { %v1548_v5 = vpack.c.bf16 %v1523_v38, %v1523_v38 }
 0x241   :  { %1573 = vst [vmem:[%s3310_s3 + $0x60] sm:$0xf] %v1548_v5 }

// kernel: _lambda_.5
= control target key start
LH: loop header
LB: loop body
LE: loop exit
PB: predicated region body
PF: predicated region fallthrough
CT: control target
= control target key end

     0   :  { %vm246_vm0 = vcmask 130048   ;;  %s861_s1 = inlined_call_operand.vmem [shape: bf16[400,128], index: 1, kind: input, shape index: {}]   ;;  %s862_s0 = inlined_call_operand.vmem [shape: bf16[8,400], index: 0, kind: input, shape index: {}]   ;;  %s863_s3 = inlined_call_operand.vmem [shape: bf16[128,128], index: 3, kind: input, shape index: {}]   ;;  %s864_s2 = inlined_call_operand.vmem [shape: f32[1,128], index: 2, kind: input, shape index: {}]   ;;  %s865_s4 = inlined_call_operand.vmem [shape: f32[1,128], index: 4, kind: input, shape index: {}]   ;;  %s866_s5 = inlined_call_operand.vmem [shape: bf16[128,128], index: 5, kind: input, shape index: {}]   ;;  %s867_s6 = inlined_call_operand.vmem [shape: f32[1,128], index: 6, kind: input, shape index: {}]   ;;  %s868_s7 = inlined_call_operand.vmem [shape: f32[8,128], index: 7, kind: output, shape index: {}]  }
   0x1   :  { %v643_v0 = vld [vmem:[%s861_s1 + $0x38] sm:$0xff]  ;;  %v642_v3 = vld [vmem:[%s861_s1 + $0x30] sm:$0xff]  ;;  %v641_v6 = vld [vmem:[%s861_s1 + $0x28] sm:$0xff] }
   0x2   :  { %v651_v1 = vld [vmem:[%s861_s1 + $0x78] sm:$0xff]  ;;  %250 = vmatpush.bf16.msra.mxu0 %v643_v0  ;;  %v650_v4 = vld [vmem:[%s861_s1 + $0x70] sm:$0xff]  ;;  %v649_v7 = vld [vmem:[%s861_s1 + $0x68] sm:$0xff] }
   0x3   :  { %v659_v2 = vld [vmem:[%s861_s1 + $0xb8] sm:$0xff]  ;;  %263 = vmatpush.bf16.msra.mxu1 %v651_v1  ;;  %v658_v5 = vld [vmem:[%s861_s1 + $0xb0] sm:$0xff]  ;;  %v660_v8 = vld [vmem:[%s861_s1 + $0xc0] sm:$0xff] }
   0x4   :  { %276 = vmatpush.bf16.msra.mxu2 %v659_v2  ;;  %v657_v9 = vld [vmem:[%s861_s1 + $0xa8] sm:$0xff]  ;;  %296 = vmatpush.bf16.msra.mxu3 %v660_v8  ;;  %v668_v12 = vld [vmem:[%s863_s3 + $0x38] sm:$0xff]  ;;  %v640_v13 = vld [vmem:[%s861_s1 + $0x20] sm:$0xff] }
   0x5   :  { %v28_v10 = vld [vmem:[%s862_s0 + $0x8] sm:$0xff]  ;;  %v648_v14 = vld [vmem:[%s861_s1 + $0x60] sm:$0xff]  ;;  %v667_v17 = vld [vmem:[%s863_s3 + $0x30] sm:$0xff] }
   0x6   :  { %251 = vmatpush.bf16.msra.mxu0 %v642_v3  ;;  %v88_v11 = vunpack.c.h.b16 %v28_v10  ;;  %v656_v16 = vld [vmem:[%s861_s1 + $0xa0] sm:$0xff]  ;;  %v639_v18 = vld [vmem:[%s861_s1 + $0x18] sm:$0xff]  ;;  %v666_v21 = vld [vmem:[%s863_s3 + $0x28] sm:$0xff]  ;;  %v87_v35 = vunpack.c.l.b16 %v28_v10 }
   0x7   :  { %264 = vmatpush.bf16.msra.mxu1 %v650_v4  ;;  %v647_v19 = vld [vmem:[%s861_s1 + $0x58] sm:$0xff]  ;;  %v638_v22 = vld [vmem:[%s861_s1 + $0x10] sm:$0xff]  ;;  %v665_v25 = vld [vmem:[%s863_s3 + $0x20] sm:$0xff] }
   0x8   :  { %277 = vmatpush.bf16.msra.mxu2 %v658_v5  ;;  %v92_v15 = vpack.c.b16 %v88_v11, %v88_v11  ;;  %371 = vmatpush.bf16.msrb.mxu3 %v668_v12  ;;  %v655_v20 = vld [vmem:[%s861_s1 + $0x98] sm:$0xff]  ;;  %v646_v23 = vld [vmem:[%s861_s1 + $0x50] sm:$0xff]  ;;  %v637_v26 = vld [vmem:[%s861_s1 + $0x8] sm:$0xff]  ;;  %v91_v39 = vpack.c.b16 %v87_v35, %v87_v35 }
   0x9   :  { %v654_v24 = vld [vmem:[%s861_s1 + $0x90] sm:$0xff]  ;;  %v645_v27 = vld [vmem:[%s861_s1 + $0x48] sm:$0xff]  ;;  %v27_v28 = vld [vmem:[%s862_s0] sm:$0xff] }
   0xa   :  { %252 = vmatpush.bf16.msra.mxu0 %v641_v6  ;;  %571 = vmatmul.msk.bf16.vlgmr.msra.gmra.mxu3 %vm246_vm0, %v92_v15  ;;  %v653_v29 = vld [vmem:[%s861_s1 + $0x88] sm:$0xff]  ;;  %v664_v30 = vld [vmem:[%s863_s3 + $0x18] sm:$0xff]  ;;  %v85_v31 = vunpack.c.l.b16 %v27_v28  ;;  %v86_v32 = vunpack.c.h.b16 %v27_v28  ;;  %v636_v33 = vld [vmem:[%s861_s1] sm:$0xff] }
   0xb   :  { %265 = vmatpush.bf16.msra.mxu1 %v649_v7  ;;  %v644_v34 = vld [vmem:[%s861_s1 + $0x40] sm:$0xff]  ;;  %v663_v40 = vld [vmem:[%s863_s3 + $0x10] sm:$0xff]  ;;  %v662_v41 = vld [vmem:[%s863_s3 + $0x8] sm:$0xff] }
   0xc   :  { %278 = vmatpush.bf16.msra.mxu2 %v657_v9  ;;  %372 = vmatpush.bf16.msrb.mxu3 %v667_v17  ;;  %v652_v36 = vld [vmem:[%s861_s1 + $0x80] sm:$0xff]  ;;  %v89_v37 = vpack.c.b16 %v85_v31, %v85_v31  ;;  %v90_v38 = vpack.c.b16 %v86_v32, %v86_v32  ;;  %v676_v43 = vld [vmem:[%s866_s5 + $0x38] sm:$0xff]  ;;  %v675_v45 = vld [vmem:[%s866_s5 + $0x30] sm:$0xff] }
   0xd   :  { %v661_v42 = vld [vmem:[%s863_s3] sm:$0xff]  ;;  %v674_v46 = vld [vmem:[%s866_s5 + $0x28] sm:$0xff]  ;;  %v672_v50 = vld [vmem:[%s866_s5 + $0x18] sm:$0xff] }
   0xe   :  { %253 = vmatpush.bf16.msra.mxu0 %v640_v13  ;;  %v673_v48 = vld [vmem:[%s866_s5 + $0x20] sm:$0xff]  ;;  %v671_v54 = vld [vmem:[%s866_s5 + $0x10] sm:$0xff]  ;;  %v670_v56 = vld [vmem:[%s866_s5 + $0x8] sm:$0xff] }
   0xf   :  { %266 = vmatpush.bf16.msra.mxu1 %v648_v14  ;;  %v677_v49 = vld [vmem:[%s864_s2] ss:$0 sm:$0xff] }
  0x10   :  { %279 = vmatpush.bf16.msra.mxu2 %v656_v16  ;;  %373 = vmatpush.bf16.msrb.mxu3 %v666_v21  ;;  %v669_v0 = vld [vmem:[%s866_s5] sm:$0xff] }
  0x11   :  { %v678_v1 = vld [vmem:[%s865_s4] ss:$0 sm:$0xff] }
  0x12   :  { %254 = vmatpush.bf16.msra.mxu0 %v639_v18  ;;  %v679_v6 = vld [vmem:[%s867_s6] ss:$0 sm:$0xff] }
  0x13   :  { %267 = vmatpush.bf16.msra.mxu1 %v647_v19 }
  0x14   :  { %280 = vmatpush.bf16.msra.mxu2 %v655_v20  ;;  %374 = vmatpush.bf16.msrb.mxu3 %v665_v25 }
  0x16   :  { %255 = vmatpush.bf16.msra.mxu0 %v638_v22 }
  0x17   :  { %268 = vmatpush.bf16.msra.mxu1 %v646_v23 }
  0x18   :  { %281 = vmatpush.bf16.msra.mxu2 %v654_v24  ;;  %375 = vmatpush.bf16.msrb.mxu3 %v664_v30 }
  0x1a   :  { %256 = vmatpush.bf16.msra.mxu0 %v637_v26 }
  0x1b   :  { %269 = vmatpush.bf16.msra.mxu1 %v645_v27 }
  0x1c   :  { %282 = vmatpush.bf16.msra.mxu2 %v653_v29  ;;  %376 = vmatpush.bf16.msrb.mxu3 %v663_v40 }
  0x1e   :  { %257 = vmatpush.bf16.msra.mxu0 %v636_v33 }
  0x1f   :  { %270 = vmatpush.bf16.msra.mxu1 %v644_v34 }
  0x20   :  { %283 = vmatpush.bf16.msra.mxu2 %v652_v36  ;;  %377 = vmatpush.bf16.msrb.mxu3 %v662_v41 }
  0x21   :  { %258 = vmatmul.bf16.vlgmr.msra.gmra.mxu0 %v89_v37 }
  0x22   :  { %271 = vmatmul.bf16.vlgmr.msra.gmra.mxu1 %v90_v38  ;;  %453 = vmatpush.bf16.msrb.mxu0 %v676_v43 }
  0x23   :  { %284 = vmatmul.bf16.vlgmr.msra.gmra.mxu2 %v91_v39 }
  0x24   :  { %378 = vmatpush.bf16.msrb.mxu3 %v661_v42 }
  0x26   :  { %454 = vmatpush.bf16.msrb.mxu0 %v675_v45 }
  0x2a   :  { %455 = vmatpush.bf16.msrb.mxu0 %v674_v46 }
  0x2e   :  { %456 = vmatpush.bf16.msrb.mxu0 %v673_v48 }
  0x32   :  { %457 = vmatpush.bf16.msrb.mxu0 %v672_v50 }
  0x36   :  { %458 = vmatpush.bf16.msrb.mxu0 %v671_v54 }
  0x3a   :  { %459 = vmatpush.bf16.msrb.mxu0 %v670_v56 }
  0x3e   :  { %460 = vmatpush.bf16.msrb.mxu0 %v669_v0 }
  0x8d   :  { %v298_v44 = vpop.f32.mrf.mxu3 }
  0x95   :  { %v300_v47 = vpop.f32.mrf.mxu3 }
  0x9e   :  { %v259_v51 = vpop.f32.mrf.mxu0 }
  0x9f   :  { %v272_v52 = vpop.f32.mrf.mxu1  ;;  %v260_v53 = vadd.f32 %v677_v49, %v259_v51 }
  0xa1   :  { %v273_v55 = vadd.f32 %v272_v52, %v260_v53 }
  0xa6   :  { %v285_v57 = vpop.f32.mrf.mxu2  ;;  %v261_v59 = vpop.f32.mrf.mxu0 }
  0xa7   :  { %v286_v58 = vadd.f32 %v285_v57, %v273_v55  ;;  %v274_v60 = vpop.f32.mrf.mxu1 }
  0xa9   :  { %v299_v61 = vadd.f32 %v298_v44, %v286_v58 }
  0xab   :  { %v302_v62 = vpack.c.bf16 %v299_v61, %v299_v61 }
  0xad   :  { %379 = vmatmul.bf16.vlgmr.msrb.gmra.mxu3 %v302_v62 }
  0xae   :  { %v287_v63 = vpop.f32.mrf.mxu2 }
 0x130   :  { %v380_v2 = vpop.f32.mrf.mxu3 }
 0x131   :  { %v381_v3 = vadd.f32 %v678_v1, %v380_v2 }
 0x133   :  { %v384_v4 = vpack.c.bf16 %v381_v3, %v381_v3 }
 0x135   :  { %461 = vmatmul.bf16.vlgmr.msrb.gmra.mxu0 %v384_v4 }
 0x138   :  { %v382_v5 = vpop.f32.mrf.mxu3 }
 0x1b2   :  { %v462_v7 = vpop.f32.mrf.mxu0 }
 0x1b3   :  { %v463_v8 = vadd.f32 %v679_v6, %v462_v7 }
 0x1b5   :  { %466 = vst [vmem:[%s868_s7] sm:$0xff] %v463_v8 }
 0x1ba   :  { %v464_v9 = vpop.f32.mrf.mxu0 }

</bundles_post_ra>
